<compile_context>
chip_gen: v6e
topology: v6e:2x2x1
jax: 0.10.0
libtpu: 0.0.40
codegen_flags: <defaults>
</compile_context>

<pallas_src>
import math

import jax
import jax.numpy as jnp
import numpy as np
from jax import lax
from jax.experimental import pallas as pl
from jax.experimental.pallas import tpu as pltpu

EPS = 1e-8      # GlobalLayerNorm eps (matches the reference module)
LN_EPS = 1e-5   # nn.LayerNorm default eps (ChannelWiseLayerNorm)

# ---- hyper-parameters: reentry_net(N, L, B, H, P, X, R, C, M, V) ----
N_ENC = 16      # N: audio encoder filters
L_WIN = 8       # L: audio encoder window (stride L//2)
B_CH  = 16      # B: bottleneck channels
H_CH  = 16      # H: TCN hidden channels
P_KER = 3       # P: depthwise kernel size (odd -> "same" length)
X_BLK = 2       # X: temporal blocks per TCN repeat (dilation 2**x)
R_REP = 1       # R: repeats (kept at 1 -- see TODO below)
C_SPK = 2       # C: unused in forward
M_SPK = 4       # M: speaker classes (unused when R == 1)
V_DIM = 16      # V: visual feature dim
VH    = 512     # VisualConv1D hidden size (hard-coded default in the reference)
VE_BLOCKS = 5   # videoEncoder default R=5 blocks

BATCH   = 2
T_AUDIO = 292
T_VIDEO = 2                                    # 32 * T_VIDEO = 64 <= K
HOP     = L_WIN // 2                           # 4
K_FRAMES = (T_AUDIO - L_WIN) // HOP + 1        # 72
T_CONV   = HOP * (K_FRAMES - 1) + L_WIN        # 292 == T_AUDIO

# ---- packed "small" weight blob layout: (SMALL_ROWS, 16), row offsets are
# multiples of 8 so every in-kernel slice starts on a sublane-tile boundary.
OFF_ENC   = 0      # enc_w          (N, L)  in cols 0:L
OFF_PA    = 16     # PA = proj0_a @ a_conv @ diag(ln_w)       (B, N)
OFF_PAB   = 32     # pa_b = proj0_a @ a_conv @ ln_b           (B, 1) in col 0
OFF_PB    = 48     # PB = proj0_b @ v_adapt                   (B, V)
OFF_VGBV  = 64     # visual gLN_0 gamma/beta, 2 rows per block (5 blocks)
OFF_TCN   = 80     # per TCN block: w1 (16) + w2 (16) + misc (16) rows
TCN_ROWS  = 48
OFF_DMASK = 176    # decoder mask_conv1x1  (N, B)
OFF_DBAS  = 192    # decoder basis_signals (L, N)
SMALL_ROWS = 200

# TODO(synk): SpeakerEncoder and slsyn_net are not defined in the reference
# source and the pretrained slsyn checkpoint load is out of scope; with
# R=1 / pretrained_v=1 those code paths are never executed in forward().


# ----------------------------------------------------------------------------
# in-kernel helpers
# ----------------------------------------------------------------------------
def _gln(y, gamma, beta):
    """GlobalLayerNorm over the whole per-sample tile, single-pass statistics."""
    inv_n = 1.0 / float(y.size)
    mean = jnp.sum(y) * inv_n
    var = jnp.sum(y * y) * inv_n - mean * mean
    return gamma * (y - mean) * jax.lax.rsqrt(var + EPS) + beta


def _shift_lanes(x, s):
    """y[:, t] = x[:, t - s] with zero fill (s > 0 shifts right, s < 0 left)."""
    C, T = x.shape
    if s == 0:
        return x
    z = jnp.zeros((C, abs(s)), x.dtype)
    if s > 0:
        return jnp.concatenate([z, x[:, :T - s]], axis=1)
    return jnp.concatenate([x[:, -s:], z], axis=1)


# ----------------------------------------------------------------------------
# fused kernel: single invocation, both batch samples unrolled in the body
# ----------------------------------------------------------------------------
def fused_kernel(xr_ref, v_ref, small_ref, vis_ref, interp_ref, ola_ref, out_ref):
    f32 = jnp.float32
    tdims = (((1,), (1,)), ((), ()))        # contract last dims -> A @ B^T

    enc_w     = small_ref[OFF_ENC:OFF_ENC + N_ENC, 0:L_WIN]        # (N, L)
    pa        = small_ref[OFF_PA:OFF_PA + B_CH, 0:N_ENC]           # (B, N)
    pa_b      = small_ref[OFF_PAB:OFF_PAB + B_CH, 0:1]             # (B, 1)
    pb        = small_ref[OFF_PB:OFF_PB + B_CH, 0:V_DIM]           # (B, V)
    dec_mask  = small_ref[OFF_DMASK:OFF_DMASK + N_ENC, 0:B_CH]     # (N, B)
    dec_basis = small_ref[OFF_DBAS:OFF_DBAS + L_WIN, 0:N_ENC]      # (L, N)
    interp    = interp_ref[...]                                    # (Tv, K)
    ola       = ola_ref[...]                                       # (K, T_conv)

    ests = []
    for b in range(BATCH):
        # ---- audioEncoder with in-kernel framing: frames[k, l] = mix[hop*k+l]
        xr = xr_ref[b]                                             # (K+1, hop)
        frames = jnp.concatenate(
            [xr[0:K_FRAMES, :], xr[1:K_FRAMES + 1, :]], axis=1)    # (K, L)
        mixture_w = jnp.maximum(
            lax.dot_general(enc_w, frames, tdims,
                            preferred_element_type=f32), 0.0)      # (N, K)

        # ---- cLN (per-timestep over channels); affine + Conv1d(N,B) +
        #      projection_0[:, :B] are folded into PA / pa_b at init time.
        s1 = jnp.sum(mixture_w, axis=0, keepdims=True) * (1.0 / N_ENC)
        s2 = jnp.sum(mixture_w * mixture_w, axis=0, keepdims=True) * (1.0 / N_ENC)
        xn = (mixture_w - s1) * jax.lax.rsqrt(s2 - s1 * s1 + LN_EPS)  # (N, K)

        # ---- videoEncoder: 5 VisualConv1D blocks, time-major (Tv, C)
        vt = v_ref[b]                                              # (Tv, V)
        for blk in range(VE_BLOCKS):
            w1t  = vis_ref[blk, 0:16, :]                           # (V, VH)
            g1   = vis_ref[blk, 16:17, :]
            b1   = vis_ref[blk, 17:18, :]
            a_pr = vis_ref[blk, 18:19, :]
            g2   = vis_ref[blk, 19:20, :]
            b2   = vis_ref[blk, 20:21, :]
            dw   = vis_ref[blk, 21:24, :]                          # (3, VH)
            w2   = vis_ref[blk, 24:40, :]                          # (V, VH)
            gv   = small_ref[OFF_VGBV + 2 * blk:OFF_VGBV + 2 * blk + 2, 0:V_DIM]

            y = jnp.maximum(vt, 0.0)
            y = _gln(y, gv[0:1, :], gv[1:2, :])
            h = jnp.dot(y, w1t, preferred_element_type=f32)        # (Tv, VH)
            h = jnp.maximum(h, 0.0)
            h = _gln(h, g1, b1)
            # depthwise conv k=3, pad=1 over time (sublane shifts, no scratch)
            zr = jnp.zeros((1, VH), f32)
            h_prev = jnp.concatenate([zr, h[:-1, :]], axis=0)      # h[t-1]
            h_next = jnp.concatenate([h[1:, :], zr], axis=0)       # h[t+1]
            h = dw[0:1, :] * h_prev + dw[1:2, :] * h + dw[2:3, :] * h_next
            h = jnp.where(h > 0, h, a_pr * h)                      # PReLU
            h = _gln(h, g2, b2)
            vt = lax.dot_general(h, w2, tdims,
                                 preferred_element_type=f32) + vt  # (Tv, V)

        # ---- v_adapt + projection_0[:, B:] folded into PB; linear interp +
        #      pad-to-K done as two VPU broadcast-FMAs.
        q = lax.dot_general(pb, vt, tdims, preferred_element_type=f32)  # (B, Tv)
        x = (jnp.dot(pa, xn, preferred_element_type=f32) + pa_b
             + q[:, 0:1] * interp[0:1, :] + q[:, 1:2] * interp[1:2, :])  # (B, K)

        # ---- TCN_block: X TemporalBlocks, dilation 2**xi
        for xi in range(X_BLK):
            d = 2 ** xi
            base = OFF_TCN + TCN_ROWS * xi
            w1   = small_ref[base:base + H_CH, 0:B_CH]             # (H, B)
            w2   = small_ref[base + 16:base + 32, 0:H_CH]          # (B, H)
            misc = small_ref[base + 32:base + 48, 0:9]             # (H, 9)
            a1, g1, b1 = misc[:, 0:1], misc[:, 1:2], misc[:, 2:3]
            a2, g2, b2 = misc[:, 3:4], misc[:, 4:5], misc[:, 5:6]
            dw = misc[:, 6:9]                                      # (H, P)

            h = jnp.dot(w1, x, preferred_element_type=f32)         # (H, K)
            h = jnp.where(h > 0, h, a1 * h)
            h = _gln(h, g1, b1)
            # depthwise "same" conv, time on lanes, via shifted adds
            h = (dw[:, 0:1] * _shift_lanes(h, d) + dw[:, 1:2] * h
                 + dw[:, 2:3] * _shift_lanes(h, -d))
            h = jnp.where(h > 0, h, a2 * h)
            h = _gln(h, g2, b2)
            x = jnp.dot(w2, h, preferred_element_type=f32) + x     # (B, K)

        # ---- audioDecoder + in-kernel overlap-and-add (lane-dense (1, 292))
        m = jnp.maximum(jnp.dot(dec_mask, x, preferred_element_type=f32), 0.0)
        m = m * mixture_w                                          # (N, K)
        fr = jnp.dot(dec_basis, m, preferred_element_type=f32)     # (L, K)
        yb = jnp.dot(fr, ola, preferred_element_type=f32)          # (L, T_conv)
        est = yb[0:1, :]
        for l in range(1, L_WIN):
            est = est + jnp.concatenate(
                [jnp.zeros((1, l), f32), yb[l:l + 1, :T_CONV - l]], axis=1)
        ests.append(est)

    out_ref[...] = jnp.concatenate(ests, axis=0)                   # (B, T_conv)


# ----------------------------------------------------------------------------
# pallas_call wrapper (no gather / scatter / transpose / pad glue around it)
# ----------------------------------------------------------------------------
def reentry_net_forward(params, mixture, v):
    T_origin = mixture.shape[-1]
    Bn = mixture.shape[0]
    assert T_origin == T_AUDIO and Bn == BATCH and T_origin % HOP == 0
    xr = mixture.reshape(Bn, T_AUDIO // HOP, HOP)      # free (bitcast) reshape

    args = (xr, v, params["small"], params["vis"], params["interp"], params["ola"])
    in_specs = [
        pl.BlockSpec(tuple(a.shape), lambda i, nd=a.ndim: (0,) * nd) for a in args
    ]

    est = pl.pallas_call(
        fused_kernel,
        out_shape=jax.ShapeDtypeStruct((Bn, T_CONV), jnp.float32),
        grid=(1,),
        in_specs=in_specs,
        out_specs=pl.BlockSpec((Bn, T_CONV), lambda i: (0, 0)),
        compiler_params=pltpu.CompilerParams(
            dimension_semantics=("arbitrary",)),
    )(*args)

    if T_origin > T_CONV:                              # no-op for these shapes
        est = jnp.pad(est, ((0, 0), (0, T_origin - T_CONV)))
    spks = []   # R == 1 -> speaker-logit list stays empty, as in the reference
    return spks, est


# ----------------------------------------------------------------------------
# deterministic synthetic parameters, folded + packed for the fused kernel
# ----------------------------------------------------------------------------
def _xavier(key, fan_out, fan_in, shape=None):
    std = math.sqrt(2.0 / (fan_in + fan_out))
    if shape is None:
        shape = (fan_out, fan_in)
    return std * jax.random.normal(key, shape, jnp.float32)


def _affine(key, c):
    k1, k2 = jax.random.split(key)
    g = 1.0 + 0.05 * jax.random.normal(k1, (c,), jnp.float32)
    b = 0.05 * jax.random.normal(k2, (c,), jnp.float32)
    return g, b


def _interp_pad_matrix(t_in, t_out, k_total):
    """F.interpolate(mode='linear', align_corners=False) t_in->t_out as a
    (t_in, k_total) matrix; columns t_out..k_total-1 are zero (== F.pad)."""
    m = np.zeros((t_in, k_total), dtype=np.float32)
    scale = t_in / t_out
    for i in range(t_out):
        src = max((i + 0.5) * scale - 0.5, 0.0)
        i0 = min(int(np.floor(src)), t_in - 1)
        i1 = min(i0 + 1, t_in - 1)
        lam = src - i0
        m[i0, i] += 1.0 - lam
        m[i1, i] += lam
    return jnp.asarray(m)


def _ola_upsample_matrix(k, hop, t_conv):
    """0/1 matrix placing frame k at output column hop*k (stride-hop upsample)."""
    m = np.zeros((k, t_conv), dtype=np.float32)
    for kk in range(k):
        m[kk, hop * kk] = 1.0
    return jnp.asarray(m)


def init_params(key):
    keys = iter(jax.random.split(key, 256))
    nk = lambda: next(keys)
    f32 = jnp.float32

    # ---- logical parameters (mirroring the PyTorch module structure) ----
    enc_w = _xavier(nk(), N_ENC, L_WIN)                      # conv1d_U (N,1,L)
    ln_w, ln_b = _affine(nk(), N_ENC)                        # ChannelWiseLayerNorm
    a_conv = _xavier(nk(), B_CH, N_ENC)                      # Conv1d(N,B,1)

    vis_blocks, vis_gbv = [], []
    for _ in range(VE_BLOCKS):
        g0, b0 = _affine(nk(), V_DIM)
        vis_gbv.append(np.stack([np.asarray(g0), np.asarray(b0)], axis=0))
        w1 = _xavier(nk(), VH, V_DIM)                        # conv1x1 (VH, V)
        g1, b1 = _affine(nk(), VH)
        dw = _xavier(nk(), VH, P_KER, shape=(P_KER, VH))     # depthwise taps
        a_pr = jnp.full((VH,), 0.25, f32)                    # nn.PReLU() default
        g2, b2 = _affine(nk(), VH)
        w2 = _xavier(nk(), V_DIM, VH)                        # pw_conv (V, VH)
        blob = jnp.concatenate(
            [w1.T, g1[None], b1[None], a_pr[None], g2[None], b2[None], dw, w2],
            axis=0)                                          # (40, VH)
        vis_blocks.append(blob)
    vis = jnp.stack(vis_blocks)                              # (5, 40, VH)

    v_adapt = _xavier(nk(), B_CH, V_DIM)                     # Conv1d(V,B,1)
    interp = _interp_pad_matrix(T_VIDEO, 32 * T_VIDEO, K_FRAMES)
    proj0 = _xavier(nk(), B_CH, 2 * B_CH)                    # Conv1d(2B,B,1)
    proj0_a, proj0_b = proj0[:, :B_CH], proj0[:, B_CH:]

    tcn = []
    for _ in range(X_BLK):
        w1 = _xavier(nk(), H_CH, B_CH)
        a1 = jnp.full((H_CH,), 0.25, f32)
        g1, b1 = _affine(nk(), H_CH)
        dw = _xavier(nk(), H_CH, P_KER, shape=(H_CH, P_KER))
        a2 = jnp.full((H_CH,), 0.25, f32)
        g2, b2 = _affine(nk(), H_CH)
        w2 = _xavier(nk(), B_CH, H_CH)
        tcn.append((w1, w2, a1, g1, b1, a2, g2, b2, dw))

    dec_mask = _xavier(nk(), N_ENC, B_CH)                    # mask_conv1x1 (N,B,1)
    dec_basis = _xavier(nk(), L_WIN, N_ENC)                  # basis_signals (L,N)

    # ---- exact algebraic folds of the linear chains in the reference graph ----
    pa = proj0_a @ (a_conv * ln_w[None, :])                  # (B, N)
    pa_b = proj0_a @ (a_conv @ ln_b)                         # (B,)
    pb = proj0_b @ v_adapt                                   # (B, V)

    # ---- pack the small weights into one (SMALL_ROWS, 16) blob ----
    small = np.zeros((SMALL_ROWS, 16), np.float32)
    small[OFF_ENC:OFF_ENC + N_ENC, 0:L_WIN] = np.asarray(enc_w)
    small[OFF_PA:OFF_PA + B_CH, 0:N_ENC] = np.asarray(pa)
    small[OFF_PAB:OFF_PAB + B_CH, 0] = np.asarray(pa_b)
    small[OFF_PB:OFF_PB + B_CH, 0:V_DIM] = np.asarray(pb)
    for blk in range(VE_BLOCKS):
        small[OFF_VGBV + 2 * blk:OFF_VGBV + 2 * blk + 2, 0:V_DIM] = vis_gbv[blk]
    for xi, (w1, w2, a1, g1, b1, a2, g2, b2, dw) in enumerate(tcn):
        base = OFF_TCN + TCN_ROWS * xi
        small[base:base + H_CH, 0:B_CH] = np.asarray(w1)
        small[base + 16:base + 32, 0:H_CH] = np.asarray(w2)
        misc = np.stack([np.asarray(t) for t in (a1, g1, b1, a2, g2, b2)], axis=1)
        small[base + 32:base + 48, 0:6] = misc
        small[base + 32:base + 48, 6:9] = np.asarray(dw)
    small[OFF_DMASK:OFF_DMASK + N_ENC, 0:B_CH] = np.asarray(dec_mask)
    small[OFF_DBAS:OFF_DBAS + L_WIN, 0:N_ENC] = np.asarray(dec_basis)

    return {
        "small": jnp.asarray(small),
        "vis": vis,
        "interp": interp,
        "ola": _ola_upsample_matrix(K_FRAMES, HOP, T_CONV),
    }


if __name__ == "__main__":
    root = jax.random.PRNGKey(0)
    k_params, k_mix, k_vid = jax.random.split(root, 3)
    params = init_params(k_params)
    mixture = jax.random.normal(k_mix, (BATCH, T_AUDIO), jnp.float32)
    v = jax.random.normal(k_vid, (BATCH, T_VIDEO, V_DIM), jnp.float32)

    fwd = jax.jit(reentry_net_forward)
    spks, est_source = fwd(params, mixture, v)
    est_source = jax.block_until_ready(est_source)

    assert est_source.shape == (BATCH, T_AUDIO), est_source.shape
    assert spks == []   # R == 1 -> no speaker logits, matching the reference loop
    assert bool(jnp.all(jnp.isfinite(est_source)))
    print("KERNEL_OK")
</pallas_src>

<mosaic_0001>
module attributes {stable_mosaic.version = 11 : i64} {
  func.func @fused_kernel(%arg0: i32, %arg1: memref<2x73x4xf32, #tpu.memory_space<vmem>>, %arg2: memref<2x2x16xf32, #tpu.memory_space<vmem>>, %arg3: memref<200x16xf32, #tpu.memory_space<vmem>>, %arg4: memref<5x40x512xf32, #tpu.memory_space<vmem>>, %arg5: memref<2x72xf32, #tpu.memory_space<vmem>>, %arg6: memref<72x292xf32, #tpu.memory_space<vmem>>, %arg7: memref<2x292xf32, #tpu.memory_space<vmem>>) attributes {dimension_semantics = [#tpu.dimension_semantics<arbitrary>], iteration_bounds = array<i64: 1>, scalar_prefetch = 0 : i64, scratch_operands = 0 : i64, tpu.core_type = #tpu.core_type<tc>, window_params = [{pipeline_mode = #tpu.pipeline_mode<synchronous>, transform_indices = @transform_0, window_bounds = array<i64: 2, 73, 4>}, {pipeline_mode = #tpu.pipeline_mode<synchronous>, transform_indices = @transform_1, window_bounds = array<i64: 2, 2, 16>}, {pipeline_mode = #tpu.pipeline_mode<synchronous>, transform_indices = @transform_2, window_bounds = array<i64: 200, 16>}, {pipeline_mode = #tpu.pipeline_mode<synchronous>, transform_indices = @transform_3, window_bounds = array<i64: 5, 40, 512>}, {pipeline_mode = #tpu.pipeline_mode<synchronous>, transform_indices = @transform_4, window_bounds = array<i64: 2, 72>}, {pipeline_mode = #tpu.pipeline_mode<synchronous>, transform_indices = @transform_5, window_bounds = array<i64: 72, 292>}, {pipeline_mode = #tpu.pipeline_mode<synchronous>, transform_indices = @transform_6, window_bounds = array<i64: 2, 292>}]} {
    %c0 = arith.constant 0 : index
    %c0_0 = arith.constant 0 : index
    %0 = vector.load %arg3[%c0, %c0_0] : memref<200x16xf32, #tpu.memory_space<vmem>>, vector<16x8xf32>
    %c16 = arith.constant 16 : index
    %c0_1 = arith.constant 0 : index
    %1 = vector.load %arg3[%c16, %c0_1] : memref<200x16xf32, #tpu.memory_space<vmem>>, vector<16x16xf32>
    %c32 = arith.constant 32 : index
    %c0_2 = arith.constant 0 : index
    %2 = vector.load %arg3[%c32, %c0_2] : memref<200x16xf32, #tpu.memory_space<vmem>>, vector<16x1xf32>
    %c48 = arith.constant 48 : index
    %c0_3 = arith.constant 0 : index
    %3 = vector.load %arg3[%c48, %c0_3] : memref<200x16xf32, #tpu.memory_space<vmem>>, vector<16x16xf32>
    %c176 = arith.constant 176 : index
    %c0_4 = arith.constant 0 : index
    %4 = vector.load %arg3[%c176, %c0_4] : memref<200x16xf32, #tpu.memory_space<vmem>>, vector<16x16xf32>
    %c192 = arith.constant 192 : index
    %c0_5 = arith.constant 0 : index
    %5 = vector.load %arg3[%c192, %c0_5] : memref<200x16xf32, #tpu.memory_space<vmem>>, vector<8x16xf32>
    %c0_6 = arith.constant 0 : index
    %c0_7 = arith.constant 0 : index
    %6 = vector.load %arg5[%c0_6, %c0_7] : memref<2x72xf32, #tpu.memory_space<vmem>>, vector<2x72xf32>
    %c0_8 = arith.constant 0 : index
    %c0_9 = arith.constant 0 : index
    %7 = vector.load %arg6[%c0_8, %c0_9] : memref<72x292xf32, #tpu.memory_space<vmem>>, vector<72x292xf32>
    %c0_10 = arith.constant 0 : index
    %c0_11 = arith.constant 0 : index
    %c0_12 = arith.constant 0 : index
    %8 = vector.load %arg1[%c0_10, %c0_11, %c0_12] : memref<2x73x4xf32, #tpu.memory_space<vmem>>, vector<1x73x4xf32>
    %9 = vector.shape_cast %8 : vector<1x73x4xf32> to vector<73x4xf32>
    %10 = vector.extract_strided_slice %9 {offsets = [0, 0], sizes = [72, 4], strides = [1, 1]} : vector<73x4xf32> to vector<72x4xf32>
    %11 = vector.extract_strided_slice %9 {offsets = [1, 0], sizes = [72, 4], strides = [1, 1]} : vector<73x4xf32> to vector<72x4xf32>
    %12 = tpu.concatenate %10, %11 in 1 : vector<72x4xf32>, vector<72x4xf32> -> vector<72x8xf32>
    %cst = arith.constant dense<0.000000e+00> : vector<16x72xf32>
    %13 = tpu.matmul %0, %12, %cst {dimension_numbers = #tpu.dot_dimension_numbers<[1], [1], [0], [0], [0, 0, 1, 0], [], []>} : vector<16x8xf32>, vector<72x8xf32>, vector<16x72xf32> -> vector<16x72xf32>
    %cst_13 = arith.constant 0.000000e+00 : f32
    %14 = vector.broadcast %cst_13 : f32 to vector<16x72xf32>
    %15 = arith.maximumf %13, %14 : vector<16x72xf32>
    %cst_14 = arith.constant dense<0.000000e+00> : vector<72xf32>
    %16 = vector.multi_reduction <add>, %15, %cst_14 [0] : vector<16x72xf32> to vector<72xf32>
    %17 = vector.shape_cast %16 : vector<72xf32> to vector<1x72xf32>
    %cst_15 = arith.constant 6.250000e-02 : f32
    %18 = vector.broadcast %cst_15 : f32 to vector<1x72xf32>
    %19 = arith.mulf %17, %18 : vector<1x72xf32>
    %20 = arith.mulf %15, %15 : vector<16x72xf32>
    %cst_16 = arith.constant dense<0.000000e+00> : vector<72xf32>
    %21 = vector.multi_reduction <add>, %20, %cst_16 [0] : vector<16x72xf32> to vector<72xf32>
    %22 = vector.shape_cast %21 : vector<72xf32> to vector<1x72xf32>
    %cst_17 = arith.constant 6.250000e-02 : f32
    %23 = vector.broadcast %cst_17 : f32 to vector<1x72xf32>
    %24 = arith.mulf %22, %23 : vector<1x72xf32>
    %25 = vector.broadcast %19 : vector<1x72xf32> to vector<16x72xf32>
    %26 = arith.subf %15, %25 : vector<16x72xf32>
    %27 = arith.mulf %19, %19 : vector<1x72xf32>
    %28 = arith.subf %24, %27 : vector<1x72xf32>
    %cst_18 = arith.constant 9.99999974E-6 : f32
    %29 = vector.broadcast %cst_18 : f32 to vector<1x72xf32>
    %30 = arith.addf %28, %29 : vector<1x72xf32>
    %31 = math.rsqrt %30 : vector<1x72xf32>
    %32 = vector.broadcast %31 : vector<1x72xf32> to vector<16x72xf32>
    %33 = arith.mulf %26, %32 : vector<16x72xf32>
    %c0_19 = arith.constant 0 : index
    %c0_20 = arith.constant 0 : index
    %c0_21 = arith.constant 0 : index
    %34 = vector.load %arg2[%c0_19, %c0_20, %c0_21] : memref<2x2x16xf32, #tpu.memory_space<vmem>>, vector<1x2x16xf32>
    %35 = vector.shape_cast %34 : vector<1x2x16xf32> to vector<2x16xf32>
    %c0_22 = arith.constant 0 : index
    %c0_23 = arith.constant 0 : index
    %c0_24 = arith.constant 0 : index
    %36 = vector.load %arg4[%c0_22, %c0_23, %c0_24] : memref<5x40x512xf32, #tpu.memory_space<vmem>>, vector<1x16x512xf32>
    %37 = vector.shape_cast %36 : vector<1x16x512xf32> to vector<16x512xf32>
    %c0_25 = arith.constant 0 : index
    %c16_26 = arith.constant 16 : index
    %c0_27 = arith.constant 0 : index
    %38 = vector.load %arg4[%c0_25, %c16_26, %c0_27] : memref<5x40x512xf32, #tpu.memory_space<vmem>>, vector<1x1x512xf32>
    %39 = vector.shape_cast %38 : vector<1x1x512xf32> to vector<1x512xf32>
    %c0_28 = arith.constant 0 : index
    %c17 = arith.constant 17 : index
    %c0_29 = arith.constant 0 : index
    %40 = vector.load %arg4[%c0_28, %c17, %c0_29] : memref<5x40x512xf32, #tpu.memory_space<vmem>>, vector<1x1x512xf32>
    %41 = vector.shape_cast %40 : vector<1x1x512xf32> to vector<1x512xf32>
    %c0_30 = arith.constant 0 : index
    %c18 = arith.constant 18 : index
    %c0_31 = arith.constant 0 : index
    %42 = vector.load %arg4[%c0_30, %c18, %c0_31] : memref<5x40x512xf32, #tpu.memory_space<vmem>>, vector<1x1x512xf32>
    %43 = vector.shape_cast %42 : vector<1x1x512xf32> to vector<1x512xf32>
    %c0_32 = arith.constant 0 : index
    %c19 = arith.constant 19 : index
    %c0_33 = arith.constant 0 : index
    %44 = vector.load %arg4[%c0_32, %c19, %c0_33] : memref<5x40x512xf32, #tpu.memory_space<vmem>>, vector<1x1x512xf32>
    %45 = vector.shape_cast %44 : vector<1x1x512xf32> to vector<1x512xf32>
    %c0_34 = arith.constant 0 : index
    %c20 = arith.constant 20 : index
    %c0_35 = arith.constant 0 : index
    %46 = vector.load %arg4[%c0_34, %c20, %c0_35] : memref<5x40x512xf32, #tpu.memory_space<vmem>>, vector<1x1x512xf32>
    %47 = vector.shape_cast %46 : vector<1x1x512xf32> to vector<1x512xf32>
    %c0_36 = arith.constant 0 : index
    %c21 = arith.constant 21 : index
    %c0_37 = arith.constant 0 : index
    %48 = vector.load %arg4[%c0_36, %c21, %c0_37] : memref<5x40x512xf32, #tpu.memory_space<vmem>>, vector<1x3x512xf32>
    %49 = vector.shape_cast %48 : vector<1x3x512xf32> to vector<3x512xf32>
    %c0_38 = arith.constant 0 : index
    %c24 = arith.constant 24 : index
    %c0_39 = arith.constant 0 : index
    %50 = vector.load %arg4[%c0_38, %c24, %c0_39] : memref<5x40x512xf32, #tpu.memory_space<vmem>>, vector<1x16x512xf32>
    %51 = vector.shape_cast %50 : vector<1x16x512xf32> to vector<16x512xf32>
    %c64 = arith.constant 64 : index
    %c0_40 = arith.constant 0 : index
    %52 = vector.load %arg3[%c64, %c0_40] : memref<200x16xf32, #tpu.memory_space<vmem>>, vector<2x16xf32>
    %cst_41 = arith.constant 0.000000e+00 : f32
    %53 = vector.broadcast %cst_41 : f32 to vector<2x16xf32>
    %54 = arith.maximumf %35, %53 : vector<2x16xf32>
    %55 = vector.extract_strided_slice %52 {offsets = [0, 0], sizes = [1, 16], strides = [1, 1]} : vector<2x16xf32> to vector<1x16xf32>
    %56 = vector.extract_strided_slice %52 {offsets = [1, 0], sizes = [1, 16], strides = [1, 1]} : vector<2x16xf32> to vector<1x16xf32>
    %57 = vector.shape_cast %54 : vector<2x16xf32> to vector<1x2x16xf32>
    %cst_42 = arith.constant dense<0.000000e+00> : vector<1xf32>
    %58 = vector.multi_reduction <add>, %57, %cst_42 [1, 2] : vector<1x2x16xf32> to vector<1xf32>
    %59 = vector.shape_cast %58 : vector<1xf32> to vector<1x1x1xf32>
    %60 = vector.extract %59[0, 0, 0] : f32 from vector<1x1x1xf32>
    %cst_43 = arith.constant 3.125000e-02 : f32
    %61 = arith.mulf %60, %cst_43 : f32
    %62 = arith.mulf %54, %54 : vector<2x16xf32>
    %63 = vector.shape_cast %62 : vector<2x16xf32> to vector<1x2x16xf32>
    %cst_44 = arith.constant dense<0.000000e+00> : vector<1xf32>
    %64 = vector.multi_reduction <add>, %63, %cst_44 [1, 2] : vector<1x2x16xf32> to vector<1xf32>
    %65 = vector.shape_cast %64 : vector<1xf32> to vector<1x1x1xf32>
    %66 = vector.extract %65[0, 0, 0] : f32 from vector<1x1x1xf32>
    %cst_45 = arith.constant 3.125000e-02 : f32
    %67 = arith.mulf %66, %cst_45 : f32
    %68 = arith.mulf %61, %61 : f32
    %69 = arith.subf %67, %68 : f32
    %70 = vector.broadcast %61 : f32 to vector<2x16xf32>
    %71 = arith.subf %54, %70 : vector<2x16xf32>
    %72 = vector.broadcast %55 : vector<1x16xf32> to vector<2x16xf32>
    %73 = arith.mulf %72, %71 : vector<2x16xf32>
    %cst_46 = arith.constant 9.99999993E-9 : f32
    %74 = arith.addf %69, %cst_46 : f32
    %75 = math.rsqrt %74 : f32
    %76 = vector.broadcast %75 : f32 to vector<2x16xf32>
    %77 = arith.mulf %73, %76 : vector<2x16xf32>
    %78 = vector.broadcast %56 : vector<1x16xf32> to vector<2x16xf32>
    %79 = arith.addf %77, %78 : vector<2x16xf32>
    %cst_47 = arith.constant dense<0.000000e+00> : vector<2x512xf32>
    %80 = tpu.matmul %79, %37, %cst_47 {dimension_numbers = #tpu.dot_dimension_numbers<[1], [0], [0], [1], [0, 0, 1, 1], [], []>} : vector<2x16xf32>, vector<16x512xf32>, vector<2x512xf32> -> vector<2x512xf32>
    %cst_48 = arith.constant 0.000000e+00 : f32
    %81 = vector.broadcast %cst_48 : f32 to vector<2x512xf32>
    %82 = arith.maximumf %80, %81 : vector<2x512xf32>
    %83 = vector.shape_cast %82 : vector<2x512xf32> to vector<1x2x512xf32>
    %cst_49 = arith.constant dense<0.000000e+00> : vector<1xf32>
    %84 = vector.multi_reduction <add>, %83, %cst_49 [1, 2] : vector<1x2x512xf32> to vector<1xf32>
    %85 = vector.shape_cast %84 : vector<1xf32> to vector<1x1x1xf32>
    %86 = vector.extract %85[0, 0, 0] : f32 from vector<1x1x1xf32>
    %cst_50 = arith.constant 9.765625E-4 : f32
    %87 = arith.mulf %86, %cst_50 : f32
    %88 = arith.mulf %82, %82 : vector<2x512xf32>
    %89 = vector.shape_cast %88 : vector<2x512xf32> to vector<1x2x512xf32>
    %cst_51 = arith.constant dense<0.000000e+00> : vector<1xf32>
    %90 = vector.multi_reduction <add>, %89, %cst_51 [1, 2] : vector<1x2x512xf32> to vector<1xf32>
    %91 = vector.shape_cast %90 : vector<1xf32> to vector<1x1x1xf32>
    %92 = vector.extract %91[0, 0, 0] : f32 from vector<1x1x1xf32>
    %cst_52 = arith.constant 9.765625E-4 : f32
    %93 = arith.mulf %92, %cst_52 : f32
    %94 = arith.mulf %87, %87 : f32
    %95 = arith.subf %93, %94 : f32
    %96 = vector.broadcast %87 : f32 to vector<2x512xf32>
    %97 = arith.subf %82, %96 : vector<2x512xf32>
    %98 = vector.broadcast %39 : vector<1x512xf32> to vector<2x512xf32>
    %99 = arith.mulf %98, %97 : vector<2x512xf32>
    %cst_53 = arith.constant 9.99999993E-9 : f32
    %100 = arith.addf %95, %cst_53 : f32
    %101 = math.rsqrt %100 : f32
    %102 = vector.broadcast %101 : f32 to vector<2x512xf32>
    %103 = arith.mulf %99, %102 : vector<2x512xf32>
    %104 = vector.broadcast %41 : vector<1x512xf32> to vector<2x512xf32>
    %105 = arith.addf %103, %104 : vector<2x512xf32>
    %cst_54 = arith.constant 0.000000e+00 : f32
    %106 = vector.broadcast %cst_54 : f32 to vector<1x512xf32>
    %107 = vector.extract_strided_slice %105 {offsets = [0, 0], sizes = [1, 512], strides = [1, 1]} : vector<2x512xf32> to vector<1x512xf32>
    %108 = tpu.concatenate %106, %107 in 0 : vector<1x512xf32>, vector<1x512xf32> -> vector<2x512xf32>
    %109 = vector.extract_strided_slice %105 {offsets = [1, 0], sizes = [1, 512], strides = [1, 1]} : vector<2x512xf32> to vector<1x512xf32>
    %110 = tpu.concatenate %109, %106 in 0 : vector<1x512xf32>, vector<1x512xf32> -> vector<2x512xf32>
    %111 = vector.extract_strided_slice %49 {offsets = [0, 0], sizes = [1, 512], strides = [1, 1]} : vector<3x512xf32> to vector<1x512xf32>
    %112 = vector.broadcast %111 : vector<1x512xf32> to vector<2x512xf32>
    %113 = arith.mulf %112, %108 : vector<2x512xf32>
    %114 = vector.extract_strided_slice %49 {offsets = [1, 0], sizes = [1, 512], strides = [1, 1]} : vector<3x512xf32> to vector<1x512xf32>
    %115 = vector.broadcast %114 : vector<1x512xf32> to vector<2x512xf32>
    %116 = arith.mulf %115, %105 : vector<2x512xf32>
    %117 = arith.addf %113, %116 : vector<2x512xf32>
    %118 = vector.extract_strided_slice %49 {offsets = [2, 0], sizes = [1, 512], strides = [1, 1]} : vector<3x512xf32> to vector<1x512xf32>
    %119 = vector.broadcast %118 : vector<1x512xf32> to vector<2x512xf32>
    %120 = arith.mulf %119, %110 : vector<2x512xf32>
    %121 = arith.addf %117, %120 : vector<2x512xf32>
    %cst_55 = arith.constant 0.000000e+00 : f32
    %122 = vector.broadcast %cst_55 : f32 to vector<2x512xf32>
    %123 = arith.cmpf ogt, %121, %122 : vector<2x512xf32>
    %124 = vector.broadcast %43 : vector<1x512xf32> to vector<2x512xf32>
    %125 = arith.mulf %124, %121 : vector<2x512xf32>
    %126 = arith.select %123, %121, %125 : vector<2x512xi1>, vector<2x512xf32>
    %127 = vector.shape_cast %126 : vector<2x512xf32> to vector<1x2x512xf32>
    %cst_56 = arith.constant dense<0.000000e+00> : vector<1xf32>
    %128 = vector.multi_reduction <add>, %127, %cst_56 [1, 2] : vector<1x2x512xf32> to vector<1xf32>
    %129 = vector.shape_cast %128 : vector<1xf32> to vector<1x1x1xf32>
    %130 = vector.extract %129[0, 0, 0] : f32 from vector<1x1x1xf32>
    %cst_57 = arith.constant 9.765625E-4 : f32
    %131 = arith.mulf %130, %cst_57 : f32
    %132 = arith.mulf %126, %126 : vector<2x512xf32>
    %133 = vector.shape_cast %132 : vector<2x512xf32> to vector<1x2x512xf32>
    %cst_58 = arith.constant dense<0.000000e+00> : vector<1xf32>
    %134 = vector.multi_reduction <add>, %133, %cst_58 [1, 2] : vector<1x2x512xf32> to vector<1xf32>
    %135 = vector.shape_cast %134 : vector<1xf32> to vector<1x1x1xf32>
    %136 = vector.extract %135[0, 0, 0] : f32 from vector<1x1x1xf32>
    %cst_59 = arith.constant 9.765625E-4 : f32
    %137 = arith.mulf %136, %cst_59 : f32
    %138 = arith.mulf %131, %131 : f32
    %139 = arith.subf %137, %138 : f32
    %140 = vector.broadcast %131 : f32 to vector<2x512xf32>
    %141 = arith.subf %126, %140 : vector<2x512xf32>
    %142 = vector.broadcast %45 : vector<1x512xf32> to vector<2x512xf32>
    %143 = arith.mulf %142, %141 : vector<2x512xf32>
    %cst_60 = arith.constant 9.99999993E-9 : f32
    %144 = arith.addf %139, %cst_60 : f32
    %145 = math.rsqrt %144 : f32
    %146 = vector.broadcast %145 : f32 to vector<2x512xf32>
    %147 = arith.mulf %143, %146 : vector<2x512xf32>
    %148 = vector.broadcast %47 : vector<1x512xf32> to vector<2x512xf32>
    %149 = arith.addf %147, %148 : vector<2x512xf32>
    %cst_61 = arith.constant dense<0.000000e+00> : vector<2x16xf32>
    %150 = tpu.matmul %149, %51, %cst_61 {dimension_numbers = #tpu.dot_dimension_numbers<[1], [1], [0], [0], [0, 0, 1, 0], [], []>} : vector<2x512xf32>, vector<16x512xf32>, vector<2x16xf32> -> vector<2x16xf32>
    %151 = arith.addf %150, %35 : vector<2x16xf32>
    %c1 = arith.constant 1 : index
    %c0_62 = arith.constant 0 : index
    %c0_63 = arith.constant 0 : index
    %152 = vector.load %arg4[%c1, %c0_62, %c0_63] : memref<5x40x512xf32, #tpu.memory_space<vmem>>, vector<1x16x512xf32>
    %153 = vector.shape_cast %152 : vector<1x16x512xf32> to vector<16x512xf32>
    %c1_64 = arith.constant 1 : index
    %c16_65 = arith.constant 16 : index
    %c0_66 = arith.constant 0 : index
    %154 = vector.load %arg4[%c1_64, %c16_65, %c0_66] : memref<5x40x512xf32, #tpu.memory_space<vmem>>, vector<1x1x512xf32>
    %155 = vector.shape_cast %154 : vector<1x1x512xf32> to vector<1x512xf32>
    %c1_67 = arith.constant 1 : index
    %c17_68 = arith.constant 17 : index
    %c0_69 = arith.constant 0 : index
    %156 = vector.load %arg4[%c1_67, %c17_68, %c0_69] : memref<5x40x512xf32, #tpu.memory_space<vmem>>, vector<1x1x512xf32>
    %157 = vector.shape_cast %156 : vector<1x1x512xf32> to vector<1x512xf32>
    %c1_70 = arith.constant 1 : index
    %c18_71 = arith.constant 18 : index
    %c0_72 = arith.constant 0 : index
    %158 = vector.load %arg4[%c1_70, %c18_71, %c0_72] : memref<5x40x512xf32, #tpu.memory_space<vmem>>, vector<1x1x512xf32>
    %159 = vector.shape_cast %158 : vector<1x1x512xf32> to vector<1x512xf32>
    %c1_73 = arith.constant 1 : index
    %c19_74 = arith.constant 19 : index
    %c0_75 = arith.constant 0 : index
    %160 = vector.load %arg4[%c1_73, %c19_74, %c0_75] : memref<5x40x512xf32, #tpu.memory_space<vmem>>, vector<1x1x512xf32>
    %161 = vector.shape_cast %160 : vector<1x1x512xf32> to vector<1x512xf32>
    %c1_76 = arith.constant 1 : index
    %c20_77 = arith.constant 20 : index
    %c0_78 = arith.constant 0 : index
    %162 = vector.load %arg4[%c1_76, %c20_77, %c0_78] : memref<5x40x512xf32, #tpu.memory_space<vmem>>, vector<1x1x512xf32>
    %163 = vector.shape_cast %162 : vector<1x1x512xf32> to vector<1x512xf32>
    %c1_79 = arith.constant 1 : index
    %c21_80 = arith.constant 21 : index
    %c0_81 = arith.constant 0 : index
    %164 = vector.load %arg4[%c1_79, %c21_80, %c0_81] : memref<5x40x512xf32, #tpu.memory_space<vmem>>, vector<1x3x512xf32>
    %165 = vector.shape_cast %164 : vector<1x3x512xf32> to vector<3x512xf32>
    %c1_82 = arith.constant 1 : index
    %c24_83 = arith.constant 24 : index
    %c0_84 = arith.constant 0 : index
    %166 = vector.load %arg4[%c1_82, %c24_83, %c0_84] : memref<5x40x512xf32, #tpu.memory_space<vmem>>, vector<1x16x512xf32>
    %167 = vector.shape_cast %166 : vector<1x16x512xf32> to vector<16x512xf32>
    %c66 = arith.constant 66 : index
    %c0_85 = arith.constant 0 : index
    %168 = vector.load %arg3[%c66, %c0_85] : memref<200x16xf32, #tpu.memory_space<vmem>>, vector<2x16xf32>
    %cst_86 = arith.constant 0.000000e+00 : f32
    %169 = vector.broadcast %cst_86 : f32 to vector<2x16xf32>
    %170 = arith.maximumf %151, %169 : vector<2x16xf32>
    %171 = vector.extract_strided_slice %168 {offsets = [0, 0], sizes = [1, 16], strides = [1, 1]} : vector<2x16xf32> to vector<1x16xf32>
    %172 = vector.extract_strided_slice %168 {offsets = [1, 0], sizes = [1, 16], strides = [1, 1]} : vector<2x16xf32> to vector<1x16xf32>
    %173 = vector.shape_cast %170 : vector<2x16xf32> to vector<1x2x16xf32>
    %cst_87 = arith.constant dense<0.000000e+00> : vector<1xf32>
    %174 = vector.multi_reduction <add>, %173, %cst_87 [1, 2] : vector<1x2x16xf32> to vector<1xf32>
    %175 = vector.shape_cast %174 : vector<1xf32> to vector<1x1x1xf32>
    %176 = vector.extract %175[0, 0, 0] : f32 from vector<1x1x1xf32>
    %cst_88 = arith.constant 3.125000e-02 : f32
    %177 = arith.mulf %176, %cst_88 : f32
    %178 = arith.mulf %170, %170 : vector<2x16xf32>
    %179 = vector.shape_cast %178 : vector<2x16xf32> to vector<1x2x16xf32>
    %cst_89 = arith.constant dense<0.000000e+00> : vector<1xf32>
    %180 = vector.multi_reduction <add>, %179, %cst_89 [1, 2] : vector<1x2x16xf32> to vector<1xf32>
    %181 = vector.shape_cast %180 : vector<1xf32> to vector<1x1x1xf32>
    %182 = vector.extract %181[0, 0, 0] : f32 from vector<1x1x1xf32>
    %cst_90 = arith.constant 3.125000e-02 : f32
    %183 = arith.mulf %182, %cst_90 : f32
    %184 = arith.mulf %177, %177 : f32
    %185 = arith.subf %183, %184 : f32
    %186 = vector.broadcast %177 : f32 to vector<2x16xf32>
    %187 = arith.subf %170, %186 : vector<2x16xf32>
    %188 = vector.broadcast %171 : vector<1x16xf32> to vector<2x16xf32>
    %189 = arith.mulf %188, %187 : vector<2x16xf32>
    %cst_91 = arith.constant 9.99999993E-9 : f32
    %190 = arith.addf %185, %cst_91 : f32
    %191 = math.rsqrt %190 : f32
    %192 = vector.broadcast %191 : f32 to vector<2x16xf32>
    %193 = arith.mulf %189, %192 : vector<2x16xf32>
    %194 = vector.broadcast %172 : vector<1x16xf32> to vector<2x16xf32>
    %195 = arith.addf %193, %194 : vector<2x16xf32>
    %cst_92 = arith.constant dense<0.000000e+00> : vector<2x512xf32>
    %196 = tpu.matmul %195, %153, %cst_92 {dimension_numbers = #tpu.dot_dimension_numbers<[1], [0], [0], [1], [0, 0, 1, 1], [], []>} : vector<2x16xf32>, vector<16x512xf32>, vector<2x512xf32> -> vector<2x512xf32>
    %cst_93 = arith.constant 0.000000e+00 : f32
    %197 = vector.broadcast %cst_93 : f32 to vector<2x512xf32>
    %198 = arith.maximumf %196, %197 : vector<2x512xf32>
    %199 = vector.shape_cast %198 : vector<2x512xf32> to vector<1x2x512xf32>
    %cst_94 = arith.constant dense<0.000000e+00> : vector<1xf32>
    %200 = vector.multi_reduction <add>, %199, %cst_94 [1, 2] : vector<1x2x512xf32> to vector<1xf32>
    %201 = vector.shape_cast %200 : vector<1xf32> to vector<1x1x1xf32>
    %202 = vector.extract %201[0, 0, 0] : f32 from vector<1x1x1xf32>
    %cst_95 = arith.constant 9.765625E-4 : f32
    %203 = arith.mulf %202, %cst_95 : f32
    %204 = arith.mulf %198, %198 : vector<2x512xf32>
    %205 = vector.shape_cast %204 : vector<2x512xf32> to vector<1x2x512xf32>
    %cst_96 = arith.constant dense<0.000000e+00> : vector<1xf32>
    %206 = vector.multi_reduction <add>, %205, %cst_96 [1, 2] : vector<1x2x512xf32> to vector<1xf32>
    %207 = vector.shape_cast %206 : vector<1xf32> to vector<1x1x1xf32>
    %208 = vector.extract %207[0, 0, 0] : f32 from vector<1x1x1xf32>
    %cst_97 = arith.constant 9.765625E-4 : f32
    %209 = arith.mulf %208, %cst_97 : f32
    %210 = arith.mulf %203, %203 : f32
    %211 = arith.subf %209, %210 : f32
    %212 = vector.broadcast %203 : f32 to vector<2x512xf32>
    %213 = arith.subf %198, %212 : vector<2x512xf32>
    %214 = vector.broadcast %155 : vector<1x512xf32> to vector<2x512xf32>
    %215 = arith.mulf %214, %213 : vector<2x512xf32>
    %cst_98 = arith.constant 9.99999993E-9 : f32
    %216 = arith.addf %211, %cst_98 : f32
    %217 = math.rsqrt %216 : f32
    %218 = vector.broadcast %217 : f32 to vector<2x512xf32>
    %219 = arith.mulf %215, %218 : vector<2x512xf32>
    %220 = vector.broadcast %157 : vector<1x512xf32> to vector<2x512xf32>
    %221 = arith.addf %219, %220 : vector<2x512xf32>
    %cst_99 = arith.constant 0.000000e+00 : f32
    %222 = vector.broadcast %cst_99 : f32 to vector<1x512xf32>
    %223 = vector.extract_strided_slice %221 {offsets = [0, 0], sizes = [1, 512], strides = [1, 1]} : vector<2x512xf32> to vector<1x512xf32>
    %224 = tpu.concatenate %222, %223 in 0 : vector<1x512xf32>, vector<1x512xf32> -> vector<2x512xf32>
    %225 = vector.extract_strided_slice %221 {offsets = [1, 0], sizes = [1, 512], strides = [1, 1]} : vector<2x512xf32> to vector<1x512xf32>
    %226 = tpu.concatenate %225, %222 in 0 : vector<1x512xf32>, vector<1x512xf32> -> vector<2x512xf32>
    %227 = vector.extract_strided_slice %165 {offsets = [0, 0], sizes = [1, 512], strides = [1, 1]} : vector<3x512xf32> to vector<1x512xf32>
    %228 = vector.broadcast %227 : vector<1x512xf32> to vector<2x512xf32>
    %229 = arith.mulf %228, %224 : vector<2x512xf32>
    %230 = vector.extract_strided_slice %165 {offsets = [1, 0], sizes = [1, 512], strides = [1, 1]} : vector<3x512xf32> to vector<1x512xf32>
    %231 = vector.broadcast %230 : vector<1x512xf32> to vector<2x512xf32>
    %232 = arith.mulf %231, %221 : vector<2x512xf32>
    %233 = arith.addf %229, %232 : vector<2x512xf32>
    %234 = vector.extract_strided_slice %165 {offsets = [2, 0], sizes = [1, 512], strides = [1, 1]} : vector<3x512xf32> to vector<1x512xf32>
    %235 = vector.broadcast %234 : vector<1x512xf32> to vector<2x512xf32>
    %236 = arith.mulf %235, %226 : vector<2x512xf32>
    %237 = arith.addf %233, %236 : vector<2x512xf32>
    %cst_100 = arith.constant 0.000000e+00 : f32
    %238 = vector.broadcast %cst_100 : f32 to vector<2x512xf32>
    %239 = arith.cmpf ogt, %237, %238 : vector<2x512xf32>
    %240 = vector.broadcast %159 : vector<1x512xf32> to vector<2x512xf32>
    %241 = arith.mulf %240, %237 : vector<2x512xf32>
    %242 = arith.select %239, %237, %241 : vector<2x512xi1>, vector<2x512xf32>
    %243 = vector.shape_cast %242 : vector<2x512xf32> to vector<1x2x512xf32>
    %cst_101 = arith.constant dense<0.000000e+00> : vector<1xf32>
    %244 = vector.multi_reduction <add>, %243, %cst_101 [1, 2] : vector<1x2x512xf32> to vector<1xf32>
    %245 = vector.shape_cast %244 : vector<1xf32> to vector<1x1x1xf32>
    %246 = vector.extract %245[0, 0, 0] : f32 from vector<1x1x1xf32>
    %cst_102 = arith.constant 9.765625E-4 : f32
    %247 = arith.mulf %246, %cst_102 : f32
    %248 = arith.mulf %242, %242 : vector<2x512xf32>
    %249 = vector.shape_cast %248 : vector<2x512xf32> to vector<1x2x512xf32>
    %cst_103 = arith.constant dense<0.000000e+00> : vector<1xf32>
    %250 = vector.multi_reduction <add>, %249, %cst_103 [1, 2] : vector<1x2x512xf32> to vector<1xf32>
    %251 = vector.shape_cast %250 : vector<1xf32> to vector<1x1x1xf32>
    %252 = vector.extract %251[0, 0, 0] : f32 from vector<1x1x1xf32>
    %cst_104 = arith.constant 9.765625E-4 : f32
    %253 = arith.mulf %252, %cst_104 : f32
    %254 = arith.mulf %247, %247 : f32
    %255 = arith.subf %253, %254 : f32
    %256 = vector.broadcast %247 : f32 to vector<2x512xf32>
    %257 = arith.subf %242, %256 : vector<2x512xf32>
    %258 = vector.broadcast %161 : vector<1x512xf32> to vector<2x512xf32>
    %259 = arith.mulf %258, %257 : vector<2x512xf32>
    %cst_105 = arith.constant 9.99999993E-9 : f32
    %260 = arith.addf %255, %cst_105 : f32
    %261 = math.rsqrt %260 : f32
    %262 = vector.broadcast %261 : f32 to vector<2x512xf32>
    %263 = arith.mulf %259, %262 : vector<2x512xf32>
    %264 = vector.broadcast %163 : vector<1x512xf32> to vector<2x512xf32>
    %265 = arith.addf %263, %264 : vector<2x512xf32>
    %cst_106 = arith.constant dense<0.000000e+00> : vector<2x16xf32>
    %266 = tpu.matmul %265, %167, %cst_106 {dimension_numbers = #tpu.dot_dimension_numbers<[1], [1], [0], [0], [0, 0, 1, 0], [], []>} : vector<2x512xf32>, vector<16x512xf32>, vector<2x16xf32> -> vector<2x16xf32>
    %267 = arith.addf %266, %151 : vector<2x16xf32>
    %c2 = arith.constant 2 : index
    %c0_107 = arith.constant 0 : index
    %c0_108 = arith.constant 0 : index
    %268 = vector.load %arg4[%c2, %c0_107, %c0_108] : memref<5x40x512xf32, #tpu.memory_space<vmem>>, vector<1x16x512xf32>
    %269 = vector.shape_cast %268 : vector<1x16x512xf32> to vector<16x512xf32>
    %c2_109 = arith.constant 2 : index
    %c16_110 = arith.constant 16 : index
    %c0_111 = arith.constant 0 : index
    %270 = vector.load %arg4[%c2_109, %c16_110, %c0_111] : memref<5x40x512xf32, #tpu.memory_space<vmem>>, vector<1x1x512xf32>
    %271 = vector.shape_cast %270 : vector<1x1x512xf32> to vector<1x512xf32>
    %c2_112 = arith.constant 2 : index
    %c17_113 = arith.constant 17 : index
    %c0_114 = arith.constant 0 : index
    %272 = vector.load %arg4[%c2_112, %c17_113, %c0_114] : memref<5x40x512xf32, #tpu.memory_space<vmem>>, vector<1x1x512xf32>
    %273 = vector.shape_cast %272 : vector<1x1x512xf32> to vector<1x512xf32>
    %c2_115 = arith.constant 2 : index
    %c18_116 = arith.constant 18 : index
    %c0_117 = arith.constant 0 : index
    %274 = vector.load %arg4[%c2_115, %c18_116, %c0_117] : memref<5x40x512xf32, #tpu.memory_space<vmem>>, vector<1x1x512xf32>
    %275 = vector.shape_cast %274 : vector<1x1x512xf32> to vector<1x512xf32>
    %c2_118 = arith.constant 2 : index
    %c19_119 = arith.constant 19 : index
    %c0_120 = arith.constant 0 : index
    %276 = vector.load %arg4[%c2_118, %c19_119, %c0_120] : memref<5x40x512xf32, #tpu.memory_space<vmem>>, vector<1x1x512xf32>
    %277 = vector.shape_cast %276 : vector<1x1x512xf32> to vector<1x512xf32>
    %c2_121 = arith.constant 2 : index
    %c20_122 = arith.constant 20 : index
    %c0_123 = arith.constant 0 : index
    %278 = vector.load %arg4[%c2_121, %c20_122, %c0_123] : memref<5x40x512xf32, #tpu.memory_space<vmem>>, vector<1x1x512xf32>
    %279 = vector.shape_cast %278 : vector<1x1x512xf32> to vector<1x512xf32>
    %c2_124 = arith.constant 2 : index
    %c21_125 = arith.constant 21 : index
    %c0_126 = arith.constant 0 : index
    %280 = vector.load %arg4[%c2_124, %c21_125, %c0_126] : memref<5x40x512xf32, #tpu.memory_space<vmem>>, vector<1x3x512xf32>
    %281 = vector.shape_cast %280 : vector<1x3x512xf32> to vector<3x512xf32>
    %c2_127 = arith.constant 2 : index
    %c24_128 = arith.constant 24 : index
    %c0_129 = arith.constant 0 : index
    %282 = vector.load %arg4[%c2_127, %c24_128, %c0_129] : memref<5x40x512xf32, #tpu.memory_space<vmem>>, vector<1x16x512xf32>
    %283 = vector.shape_cast %282 : vector<1x16x512xf32> to vector<16x512xf32>
    %c68 = arith.constant 68 : index
    %c0_130 = arith.constant 0 : index
    %284 = vector.load %arg3[%c68, %c0_130] : memref<200x16xf32, #tpu.memory_space<vmem>>, vector<2x16xf32>
    %cst_131 = arith.constant 0.000000e+00 : f32
    %285 = vector.broadcast %cst_131 : f32 to vector<2x16xf32>
    %286 = arith.maximumf %267, %285 : vector<2x16xf32>
    %287 = vector.extract_strided_slice %284 {offsets = [0, 0], sizes = [1, 16], strides = [1, 1]} : vector<2x16xf32> to vector<1x16xf32>
    %288 = vector.extract_strided_slice %284 {offsets = [1, 0], sizes = [1, 16], strides = [1, 1]} : vector<2x16xf32> to vector<1x16xf32>
    %289 = vector.shape_cast %286 : vector<2x16xf32> to vector<1x2x16xf32>
    %cst_132 = arith.constant dense<0.000000e+00> : vector<1xf32>
    %290 = vector.multi_reduction <add>, %289, %cst_132 [1, 2] : vector<1x2x16xf32> to vector<1xf32>
    %291 = vector.shape_cast %290 : vector<1xf32> to vector<1x1x1xf32>
    %292 = vector.extract %291[0, 0, 0] : f32 from vector<1x1x1xf32>
    %cst_133 = arith.constant 3.125000e-02 : f32
    %293 = arith.mulf %292, %cst_133 : f32
    %294 = arith.mulf %286, %286 : vector<2x16xf32>
    %295 = vector.shape_cast %294 : vector<2x16xf32> to vector<1x2x16xf32>
    %cst_134 = arith.constant dense<0.000000e+00> : vector<1xf32>
    %296 = vector.multi_reduction <add>, %295, %cst_134 [1, 2] : vector<1x2x16xf32> to vector<1xf32>
    %297 = vector.shape_cast %296 : vector<1xf32> to vector<1x1x1xf32>
    %298 = vector.extract %297[0, 0, 0] : f32 from vector<1x1x1xf32>
    %cst_135 = arith.constant 3.125000e-02 : f32
    %299 = arith.mulf %298, %cst_135 : f32
    %300 = arith.mulf %293, %293 : f32
    %301 = arith.subf %299, %300 : f32
    %302 = vector.broadcast %293 : f32 to vector<2x16xf32>
    %303 = arith.subf %286, %302 : vector<2x16xf32>
    %304 = vector.broadcast %287 : vector<1x16xf32> to vector<2x16xf32>
    %305 = arith.mulf %304, %303 : vector<2x16xf32>
    %cst_136 = arith.constant 9.99999993E-9 : f32
    %306 = arith.addf %301, %cst_136 : f32
    %307 = math.rsqrt %306 : f32
    %308 = vector.broadcast %307 : f32 to vector<2x16xf32>
    %309 = arith.mulf %305, %308 : vector<2x16xf32>
    %310 = vector.broadcast %288 : vector<1x16xf32> to vector<2x16xf32>
    %311 = arith.addf %309, %310 : vector<2x16xf32>
    %cst_137 = arith.constant dense<0.000000e+00> : vector<2x512xf32>
    %312 = tpu.matmul %311, %269, %cst_137 {dimension_numbers = #tpu.dot_dimension_numbers<[1], [0], [0], [1], [0, 0, 1, 1], [], []>} : vector<2x16xf32>, vector<16x512xf32>, vector<2x512xf32> -> vector<2x512xf32>
    %cst_138 = arith.constant 0.000000e+00 : f32
    %313 = vector.broadcast %cst_138 : f32 to vector<2x512xf32>
    %314 = arith.maximumf %312, %313 : vector<2x512xf32>
    %315 = vector.shape_cast %314 : vector<2x512xf32> to vector<1x2x512xf32>
    %cst_139 = arith.constant dense<0.000000e+00> : vector<1xf32>
    %316 = vector.multi_reduction <add>, %315, %cst_139 [1, 2] : vector<1x2x512xf32> to vector<1xf32>
    %317 = vector.shape_cast %316 : vector<1xf32> to vector<1x1x1xf32>
    %318 = vector.extract %317[0, 0, 0] : f32 from vector<1x1x1xf32>
    %cst_140 = arith.constant 9.765625E-4 : f32
    %319 = arith.mulf %318, %cst_140 : f32
    %320 = arith.mulf %314, %314 : vector<2x512xf32>
    %321 = vector.shape_cast %320 : vector<2x512xf32> to vector<1x2x512xf32>
    %cst_141 = arith.constant dense<0.000000e+00> : vector<1xf32>
    %322 = vector.multi_reduction <add>, %321, %cst_141 [1, 2] : vector<1x2x512xf32> to vector<1xf32>
    %323 = vector.shape_cast %322 : vector<1xf32> to vector<1x1x1xf32>
    %324 = vector.extract %323[0, 0, 0] : f32 from vector<1x1x1xf32>
    %cst_142 = arith.constant 9.765625E-4 : f32
    %325 = arith.mulf %324, %cst_142 : f32
    %326 = arith.mulf %319, %319 : f32
    %327 = arith.subf %325, %326 : f32
    %328 = vector.broadcast %319 : f32 to vector<2x512xf32>
    %329 = arith.subf %314, %328 : vector<2x512xf32>
    %330 = vector.broadcast %271 : vector<1x512xf32> to vector<2x512xf32>
    %331 = arith.mulf %330, %329 : vector<2x512xf32>
    %cst_143 = arith.constant 9.99999993E-9 : f32
    %332 = arith.addf %327, %cst_143 : f32
    %333 = math.rsqrt %332 : f32
    %334 = vector.broadcast %333 : f32 to vector<2x512xf32>
    %335 = arith.mulf %331, %334 : vector<2x512xf32>
    %336 = vector.broadcast %273 : vector<1x512xf32> to vector<2x512xf32>
    %337 = arith.addf %335, %336 : vector<2x512xf32>
    %cst_144 = arith.constant 0.000000e+00 : f32
    %338 = vector.broadcast %cst_144 : f32 to vector<1x512xf32>
    %339 = vector.extract_strided_slice %337 {offsets = [0, 0], sizes = [1, 512], strides = [1, 1]} : vector<2x512xf32> to vector<1x512xf32>
    %340 = tpu.concatenate %338, %339 in 0 : vector<1x512xf32>, vector<1x512xf32> -> vector<2x512xf32>
    %341 = vector.extract_strided_slice %337 {offsets = [1, 0], sizes = [1, 512], strides = [1, 1]} : vector<2x512xf32> to vector<1x512xf32>
    %342 = tpu.concatenate %341, %338 in 0 : vector<1x512xf32>, vector<1x512xf32> -> vector<2x512xf32>
    %343 = vector.extract_strided_slice %281 {offsets = [0, 0], sizes = [1, 512], strides = [1, 1]} : vector<3x512xf32> to vector<1x512xf32>
    %344 = vector.broadcast %343 : vector<1x512xf32> to vector<2x512xf32>
    %345 = arith.mulf %344, %340 : vector<2x512xf32>
    %346 = vector.extract_strided_slice %281 {offsets = [1, 0], sizes = [1, 512], strides = [1, 1]} : vector<3x512xf32> to vector<1x512xf32>
    %347 = vector.broadcast %346 : vector<1x512xf32> to vector<2x512xf32>
    %348 = arith.mulf %347, %337 : vector<2x512xf32>
    %349 = arith.addf %345, %348 : vector<2x512xf32>
    %350 = vector.extract_strided_slice %281 {offsets = [2, 0], sizes = [1, 512], strides = [1, 1]} : vector<3x512xf32> to vector<1x512xf32>
    %351 = vector.broadcast %350 : vector<1x512xf32> to vector<2x512xf32>
    %352 = arith.mulf %351, %342 : vector<2x512xf32>
    %353 = arith.addf %349, %352 : vector<2x512xf32>
    %cst_145 = arith.constant 0.000000e+00 : f32
    %354 = vector.broadcast %cst_145 : f32 to vector<2x512xf32>
    %355 = arith.cmpf ogt, %353, %354 : vector<2x512xf32>
    %356 = vector.broadcast %275 : vector<1x512xf32> to vector<2x512xf32>
    %357 = arith.mulf %356, %353 : vector<2x512xf32>
    %358 = arith.select %355, %353, %357 : vector<2x512xi1>, vector<2x512xf32>
    %359 = vector.shape_cast %358 : vector<2x512xf32> to vector<1x2x512xf32>
    %cst_146 = arith.constant dense<0.000000e+00> : vector<1xf32>
    %360 = vector.multi_reduction <add>, %359, %cst_146 [1, 2] : vector<1x2x512xf32> to vector<1xf32>
    %361 = vector.shape_cast %360 : vector<1xf32> to vector<1x1x1xf32>
    %362 = vector.extract %361[0, 0, 0] : f32 from vector<1x1x1xf32>
    %cst_147 = arith.constant 9.765625E-4 : f32
    %363 = arith.mulf %362, %cst_147 : f32
    %364 = arith.mulf %358, %358 : vector<2x512xf32>
    %365 = vector.shape_cast %364 : vector<2x512xf32> to vector<1x2x512xf32>
    %cst_148 = arith.constant dense<0.000000e+00> : vector<1xf32>
    %366 = vector.multi_reduction <add>, %365, %cst_148 [1, 2] : vector<1x2x512xf32> to vector<1xf32>
    %367 = vector.shape_cast %366 : vector<1xf32> to vector<1x1x1xf32>
    %368 = vector.extract %367[0, 0, 0] : f32 from vector<1x1x1xf32>
    %cst_149 = arith.constant 9.765625E-4 : f32
    %369 = arith.mulf %368, %cst_149 : f32
    %370 = arith.mulf %363, %363 : f32
    %371 = arith.subf %369, %370 : f32
    %372 = vector.broadcast %363 : f32 to vector<2x512xf32>
    %373 = arith.subf %358, %372 : vector<2x512xf32>
    %374 = vector.broadcast %277 : vector<1x512xf32> to vector<2x512xf32>
    %375 = arith.mulf %374, %373 : vector<2x512xf32>
    %cst_150 = arith.constant 9.99999993E-9 : f32
    %376 = arith.addf %371, %cst_150 : f32
    %377 = math.rsqrt %376 : f32
    %378 = vector.broadcast %377 : f32 to vector<2x512xf32>
    %379 = arith.mulf %375, %378 : vector<2x512xf32>
    %380 = vector.broadcast %279 : vector<1x512xf32> to vector<2x512xf32>
    %381 = arith.addf %379, %380 : vector<2x512xf32>
    %cst_151 = arith.constant dense<0.000000e+00> : vector<2x16xf32>
    %382 = tpu.matmul %381, %283, %cst_151 {dimension_numbers = #tpu.dot_dimension_numbers<[1], [1], [0], [0], [0, 0, 1, 0], [], []>} : vector<2x512xf32>, vector<16x512xf32>, vector<2x16xf32> -> vector<2x16xf32>
    %383 = arith.addf %382, %267 : vector<2x16xf32>
    %c3 = arith.constant 3 : index
    %c0_152 = arith.constant 0 : index
    %c0_153 = arith.constant 0 : index
    %384 = vector.load %arg4[%c3, %c0_152, %c0_153] : memref<5x40x512xf32, #tpu.memory_space<vmem>>, vector<1x16x512xf32>
    %385 = vector.shape_cast %384 : vector<1x16x512xf32> to vector<16x512xf32>
    %c3_154 = arith.constant 3 : index
    %c16_155 = arith.constant 16 : index
    %c0_156 = arith.constant 0 : index
    %386 = vector.load %arg4[%c3_154, %c16_155, %c0_156] : memref<5x40x512xf32, #tpu.memory_space<vmem>>, vector<1x1x512xf32>
    %387 = vector.shape_cast %386 : vector<1x1x512xf32> to vector<1x512xf32>
    %c3_157 = arith.constant 3 : index
    %c17_158 = arith.constant 17 : index
    %c0_159 = arith.constant 0 : index
    %388 = vector.load %arg4[%c3_157, %c17_158, %c0_159] : memref<5x40x512xf32, #tpu.memory_space<vmem>>, vector<1x1x512xf32>
    %389 = vector.shape_cast %388 : vector<1x1x512xf32> to vector<1x512xf32>
    %c3_160 = arith.constant 3 : index
    %c18_161 = arith.constant 18 : index
    %c0_162 = arith.constant 0 : index
    %390 = vector.load %arg4[%c3_160, %c18_161, %c0_162] : memref<5x40x512xf32, #tpu.memory_space<vmem>>, vector<1x1x512xf32>
    %391 = vector.shape_cast %390 : vector<1x1x512xf32> to vector<1x512xf32>
    %c3_163 = arith.constant 3 : index
    %c19_164 = arith.constant 19 : index
    %c0_165 = arith.constant 0 : index
    %392 = vector.load %arg4[%c3_163, %c19_164, %c0_165] : memref<5x40x512xf32, #tpu.memory_space<vmem>>, vector<1x1x512xf32>
    %393 = vector.shape_cast %392 : vector<1x1x512xf32> to vector<1x512xf32>
    %c3_166 = arith.constant 3 : index
    %c20_167 = arith.constant 20 : index
    %c0_168 = arith.constant 0 : index
    %394 = vector.load %arg4[%c3_166, %c20_167, %c0_168] : memref<5x40x512xf32, #tpu.memory_space<vmem>>, vector<1x1x512xf32>
    %395 = vector.shape_cast %394 : vector<1x1x512xf32> to vector<1x512xf32>
    %c3_169 = arith.constant 3 : index
    %c21_170 = arith.constant 21 : index
    %c0_171 = arith.constant 0 : index
    %396 = vector.load %arg4[%c3_169, %c21_170, %c0_171] : memref<5x40x512xf32, #tpu.memory_space<vmem>>, vector<1x3x512xf32>
    %397 = vector.shape_cast %396 : vector<1x3x512xf32> to vector<3x512xf32>
    %c3_172 = arith.constant 3 : index
    %c24_173 = arith.constant 24 : index
    %c0_174 = arith.constant 0 : index
    %398 = vector.load %arg4[%c3_172, %c24_173, %c0_174] : memref<5x40x512xf32, #tpu.memory_space<vmem>>, vector<1x16x512xf32>
    %399 = vector.shape_cast %398 : vector<1x16x512xf32> to vector<16x512xf32>
    %c70 = arith.constant 70 : index
    %c0_175 = arith.constant 0 : index
    %400 = vector.load %arg3[%c70, %c0_175] : memref<200x16xf32, #tpu.memory_space<vmem>>, vector<2x16xf32>
    %cst_176 = arith.constant 0.000000e+00 : f32
    %401 = vector.broadcast %cst_176 : f32 to vector<2x16xf32>
    %402 = arith.maximumf %383, %401 : vector<2x16xf32>
    %403 = vector.extract_strided_slice %400 {offsets = [0, 0], sizes = [1, 16], strides = [1, 1]} : vector<2x16xf32> to vector<1x16xf32>
    %404 = vector.extract_strided_slice %400 {offsets = [1, 0], sizes = [1, 16], strides = [1, 1]} : vector<2x16xf32> to vector<1x16xf32>
    %405 = vector.shape_cast %402 : vector<2x16xf32> to vector<1x2x16xf32>
    %cst_177 = arith.constant dense<0.000000e+00> : vector<1xf32>
    %406 = vector.multi_reduction <add>, %405, %cst_177 [1, 2] : vector<1x2x16xf32> to vector<1xf32>
    %407 = vector.shape_cast %406 : vector<1xf32> to vector<1x1x1xf32>
    %408 = vector.extract %407[0, 0, 0] : f32 from vector<1x1x1xf32>
    %cst_178 = arith.constant 3.125000e-02 : f32
    %409 = arith.mulf %408, %cst_178 : f32
    %410 = arith.mulf %402, %402 : vector<2x16xf32>
    %411 = vector.shape_cast %410 : vector<2x16xf32> to vector<1x2x16xf32>
    %cst_179 = arith.constant dense<0.000000e+00> : vector<1xf32>
    %412 = vector.multi_reduction <add>, %411, %cst_179 [1, 2] : vector<1x2x16xf32> to vector<1xf32>
    %413 = vector.shape_cast %412 : vector<1xf32> to vector<1x1x1xf32>
    %414 = vector.extract %413[0, 0, 0] : f32 from vector<1x1x1xf32>
    %cst_180 = arith.constant 3.125000e-02 : f32
    %415 = arith.mulf %414, %cst_180 : f32
    %416 = arith.mulf %409, %409 : f32
    %417 = arith.subf %415, %416 : f32
    %418 = vector.broadcast %409 : f32 to vector<2x16xf32>
    %419 = arith.subf %402, %418 : vector<2x16xf32>
    %420 = vector.broadcast %403 : vector<1x16xf32> to vector<2x16xf32>
    %421 = arith.mulf %420, %419 : vector<2x16xf32>
    %cst_181 = arith.constant 9.99999993E-9 : f32
    %422 = arith.addf %417, %cst_181 : f32
    %423 = math.rsqrt %422 : f32
    %424 = vector.broadcast %423 : f32 to vector<2x16xf32>
    %425 = arith.mulf %421, %424 : vector<2x16xf32>
    %426 = vector.broadcast %404 : vector<1x16xf32> to vector<2x16xf32>
    %427 = arith.addf %425, %426 : vector<2x16xf32>
    %cst_182 = arith.constant dense<0.000000e+00> : vector<2x512xf32>
    %428 = tpu.matmul %427, %385, %cst_182 {dimension_numbers = #tpu.dot_dimension_numbers<[1], [0], [0], [1], [0, 0, 1, 1], [], []>} : vector<2x16xf32>, vector<16x512xf32>, vector<2x512xf32> -> vector<2x512xf32>
    %cst_183 = arith.constant 0.000000e+00 : f32
    %429 = vector.broadcast %cst_183 : f32 to vector<2x512xf32>
    %430 = arith.maximumf %428, %429 : vector<2x512xf32>
    %431 = vector.shape_cast %430 : vector<2x512xf32> to vector<1x2x512xf32>
    %cst_184 = arith.constant dense<0.000000e+00> : vector<1xf32>
    %432 = vector.multi_reduction <add>, %431, %cst_184 [1, 2] : vector<1x2x512xf32> to vector<1xf32>
    %433 = vector.shape_cast %432 : vector<1xf32> to vector<1x1x1xf32>
    %434 = vector.extract %433[0, 0, 0] : f32 from vector<1x1x1xf32>
    %cst_185 = arith.constant 9.765625E-4 : f32
    %435 = arith.mulf %434, %cst_185 : f32
    %436 = arith.mulf %430, %430 : vector<2x512xf32>
    %437 = vector.shape_cast %436 : vector<2x512xf32> to vector<1x2x512xf32>
    %cst_186 = arith.constant dense<0.000000e+00> : vector<1xf32>
    %438 = vector.multi_reduction <add>, %437, %cst_186 [1, 2] : vector<1x2x512xf32> to vector<1xf32>
    %439 = vector.shape_cast %438 : vector<1xf32> to vector<1x1x1xf32>
    %440 = vector.extract %439[0, 0, 0] : f32 from vector<1x1x1xf32>
    %cst_187 = arith.constant 9.765625E-4 : f32
    %441 = arith.mulf %440, %cst_187 : f32
    %442 = arith.mulf %435, %435 : f32
    %443 = arith.subf %441, %442 : f32
    %444 = vector.broadcast %435 : f32 to vector<2x512xf32>
    %445 = arith.subf %430, %444 : vector<2x512xf32>
    %446 = vector.broadcast %387 : vector<1x512xf32> to vector<2x512xf32>
    %447 = arith.mulf %446, %445 : vector<2x512xf32>
    %cst_188 = arith.constant 9.99999993E-9 : f32
    %448 = arith.addf %443, %cst_188 : f32
    %449 = math.rsqrt %448 : f32
    %450 = vector.broadcast %449 : f32 to vector<2x512xf32>
    %451 = arith.mulf %447, %450 : vector<2x512xf32>
    %452 = vector.broadcast %389 : vector<1x512xf32> to vector<2x512xf32>
    %453 = arith.addf %451, %452 : vector<2x512xf32>
    %cst_189 = arith.constant 0.000000e+00 : f32
    %454 = vector.broadcast %cst_189 : f32 to vector<1x512xf32>
    %455 = vector.extract_strided_slice %453 {offsets = [0, 0], sizes = [1, 512], strides = [1, 1]} : vector<2x512xf32> to vector<1x512xf32>
    %456 = tpu.concatenate %454, %455 in 0 : vector<1x512xf32>, vector<1x512xf32> -> vector<2x512xf32>
    %457 = vector.extract_strided_slice %453 {offsets = [1, 0], sizes = [1, 512], strides = [1, 1]} : vector<2x512xf32> to vector<1x512xf32>
    %458 = tpu.concatenate %457, %454 in 0 : vector<1x512xf32>, vector<1x512xf32> -> vector<2x512xf32>
    %459 = vector.extract_strided_slice %397 {offsets = [0, 0], sizes = [1, 512], strides = [1, 1]} : vector<3x512xf32> to vector<1x512xf32>
    %460 = vector.broadcast %459 : vector<1x512xf32> to vector<2x512xf32>
    %461 = arith.mulf %460, %456 : vector<2x512xf32>
    %462 = vector.extract_strided_slice %397 {offsets = [1, 0], sizes = [1, 512], strides = [1, 1]} : vector<3x512xf32> to vector<1x512xf32>
    %463 = vector.broadcast %462 : vector<1x512xf32> to vector<2x512xf32>
    %464 = arith.mulf %463, %453 : vector<2x512xf32>
    %465 = arith.addf %461, %464 : vector<2x512xf32>
    %466 = vector.extract_strided_slice %397 {offsets = [2, 0], sizes = [1, 512], strides = [1, 1]} : vector<3x512xf32> to vector<1x512xf32>
    %467 = vector.broadcast %466 : vector<1x512xf32> to vector<2x512xf32>
    %468 = arith.mulf %467, %458 : vector<2x512xf32>
    %469 = arith.addf %465, %468 : vector<2x512xf32>
    %cst_190 = arith.constant 0.000000e+00 : f32
    %470 = vector.broadcast %cst_190 : f32 to vector<2x512xf32>
    %471 = arith.cmpf ogt, %469, %470 : vector<2x512xf32>
    %472 = vector.broadcast %391 : vector<1x512xf32> to vector<2x512xf32>
    %473 = arith.mulf %472, %469 : vector<2x512xf32>
    %474 = arith.select %471, %469, %473 : vector<2x512xi1>, vector<2x512xf32>
    %475 = vector.shape_cast %474 : vector<2x512xf32> to vector<1x2x512xf32>
    %cst_191 = arith.constant dense<0.000000e+00> : vector<1xf32>
    %476 = vector.multi_reduction <add>, %475, %cst_191 [1, 2] : vector<1x2x512xf32> to vector<1xf32>
    %477 = vector.shape_cast %476 : vector<1xf32> to vector<1x1x1xf32>
    %478 = vector.extract %477[0, 0, 0] : f32 from vector<1x1x1xf32>
    %cst_192 = arith.constant 9.765625E-4 : f32
    %479 = arith.mulf %478, %cst_192 : f32
    %480 = arith.mulf %474, %474 : vector<2x512xf32>
    %481 = vector.shape_cast %480 : vector<2x512xf32> to vector<1x2x512xf32>
    %cst_193 = arith.constant dense<0.000000e+00> : vector<1xf32>
    %482 = vector.multi_reduction <add>, %481, %cst_193 [1, 2] : vector<1x2x512xf32> to vector<1xf32>
    %483 = vector.shape_cast %482 : vector<1xf32> to vector<1x1x1xf32>
    %484 = vector.extract %483[0, 0, 0] : f32 from vector<1x1x1xf32>
    %cst_194 = arith.constant 9.765625E-4 : f32
    %485 = arith.mulf %484, %cst_194 : f32
    %486 = arith.mulf %479, %479 : f32
    %487 = arith.subf %485, %486 : f32
    %488 = vector.broadcast %479 : f32 to vector<2x512xf32>
    %489 = arith.subf %474, %488 : vector<2x512xf32>
    %490 = vector.broadcast %393 : vector<1x512xf32> to vector<2x512xf32>
    %491 = arith.mulf %490, %489 : vector<2x512xf32>
    %cst_195 = arith.constant 9.99999993E-9 : f32
    %492 = arith.addf %487, %cst_195 : f32
    %493 = math.rsqrt %492 : f32
    %494 = vector.broadcast %493 : f32 to vector<2x512xf32>
    %495 = arith.mulf %491, %494 : vector<2x512xf32>
    %496 = vector.broadcast %395 : vector<1x512xf32> to vector<2x512xf32>
    %497 = arith.addf %495, %496 : vector<2x512xf32>
    %cst_196 = arith.constant dense<0.000000e+00> : vector<2x16xf32>
    %498 = tpu.matmul %497, %399, %cst_196 {dimension_numbers = #tpu.dot_dimension_numbers<[1], [1], [0], [0], [0, 0, 1, 0], [], []>} : vector<2x512xf32>, vector<16x512xf32>, vector<2x16xf32> -> vector<2x16xf32>
    %499 = arith.addf %498, %383 : vector<2x16xf32>
    %c4 = arith.constant 4 : index
    %c0_197 = arith.constant 0 : index
    %c0_198 = arith.constant 0 : index
    %500 = vector.load %arg4[%c4, %c0_197, %c0_198] : memref<5x40x512xf32, #tpu.memory_space<vmem>>, vector<1x16x512xf32>
    %501 = vector.shape_cast %500 : vector<1x16x512xf32> to vector<16x512xf32>
    %c4_199 = arith.constant 4 : index
    %c16_200 = arith.constant 16 : index
    %c0_201 = arith.constant 0 : index
    %502 = vector.load %arg4[%c4_199, %c16_200, %c0_201] : memref<5x40x512xf32, #tpu.memory_space<vmem>>, vector<1x1x512xf32>
    %503 = vector.shape_cast %502 : vector<1x1x512xf32> to vector<1x512xf32>
    %c4_202 = arith.constant 4 : index
    %c17_203 = arith.constant 17 : index
    %c0_204 = arith.constant 0 : index
    %504 = vector.load %arg4[%c4_202, %c17_203, %c0_204] : memref<5x40x512xf32, #tpu.memory_space<vmem>>, vector<1x1x512xf32>
    %505 = vector.shape_cast %504 : vector<1x1x512xf32> to vector<1x512xf32>
    %c4_205 = arith.constant 4 : index
    %c18_206 = arith.constant 18 : index
    %c0_207 = arith.constant 0 : index
    %506 = vector.load %arg4[%c4_205, %c18_206, %c0_207] : memref<5x40x512xf32, #tpu.memory_space<vmem>>, vector<1x1x512xf32>
    %507 = vector.shape_cast %506 : vector<1x1x512xf32> to vector<1x512xf32>
    %c4_208 = arith.constant 4 : index
    %c19_209 = arith.constant 19 : index
    %c0_210 = arith.constant 0 : index
    %508 = vector.load %arg4[%c4_208, %c19_209, %c0_210] : memref<5x40x512xf32, #tpu.memory_space<vmem>>, vector<1x1x512xf32>
    %509 = vector.shape_cast %508 : vector<1x1x512xf32> to vector<1x512xf32>
    %c4_211 = arith.constant 4 : index
    %c20_212 = arith.constant 20 : index
    %c0_213 = arith.constant 0 : index
    %510 = vector.load %arg4[%c4_211, %c20_212, %c0_213] : memref<5x40x512xf32, #tpu.memory_space<vmem>>, vector<1x1x512xf32>
    %511 = vector.shape_cast %510 : vector<1x1x512xf32> to vector<1x512xf32>
    %c4_214 = arith.constant 4 : index
    %c21_215 = arith.constant 21 : index
    %c0_216 = arith.constant 0 : index
    %512 = vector.load %arg4[%c4_214, %c21_215, %c0_216] : memref<5x40x512xf32, #tpu.memory_space<vmem>>, vector<1x3x512xf32>
    %513 = vector.shape_cast %512 : vector<1x3x512xf32> to vector<3x512xf32>
    %c4_217 = arith.constant 4 : index
    %c24_218 = arith.constant 24 : index
    %c0_219 = arith.constant 0 : index
    %514 = vector.load %arg4[%c4_217, %c24_218, %c0_219] : memref<5x40x512xf32, #tpu.memory_space<vmem>>, vector<1x16x512xf32>
    %515 = vector.shape_cast %514 : vector<1x16x512xf32> to vector<16x512xf32>
    %c72 = arith.constant 72 : index
    %c0_220 = arith.constant 0 : index
    %516 = vector.load %arg3[%c72, %c0_220] : memref<200x16xf32, #tpu.memory_space<vmem>>, vector<2x16xf32>
    %cst_221 = arith.constant 0.000000e+00 : f32
    %517 = vector.broadcast %cst_221 : f32 to vector<2x16xf32>
    %518 = arith.maximumf %499, %517 : vector<2x16xf32>
    %519 = vector.extract_strided_slice %516 {offsets = [0, 0], sizes = [1, 16], strides = [1, 1]} : vector<2x16xf32> to vector<1x16xf32>
    %520 = vector.extract_strided_slice %516 {offsets = [1, 0], sizes = [1, 16], strides = [1, 1]} : vector<2x16xf32> to vector<1x16xf32>
    %521 = vector.shape_cast %518 : vector<2x16xf32> to vector<1x2x16xf32>
    %cst_222 = arith.constant dense<0.000000e+00> : vector<1xf32>
    %522 = vector.multi_reduction <add>, %521, %cst_222 [1, 2] : vector<1x2x16xf32> to vector<1xf32>
    %523 = vector.shape_cast %522 : vector<1xf32> to vector<1x1x1xf32>
    %524 = vector.extract %523[0, 0, 0] : f32 from vector<1x1x1xf32>
    %cst_223 = arith.constant 3.125000e-02 : f32
    %525 = arith.mulf %524, %cst_223 : f32
    %526 = arith.mulf %518, %518 : vector<2x16xf32>
    %527 = vector.shape_cast %526 : vector<2x16xf32> to vector<1x2x16xf32>
    %cst_224 = arith.constant dense<0.000000e+00> : vector<1xf32>
    %528 = vector.multi_reduction <add>, %527, %cst_224 [1, 2] : vector<1x2x16xf32> to vector<1xf32>
    %529 = vector.shape_cast %528 : vector<1xf32> to vector<1x1x1xf32>
    %530 = vector.extract %529[0, 0, 0] : f32 from vector<1x1x1xf32>
    %cst_225 = arith.constant 3.125000e-02 : f32
    %531 = arith.mulf %530, %cst_225 : f32
    %532 = arith.mulf %525, %525 : f32
    %533 = arith.subf %531, %532 : f32
    %534 = vector.broadcast %525 : f32 to vector<2x16xf32>
    %535 = arith.subf %518, %534 : vector<2x16xf32>
    %536 = vector.broadcast %519 : vector<1x16xf32> to vector<2x16xf32>
    %537 = arith.mulf %536, %535 : vector<2x16xf32>
    %cst_226 = arith.constant 9.99999993E-9 : f32
    %538 = arith.addf %533, %cst_226 : f32
    %539 = math.rsqrt %538 : f32
    %540 = vector.broadcast %539 : f32 to vector<2x16xf32>
    %541 = arith.mulf %537, %540 : vector<2x16xf32>
    %542 = vector.broadcast %520 : vector<1x16xf32> to vector<2x16xf32>
    %543 = arith.addf %541, %542 : vector<2x16xf32>
    %cst_227 = arith.constant dense<0.000000e+00> : vector<2x512xf32>
    %544 = tpu.matmul %543, %501, %cst_227 {dimension_numbers = #tpu.dot_dimension_numbers<[1], [0], [0], [1], [0, 0, 1, 1], [], []>} : vector<2x16xf32>, vector<16x512xf32>, vector<2x512xf32> -> vector<2x512xf32>
    %cst_228 = arith.constant 0.000000e+00 : f32
    %545 = vector.broadcast %cst_228 : f32 to vector<2x512xf32>
    %546 = arith.maximumf %544, %545 : vector<2x512xf32>
    %547 = vector.shape_cast %546 : vector<2x512xf32> to vector<1x2x512xf32>
    %cst_229 = arith.constant dense<0.000000e+00> : vector<1xf32>
    %548 = vector.multi_reduction <add>, %547, %cst_229 [1, 2] : vector<1x2x512xf32> to vector<1xf32>
    %549 = vector.shape_cast %548 : vector<1xf32> to vector<1x1x1xf32>
    %550 = vector.extract %549[0, 0, 0] : f32 from vector<1x1x1xf32>
    %cst_230 = arith.constant 9.765625E-4 : f32
    %551 = arith.mulf %550, %cst_230 : f32
    %552 = arith.mulf %546, %546 : vector<2x512xf32>
    %553 = vector.shape_cast %552 : vector<2x512xf32> to vector<1x2x512xf32>
    %cst_231 = arith.constant dense<0.000000e+00> : vector<1xf32>
    %554 = vector.multi_reduction <add>, %553, %cst_231 [1, 2] : vector<1x2x512xf32> to vector<1xf32>
    %555 = vector.shape_cast %554 : vector<1xf32> to vector<1x1x1xf32>
    %556 = vector.extract %555[0, 0, 0] : f32 from vector<1x1x1xf32>
    %cst_232 = arith.constant 9.765625E-4 : f32
    %557 = arith.mulf %556, %cst_232 : f32
    %558 = arith.mulf %551, %551 : f32
    %559 = arith.subf %557, %558 : f32
    %560 = vector.broadcast %551 : f32 to vector<2x512xf32>
    %561 = arith.subf %546, %560 : vector<2x512xf32>
    %562 = vector.broadcast %503 : vector<1x512xf32> to vector<2x512xf32>
    %563 = arith.mulf %562, %561 : vector<2x512xf32>
    %cst_233 = arith.constant 9.99999993E-9 : f32
    %564 = arith.addf %559, %cst_233 : f32
    %565 = math.rsqrt %564 : f32
    %566 = vector.broadcast %565 : f32 to vector<2x512xf32>
    %567 = arith.mulf %563, %566 : vector<2x512xf32>
    %568 = vector.broadcast %505 : vector<1x512xf32> to vector<2x512xf32>
    %569 = arith.addf %567, %568 : vector<2x512xf32>
    %cst_234 = arith.constant 0.000000e+00 : f32
    %570 = vector.broadcast %cst_234 : f32 to vector<1x512xf32>
    %571 = vector.extract_strided_slice %569 {offsets = [0, 0], sizes = [1, 512], strides = [1, 1]} : vector<2x512xf32> to vector<1x512xf32>
    %572 = tpu.concatenate %570, %571 in 0 : vector<1x512xf32>, vector<1x512xf32> -> vector<2x512xf32>
    %573 = vector.extract_strided_slice %569 {offsets = [1, 0], sizes = [1, 512], strides = [1, 1]} : vector<2x512xf32> to vector<1x512xf32>
    %574 = tpu.concatenate %573, %570 in 0 : vector<1x512xf32>, vector<1x512xf32> -> vector<2x512xf32>
    %575 = vector.extract_strided_slice %513 {offsets = [0, 0], sizes = [1, 512], strides = [1, 1]} : vector<3x512xf32> to vector<1x512xf32>
    %576 = vector.broadcast %575 : vector<1x512xf32> to vector<2x512xf32>
    %577 = arith.mulf %576, %572 : vector<2x512xf32>
    %578 = vector.extract_strided_slice %513 {offsets = [1, 0], sizes = [1, 512], strides = [1, 1]} : vector<3x512xf32> to vector<1x512xf32>
    %579 = vector.broadcast %578 : vector<1x512xf32> to vector<2x512xf32>
    %580 = arith.mulf %579, %569 : vector<2x512xf32>
    %581 = arith.addf %577, %580 : vector<2x512xf32>
    %582 = vector.extract_strided_slice %513 {offsets = [2, 0], sizes = [1, 512], strides = [1, 1]} : vector<3x512xf32> to vector<1x512xf32>
    %583 = vector.broadcast %582 : vector<1x512xf32> to vector<2x512xf32>
    %584 = arith.mulf %583, %574 : vector<2x512xf32>
    %585 = arith.addf %581, %584 : vector<2x512xf32>
    %cst_235 = arith.constant 0.000000e+00 : f32
    %586 = vector.broadcast %cst_235 : f32 to vector<2x512xf32>
    %587 = arith.cmpf ogt, %585, %586 : vector<2x512xf32>
    %588 = vector.broadcast %507 : vector<1x512xf32> to vector<2x512xf32>
    %589 = arith.mulf %588, %585 : vector<2x512xf32>
    %590 = arith.select %587, %585, %589 : vector<2x512xi1>, vector<2x512xf32>
    %591 = vector.shape_cast %590 : vector<2x512xf32> to vector<1x2x512xf32>
    %cst_236 = arith.constant dense<0.000000e+00> : vector<1xf32>
    %592 = vector.multi_reduction <add>, %591, %cst_236 [1, 2] : vector<1x2x512xf32> to vector<1xf32>
    %593 = vector.shape_cast %592 : vector<1xf32> to vector<1x1x1xf32>
    %594 = vector.extract %593[0, 0, 0] : f32 from vector<1x1x1xf32>
    %cst_237 = arith.constant 9.765625E-4 : f32
    %595 = arith.mulf %594, %cst_237 : f32
    %596 = arith.mulf %590, %590 : vector<2x512xf32>
    %597 = vector.shape_cast %596 : vector<2x512xf32> to vector<1x2x512xf32>
    %cst_238 = arith.constant dense<0.000000e+00> : vector<1xf32>
    %598 = vector.multi_reduction <add>, %597, %cst_238 [1, 2] : vector<1x2x512xf32> to vector<1xf32>
    %599 = vector.shape_cast %598 : vector<1xf32> to vector<1x1x1xf32>
    %600 = vector.extract %599[0, 0, 0] : f32 from vector<1x1x1xf32>
    %cst_239 = arith.constant 9.765625E-4 : f32
    %601 = arith.mulf %600, %cst_239 : f32
    %602 = arith.mulf %595, %595 : f32
    %603 = arith.subf %601, %602 : f32
    %604 = vector.broadcast %595 : f32 to vector<2x512xf32>
    %605 = arith.subf %590, %604 : vector<2x512xf32>
    %606 = vector.broadcast %509 : vector<1x512xf32> to vector<2x512xf32>
    %607 = arith.mulf %606, %605 : vector<2x512xf32>
    %cst_240 = arith.constant 9.99999993E-9 : f32
    %608 = arith.addf %603, %cst_240 : f32
    %609 = math.rsqrt %608 : f32
    %610 = vector.broadcast %609 : f32 to vector<2x512xf32>
    %611 = arith.mulf %607, %610 : vector<2x512xf32>
    %612 = vector.broadcast %511 : vector<1x512xf32> to vector<2x512xf32>
    %613 = arith.addf %611, %612 : vector<2x512xf32>
    %cst_241 = arith.constant dense<0.000000e+00> : vector<2x16xf32>
    %614 = tpu.matmul %613, %515, %cst_241 {dimension_numbers = #tpu.dot_dimension_numbers<[1], [1], [0], [0], [0, 0, 1, 0], [], []>} : vector<2x512xf32>, vector<16x512xf32>, vector<2x16xf32> -> vector<2x16xf32>
    %615 = arith.addf %614, %499 : vector<2x16xf32>
    %cst_242 = arith.constant dense<0.000000e+00> : vector<16x2xf32>
    %616 = tpu.matmul %3, %615, %cst_242 {dimension_numbers = #tpu.dot_dimension_numbers<[1], [1], [0], [0], [0, 0, 1, 0], [], []>} : vector<16x16xf32>, vector<2x16xf32>, vector<16x2xf32> -> vector<16x2xf32>
    %cst_243 = arith.constant dense<0.000000e+00> : vector<16x72xf32>
    %617 = tpu.matmul %1, %33, %cst_243 {dimension_numbers = #tpu.dot_dimension_numbers<[1], [0], [0], [1], [0, 0, 1, 1], [], []>} : vector<16x16xf32>, vector<16x72xf32>, vector<16x72xf32> -> vector<16x72xf32>
    %618 = vector.broadcast %2 : vector<16x1xf32> to vector<16x72xf32>
    %619 = arith.addf %617, %618 : vector<16x72xf32>
    %620 = vector.extract_strided_slice %616 {offsets = [0, 0], sizes = [16, 1], strides = [1, 1]} : vector<16x2xf32> to vector<16x1xf32>
    %621 = vector.extract_strided_slice %6 {offsets = [0, 0], sizes = [1, 72], strides = [1, 1]} : vector<2x72xf32> to vector<1x72xf32>
    %622 = vector.broadcast %620 : vector<16x1xf32> to vector<16x72xf32>
    %623 = vector.broadcast %621 : vector<1x72xf32> to vector<16x72xf32>
    %624 = arith.mulf %622, %623 : vector<16x72xf32>
    %625 = arith.addf %619, %624 : vector<16x72xf32>
    %626 = vector.extract_strided_slice %616 {offsets = [0, 1], sizes = [16, 1], strides = [1, 1]} : vector<16x2xf32> to vector<16x1xf32>
    %627 = vector.extract_strided_slice %6 {offsets = [1, 0], sizes = [1, 72], strides = [1, 1]} : vector<2x72xf32> to vector<1x72xf32>
    %628 = vector.broadcast %626 : vector<16x1xf32> to vector<16x72xf32>
    %629 = vector.broadcast %627 : vector<1x72xf32> to vector<16x72xf32>
    %630 = arith.mulf %628, %629 : vector<16x72xf32>
    %631 = arith.addf %625, %630 : vector<16x72xf32>
    %c80 = arith.constant 80 : index
    %c0_244 = arith.constant 0 : index
    %632 = vector.load %arg3[%c80, %c0_244] : memref<200x16xf32, #tpu.memory_space<vmem>>, vector<16x16xf32>
    %c96 = arith.constant 96 : index
    %c0_245 = arith.constant 0 : index
    %633 = vector.load %arg3[%c96, %c0_245] : memref<200x16xf32, #tpu.memory_space<vmem>>, vector<16x16xf32>
    %c112 = arith.constant 112 : index
    %c0_246 = arith.constant 0 : index
    %634 = vector.load %arg3[%c112, %c0_246] : memref<200x16xf32, #tpu.memory_space<vmem>>, vector<16x9xf32>
    %635 = vector.extract_strided_slice %634 {offsets = [0, 0], sizes = [16, 1], strides = [1, 1]} : vector<16x9xf32> to vector<16x1xf32>
    %636 = vector.extract_strided_slice %634 {offsets = [0, 1], sizes = [16, 1], strides = [1, 1]} : vector<16x9xf32> to vector<16x1xf32>
    %637 = vector.extract_strided_slice %634 {offsets = [0, 2], sizes = [16, 1], strides = [1, 1]} : vector<16x9xf32> to vector<16x1xf32>
    %638 = vector.extract_strided_slice %634 {offsets = [0, 3], sizes = [16, 1], strides = [1, 1]} : vector<16x9xf32> to vector<16x1xf32>
    %639 = vector.extract_strided_slice %634 {offsets = [0, 4], sizes = [16, 1], strides = [1, 1]} : vector<16x9xf32> to vector<16x1xf32>
    %640 = vector.extract_strided_slice %634 {offsets = [0, 5], sizes = [16, 1], strides = [1, 1]} : vector<16x9xf32> to vector<16x1xf32>
    %641 = vector.extract_strided_slice %634 {offsets = [0, 6], sizes = [16, 3], strides = [1, 1]} : vector<16x9xf32> to vector<16x3xf32>
    %cst_247 = arith.constant dense<0.000000e+00> : vector<16x72xf32>
    %642 = tpu.matmul %632, %631, %cst_247 {dimension_numbers = #tpu.dot_dimension_numbers<[1], [0], [0], [1], [0, 0, 1, 1], [], []>} : vector<16x16xf32>, vector<16x72xf32>, vector<16x72xf32> -> vector<16x72xf32>
    %cst_248 = arith.constant 0.000000e+00 : f32
    %643 = vector.broadcast %cst_248 : f32 to vector<16x72xf32>
    %644 = arith.cmpf ogt, %642, %643 : vector<16x72xf32>
    %645 = vector.broadcast %635 : vector<16x1xf32> to vector<16x72xf32>
    %646 = arith.mulf %645, %642 : vector<16x72xf32>
    %647 = arith.select %644, %642, %646 : vector<16x72xi1>, vector<16x72xf32>
    %648 = vector.shape_cast %647 : vector<16x72xf32> to vector<1x16x72xf32>
    %cst_249 = arith.constant dense<0.000000e+00> : vector<1xf32>
    %649 = vector.multi_reduction <add>, %648, %cst_249 [1, 2] : vector<1x16x72xf32> to vector<1xf32>
    %650 = vector.shape_cast %649 : vector<1xf32> to vector<1x1x1xf32>
    %651 = vector.extract %650[0, 0, 0] : f32 from vector<1x1x1xf32>
    %cst_250 = arith.constant 8.68055562E-4 : f32
    %652 = arith.mulf %651, %cst_250 : f32
    %653 = arith.mulf %647, %647 : vector<16x72xf32>
    %654 = vector.shape_cast %653 : vector<16x72xf32> to vector<1x16x72xf32>
    %cst_251 = arith.constant dense<0.000000e+00> : vector<1xf32>
    %655 = vector.multi_reduction <add>, %654, %cst_251 [1, 2] : vector<1x16x72xf32> to vector<1xf32>
    %656 = vector.shape_cast %655 : vector<1xf32> to vector<1x1x1xf32>
    %657 = vector.extract %656[0, 0, 0] : f32 from vector<1x1x1xf32>
    %cst_252 = arith.constant 8.68055562E-4 : f32
    %658 = arith.mulf %657, %cst_252 : f32
    %659 = arith.mulf %652, %652 : f32
    %660 = arith.subf %658, %659 : f32
    %661 = vector.broadcast %652 : f32 to vector<16x72xf32>
    %662 = arith.subf %647, %661 : vector<16x72xf32>
    %663 = vector.broadcast %636 : vector<16x1xf32> to vector<16x72xf32>
    %664 = arith.mulf %663, %662 : vector<16x72xf32>
    %cst_253 = arith.constant 9.99999993E-9 : f32
    %665 = arith.addf %660, %cst_253 : f32
    %666 = math.rsqrt %665 : f32
    %667 = vector.broadcast %666 : f32 to vector<16x72xf32>
    %668 = arith.mulf %664, %667 : vector<16x72xf32>
    %669 = vector.broadcast %637 : vector<16x1xf32> to vector<16x72xf32>
    %670 = arith.addf %668, %669 : vector<16x72xf32>
    %671 = vector.extract_strided_slice %641 {offsets = [0, 0], sizes = [16, 1], strides = [1, 1]} : vector<16x3xf32> to vector<16x1xf32>
    %cst_254 = arith.constant 0.000000e+00 : f32
    %672 = vector.broadcast %cst_254 : f32 to vector<16x1xf32>
    %673 = vector.extract_strided_slice %670 {offsets = [0, 0], sizes = [16, 71], strides = [1, 1]} : vector<16x72xf32> to vector<16x71xf32>
    %674 = tpu.concatenate %672, %673 in 1 : vector<16x1xf32>, vector<16x71xf32> -> vector<16x72xf32>
    %675 = vector.broadcast %671 : vector<16x1xf32> to vector<16x72xf32>
    %676 = arith.mulf %675, %674 : vector<16x72xf32>
    %677 = vector.extract_strided_slice %641 {offsets = [0, 1], sizes = [16, 1], strides = [1, 1]} : vector<16x3xf32> to vector<16x1xf32>
    %678 = vector.broadcast %677 : vector<16x1xf32> to vector<16x72xf32>
    %679 = arith.mulf %678, %670 : vector<16x72xf32>
    %680 = arith.addf %676, %679 : vector<16x72xf32>
    %681 = vector.extract_strided_slice %641 {offsets = [0, 2], sizes = [16, 1], strides = [1, 1]} : vector<16x3xf32> to vector<16x1xf32>
    %cst_255 = arith.constant 0.000000e+00 : f32
    %682 = vector.broadcast %cst_255 : f32 to vector<16x1xf32>
    %683 = vector.extract_strided_slice %670 {offsets = [0, 1], sizes = [16, 71], strides = [1, 1]} : vector<16x72xf32> to vector<16x71xf32>
    %684 = tpu.concatenate %683, %682 in 1 : vector<16x71xf32>, vector<16x1xf32> -> vector<16x72xf32>
    %685 = vector.broadcast %681 : vector<16x1xf32> to vector<16x72xf32>
    %686 = arith.mulf %685, %684 : vector<16x72xf32>
    %687 = arith.addf %680, %686 : vector<16x72xf32>
    %cst_256 = arith.constant 0.000000e+00 : f32
    %688 = vector.broadcast %cst_256 : f32 to vector<16x72xf32>
    %689 = arith.cmpf ogt, %687, %688 : vector<16x72xf32>
    %690 = vector.broadcast %638 : vector<16x1xf32> to vector<16x72xf32>
    %691 = arith.mulf %690, %687 : vector<16x72xf32>
    %692 = arith.select %689, %687, %691 : vector<16x72xi1>, vector<16x72xf32>
    %693 = vector.shape_cast %692 : vector<16x72xf32> to vector<1x16x72xf32>
    %cst_257 = arith.constant dense<0.000000e+00> : vector<1xf32>
    %694 = vector.multi_reduction <add>, %693, %cst_257 [1, 2] : vector<1x16x72xf32> to vector<1xf32>
    %695 = vector.shape_cast %694 : vector<1xf32> to vector<1x1x1xf32>
    %696 = vector.extract %695[0, 0, 0] : f32 from vector<1x1x1xf32>
    %cst_258 = arith.constant 8.68055562E-4 : f32
    %697 = arith.mulf %696, %cst_258 : f32
    %698 = arith.mulf %692, %692 : vector<16x72xf32>
    %699 = vector.shape_cast %698 : vector<16x72xf32> to vector<1x16x72xf32>
    %cst_259 = arith.constant dense<0.000000e+00> : vector<1xf32>
    %700 = vector.multi_reduction <add>, %699, %cst_259 [1, 2] : vector<1x16x72xf32> to vector<1xf32>
    %701 = vector.shape_cast %700 : vector<1xf32> to vector<1x1x1xf32>
    %702 = vector.extract %701[0, 0, 0] : f32 from vector<1x1x1xf32>
    %cst_260 = arith.constant 8.68055562E-4 : f32
    %703 = arith.mulf %702, %cst_260 : f32
    %704 = arith.mulf %697, %697 : f32
    %705 = arith.subf %703, %704 : f32
    %706 = vector.broadcast %697 : f32 to vector<16x72xf32>
    %707 = arith.subf %692, %706 : vector<16x72xf32>
    %708 = vector.broadcast %639 : vector<16x1xf32> to vector<16x72xf32>
    %709 = arith.mulf %708, %707 : vector<16x72xf32>
    %cst_261 = arith.constant 9.99999993E-9 : f32
    %710 = arith.addf %705, %cst_261 : f32
    %711 = math.rsqrt %710 : f32
    %712 = vector.broadcast %711 : f32 to vector<16x72xf32>
    %713 = arith.mulf %709, %712 : vector<16x72xf32>
    %714 = vector.broadcast %640 : vector<16x1xf32> to vector<16x72xf32>
    %715 = arith.addf %713, %714 : vector<16x72xf32>
    %cst_262 = arith.constant dense<0.000000e+00> : vector<16x72xf32>
    %716 = tpu.matmul %633, %715, %cst_262 {dimension_numbers = #tpu.dot_dimension_numbers<[1], [0], [0], [1], [0, 0, 1, 1], [], []>} : vector<16x16xf32>, vector<16x72xf32>, vector<16x72xf32> -> vector<16x72xf32>
    %717 = arith.addf %716, %631 : vector<16x72xf32>
    %c128 = arith.constant 128 : index
    %c0_263 = arith.constant 0 : index
    %718 = vector.load %arg3[%c128, %c0_263] : memref<200x16xf32, #tpu.memory_space<vmem>>, vector<16x16xf32>
    %c144 = arith.constant 144 : index
    %c0_264 = arith.constant 0 : index
    %719 = vector.load %arg3[%c144, %c0_264] : memref<200x16xf32, #tpu.memory_space<vmem>>, vector<16x16xf32>
    %c160 = arith.constant 160 : index
    %c0_265 = arith.constant 0 : index
    %720 = vector.load %arg3[%c160, %c0_265] : memref<200x16xf32, #tpu.memory_space<vmem>>, vector<16x9xf32>
    %721 = vector.extract_strided_slice %720 {offsets = [0, 0], sizes = [16, 1], strides = [1, 1]} : vector<16x9xf32> to vector<16x1xf32>
    %722 = vector.extract_strided_slice %720 {offsets = [0, 1], sizes = [16, 1], strides = [1, 1]} : vector<16x9xf32> to vector<16x1xf32>
    %723 = vector.extract_strided_slice %720 {offsets = [0, 2], sizes = [16, 1], strides = [1, 1]} : vector<16x9xf32> to vector<16x1xf32>
    %724 = vector.extract_strided_slice %720 {offsets = [0, 3], sizes = [16, 1], strides = [1, 1]} : vector<16x9xf32> to vector<16x1xf32>
    %725 = vector.extract_strided_slice %720 {offsets = [0, 4], sizes = [16, 1], strides = [1, 1]} : vector<16x9xf32> to vector<16x1xf32>
    %726 = vector.extract_strided_slice %720 {offsets = [0, 5], sizes = [16, 1], strides = [1, 1]} : vector<16x9xf32> to vector<16x1xf32>
    %727 = vector.extract_strided_slice %720 {offsets = [0, 6], sizes = [16, 3], strides = [1, 1]} : vector<16x9xf32> to vector<16x3xf32>
    %cst_266 = arith.constant dense<0.000000e+00> : vector<16x72xf32>
    %728 = tpu.matmul %718, %717, %cst_266 {dimension_numbers = #tpu.dot_dimension_numbers<[1], [0], [0], [1], [0, 0, 1, 1], [], []>} : vector<16x16xf32>, vector<16x72xf32>, vector<16x72xf32> -> vector<16x72xf32>
    %cst_267 = arith.constant 0.000000e+00 : f32
    %729 = vector.broadcast %cst_267 : f32 to vector<16x72xf32>
    %730 = arith.cmpf ogt, %728, %729 : vector<16x72xf32>
    %731 = vector.broadcast %721 : vector<16x1xf32> to vector<16x72xf32>
    %732 = arith.mulf %731, %728 : vector<16x72xf32>
    %733 = arith.select %730, %728, %732 : vector<16x72xi1>, vector<16x72xf32>
    %734 = vector.shape_cast %733 : vector<16x72xf32> to vector<1x16x72xf32>
    %cst_268 = arith.constant dense<0.000000e+00> : vector<1xf32>
    %735 = vector.multi_reduction <add>, %734, %cst_268 [1, 2] : vector<1x16x72xf32> to vector<1xf32>
    %736 = vector.shape_cast %735 : vector<1xf32> to vector<1x1x1xf32>
    %737 = vector.extract %736[0, 0, 0] : f32 from vector<1x1x1xf32>
    %cst_269 = arith.constant 8.68055562E-4 : f32
    %738 = arith.mulf %737, %cst_269 : f32
    %739 = arith.mulf %733, %733 : vector<16x72xf32>
    %740 = vector.shape_cast %739 : vector<16x72xf32> to vector<1x16x72xf32>
    %cst_270 = arith.constant dense<0.000000e+00> : vector<1xf32>
    %741 = vector.multi_reduction <add>, %740, %cst_270 [1, 2] : vector<1x16x72xf32> to vector<1xf32>
    %742 = vector.shape_cast %741 : vector<1xf32> to vector<1x1x1xf32>
    %743 = vector.extract %742[0, 0, 0] : f32 from vector<1x1x1xf32>
    %cst_271 = arith.constant 8.68055562E-4 : f32
    %744 = arith.mulf %743, %cst_271 : f32
    %745 = arith.mulf %738, %738 : f32
    %746 = arith.subf %744, %745 : f32
    %747 = vector.broadcast %738 : f32 to vector<16x72xf32>
    %748 = arith.subf %733, %747 : vector<16x72xf32>
    %749 = vector.broadcast %722 : vector<16x1xf32> to vector<16x72xf32>
    %750 = arith.mulf %749, %748 : vector<16x72xf32>
    %cst_272 = arith.constant 9.99999993E-9 : f32
    %751 = arith.addf %746, %cst_272 : f32
    %752 = math.rsqrt %751 : f32
    %753 = vector.broadcast %752 : f32 to vector<16x72xf32>
    %754 = arith.mulf %750, %753 : vector<16x72xf32>
    %755 = vector.broadcast %723 : vector<16x1xf32> to vector<16x72xf32>
    %756 = arith.addf %754, %755 : vector<16x72xf32>
    %757 = vector.extract_strided_slice %727 {offsets = [0, 0], sizes = [16, 1], strides = [1, 1]} : vector<16x3xf32> to vector<16x1xf32>
    %cst_273 = arith.constant 0.000000e+00 : f32
    %758 = vector.broadcast %cst_273 : f32 to vector<16x2xf32>
    %759 = vector.extract_strided_slice %756 {offsets = [0, 0], sizes = [16, 70], strides = [1, 1]} : vector<16x72xf32> to vector<16x70xf32>
    %760 = tpu.concatenate %758, %759 in 1 : vector<16x2xf32>, vector<16x70xf32> -> vector<16x72xf32>
    %761 = vector.broadcast %757 : vector<16x1xf32> to vector<16x72xf32>
    %762 = arith.mulf %761, %760 : vector<16x72xf32>
    %763 = vector.extract_strided_slice %727 {offsets = [0, 1], sizes = [16, 1], strides = [1, 1]} : vector<16x3xf32> to vector<16x1xf32>
    %764 = vector.broadcast %763 : vector<16x1xf32> to vector<16x72xf32>
    %765 = arith.mulf %764, %756 : vector<16x72xf32>
    %766 = arith.addf %762, %765 : vector<16x72xf32>
    %767 = vector.extract_strided_slice %727 {offsets = [0, 2], sizes = [16, 1], strides = [1, 1]} : vector<16x3xf32> to vector<16x1xf32>
    %cst_274 = arith.constant 0.000000e+00 : f32
    %768 = vector.broadcast %cst_274 : f32 to vector<16x2xf32>
    %769 = vector.extract_strided_slice %756 {offsets = [0, 2], sizes = [16, 70], strides = [1, 1]} : vector<16x72xf32> to vector<16x70xf32>
    %770 = tpu.concatenate %769, %768 in 1 : vector<16x70xf32>, vector<16x2xf32> -> vector<16x72xf32>
    %771 = vector.broadcast %767 : vector<16x1xf32> to vector<16x72xf32>
    %772 = arith.mulf %771, %770 : vector<16x72xf32>
    %773 = arith.addf %766, %772 : vector<16x72xf32>
    %cst_275 = arith.constant 0.000000e+00 : f32
    %774 = vector.broadcast %cst_275 : f32 to vector<16x72xf32>
    %775 = arith.cmpf ogt, %773, %774 : vector<16x72xf32>
    %776 = vector.broadcast %724 : vector<16x1xf32> to vector<16x72xf32>
    %777 = arith.mulf %776, %773 : vector<16x72xf32>
    %778 = arith.select %775, %773, %777 : vector<16x72xi1>, vector<16x72xf32>
    %779 = vector.shape_cast %778 : vector<16x72xf32> to vector<1x16x72xf32>
    %cst_276 = arith.constant dense<0.000000e+00> : vector<1xf32>
    %780 = vector.multi_reduction <add>, %779, %cst_276 [1, 2] : vector<1x16x72xf32> to vector<1xf32>
    %781 = vector.shape_cast %780 : vector<1xf32> to vector<1x1x1xf32>
    %782 = vector.extract %781[0, 0, 0] : f32 from vector<1x1x1xf32>
    %cst_277 = arith.constant 8.68055562E-4 : f32
    %783 = arith.mulf %782, %cst_277 : f32
    %784 = arith.mulf %778, %778 : vector<16x72xf32>
    %785 = vector.shape_cast %784 : vector<16x72xf32> to vector<1x16x72xf32>
    %cst_278 = arith.constant dense<0.000000e+00> : vector<1xf32>
    %786 = vector.multi_reduction <add>, %785, %cst_278 [1, 2] : vector<1x16x72xf32> to vector<1xf32>
    %787 = vector.shape_cast %786 : vector<1xf32> to vector<1x1x1xf32>
    %788 = vector.extract %787[0, 0, 0] : f32 from vector<1x1x1xf32>
    %cst_279 = arith.constant 8.68055562E-4 : f32
    %789 = arith.mulf %788, %cst_279 : f32
    %790 = arith.mulf %783, %783 : f32
    %791 = arith.subf %789, %790 : f32
    %792 = vector.broadcast %783 : f32 to vector<16x72xf32>
    %793 = arith.subf %778, %792 : vector<16x72xf32>
    %794 = vector.broadcast %725 : vector<16x1xf32> to vector<16x72xf32>
    %795 = arith.mulf %794, %793 : vector<16x72xf32>
    %cst_280 = arith.constant 9.99999993E-9 : f32
    %796 = arith.addf %791, %cst_280 : f32
    %797 = math.rsqrt %796 : f32
    %798 = vector.broadcast %797 : f32 to vector<16x72xf32>
    %799 = arith.mulf %795, %798 : vector<16x72xf32>
    %800 = vector.broadcast %726 : vector<16x1xf32> to vector<16x72xf32>
    %801 = arith.addf %799, %800 : vector<16x72xf32>
    %cst_281 = arith.constant dense<0.000000e+00> : vector<16x72xf32>
    %802 = tpu.matmul %719, %801, %cst_281 {dimension_numbers = #tpu.dot_dimension_numbers<[1], [0], [0], [1], [0, 0, 1, 1], [], []>} : vector<16x16xf32>, vector<16x72xf32>, vector<16x72xf32> -> vector<16x72xf32>
    %803 = arith.addf %802, %717 : vector<16x72xf32>
    %cst_282 = arith.constant dense<0.000000e+00> : vector<16x72xf32>
    %804 = tpu.matmul %4, %803, %cst_282 {dimension_numbers = #tpu.dot_dimension_numbers<[1], [0], [0], [1], [0, 0, 1, 1], [], []>} : vector<16x16xf32>, vector<16x72xf32>, vector<16x72xf32> -> vector<16x72xf32>
    %cst_283 = arith.constant 0.000000e+00 : f32
    %805 = vector.broadcast %cst_283 : f32 to vector<16x72xf32>
    %806 = arith.maximumf %804, %805 : vector<16x72xf32>
    %807 = arith.mulf %806, %15 : vector<16x72xf32>
    %cst_284 = arith.constant dense<0.000000e+00> : vector<8x72xf32>
    %808 = tpu.matmul %5, %807, %cst_284 {dimension_numbers = #tpu.dot_dimension_numbers<[1], [0], [0], [1], [0, 0, 1, 1], [], []>} : vector<8x16xf32>, vector<16x72xf32>, vector<8x72xf32> -> vector<8x72xf32>
    %cst_285 = arith.constant dense<0.000000e+00> : vector<8x292xf32>
    %809 = tpu.matmul %808, %7, %cst_285 {dimension_numbers = #tpu.dot_dimension_numbers<[1], [0], [0], [1], [0, 0, 1, 1], [], []>} : vector<8x72xf32>, vector<72x292xf32>, vector<8x292xf32> -> vector<8x292xf32>
    %810 = vector.extract_strided_slice %809 {offsets = [0, 0], sizes = [1, 292], strides = [1, 1]} : vector<8x292xf32> to vector<1x292xf32>
    %cst_286 = arith.constant 0.000000e+00 : f32
    %811 = vector.broadcast %cst_286 : f32 to vector<1x1xf32>
    %812 = vector.extract_strided_slice %809 {offsets = [1, 0], sizes = [1, 291], strides = [1, 1]} : vector<8x292xf32> to vector<1x291xf32>
    %813 = tpu.concatenate %811, %812 in 1 : vector<1x1xf32>, vector<1x291xf32> -> vector<1x292xf32>
    %814 = arith.addf %810, %813 : vector<1x292xf32>
    %cst_287 = arith.constant 0.000000e+00 : f32
    %815 = vector.broadcast %cst_287 : f32 to vector<1x2xf32>
    %816 = vector.extract_strided_slice %809 {offsets = [2, 0], sizes = [1, 290], strides = [1, 1]} : vector<8x292xf32> to vector<1x290xf32>
    %817 = tpu.concatenate %815, %816 in 1 : vector<1x2xf32>, vector<1x290xf32> -> vector<1x292xf32>
    %818 = arith.addf %814, %817 : vector<1x292xf32>
    %cst_288 = arith.constant 0.000000e+00 : f32
    %819 = vector.broadcast %cst_288 : f32 to vector<1x3xf32>
    %820 = vector.extract_strided_slice %809 {offsets = [3, 0], sizes = [1, 289], strides = [1, 1]} : vector<8x292xf32> to vector<1x289xf32>
    %821 = tpu.concatenate %819, %820 in 1 : vector<1x3xf32>, vector<1x289xf32> -> vector<1x292xf32>
    %822 = arith.addf %818, %821 : vector<1x292xf32>
    %cst_289 = arith.constant 0.000000e+00 : f32
    %823 = vector.broadcast %cst_289 : f32 to vector<1x4xf32>
    %824 = vector.extract_strided_slice %809 {offsets = [4, 0], sizes = [1, 288], strides = [1, 1]} : vector<8x292xf32> to vector<1x288xf32>
    %825 = tpu.concatenate %823, %824 in 1 : vector<1x4xf32>, vector<1x288xf32> -> vector<1x292xf32>
    %826 = arith.addf %822, %825 : vector<1x292xf32>
    %cst_290 = arith.constant 0.000000e+00 : f32
    %827 = vector.broadcast %cst_290 : f32 to vector<1x5xf32>
    %828 = vector.extract_strided_slice %809 {offsets = [5, 0], sizes = [1, 287], strides = [1, 1]} : vector<8x292xf32> to vector<1x287xf32>
    %829 = tpu.concatenate %827, %828 in 1 : vector<1x5xf32>, vector<1x287xf32> -> vector<1x292xf32>
    %830 = arith.addf %826, %829 : vector<1x292xf32>
    %cst_291 = arith.constant 0.000000e+00 : f32
    %831 = vector.broadcast %cst_291 : f32 to vector<1x6xf32>
    %832 = vector.extract_strided_slice %809 {offsets = [6, 0], sizes = [1, 286], strides = [1, 1]} : vector<8x292xf32> to vector<1x286xf32>
    %833 = tpu.concatenate %831, %832 in 1 : vector<1x6xf32>, vector<1x286xf32> -> vector<1x292xf32>
    %834 = arith.addf %830, %833 : vector<1x292xf32>
    %cst_292 = arith.constant 0.000000e+00 : f32
    %835 = vector.broadcast %cst_292 : f32 to vector<1x7xf32>
    %836 = vector.extract_strided_slice %809 {offsets = [7, 0], sizes = [1, 285], strides = [1, 1]} : vector<8x292xf32> to vector<1x285xf32>
    %837 = tpu.concatenate %835, %836 in 1 : vector<1x7xf32>, vector<1x285xf32> -> vector<1x292xf32>
    %838 = arith.addf %834, %837 : vector<1x292xf32>
    %c1_293 = arith.constant 1 : index
    %c0_294 = arith.constant 0 : index
    %c0_295 = arith.constant 0 : index
    %839 = vector.load %arg1[%c1_293, %c0_294, %c0_295] : memref<2x73x4xf32, #tpu.memory_space<vmem>>, vector<1x73x4xf32>
    %840 = vector.shape_cast %839 : vector<1x73x4xf32> to vector<73x4xf32>
    %841 = vector.extract_strided_slice %840 {offsets = [0, 0], sizes = [72, 4], strides = [1, 1]} : vector<73x4xf32> to vector<72x4xf32>
    %842 = vector.extract_strided_slice %840 {offsets = [1, 0], sizes = [72, 4], strides = [1, 1]} : vector<73x4xf32> to vector<72x4xf32>
    %843 = tpu.concatenate %841, %842 in 1 : vector<72x4xf32>, vector<72x4xf32> -> vector<72x8xf32>
    %cst_296 = arith.constant dense<0.000000e+00> : vector<16x72xf32>
    %844 = tpu.matmul %0, %843, %cst_296 {dimension_numbers = #tpu.dot_dimension_numbers<[1], [1], [0], [0], [0, 0, 1, 0], [], []>} : vector<16x8xf32>, vector<72x8xf32>, vector<16x72xf32> -> vector<16x72xf32>
    %cst_297 = arith.constant 0.000000e+00 : f32
    %845 = vector.broadcast %cst_297 : f32 to vector<16x72xf32>
    %846 = arith.maximumf %844, %845 : vector<16x72xf32>
    %cst_298 = arith.constant dense<0.000000e+00> : vector<72xf32>
    %847 = vector.multi_reduction <add>, %846, %cst_298 [0] : vector<16x72xf32> to vector<72xf32>
    %848 = vector.shape_cast %847 : vector<72xf32> to vector<1x72xf32>
    %cst_299 = arith.constant 6.250000e-02 : f32
    %849 = vector.broadcast %cst_299 : f32 to vector<1x72xf32>
    %850 = arith.mulf %848, %849 : vector<1x72xf32>
    %851 = arith.mulf %846, %846 : vector<16x72xf32>
    %cst_300 = arith.constant dense<0.000000e+00> : vector<72xf32>
    %852 = vector.multi_reduction <add>, %851, %cst_300 [0] : vector<16x72xf32> to vector<72xf32>
    %853 = vector.shape_cast %852 : vector<72xf32> to vector<1x72xf32>
    %cst_301 = arith.constant 6.250000e-02 : f32
    %854 = vector.broadcast %cst_301 : f32 to vector<1x72xf32>
    %855 = arith.mulf %853, %854 : vector<1x72xf32>
    %856 = vector.broadcast %850 : vector<1x72xf32> to vector<16x72xf32>
    %857 = arith.subf %846, %856 : vector<16x72xf32>
    %858 = arith.mulf %850, %850 : vector<1x72xf32>
    %859 = arith.subf %855, %858 : vector<1x72xf32>
    %cst_302 = arith.constant 9.99999974E-6 : f32
    %860 = vector.broadcast %cst_302 : f32 to vector<1x72xf32>
    %861 = arith.addf %859, %860 : vector<1x72xf32>
    %862 = math.rsqrt %861 : vector<1x72xf32>
    %863 = vector.broadcast %862 : vector<1x72xf32> to vector<16x72xf32>
    %864 = arith.mulf %857, %863 : vector<16x72xf32>
    %c1_303 = arith.constant 1 : index
    %c0_304 = arith.constant 0 : index
    %c0_305 = arith.constant 0 : index
    %865 = vector.load %arg2[%c1_303, %c0_304, %c0_305] : memref<2x2x16xf32, #tpu.memory_space<vmem>>, vector<1x2x16xf32>
    %866 = vector.shape_cast %865 : vector<1x2x16xf32> to vector<2x16xf32>
    %c0_306 = arith.constant 0 : index
    %c0_307 = arith.constant 0 : index
    %c0_308 = arith.constant 0 : index
    %867 = vector.load %arg4[%c0_306, %c0_307, %c0_308] : memref<5x40x512xf32, #tpu.memory_space<vmem>>, vector<1x16x512xf32>
    %868 = vector.shape_cast %867 : vector<1x16x512xf32> to vector<16x512xf32>
    %c0_309 = arith.constant 0 : index
    %c16_310 = arith.constant 16 : index
    %c0_311 = arith.constant 0 : index
    %869 = vector.load %arg4[%c0_309, %c16_310, %c0_311] : memref<5x40x512xf32, #tpu.memory_space<vmem>>, vector<1x1x512xf32>
    %870 = vector.shape_cast %869 : vector<1x1x512xf32> to vector<1x512xf32>
    %c0_312 = arith.constant 0 : index
    %c17_313 = arith.constant 17 : index
    %c0_314 = arith.constant 0 : index
    %871 = vector.load %arg4[%c0_312, %c17_313, %c0_314] : memref<5x40x512xf32, #tpu.memory_space<vmem>>, vector<1x1x512xf32>
    %872 = vector.shape_cast %871 : vector<1x1x512xf32> to vector<1x512xf32>
    %c0_315 = arith.constant 0 : index
    %c18_316 = arith.constant 18 : index
    %c0_317 = arith.constant 0 : index
    %873 = vector.load %arg4[%c0_315, %c18_316, %c0_317] : memref<5x40x512xf32, #tpu.memory_space<vmem>>, vector<1x1x512xf32>
    %874 = vector.shape_cast %873 : vector<1x1x512xf32> to vector<1x512xf32>
    %c0_318 = arith.constant 0 : index
    %c19_319 = arith.constant 19 : index
    %c0_320 = arith.constant 0 : index
    %875 = vector.load %arg4[%c0_318, %c19_319, %c0_320] : memref<5x40x512xf32, #tpu.memory_space<vmem>>, vector<1x1x512xf32>
    %876 = vector.shape_cast %875 : vector<1x1x512xf32> to vector<1x512xf32>
    %c0_321 = arith.constant 0 : index
    %c20_322 = arith.constant 20 : index
    %c0_323 = arith.constant 0 : index
    %877 = vector.load %arg4[%c0_321, %c20_322, %c0_323] : memref<5x40x512xf32, #tpu.memory_space<vmem>>, vector<1x1x512xf32>
    %878 = vector.shape_cast %877 : vector<1x1x512xf32> to vector<1x512xf32>
    %c0_324 = arith.constant 0 : index
    %c21_325 = arith.constant 21 : index
    %c0_326 = arith.constant 0 : index
    %879 = vector.load %arg4[%c0_324, %c21_325, %c0_326] : memref<5x40x512xf32, #tpu.memory_space<vmem>>, vector<1x3x512xf32>
    %880 = vector.shape_cast %879 : vector<1x3x512xf32> to vector<3x512xf32>
    %c0_327 = arith.constant 0 : index
    %c24_328 = arith.constant 24 : index
    %c0_329 = arith.constant 0 : index
    %881 = vector.load %arg4[%c0_327, %c24_328, %c0_329] : memref<5x40x512xf32, #tpu.memory_space<vmem>>, vector<1x16x512xf32>
    %882 = vector.shape_cast %881 : vector<1x16x512xf32> to vector<16x512xf32>
    %c64_330 = arith.constant 64 : index
    %c0_331 = arith.constant 0 : index
    %883 = vector.load %arg3[%c64_330, %c0_331] : memref<200x16xf32, #tpu.memory_space<vmem>>, vector<2x16xf32>
    %cst_332 = arith.constant 0.000000e+00 : f32
    %884 = vector.broadcast %cst_332 : f32 to vector<2x16xf32>
    %885 = arith.maximumf %866, %884 : vector<2x16xf32>
    %886 = vector.extract_strided_slice %883 {offsets = [0, 0], sizes = [1, 16], strides = [1, 1]} : vector<2x16xf32> to vector<1x16xf32>
    %887 = vector.extract_strided_slice %883 {offsets = [1, 0], sizes = [1, 16], strides = [1, 1]} : vector<2x16xf32> to vector<1x16xf32>
    %888 = vector.shape_cast %885 : vector<2x16xf32> to vector<1x2x16xf32>
    %cst_333 = arith.constant dense<0.000000e+00> : vector<1xf32>
    %889 = vector.multi_reduction <add>, %888, %cst_333 [1, 2] : vector<1x2x16xf32> to vector<1xf32>
    %890 = vector.shape_cast %889 : vector<1xf32> to vector<1x1x1xf32>
    %891 = vector.extract %890[0, 0, 0] : f32 from vector<1x1x1xf32>
    %cst_334 = arith.constant 3.125000e-02 : f32
    %892 = arith.mulf %891, %cst_334 : f32
    %893 = arith.mulf %885, %885 : vector<2x16xf32>
    %894 = vector.shape_cast %893 : vector<2x16xf32> to vector<1x2x16xf32>
    %cst_335 = arith.constant dense<0.000000e+00> : vector<1xf32>
    %895 = vector.multi_reduction <add>, %894, %cst_335 [1, 2] : vector<1x2x16xf32> to vector<1xf32>
    %896 = vector.shape_cast %895 : vector<1xf32> to vector<1x1x1xf32>
    %897 = vector.extract %896[0, 0, 0] : f32 from vector<1x1x1xf32>
    %cst_336 = arith.constant 3.125000e-02 : f32
    %898 = arith.mulf %897, %cst_336 : f32
    %899 = arith.mulf %892, %892 : f32
    %900 = arith.subf %898, %899 : f32
    %901 = vector.broadcast %892 : f32 to vector<2x16xf32>
    %902 = arith.subf %885, %901 : vector<2x16xf32>
    %903 = vector.broadcast %886 : vector<1x16xf32> to vector<2x16xf32>
    %904 = arith.mulf %903, %902 : vector<2x16xf32>
    %cst_337 = arith.constant 9.99999993E-9 : f32
    %905 = arith.addf %900, %cst_337 : f32
    %906 = math.rsqrt %905 : f32
    %907 = vector.broadcast %906 : f32 to vector<2x16xf32>
    %908 = arith.mulf %904, %907 : vector<2x16xf32>
    %909 = vector.broadcast %887 : vector<1x16xf32> to vector<2x16xf32>
    %910 = arith.addf %908, %909 : vector<2x16xf32>
    %cst_338 = arith.constant dense<0.000000e+00> : vector<2x512xf32>
    %911 = tpu.matmul %910, %868, %cst_338 {dimension_numbers = #tpu.dot_dimension_numbers<[1], [0], [0], [1], [0, 0, 1, 1], [], []>} : vector<2x16xf32>, vector<16x512xf32>, vector<2x512xf32> -> vector<2x512xf32>
    %cst_339 = arith.constant 0.000000e+00 : f32
    %912 = vector.broadcast %cst_339 : f32 to vector<2x512xf32>
    %913 = arith.maximumf %911, %912 : vector<2x512xf32>
    %914 = vector.shape_cast %913 : vector<2x512xf32> to vector<1x2x512xf32>
    %cst_340 = arith.constant dense<0.000000e+00> : vector<1xf32>
    %915 = vector.multi_reduction <add>, %914, %cst_340 [1, 2] : vector<1x2x512xf32> to vector<1xf32>
    %916 = vector.shape_cast %915 : vector<1xf32> to vector<1x1x1xf32>
    %917 = vector.extract %916[0, 0, 0] : f32 from vector<1x1x1xf32>
    %cst_341 = arith.constant 9.765625E-4 : f32
    %918 = arith.mulf %917, %cst_341 : f32
    %919 = arith.mulf %913, %913 : vector<2x512xf32>
    %920 = vector.shape_cast %919 : vector<2x512xf32> to vector<1x2x512xf32>
    %cst_342 = arith.constant dense<0.000000e+00> : vector<1xf32>
    %921 = vector.multi_reduction <add>, %920, %cst_342 [1, 2] : vector<1x2x512xf32> to vector<1xf32>
    %922 = vector.shape_cast %921 : vector<1xf32> to vector<1x1x1xf32>
    %923 = vector.extract %922[0, 0, 0] : f32 from vector<1x1x1xf32>
    %cst_343 = arith.constant 9.765625E-4 : f32
    %924 = arith.mulf %923, %cst_343 : f32
    %925 = arith.mulf %918, %918 : f32
    %926 = arith.subf %924, %925 : f32
    %927 = vector.broadcast %918 : f32 to vector<2x512xf32>
    %928 = arith.subf %913, %927 : vector<2x512xf32>
    %929 = vector.broadcast %870 : vector<1x512xf32> to vector<2x512xf32>
    %930 = arith.mulf %929, %928 : vector<2x512xf32>
    %cst_344 = arith.constant 9.99999993E-9 : f32
    %931 = arith.addf %926, %cst_344 : f32
    %932 = math.rsqrt %931 : f32
    %933 = vector.broadcast %932 : f32 to vector<2x512xf32>
    %934 = arith.mulf %930, %933 : vector<2x512xf32>
    %935 = vector.broadcast %872 : vector<1x512xf32> to vector<2x512xf32>
    %936 = arith.addf %934, %935 : vector<2x512xf32>
    %cst_345 = arith.constant 0.000000e+00 : f32
    %937 = vector.broadcast %cst_345 : f32 to vector<1x512xf32>
    %938 = vector.extract_strided_slice %936 {offsets = [0, 0], sizes = [1, 512], strides = [1, 1]} : vector<2x512xf32> to vector<1x512xf32>
    %939 = tpu.concatenate %937, %938 in 0 : vector<1x512xf32>, vector<1x512xf32> -> vector<2x512xf32>
    %940 = vector.extract_strided_slice %936 {offsets = [1, 0], sizes = [1, 512], strides = [1, 1]} : vector<2x512xf32> to vector<1x512xf32>
    %941 = tpu.concatenate %940, %937 in 0 : vector<1x512xf32>, vector<1x512xf32> -> vector<2x512xf32>
    %942 = vector.extract_strided_slice %880 {offsets = [0, 0], sizes = [1, 512], strides = [1, 1]} : vector<3x512xf32> to vector<1x512xf32>
    %943 = vector.broadcast %942 : vector<1x512xf32> to vector<2x512xf32>
    %944 = arith.mulf %943, %939 : vector<2x512xf32>
    %945 = vector.extract_strided_slice %880 {offsets = [1, 0], sizes = [1, 512], strides = [1, 1]} : vector<3x512xf32> to vector<1x512xf32>
    %946 = vector.broadcast %945 : vector<1x512xf32> to vector<2x512xf32>
    %947 = arith.mulf %946, %936 : vector<2x512xf32>
    %948 = arith.addf %944, %947 : vector<2x512xf32>
    %949 = vector.extract_strided_slice %880 {offsets = [2, 0], sizes = [1, 512], strides = [1, 1]} : vector<3x512xf32> to vector<1x512xf32>
    %950 = vector.broadcast %949 : vector<1x512xf32> to vector<2x512xf32>
    %951 = arith.mulf %950, %941 : vector<2x512xf32>
    %952 = arith.addf %948, %951 : vector<2x512xf32>
    %cst_346 = arith.constant 0.000000e+00 : f32
    %953 = vector.broadcast %cst_346 : f32 to vector<2x512xf32>
    %954 = arith.cmpf ogt, %952, %953 : vector<2x512xf32>
    %955 = vector.broadcast %874 : vector<1x512xf32> to vector<2x512xf32>
    %956 = arith.mulf %955, %952 : vector<2x512xf32>
    %957 = arith.select %954, %952, %956 : vector<2x512xi1>, vector<2x512xf32>
    %958 = vector.shape_cast %957 : vector<2x512xf32> to vector<1x2x512xf32>
    %cst_347 = arith.constant dense<0.000000e+00> : vector<1xf32>
    %959 = vector.multi_reduction <add>, %958, %cst_347 [1, 2] : vector<1x2x512xf32> to vector<1xf32>
    %960 = vector.shape_cast %959 : vector<1xf32> to vector<1x1x1xf32>
    %961 = vector.extract %960[0, 0, 0] : f32 from vector<1x1x1xf32>
    %cst_348 = arith.constant 9.765625E-4 : f32
    %962 = arith.mulf %961, %cst_348 : f32
    %963 = arith.mulf %957, %957 : vector<2x512xf32>
    %964 = vector.shape_cast %963 : vector<2x512xf32> to vector<1x2x512xf32>
    %cst_349 = arith.constant dense<0.000000e+00> : vector<1xf32>
    %965 = vector.multi_reduction <add>, %964, %cst_349 [1, 2] : vector<1x2x512xf32> to vector<1xf32>
    %966 = vector.shape_cast %965 : vector<1xf32> to vector<1x1x1xf32>
    %967 = vector.extract %966[0, 0, 0] : f32 from vector<1x1x1xf32>
    %cst_350 = arith.constant 9.765625E-4 : f32
    %968 = arith.mulf %967, %cst_350 : f32
    %969 = arith.mulf %962, %962 : f32
    %970 = arith.subf %968, %969 : f32
    %971 = vector.broadcast %962 : f32 to vector<2x512xf32>
    %972 = arith.subf %957, %971 : vector<2x512xf32>
    %973 = vector.broadcast %876 : vector<1x512xf32> to vector<2x512xf32>
    %974 = arith.mulf %973, %972 : vector<2x512xf32>
    %cst_351 = arith.constant 9.99999993E-9 : f32
    %975 = arith.addf %970, %cst_351 : f32
    %976 = math.rsqrt %975 : f32
    %977 = vector.broadcast %976 : f32 to vector<2x512xf32>
    %978 = arith.mulf %974, %977 : vector<2x512xf32>
    %979 = vector.broadcast %878 : vector<1x512xf32> to vector<2x512xf32>
    %980 = arith.addf %978, %979 : vector<2x512xf32>
    %cst_352 = arith.constant dense<0.000000e+00> : vector<2x16xf32>
    %981 = tpu.matmul %980, %882, %cst_352 {dimension_numbers = #tpu.dot_dimension_numbers<[1], [1], [0], [0], [0, 0, 1, 0], [], []>} : vector<2x512xf32>, vector<16x512xf32>, vector<2x16xf32> -> vector<2x16xf32>
    %982 = arith.addf %981, %866 : vector<2x16xf32>
    %c1_353 = arith.constant 1 : index
    %c0_354 = arith.constant 0 : index
    %c0_355 = arith.constant 0 : index
    %983 = vector.load %arg4[%c1_353, %c0_354, %c0_355] : memref<5x40x512xf32, #tpu.memory_space<vmem>>, vector<1x16x512xf32>
    %984 = vector.shape_cast %983 : vector<1x16x512xf32> to vector<16x512xf32>
    %c1_356 = arith.constant 1 : index
    %c16_357 = arith.constant 16 : index
    %c0_358 = arith.constant 0 : index
    %985 = vector.load %arg4[%c1_356, %c16_357, %c0_358] : memref<5x40x512xf32, #tpu.memory_space<vmem>>, vector<1x1x512xf32>
    %986 = vector.shape_cast %985 : vector<1x1x512xf32> to vector<1x512xf32>
    %c1_359 = arith.constant 1 : index
    %c17_360 = arith.constant 17 : index
    %c0_361 = arith.constant 0 : index
    %987 = vector.load %arg4[%c1_359, %c17_360, %c0_361] : memref<5x40x512xf32, #tpu.memory_space<vmem>>, vector<1x1x512xf32>
    %988 = vector.shape_cast %987 : vector<1x1x512xf32> to vector<1x512xf32>
    %c1_362 = arith.constant 1 : index
    %c18_363 = arith.constant 18 : index
    %c0_364 = arith.constant 0 : index
    %989 = vector.load %arg4[%c1_362, %c18_363, %c0_364] : memref<5x40x512xf32, #tpu.memory_space<vmem>>, vector<1x1x512xf32>
    %990 = vector.shape_cast %989 : vector<1x1x512xf32> to vector<1x512xf32>
    %c1_365 = arith.constant 1 : index
    %c19_366 = arith.constant 19 : index
    %c0_367 = arith.constant 0 : index
    %991 = vector.load %arg4[%c1_365, %c19_366, %c0_367] : memref<5x40x512xf32, #tpu.memory_space<vmem>>, vector<1x1x512xf32>
    %992 = vector.shape_cast %991 : vector<1x1x512xf32> to vector<1x512xf32>
    %c1_368 = arith.constant 1 : index
    %c20_369 = arith.constant 20 : index
    %c0_370 = arith.constant 0 : index
    %993 = vector.load %arg4[%c1_368, %c20_369, %c0_370] : memref<5x40x512xf32, #tpu.memory_space<vmem>>, vector<1x1x512xf32>
    %994 = vector.shape_cast %993 : vector<1x1x512xf32> to vector<1x512xf32>
    %c1_371 = arith.constant 1 : index
    %c21_372 = arith.constant 21 : index
    %c0_373 = arith.constant 0 : index
    %995 = vector.load %arg4[%c1_371, %c21_372, %c0_373] : memref<5x40x512xf32, #tpu.memory_space<vmem>>, vector<1x3x512xf32>
    %996 = vector.shape_cast %995 : vector<1x3x512xf32> to vector<3x512xf32>
    %c1_374 = arith.constant 1 : index
    %c24_375 = arith.constant 24 : index
    %c0_376 = arith.constant 0 : index
    %997 = vector.load %arg4[%c1_374, %c24_375, %c0_376] : memref<5x40x512xf32, #tpu.memory_space<vmem>>, vector<1x16x512xf32>
    %998 = vector.shape_cast %997 : vector<1x16x512xf32> to vector<16x512xf32>
    %c66_377 = arith.constant 66 : index
    %c0_378 = arith.constant 0 : index
    %999 = vector.load %arg3[%c66_377, %c0_378] : memref<200x16xf32, #tpu.memory_space<vmem>>, vector<2x16xf32>
    %cst_379 = arith.constant 0.000000e+00 : f32
    %1000 = vector.broadcast %cst_379 : f32 to vector<2x16xf32>
    %1001 = arith.maximumf %982, %1000 : vector<2x16xf32>
    %1002 = vector.extract_strided_slice %999 {offsets = [0, 0], sizes = [1, 16], strides = [1, 1]} : vector<2x16xf32> to vector<1x16xf32>
    %1003 = vector.extract_strided_slice %999 {offsets = [1, 0], sizes = [1, 16], strides = [1, 1]} : vector<2x16xf32> to vector<1x16xf32>
    %1004 = vector.shape_cast %1001 : vector<2x16xf32> to vector<1x2x16xf32>
    %cst_380 = arith.constant dense<0.000000e+00> : vector<1xf32>
    %1005 = vector.multi_reduction <add>, %1004, %cst_380 [1, 2] : vector<1x2x16xf32> to vector<1xf32>
    %1006 = vector.shape_cast %1005 : vector<1xf32> to vector<1x1x1xf32>
    %1007 = vector.extract %1006[0, 0, 0] : f32 from vector<1x1x1xf32>
    %cst_381 = arith.constant 3.125000e-02 : f32
    %1008 = arith.mulf %1007, %cst_381 : f32
    %1009 = arith.mulf %1001, %1001 : vector<2x16xf32>
    %1010 = vector.shape_cast %1009 : vector<2x16xf32> to vector<1x2x16xf32>
    %cst_382 = arith.constant dense<0.000000e+00> : vector<1xf32>
    %1011 = vector.multi_reduction <add>, %1010, %cst_382 [1, 2] : vector<1x2x16xf32> to vector<1xf32>
    %1012 = vector.shape_cast %1011 : vector<1xf32> to vector<1x1x1xf32>
    %1013 = vector.extract %1012[0, 0, 0] : f32 from vector<1x1x1xf32>
    %cst_383 = arith.constant 3.125000e-02 : f32
    %1014 = arith.mulf %1013, %cst_383 : f32
    %1015 = arith.mulf %1008, %1008 : f32
    %1016 = arith.subf %1014, %1015 : f32
    %1017 = vector.broadcast %1008 : f32 to vector<2x16xf32>
    %1018 = arith.subf %1001, %1017 : vector<2x16xf32>
    %1019 = vector.broadcast %1002 : vector<1x16xf32> to vector<2x16xf32>
    %1020 = arith.mulf %1019, %1018 : vector<2x16xf32>
    %cst_384 = arith.constant 9.99999993E-9 : f32
    %1021 = arith.addf %1016, %cst_384 : f32
    %1022 = math.rsqrt %1021 : f32
    %1023 = vector.broadcast %1022 : f32 to vector<2x16xf32>
    %1024 = arith.mulf %1020, %1023 : vector<2x16xf32>
    %1025 = vector.broadcast %1003 : vector<1x16xf32> to vector<2x16xf32>
    %1026 = arith.addf %1024, %1025 : vector<2x16xf32>
    %cst_385 = arith.constant dense<0.000000e+00> : vector<2x512xf32>
    %1027 = tpu.matmul %1026, %984, %cst_385 {dimension_numbers = #tpu.dot_dimension_numbers<[1], [0], [0], [1], [0, 0, 1, 1], [], []>} : vector<2x16xf32>, vector<16x512xf32>, vector<2x512xf32> -> vector<2x512xf32>
    %cst_386 = arith.constant 0.000000e+00 : f32
    %1028 = vector.broadcast %cst_386 : f32 to vector<2x512xf32>
    %1029 = arith.maximumf %1027, %1028 : vector<2x512xf32>
    %1030 = vector.shape_cast %1029 : vector<2x512xf32> to vector<1x2x512xf32>
    %cst_387 = arith.constant dense<0.000000e+00> : vector<1xf32>
    %1031 = vector.multi_reduction <add>, %1030, %cst_387 [1, 2] : vector<1x2x512xf32> to vector<1xf32>
    %1032 = vector.shape_cast %1031 : vector<1xf32> to vector<1x1x1xf32>
    %1033 = vector.extract %1032[0, 0, 0] : f32 from vector<1x1x1xf32>
    %cst_388 = arith.constant 9.765625E-4 : f32
    %1034 = arith.mulf %1033, %cst_388 : f32
    %1035 = arith.mulf %1029, %1029 : vector<2x512xf32>
    %1036 = vector.shape_cast %1035 : vector<2x512xf32> to vector<1x2x512xf32>
    %cst_389 = arith.constant dense<0.000000e+00> : vector<1xf32>
    %1037 = vector.multi_reduction <add>, %1036, %cst_389 [1, 2] : vector<1x2x512xf32> to vector<1xf32>
    %1038 = vector.shape_cast %1037 : vector<1xf32> to vector<1x1x1xf32>
    %1039 = vector.extract %1038[0, 0, 0] : f32 from vector<1x1x1xf32>
    %cst_390 = arith.constant 9.765625E-4 : f32
    %1040 = arith.mulf %1039, %cst_390 : f32
    %1041 = arith.mulf %1034, %1034 : f32
    %1042 = arith.subf %1040, %1041 : f32
    %1043 = vector.broadcast %1034 : f32 to vector<2x512xf32>
    %1044 = arith.subf %1029, %1043 : vector<2x512xf32>
    %1045 = vector.broadcast %986 : vector<1x512xf32> to vector<2x512xf32>
    %1046 = arith.mulf %1045, %1044 : vector<2x512xf32>
    %cst_391 = arith.constant 9.99999993E-9 : f32
    %1047 = arith.addf %1042, %cst_391 : f32
    %1048 = math.rsqrt %1047 : f32
    %1049 = vector.broadcast %1048 : f32 to vector<2x512xf32>
    %1050 = arith.mulf %1046, %1049 : vector<2x512xf32>
    %1051 = vector.broadcast %988 : vector<1x512xf32> to vector<2x512xf32>
    %1052 = arith.addf %1050, %1051 : vector<2x512xf32>
    %cst_392 = arith.constant 0.000000e+00 : f32
    %1053 = vector.broadcast %cst_392 : f32 to vector<1x512xf32>
    %1054 = vector.extract_strided_slice %1052 {offsets = [0, 0], sizes = [1, 512], strides = [1, 1]} : vector<2x512xf32> to vector<1x512xf32>
    %1055 = tpu.concatenate %1053, %1054 in 0 : vector<1x512xf32>, vector<1x512xf32> -> vector<2x512xf32>
    %1056 = vector.extract_strided_slice %1052 {offsets = [1, 0], sizes = [1, 512], strides = [1, 1]} : vector<2x512xf32> to vector<1x512xf32>
    %1057 = tpu.concatenate %1056, %1053 in 0 : vector<1x512xf32>, vector<1x512xf32> -> vector<2x512xf32>
    %1058 = vector.extract_strided_slice %996 {offsets = [0, 0], sizes = [1, 512], strides = [1, 1]} : vector<3x512xf32> to vector<1x512xf32>
    %1059 = vector.broadcast %1058 : vector<1x512xf32> to vector<2x512xf32>
    %1060 = arith.mulf %1059, %1055 : vector<2x512xf32>
    %1061 = vector.extract_strided_slice %996 {offsets = [1, 0], sizes = [1, 512], strides = [1, 1]} : vector<3x512xf32> to vector<1x512xf32>
    %1062 = vector.broadcast %1061 : vector<1x512xf32> to vector<2x512xf32>
    %1063 = arith.mulf %1062, %1052 : vector<2x512xf32>
    %1064 = arith.addf %1060, %1063 : vector<2x512xf32>
    %1065 = vector.extract_strided_slice %996 {offsets = [2, 0], sizes = [1, 512], strides = [1, 1]} : vector<3x512xf32> to vector<1x512xf32>
    %1066 = vector.broadcast %1065 : vector<1x512xf32> to vector<2x512xf32>
    %1067 = arith.mulf %1066, %1057 : vector<2x512xf32>
    %1068 = arith.addf %1064, %1067 : vector<2x512xf32>
    %cst_393 = arith.constant 0.000000e+00 : f32
    %1069 = vector.broadcast %cst_393 : f32 to vector<2x512xf32>
    %1070 = arith.cmpf ogt, %1068, %1069 : vector<2x512xf32>
    %1071 = vector.broadcast %990 : vector<1x512xf32> to vector<2x512xf32>
    %1072 = arith.mulf %1071, %1068 : vector<2x512xf32>
    %1073 = arith.select %1070, %1068, %1072 : vector<2x512xi1>, vector<2x512xf32>
    %1074 = vector.shape_cast %1073 : vector<2x512xf32> to vector<1x2x512xf32>
    %cst_394 = arith.constant dense<0.000000e+00> : vector<1xf32>
    %1075 = vector.multi_reduction <add>, %1074, %cst_394 [1, 2] : vector<1x2x512xf32> to vector<1xf32>
    %1076 = vector.shape_cast %1075 : vector<1xf32> to vector<1x1x1xf32>
    %1077 = vector.extract %1076[0, 0, 0] : f32 from vector<1x1x1xf32>
    %cst_395 = arith.constant 9.765625E-4 : f32
    %1078 = arith.mulf %1077, %cst_395 : f32
    %1079 = arith.mulf %1073, %1073 : vector<2x512xf32>
    %1080 = vector.shape_cast %1079 : vector<2x512xf32> to vector<1x2x512xf32>
    %cst_396 = arith.constant dense<0.000000e+00> : vector<1xf32>
    %1081 = vector.multi_reduction <add>, %1080, %cst_396 [1, 2] : vector<1x2x512xf32> to vector<1xf32>
    %1082 = vector.shape_cast %1081 : vector<1xf32> to vector<1x1x1xf32>
    %1083 = vector.extract %1082[0, 0, 0] : f32 from vector<1x1x1xf32>
    %cst_397 = arith.constant 9.765625E-4 : f32
    %1084 = arith.mulf %1083, %cst_397 : f32
    %1085 = arith.mulf %1078, %1078 : f32
    %1086 = arith.subf %1084, %1085 : f32
    %1087 = vector.broadcast %1078 : f32 to vector<2x512xf32>
    %1088 = arith.subf %1073, %1087 : vector<2x512xf32>
    %1089 = vector.broadcast %992 : vector<1x512xf32> to vector<2x512xf32>
    %1090 = arith.mulf %1089, %1088 : vector<2x512xf32>
    %cst_398 = arith.constant 9.99999993E-9 : f32
    %1091 = arith.addf %1086, %cst_398 : f32
    %1092 = math.rsqrt %1091 : f32
    %1093 = vector.broadcast %1092 : f32 to vector<2x512xf32>
    %1094 = arith.mulf %1090, %1093 : vector<2x512xf32>
    %1095 = vector.broadcast %994 : vector<1x512xf32> to vector<2x512xf32>
    %1096 = arith.addf %1094, %1095 : vector<2x512xf32>
    %cst_399 = arith.constant dense<0.000000e+00> : vector<2x16xf32>
    %1097 = tpu.matmul %1096, %998, %cst_399 {dimension_numbers = #tpu.dot_dimension_numbers<[1], [1], [0], [0], [0, 0, 1, 0], [], []>} : vector<2x512xf32>, vector<16x512xf32>, vector<2x16xf32> -> vector<2x16xf32>
    %1098 = arith.addf %1097, %982 : vector<2x16xf32>
    %c2_400 = arith.constant 2 : index
    %c0_401 = arith.constant 0 : index
    %c0_402 = arith.constant 0 : index
    %1099 = vector.load %arg4[%c2_400, %c0_401, %c0_402] : memref<5x40x512xf32, #tpu.memory_space<vmem>>, vector<1x16x512xf32>
    %1100 = vector.shape_cast %1099 : vector<1x16x512xf32> to vector<16x512xf32>
    %c2_403 = arith.constant 2 : index
    %c16_404 = arith.constant 16 : index
    %c0_405 = arith.constant 0 : index
    %1101 = vector.load %arg4[%c2_403, %c16_404, %c0_405] : memref<5x40x512xf32, #tpu.memory_space<vmem>>, vector<1x1x512xf32>
    %1102 = vector.shape_cast %1101 : vector<1x1x512xf32> to vector<1x512xf32>
    %c2_406 = arith.constant 2 : index
    %c17_407 = arith.constant 17 : index
    %c0_408 = arith.constant 0 : index
    %1103 = vector.load %arg4[%c2_406, %c17_407, %c0_408] : memref<5x40x512xf32, #tpu.memory_space<vmem>>, vector<1x1x512xf32>
    %1104 = vector.shape_cast %1103 : vector<1x1x512xf32> to vector<1x512xf32>
    %c2_409 = arith.constant 2 : index
    %c18_410 = arith.constant 18 : index
    %c0_411 = arith.constant 0 : index
    %1105 = vector.load %arg4[%c2_409, %c18_410, %c0_411] : memref<5x40x512xf32, #tpu.memory_space<vmem>>, vector<1x1x512xf32>
    %1106 = vector.shape_cast %1105 : vector<1x1x512xf32> to vector<1x512xf32>
    %c2_412 = arith.constant 2 : index
    %c19_413 = arith.constant 19 : index
    %c0_414 = arith.constant 0 : index
    %1107 = vector.load %arg4[%c2_412, %c19_413, %c0_414] : memref<5x40x512xf32, #tpu.memory_space<vmem>>, vector<1x1x512xf32>
    %1108 = vector.shape_cast %1107 : vector<1x1x512xf32> to vector<1x512xf32>
    %c2_415 = arith.constant 2 : index
    %c20_416 = arith.constant 20 : index
    %c0_417 = arith.constant 0 : index
    %1109 = vector.load %arg4[%c2_415, %c20_416, %c0_417] : memref<5x40x512xf32, #tpu.memory_space<vmem>>, vector<1x1x512xf32>
    %1110 = vector.shape_cast %1109 : vector<1x1x512xf32> to vector<1x512xf32>
    %c2_418 = arith.constant 2 : index
    %c21_419 = arith.constant 21 : index
    %c0_420 = arith.constant 0 : index
    %1111 = vector.load %arg4[%c2_418, %c21_419, %c0_420] : memref<5x40x512xf32, #tpu.memory_space<vmem>>, vector<1x3x512xf32>
    %1112 = vector.shape_cast %1111 : vector<1x3x512xf32> to vector<3x512xf32>
    %c2_421 = arith.constant 2 : index
    %c24_422 = arith.constant 24 : index
    %c0_423 = arith.constant 0 : index
    %1113 = vector.load %arg4[%c2_421, %c24_422, %c0_423] : memref<5x40x512xf32, #tpu.memory_space<vmem>>, vector<1x16x512xf32>
    %1114 = vector.shape_cast %1113 : vector<1x16x512xf32> to vector<16x512xf32>
    %c68_424 = arith.constant 68 : index
    %c0_425 = arith.constant 0 : index
    %1115 = vector.load %arg3[%c68_424, %c0_425] : memref<200x16xf32, #tpu.memory_space<vmem>>, vector<2x16xf32>
    %cst_426 = arith.constant 0.000000e+00 : f32
    %1116 = vector.broadcast %cst_426 : f32 to vector<2x16xf32>
    %1117 = arith.maximumf %1098, %1116 : vector<2x16xf32>
    %1118 = vector.extract_strided_slice %1115 {offsets = [0, 0], sizes = [1, 16], strides = [1, 1]} : vector<2x16xf32> to vector<1x16xf32>
    %1119 = vector.extract_strided_slice %1115 {offsets = [1, 0], sizes = [1, 16], strides = [1, 1]} : vector<2x16xf32> to vector<1x16xf32>
    %1120 = vector.shape_cast %1117 : vector<2x16xf32> to vector<1x2x16xf32>
    %cst_427 = arith.constant dense<0.000000e+00> : vector<1xf32>
    %1121 = vector.multi_reduction <add>, %1120, %cst_427 [1, 2] : vector<1x2x16xf32> to vector<1xf32>
    %1122 = vector.shape_cast %1121 : vector<1xf32> to vector<1x1x1xf32>
    %1123 = vector.extract %1122[0, 0, 0] : f32 from vector<1x1x1xf32>
    %cst_428 = arith.constant 3.125000e-02 : f32
    %1124 = arith.mulf %1123, %cst_428 : f32
    %1125 = arith.mulf %1117, %1117 : vector<2x16xf32>
    %1126 = vector.shape_cast %1125 : vector<2x16xf32> to vector<1x2x16xf32>
    %cst_429 = arith.constant dense<0.000000e+00> : vector<1xf32>
    %1127 = vector.multi_reduction <add>, %1126, %cst_429 [1, 2] : vector<1x2x16xf32> to vector<1xf32>
    %1128 = vector.shape_cast %1127 : vector<1xf32> to vector<1x1x1xf32>
    %1129 = vector.extract %1128[0, 0, 0] : f32 from vector<1x1x1xf32>
    %cst_430 = arith.constant 3.125000e-02 : f32
    %1130 = arith.mulf %1129, %cst_430 : f32
    %1131 = arith.mulf %1124, %1124 : f32
    %1132 = arith.subf %1130, %1131 : f32
    %1133 = vector.broadcast %1124 : f32 to vector<2x16xf32>
    %1134 = arith.subf %1117, %1133 : vector<2x16xf32>
    %1135 = vector.broadcast %1118 : vector<1x16xf32> to vector<2x16xf32>
    %1136 = arith.mulf %1135, %1134 : vector<2x16xf32>
    %cst_431 = arith.constant 9.99999993E-9 : f32
    %1137 = arith.addf %1132, %cst_431 : f32
    %1138 = math.rsqrt %1137 : f32
    %1139 = vector.broadcast %1138 : f32 to vector<2x16xf32>
    %1140 = arith.mulf %1136, %1139 : vector<2x16xf32>
    %1141 = vector.broadcast %1119 : vector<1x16xf32> to vector<2x16xf32>
    %1142 = arith.addf %1140, %1141 : vector<2x16xf32>
    %cst_432 = arith.constant dense<0.000000e+00> : vector<2x512xf32>
    %1143 = tpu.matmul %1142, %1100, %cst_432 {dimension_numbers = #tpu.dot_dimension_numbers<[1], [0], [0], [1], [0, 0, 1, 1], [], []>} : vector<2x16xf32>, vector<16x512xf32>, vector<2x512xf32> -> vector<2x512xf32>
    %cst_433 = arith.constant 0.000000e+00 : f32
    %1144 = vector.broadcast %cst_433 : f32 to vector<2x512xf32>
    %1145 = arith.maximumf %1143, %1144 : vector<2x512xf32>
    %1146 = vector.shape_cast %1145 : vector<2x512xf32> to vector<1x2x512xf32>
    %cst_434 = arith.constant dense<0.000000e+00> : vector<1xf32>
    %1147 = vector.multi_reduction <add>, %1146, %cst_434 [1, 2] : vector<1x2x512xf32> to vector<1xf32>
    %1148 = vector.shape_cast %1147 : vector<1xf32> to vector<1x1x1xf32>
    %1149 = vector.extract %1148[0, 0, 0] : f32 from vector<1x1x1xf32>
    %cst_435 = arith.constant 9.765625E-4 : f32
    %1150 = arith.mulf %1149, %cst_435 : f32
    %1151 = arith.mulf %1145, %1145 : vector<2x512xf32>
    %1152 = vector.shape_cast %1151 : vector<2x512xf32> to vector<1x2x512xf32>
    %cst_436 = arith.constant dense<0.000000e+00> : vector<1xf32>
    %1153 = vector.multi_reduction <add>, %1152, %cst_436 [1, 2] : vector<1x2x512xf32> to vector<1xf32>
    %1154 = vector.shape_cast %1153 : vector<1xf32> to vector<1x1x1xf32>
    %1155 = vector.extract %1154[0, 0, 0] : f32 from vector<1x1x1xf32>
    %cst_437 = arith.constant 9.765625E-4 : f32
    %1156 = arith.mulf %1155, %cst_437 : f32
    %1157 = arith.mulf %1150, %1150 : f32
    %1158 = arith.subf %1156, %1157 : f32
    %1159 = vector.broadcast %1150 : f32 to vector<2x512xf32>
    %1160 = arith.subf %1145, %1159 : vector<2x512xf32>
    %1161 = vector.broadcast %1102 : vector<1x512xf32> to vector<2x512xf32>
    %1162 = arith.mulf %1161, %1160 : vector<2x512xf32>
    %cst_438 = arith.constant 9.99999993E-9 : f32
    %1163 = arith.addf %1158, %cst_438 : f32
    %1164 = math.rsqrt %1163 : f32
    %1165 = vector.broadcast %1164 : f32 to vector<2x512xf32>
    %1166 = arith.mulf %1162, %1165 : vector<2x512xf32>
    %1167 = vector.broadcast %1104 : vector<1x512xf32> to vector<2x512xf32>
    %1168 = arith.addf %1166, %1167 : vector<2x512xf32>
    %cst_439 = arith.constant 0.000000e+00 : f32
    %1169 = vector.broadcast %cst_439 : f32 to vector<1x512xf32>
    %1170 = vector.extract_strided_slice %1168 {offsets = [0, 0], sizes = [1, 512], strides = [1, 1]} : vector<2x512xf32> to vector<1x512xf32>
    %1171 = tpu.concatenate %1169, %1170 in 0 : vector<1x512xf32>, vector<1x512xf32> -> vector<2x512xf32>
    %1172 = vector.extract_strided_slice %1168 {offsets = [1, 0], sizes = [1, 512], strides = [1, 1]} : vector<2x512xf32> to vector<1x512xf32>
    %1173 = tpu.concatenate %1172, %1169 in 0 : vector<1x512xf32>, vector<1x512xf32> -> vector<2x512xf32>
    %1174 = vector.extract_strided_slice %1112 {offsets = [0, 0], sizes = [1, 512], strides = [1, 1]} : vector<3x512xf32> to vector<1x512xf32>
    %1175 = vector.broadcast %1174 : vector<1x512xf32> to vector<2x512xf32>
    %1176 = arith.mulf %1175, %1171 : vector<2x512xf32>
    %1177 = vector.extract_strided_slice %1112 {offsets = [1, 0], sizes = [1, 512], strides = [1, 1]} : vector<3x512xf32> to vector<1x512xf32>
    %1178 = vector.broadcast %1177 : vector<1x512xf32> to vector<2x512xf32>
    %1179 = arith.mulf %1178, %1168 : vector<2x512xf32>
    %1180 = arith.addf %1176, %1179 : vector<2x512xf32>
    %1181 = vector.extract_strided_slice %1112 {offsets = [2, 0], sizes = [1, 512], strides = [1, 1]} : vector<3x512xf32> to vector<1x512xf32>
    %1182 = vector.broadcast %1181 : vector<1x512xf32> to vector<2x512xf32>
    %1183 = arith.mulf %1182, %1173 : vector<2x512xf32>
    %1184 = arith.addf %1180, %1183 : vector<2x512xf32>
    %cst_440 = arith.constant 0.000000e+00 : f32
    %1185 = vector.broadcast %cst_440 : f32 to vector<2x512xf32>
    %1186 = arith.cmpf ogt, %1184, %1185 : vector<2x512xf32>
    %1187 = vector.broadcast %1106 : vector<1x512xf32> to vector<2x512xf32>
    %1188 = arith.mulf %1187, %1184 : vector<2x512xf32>
    %1189 = arith.select %1186, %1184, %1188 : vector<2x512xi1>, vector<2x512xf32>
    %1190 = vector.shape_cast %1189 : vector<2x512xf32> to vector<1x2x512xf32>
    %cst_441 = arith.constant dense<0.000000e+00> : vector<1xf32>
    %1191 = vector.multi_reduction <add>, %1190, %cst_441 [1, 2] : vector<1x2x512xf32> to vector<1xf32>
    %1192 = vector.shape_cast %1191 : vector<1xf32> to vector<1x1x1xf32>
    %1193 = vector.extract %1192[0, 0, 0] : f32 from vector<1x1x1xf32>
    %cst_442 = arith.constant 9.765625E-4 : f32
    %1194 = arith.mulf %1193, %cst_442 : f32
    %1195 = arith.mulf %1189, %1189 : vector<2x512xf32>
    %1196 = vector.shape_cast %1195 : vector<2x512xf32> to vector<1x2x512xf32>
    %cst_443 = arith.constant dense<0.000000e+00> : vector<1xf32>
    %1197 = vector.multi_reduction <add>, %1196, %cst_443 [1, 2] : vector<1x2x512xf32> to vector<1xf32>
    %1198 = vector.shape_cast %1197 : vector<1xf32> to vector<1x1x1xf32>
    %1199 = vector.extract %1198[0, 0, 0] : f32 from vector<1x1x1xf32>
    %cst_444 = arith.constant 9.765625E-4 : f32
    %1200 = arith.mulf %1199, %cst_444 : f32
    %1201 = arith.mulf %1194, %1194 : f32
    %1202 = arith.subf %1200, %1201 : f32
    %1203 = vector.broadcast %1194 : f32 to vector<2x512xf32>
    %1204 = arith.subf %1189, %1203 : vector<2x512xf32>
    %1205 = vector.broadcast %1108 : vector<1x512xf32> to vector<2x512xf32>
    %1206 = arith.mulf %1205, %1204 : vector<2x512xf32>
    %cst_445 = arith.constant 9.99999993E-9 : f32
    %1207 = arith.addf %1202, %cst_445 : f32
    %1208 = math.rsqrt %1207 : f32
    %1209 = vector.broadcast %1208 : f32 to vector<2x512xf32>
    %1210 = arith.mulf %1206, %1209 : vector<2x512xf32>
    %1211 = vector.broadcast %1110 : vector<1x512xf32> to vector<2x512xf32>
    %1212 = arith.addf %1210, %1211 : vector<2x512xf32>
    %cst_446 = arith.constant dense<0.000000e+00> : vector<2x16xf32>
    %1213 = tpu.matmul %1212, %1114, %cst_446 {dimension_numbers = #tpu.dot_dimension_numbers<[1], [1], [0], [0], [0, 0, 1, 0], [], []>} : vector<2x512xf32>, vector<16x512xf32>, vector<2x16xf32> -> vector<2x16xf32>
    %1214 = arith.addf %1213, %1098 : vector<2x16xf32>
    %c3_447 = arith.constant 3 : index
    %c0_448 = arith.constant 0 : index
    %c0_449 = arith.constant 0 : index
    %1215 = vector.load %arg4[%c3_447, %c0_448, %c0_449] : memref<5x40x512xf32, #tpu.memory_space<vmem>>, vector<1x16x512xf32>
    %1216 = vector.shape_cast %1215 : vector<1x16x512xf32> to vector<16x512xf32>
    %c3_450 = arith.constant 3 : index
    %c16_451 = arith.constant 16 : index
    %c0_452 = arith.constant 0 : index
    %1217 = vector.load %arg4[%c3_450, %c16_451, %c0_452] : memref<5x40x512xf32, #tpu.memory_space<vmem>>, vector<1x1x512xf32>
    %1218 = vector.shape_cast %1217 : vector<1x1x512xf32> to vector<1x512xf32>
    %c3_453 = arith.constant 3 : index
    %c17_454 = arith.constant 17 : index
    %c0_455 = arith.constant 0 : index
    %1219 = vector.load %arg4[%c3_453, %c17_454, %c0_455] : memref<5x40x512xf32, #tpu.memory_space<vmem>>, vector<1x1x512xf32>
    %1220 = vector.shape_cast %1219 : vector<1x1x512xf32> to vector<1x512xf32>
    %c3_456 = arith.constant 3 : index
    %c18_457 = arith.constant 18 : index
    %c0_458 = arith.constant 0 : index
    %1221 = vector.load %arg4[%c3_456, %c18_457, %c0_458] : memref<5x40x512xf32, #tpu.memory_space<vmem>>, vector<1x1x512xf32>
    %1222 = vector.shape_cast %1221 : vector<1x1x512xf32> to vector<1x512xf32>
    %c3_459 = arith.constant 3 : index
    %c19_460 = arith.constant 19 : index
    %c0_461 = arith.constant 0 : index
    %1223 = vector.load %arg4[%c3_459, %c19_460, %c0_461] : memref<5x40x512xf32, #tpu.memory_space<vmem>>, vector<1x1x512xf32>
    %1224 = vector.shape_cast %1223 : vector<1x1x512xf32> to vector<1x512xf32>
    %c3_462 = arith.constant 3 : index
    %c20_463 = arith.constant 20 : index
    %c0_464 = arith.constant 0 : index
    %1225 = vector.load %arg4[%c3_462, %c20_463, %c0_464] : memref<5x40x512xf32, #tpu.memory_space<vmem>>, vector<1x1x512xf32>
    %1226 = vector.shape_cast %1225 : vector<1x1x512xf32> to vector<1x512xf32>
    %c3_465 = arith.constant 3 : index
    %c21_466 = arith.constant 21 : index
    %c0_467 = arith.constant 0 : index
    %1227 = vector.load %arg4[%c3_465, %c21_466, %c0_467] : memref<5x40x512xf32, #tpu.memory_space<vmem>>, vector<1x3x512xf32>
    %1228 = vector.shape_cast %1227 : vector<1x3x512xf32> to vector<3x512xf32>
    %c3_468 = arith.constant 3 : index
    %c24_469 = arith.constant 24 : index
    %c0_470 = arith.constant 0 : index
    %1229 = vector.load %arg4[%c3_468, %c24_469, %c0_470] : memref<5x40x512xf32, #tpu.memory_space<vmem>>, vector<1x16x512xf32>
    %1230 = vector.shape_cast %1229 : vector<1x16x512xf32> to vector<16x512xf32>
    %c70_471 = arith.constant 70 : index
    %c0_472 = arith.constant 0 : index
    %1231 = vector.load %arg3[%c70_471, %c0_472] : memref<200x16xf32, #tpu.memory_space<vmem>>, vector<2x16xf32>
    %cst_473 = arith.constant 0.000000e+00 : f32
    %1232 = vector.broadcast %cst_473 : f32 to vector<2x16xf32>
    %1233 = arith.maximumf %1214, %1232 : vector<2x16xf32>
    %1234 = vector.extract_strided_slice %1231 {offsets = [0, 0], sizes = [1, 16], strides = [1, 1]} : vector<2x16xf32> to vector<1x16xf32>
    %1235 = vector.extract_strided_slice %1231 {offsets = [1, 0], sizes = [1, 16], strides = [1, 1]} : vector<2x16xf32> to vector<1x16xf32>
    %1236 = vector.shape_cast %1233 : vector<2x16xf32> to vector<1x2x16xf32>
    %cst_474 = arith.constant dense<0.000000e+00> : vector<1xf32>
    %1237 = vector.multi_reduction <add>, %1236, %cst_474 [1, 2] : vector<1x2x16xf32> to vector<1xf32>
    %1238 = vector.shape_cast %1237 : vector<1xf32> to vector<1x1x1xf32>
    %1239 = vector.extract %1238[0, 0, 0] : f32 from vector<1x1x1xf32>
    %cst_475 = arith.constant 3.125000e-02 : f32
    %1240 = arith.mulf %1239, %cst_475 : f32
    %1241 = arith.mulf %1233, %1233 : vector<2x16xf32>
    %1242 = vector.shape_cast %1241 : vector<2x16xf32> to vector<1x2x16xf32>
    %cst_476 = arith.constant dense<0.000000e+00> : vector<1xf32>
    %1243 = vector.multi_reduction <add>, %1242, %cst_476 [1, 2] : vector<1x2x16xf32> to vector<1xf32>
    %1244 = vector.shape_cast %1243 : vector<1xf32> to vector<1x1x1xf32>
    %1245 = vector.extract %1244[0, 0, 0] : f32 from vector<1x1x1xf32>
    %cst_477 = arith.constant 3.125000e-02 : f32
    %1246 = arith.mulf %1245, %cst_477 : f32
    %1247 = arith.mulf %1240, %1240 : f32
    %1248 = arith.subf %1246, %1247 : f32
    %1249 = vector.broadcast %1240 : f32 to vector<2x16xf32>
    %1250 = arith.subf %1233, %1249 : vector<2x16xf32>
    %1251 = vector.broadcast %1234 : vector<1x16xf32> to vector<2x16xf32>
    %1252 = arith.mulf %1251, %1250 : vector<2x16xf32>
    %cst_478 = arith.constant 9.99999993E-9 : f32
    %1253 = arith.addf %1248, %cst_478 : f32
    %1254 = math.rsqrt %1253 : f32
    %1255 = vector.broadcast %1254 : f32 to vector<2x16xf32>
    %1256 = arith.mulf %1252, %1255 : vector<2x16xf32>
    %1257 = vector.broadcast %1235 : vector<1x16xf32> to vector<2x16xf32>
    %1258 = arith.addf %1256, %1257 : vector<2x16xf32>
    %cst_479 = arith.constant dense<0.000000e+00> : vector<2x512xf32>
    %1259 = tpu.matmul %1258, %1216, %cst_479 {dimension_numbers = #tpu.dot_dimension_numbers<[1], [0], [0], [1], [0, 0, 1, 1], [], []>} : vector<2x16xf32>, vector<16x512xf32>, vector<2x512xf32> -> vector<2x512xf32>
    %cst_480 = arith.constant 0.000000e+00 : f32
    %1260 = vector.broadcast %cst_480 : f32 to vector<2x512xf32>
    %1261 = arith.maximumf %1259, %1260 : vector<2x512xf32>
    %1262 = vector.shape_cast %1261 : vector<2x512xf32> to vector<1x2x512xf32>
    %cst_481 = arith.constant dense<0.000000e+00> : vector<1xf32>
    %1263 = vector.multi_reduction <add>, %1262, %cst_481 [1, 2] : vector<1x2x512xf32> to vector<1xf32>
    %1264 = vector.shape_cast %1263 : vector<1xf32> to vector<1x1x1xf32>
    %1265 = vector.extract %1264[0, 0, 0] : f32 from vector<1x1x1xf32>
    %cst_482 = arith.constant 9.765625E-4 : f32
    %1266 = arith.mulf %1265, %cst_482 : f32
    %1267 = arith.mulf %1261, %1261 : vector<2x512xf32>
    %1268 = vector.shape_cast %1267 : vector<2x512xf32> to vector<1x2x512xf32>
    %cst_483 = arith.constant dense<0.000000e+00> : vector<1xf32>
    %1269 = vector.multi_reduction <add>, %1268, %cst_483 [1, 2] : vector<1x2x512xf32> to vector<1xf32>
    %1270 = vector.shape_cast %1269 : vector<1xf32> to vector<1x1x1xf32>
    %1271 = vector.extract %1270[0, 0, 0] : f32 from vector<1x1x1xf32>
    %cst_484 = arith.constant 9.765625E-4 : f32
    %1272 = arith.mulf %1271, %cst_484 : f32
    %1273 = arith.mulf %1266, %1266 : f32
    %1274 = arith.subf %1272, %1273 : f32
    %1275 = vector.broadcast %1266 : f32 to vector<2x512xf32>
    %1276 = arith.subf %1261, %1275 : vector<2x512xf32>
    %1277 = vector.broadcast %1218 : vector<1x512xf32> to vector<2x512xf32>
    %1278 = arith.mulf %1277, %1276 : vector<2x512xf32>
    %cst_485 = arith.constant 9.99999993E-9 : f32
    %1279 = arith.addf %1274, %cst_485 : f32
    %1280 = math.rsqrt %1279 : f32
    %1281 = vector.broadcast %1280 : f32 to vector<2x512xf32>
    %1282 = arith.mulf %1278, %1281 : vector<2x512xf32>
    %1283 = vector.broadcast %1220 : vector<1x512xf32> to vector<2x512xf32>
    %1284 = arith.addf %1282, %1283 : vector<2x512xf32>
    %cst_486 = arith.constant 0.000000e+00 : f32
    %1285 = vector.broadcast %cst_486 : f32 to vector<1x512xf32>
    %1286 = vector.extract_strided_slice %1284 {offsets = [0, 0], sizes = [1, 512], strides = [1, 1]} : vector<2x512xf32> to vector<1x512xf32>
    %1287 = tpu.concatenate %1285, %1286 in 0 : vector<1x512xf32>, vector<1x512xf32> -> vector<2x512xf32>
    %1288 = vector.extract_strided_slice %1284 {offsets = [1, 0], sizes = [1, 512], strides = [1, 1]} : vector<2x512xf32> to vector<1x512xf32>
    %1289 = tpu.concatenate %1288, %1285 in 0 : vector<1x512xf32>, vector<1x512xf32> -> vector<2x512xf32>
    %1290 = vector.extract_strided_slice %1228 {offsets = [0, 0], sizes = [1, 512], strides = [1, 1]} : vector<3x512xf32> to vector<1x512xf32>
    %1291 = vector.broadcast %1290 : vector<1x512xf32> to vector<2x512xf32>
    %1292 = arith.mulf %1291, %1287 : vector<2x512xf32>
    %1293 = vector.extract_strided_slice %1228 {offsets = [1, 0], sizes = [1, 512], strides = [1, 1]} : vector<3x512xf32> to vector<1x512xf32>
    %1294 = vector.broadcast %1293 : vector<1x512xf32> to vector<2x512xf32>
    %1295 = arith.mulf %1294, %1284 : vector<2x512xf32>
    %1296 = arith.addf %1292, %1295 : vector<2x512xf32>
    %1297 = vector.extract_strided_slice %1228 {offsets = [2, 0], sizes = [1, 512], strides = [1, 1]} : vector<3x512xf32> to vector<1x512xf32>
    %1298 = vector.broadcast %1297 : vector<1x512xf32> to vector<2x512xf32>
    %1299 = arith.mulf %1298, %1289 : vector<2x512xf32>
    %1300 = arith.addf %1296, %1299 : vector<2x512xf32>
    %cst_487 = arith.constant 0.000000e+00 : f32
    %1301 = vector.broadcast %cst_487 : f32 to vector<2x512xf32>
    %1302 = arith.cmpf ogt, %1300, %1301 : vector<2x512xf32>
    %1303 = vector.broadcast %1222 : vector<1x512xf32> to vector<2x512xf32>
    %1304 = arith.mulf %1303, %1300 : vector<2x512xf32>
    %1305 = arith.select %1302, %1300, %1304 : vector<2x512xi1>, vector<2x512xf32>
    %1306 = vector.shape_cast %1305 : vector<2x512xf32> to vector<1x2x512xf32>
    %cst_488 = arith.constant dense<0.000000e+00> : vector<1xf32>
    %1307 = vector.multi_reduction <add>, %1306, %cst_488 [1, 2] : vector<1x2x512xf32> to vector<1xf32>
    %1308 = vector.shape_cast %1307 : vector<1xf32> to vector<1x1x1xf32>
    %1309 = vector.extract %1308[0, 0, 0] : f32 from vector<1x1x1xf32>
    %cst_489 = arith.constant 9.765625E-4 : f32
    %1310 = arith.mulf %1309, %cst_489 : f32
    %1311 = arith.mulf %1305, %1305 : vector<2x512xf32>
    %1312 = vector.shape_cast %1311 : vector<2x512xf32> to vector<1x2x512xf32>
    %cst_490 = arith.constant dense<0.000000e+00> : vector<1xf32>
    %1313 = vector.multi_reduction <add>, %1312, %cst_490 [1, 2] : vector<1x2x512xf32> to vector<1xf32>
    %1314 = vector.shape_cast %1313 : vector<1xf32> to vector<1x1x1xf32>
    %1315 = vector.extract %1314[0, 0, 0] : f32 from vector<1x1x1xf32>
    %cst_491 = arith.constant 9.765625E-4 : f32
    %1316 = arith.mulf %1315, %cst_491 : f32
    %1317 = arith.mulf %1310, %1310 : f32
    %1318 = arith.subf %1316, %1317 : f32
    %1319 = vector.broadcast %1310 : f32 to vector<2x512xf32>
    %1320 = arith.subf %1305, %1319 : vector<2x512xf32>
    %1321 = vector.broadcast %1224 : vector<1x512xf32> to vector<2x512xf32>
    %1322 = arith.mulf %1321, %1320 : vector<2x512xf32>
    %cst_492 = arith.constant 9.99999993E-9 : f32
    %1323 = arith.addf %1318, %cst_492 : f32
    %1324 = math.rsqrt %1323 : f32
    %1325 = vector.broadcast %1324 : f32 to vector<2x512xf32>
    %1326 = arith.mulf %1322, %1325 : vector<2x512xf32>
    %1327 = vector.broadcast %1226 : vector<1x512xf32> to vector<2x512xf32>
    %1328 = arith.addf %1326, %1327 : vector<2x512xf32>
    %cst_493 = arith.constant dense<0.000000e+00> : vector<2x16xf32>
    %1329 = tpu.matmul %1328, %1230, %cst_493 {dimension_numbers = #tpu.dot_dimension_numbers<[1], [1], [0], [0], [0, 0, 1, 0], [], []>} : vector<2x512xf32>, vector<16x512xf32>, vector<2x16xf32> -> vector<2x16xf32>
    %1330 = arith.addf %1329, %1214 : vector<2x16xf32>
    %c4_494 = arith.constant 4 : index
    %c0_495 = arith.constant 0 : index
    %c0_496 = arith.constant 0 : index
    %1331 = vector.load %arg4[%c4_494, %c0_495, %c0_496] : memref<5x40x512xf32, #tpu.memory_space<vmem>>, vector<1x16x512xf32>
    %1332 = vector.shape_cast %1331 : vector<1x16x512xf32> to vector<16x512xf32>
    %c4_497 = arith.constant 4 : index
    %c16_498 = arith.constant 16 : index
    %c0_499 = arith.constant 0 : index
    %1333 = vector.load %arg4[%c4_497, %c16_498, %c0_499] : memref<5x40x512xf32, #tpu.memory_space<vmem>>, vector<1x1x512xf32>
    %1334 = vector.shape_cast %1333 : vector<1x1x512xf32> to vector<1x512xf32>
    %c4_500 = arith.constant 4 : index
    %c17_501 = arith.constant 17 : index
    %c0_502 = arith.constant 0 : index
    %1335 = vector.load %arg4[%c4_500, %c17_501, %c0_502] : memref<5x40x512xf32, #tpu.memory_space<vmem>>, vector<1x1x512xf32>
    %1336 = vector.shape_cast %1335 : vector<1x1x512xf32> to vector<1x512xf32>
    %c4_503 = arith.constant 4 : index
    %c18_504 = arith.constant 18 : index
    %c0_505 = arith.constant 0 : index
    %1337 = vector.load %arg4[%c4_503, %c18_504, %c0_505] : memref<5x40x512xf32, #tpu.memory_space<vmem>>, vector<1x1x512xf32>
    %1338 = vector.shape_cast %1337 : vector<1x1x512xf32> to vector<1x512xf32>
    %c4_506 = arith.constant 4 : index
    %c19_507 = arith.constant 19 : index
    %c0_508 = arith.constant 0 : index
    %1339 = vector.load %arg4[%c4_506, %c19_507, %c0_508] : memref<5x40x512xf32, #tpu.memory_space<vmem>>, vector<1x1x512xf32>
    %1340 = vector.shape_cast %1339 : vector<1x1x512xf32> to vector<1x512xf32>
    %c4_509 = arith.constant 4 : index
    %c20_510 = arith.constant 20 : index
    %c0_511 = arith.constant 0 : index
    %1341 = vector.load %arg4[%c4_509, %c20_510, %c0_511] : memref<5x40x512xf32, #tpu.memory_space<vmem>>, vector<1x1x512xf32>
    %1342 = vector.shape_cast %1341 : vector<1x1x512xf32> to vector<1x512xf32>
    %c4_512 = arith.constant 4 : index
    %c21_513 = arith.constant 21 : index
    %c0_514 = arith.constant 0 : index
    %1343 = vector.load %arg4[%c4_512, %c21_513, %c0_514] : memref<5x40x512xf32, #tpu.memory_space<vmem>>, vector<1x3x512xf32>
    %1344 = vector.shape_cast %1343 : vector<1x3x512xf32> to vector<3x512xf32>
    %c4_515 = arith.constant 4 : index
    %c24_516 = arith.constant 24 : index
    %c0_517 = arith.constant 0 : index
    %1345 = vector.load %arg4[%c4_515, %c24_516, %c0_517] : memref<5x40x512xf32, #tpu.memory_space<vmem>>, vector<1x16x512xf32>
    %1346 = vector.shape_cast %1345 : vector<1x16x512xf32> to vector<16x512xf32>
    %c72_518 = arith.constant 72 : index
    %c0_519 = arith.constant 0 : index
    %1347 = vector.load %arg3[%c72_518, %c0_519] : memref<200x16xf32, #tpu.memory_space<vmem>>, vector<2x16xf32>
    %cst_520 = arith.constant 0.000000e+00 : f32
    %1348 = vector.broadcast %cst_520 : f32 to vector<2x16xf32>
    %1349 = arith.maximumf %1330, %1348 : vector<2x16xf32>
    %1350 = vector.extract_strided_slice %1347 {offsets = [0, 0], sizes = [1, 16], strides = [1, 1]} : vector<2x16xf32> to vector<1x16xf32>
    %1351 = vector.extract_strided_slice %1347 {offsets = [1, 0], sizes = [1, 16], strides = [1, 1]} : vector<2x16xf32> to vector<1x16xf32>
    %1352 = vector.shape_cast %1349 : vector<2x16xf32> to vector<1x2x16xf32>
    %cst_521 = arith.constant dense<0.000000e+00> : vector<1xf32>
    %1353 = vector.multi_reduction <add>, %1352, %cst_521 [1, 2] : vector<1x2x16xf32> to vector<1xf32>
    %1354 = vector.shape_cast %1353 : vector<1xf32> to vector<1x1x1xf32>
    %1355 = vector.extract %1354[0, 0, 0] : f32 from vector<1x1x1xf32>
    %cst_522 = arith.constant 3.125000e-02 : f32
    %1356 = arith.mulf %1355, %cst_522 : f32
    %1357 = arith.mulf %1349, %1349 : vector<2x16xf32>
    %1358 = vector.shape_cast %1357 : vector<2x16xf32> to vector<1x2x16xf32>
    %cst_523 = arith.constant dense<0.000000e+00> : vector<1xf32>
    %1359 = vector.multi_reduction <add>, %1358, %cst_523 [1, 2] : vector<1x2x16xf32> to vector<1xf32>
    %1360 = vector.shape_cast %1359 : vector<1xf32> to vector<1x1x1xf32>
    %1361 = vector.extract %1360[0, 0, 0] : f32 from vector<1x1x1xf32>
    %cst_524 = arith.constant 3.125000e-02 : f32
    %1362 = arith.mulf %1361, %cst_524 : f32
    %1363 = arith.mulf %1356, %1356 : f32
    %1364 = arith.subf %1362, %1363 : f32
    %1365 = vector.broadcast %1356 : f32 to vector<2x16xf32>
    %1366 = arith.subf %1349, %1365 : vector<2x16xf32>
    %1367 = vector.broadcast %1350 : vector<1x16xf32> to vector<2x16xf32>
    %1368 = arith.mulf %1367, %1366 : vector<2x16xf32>
    %cst_525 = arith.constant 9.99999993E-9 : f32
    %1369 = arith.addf %1364, %cst_525 : f32
    %1370 = math.rsqrt %1369 : f32
    %1371 = vector.broadcast %1370 : f32 to vector<2x16xf32>
    %1372 = arith.mulf %1368, %1371 : vector<2x16xf32>
    %1373 = vector.broadcast %1351 : vector<1x16xf32> to vector<2x16xf32>
    %1374 = arith.addf %1372, %1373 : vector<2x16xf32>
    %cst_526 = arith.constant dense<0.000000e+00> : vector<2x512xf32>
    %1375 = tpu.matmul %1374, %1332, %cst_526 {dimension_numbers = #tpu.dot_dimension_numbers<[1], [0], [0], [1], [0, 0, 1, 1], [], []>} : vector<2x16xf32>, vector<16x512xf32>, vector<2x512xf32> -> vector<2x512xf32>
    %cst_527 = arith.constant 0.000000e+00 : f32
    %1376 = vector.broadcast %cst_527 : f32 to vector<2x512xf32>
    %1377 = arith.maximumf %1375, %1376 : vector<2x512xf32>
    %1378 = vector.shape_cast %1377 : vector<2x512xf32> to vector<1x2x512xf32>
    %cst_528 = arith.constant dense<0.000000e+00> : vector<1xf32>
    %1379 = vector.multi_reduction <add>, %1378, %cst_528 [1, 2] : vector<1x2x512xf32> to vector<1xf32>
    %1380 = vector.shape_cast %1379 : vector<1xf32> to vector<1x1x1xf32>
    %1381 = vector.extract %1380[0, 0, 0] : f32 from vector<1x1x1xf32>
    %cst_529 = arith.constant 9.765625E-4 : f32
    %1382 = arith.mulf %1381, %cst_529 : f32
    %1383 = arith.mulf %1377, %1377 : vector<2x512xf32>
    %1384 = vector.shape_cast %1383 : vector<2x512xf32> to vector<1x2x512xf32>
    %cst_530 = arith.constant dense<0.000000e+00> : vector<1xf32>
    %1385 = vector.multi_reduction <add>, %1384, %cst_530 [1, 2] : vector<1x2x512xf32> to vector<1xf32>
    %1386 = vector.shape_cast %1385 : vector<1xf32> to vector<1x1x1xf32>
    %1387 = vector.extract %1386[0, 0, 0] : f32 from vector<1x1x1xf32>
    %cst_531 = arith.constant 9.765625E-4 : f32
    %1388 = arith.mulf %1387, %cst_531 : f32
    %1389 = arith.mulf %1382, %1382 : f32
    %1390 = arith.subf %1388, %1389 : f32
    %1391 = vector.broadcast %1382 : f32 to vector<2x512xf32>
    %1392 = arith.subf %1377, %1391 : vector<2x512xf32>
    %1393 = vector.broadcast %1334 : vector<1x512xf32> to vector<2x512xf32>
    %1394 = arith.mulf %1393, %1392 : vector<2x512xf32>
    %cst_532 = arith.constant 9.99999993E-9 : f32
    %1395 = arith.addf %1390, %cst_532 : f32
    %1396 = math.rsqrt %1395 : f32
    %1397 = vector.broadcast %1396 : f32 to vector<2x512xf32>
    %1398 = arith.mulf %1394, %1397 : vector<2x512xf32>
    %1399 = vector.broadcast %1336 : vector<1x512xf32> to vector<2x512xf32>
    %1400 = arith.addf %1398, %1399 : vector<2x512xf32>
    %cst_533 = arith.constant 0.000000e+00 : f32
    %1401 = vector.broadcast %cst_533 : f32 to vector<1x512xf32>
    %1402 = vector.extract_strided_slice %1400 {offsets = [0, 0], sizes = [1, 512], strides = [1, 1]} : vector<2x512xf32> to vector<1x512xf32>
    %1403 = tpu.concatenate %1401, %1402 in 0 : vector<1x512xf32>, vector<1x512xf32> -> vector<2x512xf32>
    %1404 = vector.extract_strided_slice %1400 {offsets = [1, 0], sizes = [1, 512], strides = [1, 1]} : vector<2x512xf32> to vector<1x512xf32>
    %1405 = tpu.concatenate %1404, %1401 in 0 : vector<1x512xf32>, vector<1x512xf32> -> vector<2x512xf32>
    %1406 = vector.extract_strided_slice %1344 {offsets = [0, 0], sizes = [1, 512], strides = [1, 1]} : vector<3x512xf32> to vector<1x512xf32>
    %1407 = vector.broadcast %1406 : vector<1x512xf32> to vector<2x512xf32>
    %1408 = arith.mulf %1407, %1403 : vector<2x512xf32>
    %1409 = vector.extract_strided_slice %1344 {offsets = [1, 0], sizes = [1, 512], strides = [1, 1]} : vector<3x512xf32> to vector<1x512xf32>
    %1410 = vector.broadcast %1409 : vector<1x512xf32> to vector<2x512xf32>
    %1411 = arith.mulf %1410, %1400 : vector<2x512xf32>
    %1412 = arith.addf %1408, %1411 : vector<2x512xf32>
    %1413 = vector.extract_strided_slice %1344 {offsets = [2, 0], sizes = [1, 512], strides = [1, 1]} : vector<3x512xf32> to vector<1x512xf32>
    %1414 = vector.broadcast %1413 : vector<1x512xf32> to vector<2x512xf32>
    %1415 = arith.mulf %1414, %1405 : vector<2x512xf32>
    %1416 = arith.addf %1412, %1415 : vector<2x512xf32>
    %cst_534 = arith.constant 0.000000e+00 : f32
    %1417 = vector.broadcast %cst_534 : f32 to vector<2x512xf32>
    %1418 = arith.cmpf ogt, %1416, %1417 : vector<2x512xf32>
    %1419 = vector.broadcast %1338 : vector<1x512xf32> to vector<2x512xf32>
    %1420 = arith.mulf %1419, %1416 : vector<2x512xf32>
    %1421 = arith.select %1418, %1416, %1420 : vector<2x512xi1>, vector<2x512xf32>
    %1422 = vector.shape_cast %1421 : vector<2x512xf32> to vector<1x2x512xf32>
    %cst_535 = arith.constant dense<0.000000e+00> : vector<1xf32>
    %1423 = vector.multi_reduction <add>, %1422, %cst_535 [1, 2] : vector<1x2x512xf32> to vector<1xf32>
    %1424 = vector.shape_cast %1423 : vector<1xf32> to vector<1x1x1xf32>
    %1425 = vector.extract %1424[0, 0, 0] : f32 from vector<1x1x1xf32>
    %cst_536 = arith.constant 9.765625E-4 : f32
    %1426 = arith.mulf %1425, %cst_536 : f32
    %1427 = arith.mulf %1421, %1421 : vector<2x512xf32>
    %1428 = vector.shape_cast %1427 : vector<2x512xf32> to vector<1x2x512xf32>
    %cst_537 = arith.constant dense<0.000000e+00> : vector<1xf32>
    %1429 = vector.multi_reduction <add>, %1428, %cst_537 [1, 2] : vector<1x2x512xf32> to vector<1xf32>
    %1430 = vector.shape_cast %1429 : vector<1xf32> to vector<1x1x1xf32>
    %1431 = vector.extract %1430[0, 0, 0] : f32 from vector<1x1x1xf32>
    %cst_538 = arith.constant 9.765625E-4 : f32
    %1432 = arith.mulf %1431, %cst_538 : f32
    %1433 = arith.mulf %1426, %1426 : f32
    %1434 = arith.subf %1432, %1433 : f32
    %1435 = vector.broadcast %1426 : f32 to vector<2x512xf32>
    %1436 = arith.subf %1421, %1435 : vector<2x512xf32>
    %1437 = vector.broadcast %1340 : vector<1x512xf32> to vector<2x512xf32>
    %1438 = arith.mulf %1437, %1436 : vector<2x512xf32>
    %cst_539 = arith.constant 9.99999993E-9 : f32
    %1439 = arith.addf %1434, %cst_539 : f32
    %1440 = math.rsqrt %1439 : f32
    %1441 = vector.broadcast %1440 : f32 to vector<2x512xf32>
    %1442 = arith.mulf %1438, %1441 : vector<2x512xf32>
    %1443 = vector.broadcast %1342 : vector<1x512xf32> to vector<2x512xf32>
    %1444 = arith.addf %1442, %1443 : vector<2x512xf32>
    %cst_540 = arith.constant dense<0.000000e+00> : vector<2x16xf32>
    %1445 = tpu.matmul %1444, %1346, %cst_540 {dimension_numbers = #tpu.dot_dimension_numbers<[1], [1], [0], [0], [0, 0, 1, 0], [], []>} : vector<2x512xf32>, vector<16x512xf32>, vector<2x16xf32> -> vector<2x16xf32>
    %1446 = arith.addf %1445, %1330 : vector<2x16xf32>
    %cst_541 = arith.constant dense<0.000000e+00> : vector<16x2xf32>
    %1447 = tpu.matmul %3, %1446, %cst_541 {dimension_numbers = #tpu.dot_dimension_numbers<[1], [1], [0], [0], [0, 0, 1, 0], [], []>} : vector<16x16xf32>, vector<2x16xf32>, vector<16x2xf32> -> vector<16x2xf32>
    %cst_542 = arith.constant dense<0.000000e+00> : vector<16x72xf32>
    %1448 = tpu.matmul %1, %864, %cst_542 {dimension_numbers = #tpu.dot_dimension_numbers<[1], [0], [0], [1], [0, 0, 1, 1], [], []>} : vector<16x16xf32>, vector<16x72xf32>, vector<16x72xf32> -> vector<16x72xf32>
    %1449 = vector.broadcast %2 : vector<16x1xf32> to vector<16x72xf32>
    %1450 = arith.addf %1448, %1449 : vector<16x72xf32>
    %1451 = vector.extract_strided_slice %1447 {offsets = [0, 0], sizes = [16, 1], strides = [1, 1]} : vector<16x2xf32> to vector<16x1xf32>
    %1452 = vector.extract_strided_slice %6 {offsets = [0, 0], sizes = [1, 72], strides = [1, 1]} : vector<2x72xf32> to vector<1x72xf32>
    %1453 = vector.broadcast %1451 : vector<16x1xf32> to vector<16x72xf32>
    %1454 = vector.broadcast %1452 : vector<1x72xf32> to vector<16x72xf32>
    %1455 = arith.mulf %1453, %1454 : vector<16x72xf32>
    %1456 = arith.addf %1450, %1455 : vector<16x72xf32>
    %1457 = vector.extract_strided_slice %1447 {offsets = [0, 1], sizes = [16, 1], strides = [1, 1]} : vector<16x2xf32> to vector<16x1xf32>
    %1458 = vector.extract_strided_slice %6 {offsets = [1, 0], sizes = [1, 72], strides = [1, 1]} : vector<2x72xf32> to vector<1x72xf32>
    %1459 = vector.broadcast %1457 : vector<16x1xf32> to vector<16x72xf32>
    %1460 = vector.broadcast %1458 : vector<1x72xf32> to vector<16x72xf32>
    %1461 = arith.mulf %1459, %1460 : vector<16x72xf32>
    %1462 = arith.addf %1456, %1461 : vector<16x72xf32>
    %c80_543 = arith.constant 80 : index
    %c0_544 = arith.constant 0 : index
    %1463 = vector.load %arg3[%c80_543, %c0_544] : memref<200x16xf32, #tpu.memory_space<vmem>>, vector<16x16xf32>
    %c96_545 = arith.constant 96 : index
    %c0_546 = arith.constant 0 : index
    %1464 = vector.load %arg3[%c96_545, %c0_546] : memref<200x16xf32, #tpu.memory_space<vmem>>, vector<16x16xf32>
    %c112_547 = arith.constant 112 : index
    %c0_548 = arith.constant 0 : index
    %1465 = vector.load %arg3[%c112_547, %c0_548] : memref<200x16xf32, #tpu.memory_space<vmem>>, vector<16x9xf32>
    %1466 = vector.extract_strided_slice %1465 {offsets = [0, 0], sizes = [16, 1], strides = [1, 1]} : vector<16x9xf32> to vector<16x1xf32>
    %1467 = vector.extract_strided_slice %1465 {offsets = [0, 1], sizes = [16, 1], strides = [1, 1]} : vector<16x9xf32> to vector<16x1xf32>
    %1468 = vector.extract_strided_slice %1465 {offsets = [0, 2], sizes = [16, 1], strides = [1, 1]} : vector<16x9xf32> to vector<16x1xf32>
    %1469 = vector.extract_strided_slice %1465 {offsets = [0, 3], sizes = [16, 1], strides = [1, 1]} : vector<16x9xf32> to vector<16x1xf32>
    %1470 = vector.extract_strided_slice %1465 {offsets = [0, 4], sizes = [16, 1], strides = [1, 1]} : vector<16x9xf32> to vector<16x1xf32>
    %1471 = vector.extract_strided_slice %1465 {offsets = [0, 5], sizes = [16, 1], strides = [1, 1]} : vector<16x9xf32> to vector<16x1xf32>
    %1472 = vector.extract_strided_slice %1465 {offsets = [0, 6], sizes = [16, 3], strides = [1, 1]} : vector<16x9xf32> to vector<16x3xf32>
    %cst_549 = arith.constant dense<0.000000e+00> : vector<16x72xf32>
    %1473 = tpu.matmul %1463, %1462, %cst_549 {dimension_numbers = #tpu.dot_dimension_numbers<[1], [0], [0], [1], [0, 0, 1, 1], [], []>} : vector<16x16xf32>, vector<16x72xf32>, vector<16x72xf32> -> vector<16x72xf32>
    %cst_550 = arith.constant 0.000000e+00 : f32
    %1474 = vector.broadcast %cst_550 : f32 to vector<16x72xf32>
    %1475 = arith.cmpf ogt, %1473, %1474 : vector<16x72xf32>
    %1476 = vector.broadcast %1466 : vector<16x1xf32> to vector<16x72xf32>
    %1477 = arith.mulf %1476, %1473 : vector<16x72xf32>
    %1478 = arith.select %1475, %1473, %1477 : vector<16x72xi1>, vector<16x72xf32>
    %1479 = vector.shape_cast %1478 : vector<16x72xf32> to vector<1x16x72xf32>
    %cst_551 = arith.constant dense<0.000000e+00> : vector<1xf32>
    %1480 = vector.multi_reduction <add>, %1479, %cst_551 [1, 2] : vector<1x16x72xf32> to vector<1xf32>
    %1481 = vector.shape_cast %1480 : vector<1xf32> to vector<1x1x1xf32>
    %1482 = vector.extract %1481[0, 0, 0] : f32 from vector<1x1x1xf32>
    %cst_552 = arith.constant 8.68055562E-4 : f32
    %1483 = arith.mulf %1482, %cst_552 : f32
    %1484 = arith.mulf %1478, %1478 : vector<16x72xf32>
    %1485 = vector.shape_cast %1484 : vector<16x72xf32> to vector<1x16x72xf32>
    %cst_553 = arith.constant dense<0.000000e+00> : vector<1xf32>
    %1486 = vector.multi_reduction <add>, %1485, %cst_553 [1, 2] : vector<1x16x72xf32> to vector<1xf32>
    %1487 = vector.shape_cast %1486 : vector<1xf32> to vector<1x1x1xf32>
    %1488 = vector.extract %1487[0, 0, 0] : f32 from vector<1x1x1xf32>
    %cst_554 = arith.constant 8.68055562E-4 : f32
    %1489 = arith.mulf %1488, %cst_554 : f32
    %1490 = arith.mulf %1483, %1483 : f32
    %1491 = arith.subf %1489, %1490 : f32
    %1492 = vector.broadcast %1483 : f32 to vector<16x72xf32>
    %1493 = arith.subf %1478, %1492 : vector<16x72xf32>
    %1494 = vector.broadcast %1467 : vector<16x1xf32> to vector<16x72xf32>
    %1495 = arith.mulf %1494, %1493 : vector<16x72xf32>
    %cst_555 = arith.constant 9.99999993E-9 : f32
    %1496 = arith.addf %1491, %cst_555 : f32
    %1497 = math.rsqrt %1496 : f32
    %1498 = vector.broadcast %1497 : f32 to vector<16x72xf32>
    %1499 = arith.mulf %1495, %1498 : vector<16x72xf32>
    %1500 = vector.broadcast %1468 : vector<16x1xf32> to vector<16x72xf32>
    %1501 = arith.addf %1499, %1500 : vector<16x72xf32>
    %1502 = vector.extract_strided_slice %1472 {offsets = [0, 0], sizes = [16, 1], strides = [1, 1]} : vector<16x3xf32> to vector<16x1xf32>
    %cst_556 = arith.constant 0.000000e+00 : f32
    %1503 = vector.broadcast %cst_556 : f32 to vector<16x1xf32>
    %1504 = vector.extract_strided_slice %1501 {offsets = [0, 0], sizes = [16, 71], strides = [1, 1]} : vector<16x72xf32> to vector<16x71xf32>
    %1505 = tpu.concatenate %1503, %1504 in 1 : vector<16x1xf32>, vector<16x71xf32> -> vector<16x72xf32>
    %1506 = vector.broadcast %1502 : vector<16x1xf32> to vector<16x72xf32>
    %1507 = arith.mulf %1506, %1505 : vector<16x72xf32>
    %1508 = vector.extract_strided_slice %1472 {offsets = [0, 1], sizes = [16, 1], strides = [1, 1]} : vector<16x3xf32> to vector<16x1xf32>
    %1509 = vector.broadcast %1508 : vector<16x1xf32> to vector<16x72xf32>
    %1510 = arith.mulf %1509, %1501 : vector<16x72xf32>
    %1511 = arith.addf %1507, %1510 : vector<16x72xf32>
    %1512 = vector.extract_strided_slice %1472 {offsets = [0, 2], sizes = [16, 1], strides = [1, 1]} : vector<16x3xf32> to vector<16x1xf32>
    %cst_557 = arith.constant 0.000000e+00 : f32
    %1513 = vector.broadcast %cst_557 : f32 to vector<16x1xf32>
    %1514 = vector.extract_strided_slice %1501 {offsets = [0, 1], sizes = [16, 71], strides = [1, 1]} : vector<16x72xf32> to vector<16x71xf32>
    %1515 = tpu.concatenate %1514, %1513 in 1 : vector<16x71xf32>, vector<16x1xf32> -> vector<16x72xf32>
    %1516 = vector.broadcast %1512 : vector<16x1xf32> to vector<16x72xf32>
    %1517 = arith.mulf %1516, %1515 : vector<16x72xf32>
    %1518 = arith.addf %1511, %1517 : vector<16x72xf32>
    %cst_558 = arith.constant 0.000000e+00 : f32
    %1519 = vector.broadcast %cst_558 : f32 to vector<16x72xf32>
    %1520 = arith.cmpf ogt, %1518, %1519 : vector<16x72xf32>
    %1521 = vector.broadcast %1469 : vector<16x1xf32> to vector<16x72xf32>
    %1522 = arith.mulf %1521, %1518 : vector<16x72xf32>
    %1523 = arith.select %1520, %1518, %1522 : vector<16x72xi1>, vector<16x72xf32>
    %1524 = vector.shape_cast %1523 : vector<16x72xf32> to vector<1x16x72xf32>
    %cst_559 = arith.constant dense<0.000000e+00> : vector<1xf32>
    %1525 = vector.multi_reduction <add>, %1524, %cst_559 [1, 2] : vector<1x16x72xf32> to vector<1xf32>
    %1526 = vector.shape_cast %1525 : vector<1xf32> to vector<1x1x1xf32>
    %1527 = vector.extract %1526[0, 0, 0] : f32 from vector<1x1x1xf32>
    %cst_560 = arith.constant 8.68055562E-4 : f32
    %1528 = arith.mulf %1527, %cst_560 : f32
    %1529 = arith.mulf %1523, %1523 : vector<16x72xf32>
    %1530 = vector.shape_cast %1529 : vector<16x72xf32> to vector<1x16x72xf32>
    %cst_561 = arith.constant dense<0.000000e+00> : vector<1xf32>
    %1531 = vector.multi_reduction <add>, %1530, %cst_561 [1, 2] : vector<1x16x72xf32> to vector<1xf32>
    %1532 = vector.shape_cast %1531 : vector<1xf32> to vector<1x1x1xf32>
    %1533 = vector.extract %1532[0, 0, 0] : f32 from vector<1x1x1xf32>
    %cst_562 = arith.constant 8.68055562E-4 : f32
    %1534 = arith.mulf %1533, %cst_562 : f32
    %1535 = arith.mulf %1528, %1528 : f32
    %1536 = arith.subf %1534, %1535 : f32
    %1537 = vector.broadcast %1528 : f32 to vector<16x72xf32>
    %1538 = arith.subf %1523, %1537 : vector<16x72xf32>
    %1539 = vector.broadcast %1470 : vector<16x1xf32> to vector<16x72xf32>
    %1540 = arith.mulf %1539, %1538 : vector<16x72xf32>
    %cst_563 = arith.constant 9.99999993E-9 : f32
    %1541 = arith.addf %1536, %cst_563 : f32
    %1542 = math.rsqrt %1541 : f32
    %1543 = vector.broadcast %1542 : f32 to vector<16x72xf32>
    %1544 = arith.mulf %1540, %1543 : vector<16x72xf32>
    %1545 = vector.broadcast %1471 : vector<16x1xf32> to vector<16x72xf32>
    %1546 = arith.addf %1544, %1545 : vector<16x72xf32>
    %cst_564 = arith.constant dense<0.000000e+00> : vector<16x72xf32>
    %1547 = tpu.matmul %1464, %1546, %cst_564 {dimension_numbers = #tpu.dot_dimension_numbers<[1], [0], [0], [1], [0, 0, 1, 1], [], []>} : vector<16x16xf32>, vector<16x72xf32>, vector<16x72xf32> -> vector<16x72xf32>
    %1548 = arith.addf %1547, %1462 : vector<16x72xf32>
    %c128_565 = arith.constant 128 : index
    %c0_566 = arith.constant 0 : index
    %1549 = vector.load %arg3[%c128_565, %c0_566] : memref<200x16xf32, #tpu.memory_space<vmem>>, vector<16x16xf32>
    %c144_567 = arith.constant 144 : index
    %c0_568 = arith.constant 0 : index
    %1550 = vector.load %arg3[%c144_567, %c0_568] : memref<200x16xf32, #tpu.memory_space<vmem>>, vector<16x16xf32>
    %c160_569 = arith.constant 160 : index
    %c0_570 = arith.constant 0 : index
    %1551 = vector.load %arg3[%c160_569, %c0_570] : memref<200x16xf32, #tpu.memory_space<vmem>>, vector<16x9xf32>
    %1552 = vector.extract_strided_slice %1551 {offsets = [0, 0], sizes = [16, 1], strides = [1, 1]} : vector<16x9xf32> to vector<16x1xf32>
    %1553 = vector.extract_strided_slice %1551 {offsets = [0, 1], sizes = [16, 1], strides = [1, 1]} : vector<16x9xf32> to vector<16x1xf32>
    %1554 = vector.extract_strided_slice %1551 {offsets = [0, 2], sizes = [16, 1], strides = [1, 1]} : vector<16x9xf32> to vector<16x1xf32>
    %1555 = vector.extract_strided_slice %1551 {offsets = [0, 3], sizes = [16, 1], strides = [1, 1]} : vector<16x9xf32> to vector<16x1xf32>
    %1556 = vector.extract_strided_slice %1551 {offsets = [0, 4], sizes = [16, 1], strides = [1, 1]} : vector<16x9xf32> to vector<16x1xf32>
    %1557 = vector.extract_strided_slice %1551 {offsets = [0, 5], sizes = [16, 1], strides = [1, 1]} : vector<16x9xf32> to vector<16x1xf32>
    %1558 = vector.extract_strided_slice %1551 {offsets = [0, 6], sizes = [16, 3], strides = [1, 1]} : vector<16x9xf32> to vector<16x3xf32>
    %cst_571 = arith.constant dense<0.000000e+00> : vector<16x72xf32>
    %1559 = tpu.matmul %1549, %1548, %cst_571 {dimension_numbers = #tpu.dot_dimension_numbers<[1], [0], [0], [1], [0, 0, 1, 1], [], []>} : vector<16x16xf32>, vector<16x72xf32>, vector<16x72xf32> -> vector<16x72xf32>
    %cst_572 = arith.constant 0.000000e+00 : f32
    %1560 = vector.broadcast %cst_572 : f32 to vector<16x72xf32>
    %1561 = arith.cmpf ogt, %1559, %1560 : vector<16x72xf32>
    %1562 = vector.broadcast %1552 : vector<16x1xf32> to vector<16x72xf32>
    %1563 = arith.mulf %1562, %1559 : vector<16x72xf32>
    %1564 = arith.select %1561, %1559, %1563 : vector<16x72xi1>, vector<16x72xf32>
    %1565 = vector.shape_cast %1564 : vector<16x72xf32> to vector<1x16x72xf32>
    %cst_573 = arith.constant dense<0.000000e+00> : vector<1xf32>
    %1566 = vector.multi_reduction <add>, %1565, %cst_573 [1, 2] : vector<1x16x72xf32> to vector<1xf32>
    %1567 = vector.shape_cast %1566 : vector<1xf32> to vector<1x1x1xf32>
    %1568 = vector.extract %1567[0, 0, 0] : f32 from vector<1x1x1xf32>
    %cst_574 = arith.constant 8.68055562E-4 : f32
    %1569 = arith.mulf %1568, %cst_574 : f32
    %1570 = arith.mulf %1564, %1564 : vector<16x72xf32>
    %1571 = vector.shape_cast %1570 : vector<16x72xf32> to vector<1x16x72xf32>
    %cst_575 = arith.constant dense<0.000000e+00> : vector<1xf32>
    %1572 = vector.multi_reduction <add>, %1571, %cst_575 [1, 2] : vector<1x16x72xf32> to vector<1xf32>
    %1573 = vector.shape_cast %1572 : vector<1xf32> to vector<1x1x1xf32>
    %1574 = vector.extract %1573[0, 0, 0] : f32 from vector<1x1x1xf32>
    %cst_576 = arith.constant 8.68055562E-4 : f32
    %1575 = arith.mulf %1574, %cst_576 : f32
    %1576 = arith.mulf %1569, %1569 : f32
    %1577 = arith.subf %1575, %1576 : f32
    %1578 = vector.broadcast %1569 : f32 to vector<16x72xf32>
    %1579 = arith.subf %1564, %1578 : vector<16x72xf32>
    %1580 = vector.broadcast %1553 : vector<16x1xf32> to vector<16x72xf32>
    %1581 = arith.mulf %1580, %1579 : vector<16x72xf32>
    %cst_577 = arith.constant 9.99999993E-9 : f32
    %1582 = arith.addf %1577, %cst_577 : f32
    %1583 = math.rsqrt %1582 : f32
    %1584 = vector.broadcast %1583 : f32 to vector<16x72xf32>
    %1585 = arith.mulf %1581, %1584 : vector<16x72xf32>
    %1586 = vector.broadcast %1554 : vector<16x1xf32> to vector<16x72xf32>
    %1587 = arith.addf %1585, %1586 : vector<16x72xf32>
    %1588 = vector.extract_strided_slice %1558 {offsets = [0, 0], sizes = [16, 1], strides = [1, 1]} : vector<16x3xf32> to vector<16x1xf32>
    %cst_578 = arith.constant 0.000000e+00 : f32
    %1589 = vector.broadcast %cst_578 : f32 to vector<16x2xf32>
    %1590 = vector.extract_strided_slice %1587 {offsets = [0, 0], sizes = [16, 70], strides = [1, 1]} : vector<16x72xf32> to vector<16x70xf32>
    %1591 = tpu.concatenate %1589, %1590 in 1 : vector<16x2xf32>, vector<16x70xf32> -> vector<16x72xf32>
    %1592 = vector.broadcast %1588 : vector<16x1xf32> to vector<16x72xf32>
    %1593 = arith.mulf %1592, %1591 : vector<16x72xf32>
    %1594 = vector.extract_strided_slice %1558 {offsets = [0, 1], sizes = [16, 1], strides = [1, 1]} : vector<16x3xf32> to vector<16x1xf32>
    %1595 = vector.broadcast %1594 : vector<16x1xf32> to vector<16x72xf32>
    %1596 = arith.mulf %1595, %1587 : vector<16x72xf32>
    %1597 = arith.addf %1593, %1596 : vector<16x72xf32>
    %1598 = vector.extract_strided_slice %1558 {offsets = [0, 2], sizes = [16, 1], strides = [1, 1]} : vector<16x3xf32> to vector<16x1xf32>
    %cst_579 = arith.constant 0.000000e+00 : f32
    %1599 = vector.broadcast %cst_579 : f32 to vector<16x2xf32>
    %1600 = vector.extract_strided_slice %1587 {offsets = [0, 2], sizes = [16, 70], strides = [1, 1]} : vector<16x72xf32> to vector<16x70xf32>
    %1601 = tpu.concatenate %1600, %1599 in 1 : vector<16x70xf32>, vector<16x2xf32> -> vector<16x72xf32>
    %1602 = vector.broadcast %1598 : vector<16x1xf32> to vector<16x72xf32>
    %1603 = arith.mulf %1602, %1601 : vector<16x72xf32>
    %1604 = arith.addf %1597, %1603 : vector<16x72xf32>
    %cst_580 = arith.constant 0.000000e+00 : f32
    %1605 = vector.broadcast %cst_580 : f32 to vector<16x72xf32>
    %1606 = arith.cmpf ogt, %1604, %1605 : vector<16x72xf32>
    %1607 = vector.broadcast %1555 : vector<16x1xf32> to vector<16x72xf32>
    %1608 = arith.mulf %1607, %1604 : vector<16x72xf32>
    %1609 = arith.select %1606, %1604, %1608 : vector<16x72xi1>, vector<16x72xf32>
    %1610 = vector.shape_cast %1609 : vector<16x72xf32> to vector<1x16x72xf32>
    %cst_581 = arith.constant dense<0.000000e+00> : vector<1xf32>
    %1611 = vector.multi_reduction <add>, %1610, %cst_581 [1, 2] : vector<1x16x72xf32> to vector<1xf32>
    %1612 = vector.shape_cast %1611 : vector<1xf32> to vector<1x1x1xf32>
    %1613 = vector.extract %1612[0, 0, 0] : f32 from vector<1x1x1xf32>
    %cst_582 = arith.constant 8.68055562E-4 : f32
    %1614 = arith.mulf %1613, %cst_582 : f32
    %1615 = arith.mulf %1609, %1609 : vector<16x72xf32>
    %1616 = vector.shape_cast %1615 : vector<16x72xf32> to vector<1x16x72xf32>
    %cst_583 = arith.constant dense<0.000000e+00> : vector<1xf32>
    %1617 = vector.multi_reduction <add>, %1616, %cst_583 [1, 2] : vector<1x16x72xf32> to vector<1xf32>
    %1618 = vector.shape_cast %1617 : vector<1xf32> to vector<1x1x1xf32>
    %1619 = vector.extract %1618[0, 0, 0] : f32 from vector<1x1x1xf32>
    %cst_584 = arith.constant 8.68055562E-4 : f32
    %1620 = arith.mulf %1619, %cst_584 : f32
    %1621 = arith.mulf %1614, %1614 : f32
    %1622 = arith.subf %1620, %1621 : f32
    %1623 = vector.broadcast %1614 : f32 to vector<16x72xf32>
    %1624 = arith.subf %1609, %1623 : vector<16x72xf32>
    %1625 = vector.broadcast %1556 : vector<16x1xf32> to vector<16x72xf32>
    %1626 = arith.mulf %1625, %1624 : vector<16x72xf32>
    %cst_585 = arith.constant 9.99999993E-9 : f32
    %1627 = arith.addf %1622, %cst_585 : f32
    %1628 = math.rsqrt %1627 : f32
    %1629 = vector.broadcast %1628 : f32 to vector<16x72xf32>
    %1630 = arith.mulf %1626, %1629 : vector<16x72xf32>
    %1631 = vector.broadcast %1557 : vector<16x1xf32> to vector<16x72xf32>
    %1632 = arith.addf %1630, %1631 : vector<16x72xf32>
    %cst_586 = arith.constant dense<0.000000e+00> : vector<16x72xf32>
    %1633 = tpu.matmul %1550, %1632, %cst_586 {dimension_numbers = #tpu.dot_dimension_numbers<[1], [0], [0], [1], [0, 0, 1, 1], [], []>} : vector<16x16xf32>, vector<16x72xf32>, vector<16x72xf32> -> vector<16x72xf32>
    %1634 = arith.addf %1633, %1548 : vector<16x72xf32>
    %cst_587 = arith.constant dense<0.000000e+00> : vector<16x72xf32>
    %1635 = tpu.matmul %4, %1634, %cst_587 {dimension_numbers = #tpu.dot_dimension_numbers<[1], [0], [0], [1], [0, 0, 1, 1], [], []>} : vector<16x16xf32>, vector<16x72xf32>, vector<16x72xf32> -> vector<16x72xf32>
    %cst_588 = arith.constant 0.000000e+00 : f32
    %1636 = vector.broadcast %cst_588 : f32 to vector<16x72xf32>
    %1637 = arith.maximumf %1635, %1636 : vector<16x72xf32>
    %1638 = arith.mulf %1637, %846 : vector<16x72xf32>
    %cst_589 = arith.constant dense<0.000000e+00> : vector<8x72xf32>
    %1639 = tpu.matmul %5, %1638, %cst_589 {dimension_numbers = #tpu.dot_dimension_numbers<[1], [0], [0], [1], [0, 0, 1, 1], [], []>} : vector<8x16xf32>, vector<16x72xf32>, vector<8x72xf32> -> vector<8x72xf32>
    %cst_590 = arith.constant dense<0.000000e+00> : vector<8x292xf32>
    %1640 = tpu.matmul %1639, %7, %cst_590 {dimension_numbers = #tpu.dot_dimension_numbers<[1], [0], [0], [1], [0, 0, 1, 1], [], []>} : vector<8x72xf32>, vector<72x292xf32>, vector<8x292xf32> -> vector<8x292xf32>
    %1641 = vector.extract_strided_slice %1640 {offsets = [0, 0], sizes = [1, 292], strides = [1, 1]} : vector<8x292xf32> to vector<1x292xf32>
    %cst_591 = arith.constant 0.000000e+00 : f32
    %1642 = vector.broadcast %cst_591 : f32 to vector<1x1xf32>
    %1643 = vector.extract_strided_slice %1640 {offsets = [1, 0], sizes = [1, 291], strides = [1, 1]} : vector<8x292xf32> to vector<1x291xf32>
    %1644 = tpu.concatenate %1642, %1643 in 1 : vector<1x1xf32>, vector<1x291xf32> -> vector<1x292xf32>
    %1645 = arith.addf %1641, %1644 : vector<1x292xf32>
    %cst_592 = arith.constant 0.000000e+00 : f32
    %1646 = vector.broadcast %cst_592 : f32 to vector<1x2xf32>
    %1647 = vector.extract_strided_slice %1640 {offsets = [2, 0], sizes = [1, 290], strides = [1, 1]} : vector<8x292xf32> to vector<1x290xf32>
    %1648 = tpu.concatenate %1646, %1647 in 1 : vector<1x2xf32>, vector<1x290xf32> -> vector<1x292xf32>
    %1649 = arith.addf %1645, %1648 : vector<1x292xf32>
    %cst_593 = arith.constant 0.000000e+00 : f32
    %1650 = vector.broadcast %cst_593 : f32 to vector<1x3xf32>
    %1651 = vector.extract_strided_slice %1640 {offsets = [3, 0], sizes = [1, 289], strides = [1, 1]} : vector<8x292xf32> to vector<1x289xf32>
    %1652 = tpu.concatenate %1650, %1651 in 1 : vector<1x3xf32>, vector<1x289xf32> -> vector<1x292xf32>
    %1653 = arith.addf %1649, %1652 : vector<1x292xf32>
    %cst_594 = arith.constant 0.000000e+00 : f32
    %1654 = vector.broadcast %cst_594 : f32 to vector<1x4xf32>
    %1655 = vector.extract_strided_slice %1640 {offsets = [4, 0], sizes = [1, 288], strides = [1, 1]} : vector<8x292xf32> to vector<1x288xf32>
    %1656 = tpu.concatenate %1654, %1655 in 1 : vector<1x4xf32>, vector<1x288xf32> -> vector<1x292xf32>
    %1657 = arith.addf %1653, %1656 : vector<1x292xf32>
    %cst_595 = arith.constant 0.000000e+00 : f32
    %1658 = vector.broadcast %cst_595 : f32 to vector<1x5xf32>
    %1659 = vector.extract_strided_slice %1640 {offsets = [5, 0], sizes = [1, 287], strides = [1, 1]} : vector<8x292xf32> to vector<1x287xf32>
    %1660 = tpu.concatenate %1658, %1659 in 1 : vector<1x5xf32>, vector<1x287xf32> -> vector<1x292xf32>
    %1661 = arith.addf %1657, %1660 : vector<1x292xf32>
    %cst_596 = arith.constant 0.000000e+00 : f32
    %1662 = vector.broadcast %cst_596 : f32 to vector<1x6xf32>
    %1663 = vector.extract_strided_slice %1640 {offsets = [6, 0], sizes = [1, 286], strides = [1, 1]} : vector<8x292xf32> to vector<1x286xf32>
    %1664 = tpu.concatenate %1662, %1663 in 1 : vector<1x6xf32>, vector<1x286xf32> -> vector<1x292xf32>
    %1665 = arith.addf %1661, %1664 : vector<1x292xf32>
    %cst_597 = arith.constant 0.000000e+00 : f32
    %1666 = vector.broadcast %cst_597 : f32 to vector<1x7xf32>
    %1667 = vector.extract_strided_slice %1640 {offsets = [7, 0], sizes = [1, 285], strides = [1, 1]} : vector<8x292xf32> to vector<1x285xf32>
    %1668 = tpu.concatenate %1666, %1667 in 1 : vector<1x7xf32>, vector<1x285xf32> -> vector<1x292xf32>
    %1669 = arith.addf %1665, %1668 : vector<1x292xf32>
    %1670 = tpu.concatenate %838, %1669 in 0 : vector<1x292xf32>, vector<1x292xf32> -> vector<2x292xf32>
    %c0_598 = arith.constant 0 : index
    %c0_599 = arith.constant 0 : index
    %1671 = vector.load %arg7[%c0_598, %c0_599] : memref<2x292xf32, #tpu.memory_space<vmem>>, vector<2x292xf32>
    tpu.vector_store %arg7[%c0_598, %c0_599], %1670 {strides = array<i32>} : memref<2x292xf32, #tpu.memory_space<vmem>>, vector<2x292xf32>,
    return
  }
  func.func @transform_0(%arg0: i32) -> (i32, i32, i32) {
    %c0_i32 = arith.constant 0 : i32
    %c0_i32_0 = arith.constant 0 : i32
    %c0_i32_1 = arith.constant 0 : i32
    %c0_i32_2 = arith.constant 0 : i32
    return %c0_i32, %c0_i32_0, %c0_i32_1 : i32, i32, i32
  }
  func.func @transform_1(%arg0: i32) -> (i32, i32, i32) {
    %c0_i32 = arith.constant 0 : i32
    %c0_i32_0 = arith.constant 0 : i32
    %c0_i32_1 = arith.constant 0 : i32
    %c0_i32_2 = arith.constant 0 : i32
    return %c0_i32, %c0_i32_0, %c0_i32_1 : i32, i32, i32
  }
  func.func @transform_2(%arg0: i32) -> (i32, i32) {
    %c0_i32 = arith.constant 0 : i32
    %c0_i32_0 = arith.constant 0 : i32
    %c0_i32_1 = arith.constant 0 : i32
    return %c0_i32, %c0_i32_0 : i32, i32
  }
  func.func @transform_3(%arg0: i32) -> (i32, i32, i32) {
    %c0_i32 = arith.constant 0 : i32
    %c0_i32_0 = arith.constant 0 : i32
    %c0_i32_1 = arith.constant 0 : i32
    %c0_i32_2 = arith.constant 0 : i32
    return %c0_i32, %c0_i32_0, %c0_i32_1 : i32, i32, i32
  }
  func.func @transform_4(%arg0: i32) -> (i32, i32) {
    %c0_i32 = arith.constant 0 : i32
    %c0_i32_0 = arith.constant 0 : i32
    %c0_i32_1 = arith.constant 0 : i32
    return %c0_i32, %c0_i32_0 : i32, i32
  }
  func.func @transform_5(%arg0: i32) -> (i32, i32) {
    %c0_i32 = arith.constant 0 : i32
    %c0_i32_0 = arith.constant 0 : i32
    %c0_i32_1 = arith.constant 0 : i32
    return %c0_i32, %c0_i32_0 : i32, i32
  }
  func.func @transform_6(%arg0: i32) -> (i32, i32) {
    %c0_i32 = arith.constant 0 : i32
    %c0_i32_0 = arith.constant 0 : i32
    %c0_i32_1 = arith.constant 0 : i32
    return %c0_i32, %c0_i32_0 : i32, i32
  }
}

</mosaic_0001>

<bundles_post_ra>
// kernel: reentry_net_forward.1
= control target key start
LH: loop header
LB: loop body
LE: loop exit
PB: predicated region body
PF: predicated region fallthrough
CT: control target
= control target key end

     0   :  { %11 = vsyncpa [#allocation3], 0  ;;  %s12866_s0 = inlined_call_operand.vmem [shape: f32[2,73,4], index: 0, kind: input, shape index: {}]   ;;  %s12867_s1 = inlined_call_operand.vmem [shape: f32[2,2,16], index: 1, kind: input, shape index: {}]   ;;  %s12868_s2 = inlined_call_operand.vmem [shape: f32[200,16], index: 2, kind: input, shape index: {}]   ;;  %s12869_s3 = inlined_call_operand.hbm [shape: f32[5,40,512], index: 3, kind: input, shape index: {}]   ;;  %s12870_s4 = inlined_call_operand.vmem [shape: f32[2,72], index: 4, kind: input, shape index: {}]   ;;  %s12871_s5 = inlined_call_operand.vmem [shape: f32[72,292], index: 5, kind: input, shape index: {}]   ;;  %s12872_s6 = inlined_call_operand.hbm [shape: f32[2,292], index: 6, kind: output, shape index: {}]  }
   0x1   :  { %12 = vsyncpa [#allocation4], 0  ;;  %s10102_s21 = smov [#allocation2]  }
   0x2   :  { %s24_s22 = sshll.u32 %s10102_s21, 4  ;;  %s25_s22 = int_to_ptr.vmem [resolvable:$true] %s24_s22 }
   0x3   :  { %s10066_s23 = scalar_lea.vmem %s25_s22, 12800  ;;  %p10071_p1 = scmp.lt.s32.totalorder %s25_s22, %s25_s22 }
   0x4   :  { %p10067_p0 = scmp.ne.s32.totalorder %s25_s22, %s10066_s23  ;;  %p10072_p2 = scmp.lt.s32.totalorder %s10066_s23, %s10066_s23 }
   0x6   :  { %p10073_p3 = por %p10072_p2, %p10071_p1 }
   0x8   :  { %p10074_p4 = pnand %p10073_p3, %p10067_p0 }
   0xa   :  { %10077 = shalt.err (!%p10074_p4)
}
   0xb   :  { %s10103_s24 = smov 512   ;;  %s10104_s25 = smov 32  }
   0xc   :  { %30 = dma.hbm_to_vmem [thread:$0]  %s12869_s3, 12800, %s25_s22, [#allocation3], %s10103_s24, %s10103_s24, %s10104_s25  }
   0xd   :  { %10098 = dma.done.wait [#allocation3], 12800  }
   0xe   :  { %10099 = vsyncadd [#allocation3], 4294954496  ;;  %v10168_v0 = vld [vmem:[%s12867_s1] sm:$0x3]  ;;  %vm329_vm0 = vcmask 123904   ;;  %v302_v15 = vld [vmem:[#allocation2 + $0x28] sm:$0xff]  ;;  %v357_v27 = vlaneseq }
   0xf   :  { %v328_v1 = vmax.f32 %v10168_v0, 0.0  ;;  %405 = vmatprep.subr.mxu1 %v302_v15  ;;  %v301_v18 = vld [vmem:[#allocation2 + $0x20] sm:$0xff]  ;;  %v298_v19 = vld [vmem:[#allocation2 + $0x8] sm:$0xff]  ;;  %v12873_v22 = vmov 0.0   ;;  %v304_v23 = vld [vmem:[#allocation2 + $0x38] sm:$0xff]  ;;  %vm373_vm1 = vcmask 130048  }
  0x10   :  { %406 = vmatpush1.msra.mxu1 %v301_v18  ;;  %v297_v21 = vld [vmem:[#allocation2] sm:$0xff]  ;;  %441 = vmatprep.mubr.f32.mxu1 %v12873_v22  ;;  %v10174_v28 = vshrl.u32 %v357_v27, 7  ;;  %v303_v40 = vld [vmem:[#allocation2 + $0x30] sm:$0xff]  ;;  %v300_v41 = vld [vmem:[#allocation2 + $0x18] sm:$0xff]  ;;  %vm523_vm2 = vcmask 1041408   ;;  %vm640_vm3 = vcmask 1040384  }
  0x11   :  { %v330_v2 = vsel %vm329_vm0, %v328_v1, 0.0  ;;  %v341_v3 = vmul.f32 %v328_v1, %v328_v1  ;;  %407 = vmatprep.subr.mxu1 %v298_v19  ;;  %v327_v31 = vld [vmem:[%s12868_s2 + $0x40] sm:$0x3]  ;;  %v299_v42 = vld [vmem:[#allocation2 + $0x10] sm:$0xff]  ;;  %vm97_vm12 = vcmask 1046528   ;;  %vm154_vm13 = vcmask 64512  }
  0x12   :  { %331 = vadd.xlane.f32.xlu0 %v330_v2  ;;  %408 = vmatpush1.msra.mxu1 %v297_v21  ;;  %13071 = vst [vmem:[#allocation8_spill] sm:$0xff] %v10174_v28  ;;  %v10177_v29 = vsub.s32 0, %v10174_v28  ;;  %v10186_v34 = vsub.s32 1, %v10174_v28  ;;  %v308_v27 = vld [vmem:[#allocation2 + $0x41] ss:$8 sm:$0xf] }
  0x13   :  { %v342_v4 = vsel %vm329_vm0, %v341_v3, 0.0  ;;  %476 = vmatprep.subr.mxu1 %v304_v23  ;;  %v10225_v23 = vsub.s32 2, %v10174_v28  ;;  %vm144_vm14 = vcmask 31744   ;;  %vm265_vm15 = vcmask 588800  }
  0x14   :  { %v10183_v33 = vrot.slane %v327_v31, %v10177_v29  ;;  %v10190_v36 = vrot.slane %v327_v31, %v10186_v34  ;;  %v315_v31 = vld [vmem:[#allocation2 + $0x40] sm:$0xe0] }
  0x16   :  { %343 = vadd.xlane.f32.xlu0 %v342_v4 }
  0x9b   :  { %v332_v5 = vpop.xlane.xlu0 %331 }
  0x9c   :  { %v333_v6 = vrot.slane %v332_v5, 4 }
  0x9e   :  { %v334_v7 = vadd.f32 %v333_v6, %v332_v5 }
  0x9f   :  { %v344_v8 = vpop.xlane.xlu0 %343 }
  0xa0   :  { %v345_v9 = vrot.slane %v344_v8, 4  ;;  %v335_v10 = vrot.slane %v334_v7, 2 }
  0xa2   :  { %v346_v11 = vadd.f32 %v345_v9, %v344_v8  ;;  %v336_v12 = vadd.f32 %v335_v10, %v334_v7 }
  0xa4   :  { %v337_v13 = vrot.slane %v336_v12, 1  ;;  %v347_v14 = vrot.slane %v346_v11, 2 }
  0xa6   :  { %v338_v16 = vadd.f32 %v337_v13, %v336_v12  ;;  %v348_v17 = vadd.f32 %v347_v14, %v346_v11 }
  0xa8   :  { %9567 = vpush %v338_v16  ;;  %v349_v20 = vrot.slane %v348_v17, 1 }
  0xaa   :  { %v350_v24 = vadd.f32 %v349_v20, %v348_v17 }
  0xac   :  { %9569 = vpush %v350_v24  ;;  %v10228_v24 = vsub.s32 3, %v10174_v28 }
  0xd9   :  { %s9568_s3 = spop %9567 }
  0xda   :  { %s340_s30 = smul.f32 0.03125, %s9568_s3 }
  0xdc   :  { %s353_s7 = smul.f32 %s340_s30, %s340_s30  ;;  %v355_v30 = vstv %s340_s30 }
  0xdd   :  { %s9570_s8 = spop %9569  ;;  %v356_v32 = vsub.f32 %v328_v1, %v355_v30  ;;  %v10231_v30 = vsub.s32 6, %v10174_v28 }
  0xde   :  { %s352_s9 = smul.f32 0.03125, %s9570_s8 }
  0xdf   :  { %v361_v35 = vmul.f32 %v10183_v33, %v356_v32 }
  0xe0   :  { %s354_s10 = ssub.f32 %s352_s9, %s353_s7 }
  0xe2   :  { %s362_s11 = sadd.f32 1e-08, %s354_s10 }
  0xe4   :  { %v363_v25 = vstv %s362_s11 }
  0xe5   :  { %9854 = vrsqrt.f32 %v363_v25  ;;  %v306_v25 = vld [vmem:[#allocation2 + $0x40] ss:$8 sm:$0xf] }
  0xe6   :  { %v10234_v32 = vrot.slane %v306_v25, %v10177_v29 }
  0xf2   :  { %v9855_v26 = vpop.eup %9854 }
  0xf3   :  { %9571 = vpush %v9855_v26 }
 0x124   :  { %s9572_s14 = spop %9571 }
 0x125   :  { %v366_v37 = vstv %s9572_s14 }
 0x126   :  { %v367_v38 = vmul.f32 %v366_v37, %v361_v35  ;;  %v10237_v35 = vrot.slane %v306_v25, %v10186_v34  ;;  %v10240_v37 = vrot.slane %v306_v25, %v10225_v23 }
 0x128   :  { %v372_v39 = vadd.f32 %v10190_v36, %v367_v38  ;;  %v10243_v38 = vrot.slane %v306_v25, %v10228_v24 }
 0x12a   :  { %9195 = vmatmul.mubr.msk.f32.vlgmr.msra.gmra.mxu1 %vm373_vm1, %v372_v39 }
 0x12b   :  { %477 = vmatpush1.msra.mxu1 %v303_v40  ;;  %512 = vmatprep.mubr.f32.mxu1 %v12873_v22 }
 0x12c   :  { %478 = vmatprep.subr.mxu1 %v300_v41 }
 0x12d   :  { %479 = vmatpush1.msra.mxu1 %v299_v42 }
 0x12e   :  { %9196 = vmatmul.mubr.msk.f32.vlgmr.msra.gmra.mxu1 %vm373_vm1, %v372_v39 }
 0x1ea   :  { %v443_v43 = vpop.f32.mrf.mxu1 }
 0x1eb   :  { %v10196_v44 = vmax.f32 %v443_v43, 0.0  ;;  %v316_v43 = vld [vmem:[#allocation2 + $0x48] sm:$0xe0] }
 0x1ec   :  { %v445_v45 = vpop.f32.mrf.mxu1 }
 0x1ed   :  { %v541_v46 = vmul.f32 %v10196_v44, %v10196_v44  ;;  %v10200_v47 = vmax.f32 %v445_v45, 0.0  ;;  %v524_v51 = vsel %vm523_vm2, %v10196_v44, 0.0  ;;  %v317_v45 = vld [vmem:[#allocation2 + $0x50] sm:$0xe0] }
 0x1ee   :  { %v514_v48 = vpop.f32.mrf.mxu1 }
 0x1ef   :  { %v542_v49 = vmul.f32 %v10200_v47, %v10200_v47  ;;  %v10204_v50 = vmax.f32 %v514_v48, 0.0  ;;  %v525_v52 = vsel %vm523_vm2, %v10200_v47, 0.0  ;;  %v545_v55 = vsel %vm523_vm2, %v541_v46, 0.0  ;;  %v318_v46 = vld [vmem:[#allocation2 + $0x58] sm:$0xe0] }
 0x1f0   :  { %v516_v53 = vpop.f32.mrf.mxu1  ;;  %v526_v54 = vadd.f32 %v525_v52, %v524_v51  ;;  %v10250_v48 = vrot.slane %v308_v27, %v10177_v29  ;;  %v10256_v51 = vrot.slane %v308_v27, %v10186_v34  ;;  %v10268_v52 = vrot.slane %v316_v43, %v10231_v30 }
 0x1f1   :  { %v543_v56 = vmul.f32 %v10204_v50, %v10204_v50  ;;  %v10213_v57 = vmax.f32 %v516_v53, 0.0  ;;  %v527_v58 = vsel %vm523_vm2, %v10204_v50, 0.0  ;;  %v546_v59 = vsel %vm523_vm2, %v542_v49, 0.0 }
 0x1f2   :  { %v528_v60 = vadd.f32 %v527_v58, %v526_v54  ;;  %v547_v61 = vadd.f32 %v546_v59, %v545_v55  ;;  %v10253_v49 = vsub.s32 5, %v10174_v28  ;;  %13073 = vst [vmem:[#allocation10_spill] sm:$0xff] %v10268_v52  ;;  %v10271_v53 = vrot.slane %v317_v45, %v10231_v30 }
 0x1f3   :  { %v529_v62 = vsel %vm523_vm2, %v10213_v57, 0.0  ;;  %v544_v63 = vmul.f32 %v10213_v57, %v10213_v57  ;;  %v548_v1 = vsel %vm523_vm2, %v543_v56, 0.0  ;;  %v10274_v54 = vrot.slane %v318_v46, %v10231_v30 }
 0x1f4   :  { %v530_v2 = vadd.f32 %v529_v62, %v528_v60  ;;  %v549_v3 = vadd.f32 %v548_v1, %v547_v61  ;;  %13074 = vst [vmem:[#allocation11_spill] sm:$0xff] %v10271_v53  ;;  %v10277_v55 = vsub.s32 7, %v10174_v28  ;;  %v10284_v61 = vrot.slane %v315_v31, %v10253_v49 }
 0x1f5   :  { %v550_v4 = vsel %vm523_vm2, %v544_v63, 0.0  ;;  %13075 = vst [vmem:[#allocation12_spill] sm:$0xff] %v10274_v54  ;;  %v10287_v62 = vrot.slane %v316_v43, %v10253_v49 }
 0x1f6   :  { %531 = vadd.xlane.f32.xlu1 %v530_v2  ;;  %v551_v5 = vadd.f32 %v550_v4, %v549_v3  ;;  %v310_v4 = vld [vmem:[#allocation2 + $0x42] ss:$8 sm:$0xf] }
 0x1fa   :  { %552 = vadd.xlane.f32.xlu1 %v551_v5  ;;  %v10290_v5 = vrot.slane %v317_v45, %v10253_v49 }
 0x1fc   :  { %13076 = vst [vmem:[#allocation13_spill] sm:$0xff] %v10290_v5 }
 0x27f   :  { %v532_v6 = vpop.xlane.xlu1 %531 }
 0x280   :  { %v533_v7 = vrot.slane %v532_v6, 4 }
 0x282   :  { %v534_v8 = vadd.f32 %v533_v7, %v532_v6  ;;  %v10293_v6 = vrot.slane %v315_v31, %v10277_v55  ;;  %v10296_v7 = vrot.slane %v316_v43, %v10277_v55 }
 0x283   :  { %v553_v9 = vpop.xlane.xlu1 %552 }
 0x284   :  { %v554_v10 = vrot.slane %v553_v9, 4  ;;  %v535_v11 = vrot.slane %v534_v8, 2  ;;  %13077 = vst [vmem:[#allocation14_spill] sm:$0xff] %v10293_v6  ;;  %13078 = vst [vmem:[#allocation15_spill] sm:$0xff] %v10296_v7 }
 0x286   :  { %v555_v12 = vadd.f32 %v554_v10, %v553_v9  ;;  %v536_v13 = vadd.f32 %v535_v11, %v534_v8  ;;  %v10299_v8 = vrot.slane %v318_v46, %v10253_v49 }
 0x288   :  { %v537_v14 = vrot.slane %v536_v13, 1  ;;  %v556_v15 = vrot.slane %v555_v12, 2  ;;  %13079 = vst [vmem:[#allocation16_spill] sm:$0xff] %v10299_v8 }
 0x28a   :  { %v538_v16 = vadd.f32 %v537_v14, %v536_v13  ;;  %v557_v17 = vadd.f32 %v556_v15, %v555_v12  ;;  %v10306_v13 = vrot.slane %v317_v45, %v10277_v55  ;;  %v10309_v14 = vrot.slane %v318_v46, %v10277_v55 }
 0x28b   :  { %v10312_v15 = vrot.slane %v310_v4, %v10177_v29 }
 0x28c   :  { %9573 = vpush %v538_v16  ;;  %v558_v18 = vrot.slane %v557_v17, 1  ;;  %13080 = vst [vmem:[#allocation17_spill] sm:$0xff] %v10306_v13  ;;  %v10315_v16 = vrot.slane %v310_v4, %v10186_v34 }
 0x28d   :  { %13081 = vst [vmem:[#allocation18_spill] sm:$0xff] %v10309_v14  ;;  %13082 = vst [vmem:[#allocation19_spill] sm:$0xff] %v10312_v15 }
 0x28e   :  { %v559_v19 = vadd.f32 %v558_v18, %v557_v17  ;;  %13083 = vst [vmem:[#allocation20_spill] sm:$0xff] %v10315_v16 }
 0x290   :  { %9575 = vpush %v559_v19 }
 0x2bd   :  { %s9574_s15 = spop %9573 }
 0x2be   :  { %s540_s16 = smul.f32 0.0009765625, %s9574_s15 }
 0x2c0   :  { %s562_s17 = smul.f32 %s540_s16, %s540_s16  ;;  %v564_v26 = vstv %s540_s16 }
 0x2c1   :  { %s9576_s18 = spop %9575  ;;  %v565_v39 = vsub.f32 %v10196_v44, %v564_v26  ;;  %v566_v40 = vsub.f32 %v10200_v47, %v564_v26  ;;  %v567_v41 = vsub.f32 %v10204_v50, %v564_v26  ;;  %v568_v42 = vsub.f32 %v10213_v57, %v564_v26 }
 0x2c2   :  { %s561_s19 = smul.f32 0.0009765625, %s9576_s18  ;;  %v10259_v44 = vrot.slane %v308_v27, %v10225_v23  ;;  %v10262_v47 = vrot.slane %v308_v27, %v10228_v24  ;;  %v10265_v50 = vrot.slane %v315_v31, %v10231_v30 }
 0x2c3   :  { %v590_v56 = vmul.f32 %v10234_v32, %v565_v39  ;;  %v591_v57 = vmul.f32 %v10237_v35, %v566_v40  ;;  %v592_v58 = vmul.f32 %v10240_v37, %v567_v41  ;;  %v593_v59 = vmul.f32 %v10243_v38, %v568_v42 }
 0x2c4   :  { %s563_s20 = ssub.f32 %s561_s19, %s562_s17  ;;  %13072 = vst [vmem:[#allocation9_spill] sm:$0xff] %v10265_v50 }
 0x2c6   :  { %s594_s21 = sadd.f32 1e-08, %s563_s20 }
 0x2c8   :  { %v595_v20 = vstv %s594_s21 }
 0x2c9   :  { %9856 = vrsqrt.f32 %v595_v20 }
 0x2d6   :  { %v9857_v21 = vpop.eup %9856 }
 0x2d7   :  { %9577 = vpush %v9857_v21 }
 0x308   :  { %s9578_s22 = spop %9577 }
 0x309   :  { %v598_v60 = vstv %s9578_s22 }
 0x30a   :  { %v599_v63 = vmul.f32 %v598_v60, %v590_v56  ;;  %v600_v1 = vmul.f32 %v598_v60, %v591_v57  ;;  %v601_v2 = vmul.f32 %v598_v60, %v592_v58  ;;  %v602_v3 = vmul.f32 %v598_v60, %v593_v59 }
 0x30c   :  { %v624_v9 = vadd.f32 %v10250_v48, %v599_v63  ;;  %v625_v10 = vadd.f32 %v10256_v51, %v600_v1  ;;  %v626_v11 = vadd.f32 %v10259_v44, %v601_v2  ;;  %v627_v12 = vadd.f32 %v10262_v47, %v602_v3 }
 0x30e   :  { %v632_v17 = vrot.slane %v624_v9, 7  ;;  %v633_v18 = vrot.slane %v625_v10, 7  ;;  %v634_v19 = vrot.slane %v626_v11, 7  ;;  %v635_v20 = vrot.slane %v627_v12, 7 }
 0x30f   :  { %v645_v21 = vrot.slane %v624_v9, 1  ;;  %v646_v25 = vrot.slane %v625_v10, 1  ;;  %v647_v26 = vrot.slane %v626_v11, 1  ;;  %v648_v27 = vrot.slane %v627_v12, 1 }
 0x310   :  { %v641_v31 = vsel %vm640_vm3, 0.0, %v632_v17  ;;  %v642_v39 = vsel %vm640_vm3, 0.0, %v633_v18  ;;  %v643_v40 = vsel %vm640_vm3, 0.0, %v634_v19  ;;  %v644_v41 = vsel %vm640_vm3, 0.0, %v635_v20 }
 0x311   :  { %v653_v42 = vsel %vm640_vm3, %v645_v21, 0.0  ;;  %v654_v43 = vsel %vm640_vm3, %v646_v25, 0.0  ;;  %v655_v45 = vsel %vm640_vm3, %v647_v26, 0.0  ;;  %v673_v46 = vmul.f32 %v10284_v61, %v641_v31 }
 0x312   :  { %v674_v56 = vmul.f32 %v10287_v62, %v642_v39  ;;  %v675_v57 = vmul.f32 %v10290_v5, %v643_v40  ;;  %v693_v58 = vmul.f32 %v10265_v50, %v624_v9  ;;  %v694_v59 = vmul.f32 %v10268_v52, %v625_v10 }
 0x313   :  { %v695_v60 = vmul.f32 %v10271_v53, %v626_v11  ;;  %v696_v63 = vmul.f32 %v10274_v54, %v627_v12  ;;  %v717_v1 = vmul.f32 %v10293_v6, %v653_v42  ;;  %v718_v2 = vmul.f32 %v10296_v7, %v654_v43 }
 0x314   :  { %v697_v3 = vadd.f32 %v693_v58, %v673_v46  ;;  %v698_v17 = vadd.f32 %v694_v59, %v674_v56  ;;  %v656_v18 = vsel %vm640_vm3, %v648_v27, 0.0  ;;  %v676_v19 = vmul.f32 %v10299_v8, %v644_v41 }
 0x315   :  { %v699_v20 = vadd.f32 %v695_v60, %v675_v57  ;;  %v719_v21 = vmul.f32 %v10306_v13, %v655_v45  ;;  %v10337_v9 = vrot.slane %v310_v4, %v10225_v23  ;;  %v10340_v10 = vrot.slane %v310_v4, %v10228_v24 }
 0x316   :  { %v700_v11 = vadd.f32 %v696_v63, %v676_v19  ;;  %v720_v12 = vmul.f32 %v10309_v14, %v656_v18  ;;  %v721_v25 = vadd.f32 %v717_v1, %v697_v3  ;;  %v722_v26 = vadd.f32 %v718_v2, %v698_v17 }
 0x317   :  { %13084 = vst [vmem:[#allocation21_spill] sm:$0xff] %v10337_v9  ;;  %13085 = vst [vmem:[#allocation22_spill] sm:$0xff] %v10340_v10  ;;  %v723_v31 = vadd.f32 %v719_v21, %v699_v20 }
 0x318   :  { %v724_v39 = vadd.f32 %v720_v12, %v700_v11  ;;  %vm725_vm4 = vcmp.gt.f32.partialorder %v721_v25, 0.0  ;;  %vm726_vm5 = vcmp.gt.f32.partialorder %v722_v26, 0.0  ;;  %v750_v27 = vmul.f32 %v10312_v15, %v721_v25 }
 0x319   :  { %vm727_vm6 = vcmp.gt.f32.partialorder %v723_v31, 0.0  ;;  %v751_v40 = vmul.f32 %v10315_v16, %v722_v26  ;;  %v752_v41 = vmul.f32 %v10337_v9, %v723_v31 }
 0x31a   :  { %vm728_vm7 = vcmp.gt.f32.partialorder %v724_v39, 0.0  ;;  %v753_v4 = vmul.f32 %v10340_v10, %v724_v39  ;;  %v10347_v42 = vsel %vm725_vm4, %v721_v25, %v750_v27 }
 0x31b   :  { %v10349_v43 = vsel %vm726_vm5, %v722_v26, %v751_v40  ;;  %v10351_v45 = vsel %vm727_vm6, %v723_v31, %v752_v41  ;;  %v758_v46 = vsel %vm523_vm2, %v10347_v42, 0.0  ;;  %v775_v56 = vmul.f32 %v10347_v42, %v10347_v42  ;;  %v324_v31 = vld [vmem:[#allocation2 + $0x88] sm:$0xff] }
 0x31c   :  { %v10357_v57 = vsel %vm728_vm7, %v724_v39, %v753_v4  ;;  %v759_v58 = vsel %vm523_vm2, %v10349_v43, 0.0  ;;  %v776_v59 = vmul.f32 %v10349_v43, %v10349_v43  ;;  %v777_v63 = vmul.f32 %v10351_v45, %v10351_v45  ;;  %v323_v39 = vld [vmem:[#allocation2 + $0x80] sm:$0xff]  ;;  %890 = vmatprep.subr.mxu1 %v324_v31 }
 0x31d   :  { %v760_v60 = vadd.f32 %v759_v58, %v758_v46  ;;  %v761_v1 = vsel %vm523_vm2, %v10351_v45, 0.0  ;;  %v778_v2 = vmul.f32 %v10357_v57, %v10357_v57  ;;  %v779_v3 = vsel %vm523_vm2, %v775_v56, 0.0  ;;  %891 = vmatpush1.xpose.msra.mxu1 %v323_v39 }
 0x31e   :  { %v780_v17 = vsel %vm523_vm2, %v776_v59, 0.0  ;;  %v763_v20 = vsel %vm523_vm2, %v10357_v57, 0.0  ;;  %v782_v21 = vsel %vm523_vm2, %v777_v63, 0.0 }
 0x31f   :  { %v762_v18 = vadd.f32 %v761_v1, %v760_v60  ;;  %v781_v19 = vadd.f32 %v780_v17, %v779_v3  ;;  %v784_v25 = vsel %vm523_vm2, %v778_v2, 0.0  ;;  %v320_v17 = vld [vmem:[#allocation2 + $0x68] sm:$0xff] }
 0x320   :  { %892 = vmatprep.subr.mxu1 %v320_v17 }
 0x321   :  { %v764_v11 = vadd.f32 %v763_v20, %v762_v18  ;;  %v783_v12 = vadd.f32 %v782_v21, %v781_v19  ;;  %v319_v18 = vld [vmem:[#allocation2 + $0x60] sm:$0xff]  ;;  %v326_v20 = vld [vmem:[#allocation2 + $0x98] sm:$0xff] }
 0x322   :  { %893 = vmatpush1.xpose.msra.mxu1 %v319_v18 }
 0x323   :  { %765 = vadd.xlane.f32.xlu0 %v764_v11  ;;  %v785_v26 = vadd.f32 %v784_v25, %v783_v12  ;;  %960 = vmatprep.subr.mxu1 %v326_v20  ;;  %v312_v12 = vld [vmem:[#allocation2 + $0x43] ss:$8 sm:$0xf] }
 0x324   :  { %v10379_v31 = vrot.slane %v312_v12, %v10186_v34 }
 0x325   :  { %786 = vadd.xlane.f32.xlu1 %v785_v26  ;;  %v10376_v26 = vrot.slane %v312_v12, %v10177_v29 }
 0x326   :  { %13087 = vst [vmem:[#allocation24_spill] sm:$0xff] %v10379_v31 }
 0x327   :  { %13086 = vst [vmem:[#allocation23_spill] sm:$0xff] %v10376_v26 }
 0x3ac   :  { %v766_v27 = vpop.xlane.xlu0 %765 }
 0x3ad   :  { %v767_v40 = vrot.slane %v766_v27, 4 }
 0x3ae   :  { %v787_v41 = vpop.xlane.xlu1 %786 }
 0x3af   :  { %v768_v4 = vadd.f32 %v767_v40, %v766_v27  ;;  %v788_v46 = vrot.slane %v787_v41, 4 }
 0x3b1   :  { %v789_v56 = vadd.f32 %v788_v46, %v787_v41  ;;  %v769_v58 = vrot.slane %v768_v4, 2  ;;  %v314_v41 = vld [vmem:[#allocation2 + $0x44] ss:$8 sm:$0xf] }
 0x3b2   :  { %v10388_v46 = vrot.slane %v314_v41, %v10177_v29 }
 0x3b3   :  { %v770_v59 = vadd.f32 %v769_v58, %v768_v4  ;;  %v790_v60 = vrot.slane %v789_v56, 2  ;;  %v10385_v4 = vrot.slane %v312_v12, %v10228_v24 }
 0x3b4   :  { %13089 = vst [vmem:[#allocation26_spill] sm:$0xff] %v10388_v46 }
 0x3b5   :  { %v771_v63 = vrot.slane %v770_v59, 1  ;;  %v791_v1 = vadd.f32 %v790_v60, %v789_v56  ;;  %13088 = vst [vmem:[#allocation25_spill] sm:$0xff] %v10385_v4 }
 0x3b7   :  { %v772_v3 = vadd.f32 %v771_v63, %v770_v59  ;;  %v792_v2 = vrot.slane %v791_v1, 1 }
 0x3b9   :  { %9579 = vpush %v772_v3  ;;  %v793_v19 = vadd.f32 %v792_v2, %v791_v1  ;;  %v10397_v1 = vrot.slane %v314_v41, %v10228_v24  ;;  %v10401_v2 = vrot.slane %v312_v12, %v10225_v23  ;;  %v321_v12 = vld [vmem:[#allocation2 + $0x70] sm:$0xff] }
 0x3bb   :  { %9581 = vpush %v793_v19  ;;  %13091 = vst [vmem:[#allocation28_spill] sm:$0xff] %v10397_v1  ;;  %v325_v19 = vld [vmem:[#allocation2 + $0x90] sm:$0xff] }
 0x3bc   :  { %13092 = vst [vmem:[#allocation29_spill] sm:$0xff] %v10401_v2 }
 0x3ea   :  { %s9580_s23 = spop %9579 }
 0x3eb   :  { %s774_s24 = smul.f32 0.0009765625, %s9580_s23 }
 0x3ec   :  { %s9582_s25 = spop %9581 }
 0x3ed   :  { %s796_s26 = smul.f32 %s774_s24, %s774_s24  ;;  %v798_v25 = vstv %s774_s24 }
 0x3ee   :  { %s795_s27 = smul.f32 0.0009765625, %s9582_s25  ;;  %v799_v39 = vsub.f32 %v10347_v42, %v798_v25  ;;  %v800_v27 = vsub.f32 %v10349_v43, %v798_v25  ;;  %v802_v40 = vsub.f32 %v10357_v57, %v798_v25  ;;  %v10394_v42 = vrot.slane %v314_v41, %v10186_v34 }
 0x3ef   :  { %v801_v3 = vsub.f32 %v10351_v45, %v798_v25  ;;  %v10408_v45 = vrot.slane %v314_v41, %v10225_v23 }
 0x3f0   :  { %s797_s28 = ssub.f32 %s795_s27, %s796_s26  ;;  %v824_v56 = vmul.f32 %v10376_v26, %v799_v39  ;;  %v825_v58 = vmul.f32 %v10379_v31, %v800_v27  ;;  %v827_v59 = vmul.f32 %v10385_v4, %v802_v40  ;;  %13090 = vst [vmem:[#allocation27_spill] sm:$0xff] %v10394_v42 }
 0x3f1   :  { %13093 = vst [vmem:[#allocation30_spill] sm:$0xff] %v10408_v45 }
 0x3f2   :  { %s828_s29 = sadd.f32 1e-08, %s797_s28 }
 0x3f4   :  { %v829_v21 = vstv %s828_s29 }
 0x3f5   :  { %9858 = vrsqrt.f32 %v829_v21  ;;  %v322_v21 = vld [vmem:[#allocation2 + $0x78] sm:$0xff] }
 0x402   :  { %v9859_v11 = vpop.eup %9858 }
 0x403   :  { %9583 = vpush %v9859_v11  ;;  %v826_v11 = vmul.f32 %v10401_v2, %v801_v3 }
 0x434   :  { %s9584_s3 = spop %9583 }
 0x435   :  { %v832_v43 = vstv %s9584_s3 }
 0x436   :  { %v833_v60 = vmul.f32 %v832_v43, %v824_v56  ;;  %v834_v57 = vmul.f32 %v832_v43, %v825_v58  ;;  %v836_v63 = vmul.f32 %v832_v43, %v827_v59  ;;  %v835_v39 = vmul.f32 %v832_v43, %v826_v11 }
 0x438   :  { %v858_v17 = vadd.f32 %v10388_v46, %v833_v60  ;;  %v859_v18 = vadd.f32 %v10394_v42, %v834_v57  ;;  %v861_v20 = vadd.f32 %v10397_v1, %v836_v63  ;;  %v860_v25 = vadd.f32 %v10408_v45, %v835_v39 }
 0x43a   :  { %926 = vmatprep.mubr.f32.mxu1 %v859_v18 }
 0x43b   :  { %927 = vmatmul.mubr.f32.vlgmr.msra.gmra.mxu1 %v858_v17 }
 0x43c   :  { %961 = vmatpush1.xpose.msra.mxu1 %v325_v19  ;;  %996 = vmatprep.mubr.f32.mxu1 %v861_v20 }
 0x43d   :  { %962 = vmatprep.subr.mxu1 %v322_v21 }
 0x440   :  { %963 = vmatpush1.xpose.msra.mxu1 %v321_v12 }
 0x443   :  { %997 = vmatmul.mubr.f32.vlgmr.msra.gmra.mxu1 %v860_v25 }
 0x444   :  { %1145 = vmatprep.mubr.f32.mxu1 %v12873_v22 }
 0x4fb   :  { %v928_v27 = vpop.f32.mrf.mxu1 }
 0x4fc   :  { %v929_v56 = vadd.f32 %v928_v27, %v10168_v0  ;;  %v1008_v27 = vld [vmem:[#allocation2 + $0xc8] sm:$0xff] }
 0x4fd   :  { %v930_v40 = vpop.f32.mrf.mxu1  ;;  %1109 = vmatprep.subr.mxu1 %v1008_v27  ;;  %v1009_v27 = vld [vmem:[#allocation2 + $0xd0] sm:$0xff] }
 0x4fe   :  { %v1007_v40 = vld [vmem:[#allocation2 + $0xc0] sm:$0xff] }
 0x4ff   :  { %1110 = vmatpush1.msra.mxu1 %v1007_v40  ;;  %v1006_v40 = vld [vmem:[#allocation2 + $0xb8] sm:$0xff] }
 0x503   :  { %v998_v58 = vpop.f32.mrf.mxu1 }
 0x504   :  { %v10413_v59 = vadd.f32 %v998_v58, %v929_v56 }
 0x505   :  { %v1000_v60 = vpop.f32.mrf.mxu1 }
 0x506   :  { %v1034_v43 = vmax.f32 %v10413_v59, 0.0  ;;  %v1004_v60 = vld [vmem:[#allocation2 + $0xa8] sm:$0xff] }
 0x507   :  { %1111 = vmatprep.subr.mxu1 %v1004_v60 }
 0x508   :  { %v1035_v41 = vsel %vm329_vm0, %v1034_v43, 0.0  ;;  %v1046_v57 = vmul.f32 %v1034_v43, %v1034_v43 }
 0x509   :  { %1036 = vadd.xlane.f32.xlu0 %v1035_v41  ;;  %v1003_v41 = vld [vmem:[#allocation2 + $0xa0] sm:$0xff] }
 0x50a   :  { %v1047_v63 = vsel %vm329_vm0, %v1046_v57, 0.0  ;;  %1112 = vmatpush1.msra.mxu1 %v1003_v41 }
 0x50b   :  { %1048 = vadd.xlane.f32.xlu1 %v1047_v63  ;;  %v1010_v63 = vld [vmem:[#allocation2 + $0xd8] sm:$0xff] }
 0x50c   :  { %1180 = vmatprep.subr.mxu1 %v1010_v63 }
 0x592   :  { %v1037_v3 = vpop.xlane.xlu0 %1036 }
 0x593   :  { %v1038_v17 = vrot.slane %v1037_v3, 4 }
 0x594   :  { %v1049_v18 = vpop.xlane.xlu1 %1048 }
 0x595   :  { %v1039_v19 = vadd.f32 %v1038_v17, %v1037_v3  ;;  %v1050_v20 = vrot.slane %v1049_v18, 4 }
 0x597   :  { %v1051_v21 = vadd.f32 %v1050_v20, %v1049_v18  ;;  %v1040_v0 = vrot.slane %v1039_v19, 2 }
 0x599   :  { %v1041_v11 = vadd.f32 %v1040_v0, %v1039_v19  ;;  %v1052_v39 = vrot.slane %v1051_v21, 2  ;;  %v1033_v19 = vld [vmem:[%s12868_s2 + $0x42] sm:$0x3] }
 0x59b   :  { %v1042_v12 = vrot.slane %v1041_v11, 1  ;;  %v1053_v25 = vadd.f32 %v1052_v39, %v1051_v21  ;;  %v10422_v21 = vrot.slane %v1033_v19, %v10177_v29 }
 0x59d   :  { %v1043_v56 = vadd.f32 %v1042_v12, %v1041_v11  ;;  %v1054_v58 = vrot.slane %v1053_v25, 1  ;;  %13094 = vst [vmem:[#allocation31_spill] sm:$0xff] %v10422_v21  ;;  %v10426_v11 = vrot.slane %v1033_v19, %v10186_v34 }
 0x59f   :  { %9585 = vpush %v1043_v56  ;;  %v1055_v57 = vadd.f32 %v1054_v58, %v1053_v25  ;;  %13095 = vst [vmem:[#allocation32_spill] sm:$0xff] %v10426_v11  ;;  %v1005_v56 = vld [vmem:[#allocation2 + $0xb0] sm:$0xff] }
 0x5a1   :  { %9587 = vpush %v1055_v57 }
 0x5d0   :  { %s9586_s30 = spop %9585 }
 0x5d1   :  { %s1045_s7 = smul.f32 0.03125, %s9586_s30 }
 0x5d2   :  { %s9588_s8 = spop %9587 }
 0x5d3   :  { %s1058_s9 = smul.f32 %s1045_s7, %s1045_s7  ;;  %v1060_v18 = vstv %s1045_s7 }
 0x5d4   :  { %s1057_s10 = smul.f32 0.03125, %s9588_s8  ;;  %v1061_v20 = vsub.f32 %v1034_v43, %v1060_v18 }
 0x5d6   :  { %s1059_s11 = ssub.f32 %s1057_s10, %s1058_s9  ;;  %v1066_v0 = vmul.f32 %v10422_v21, %v1061_v20 }
 0x5d8   :  { %s1067_s12 = sadd.f32 1e-08, %s1059_s11  ;;  %s10106_s11 = smov 4  }
 0x5da   :  { %v1068_v3 = vstv %s1067_s12 }
 0x5db   :  { %9860 = vrsqrt.f32 %v1068_v3 }
 0x5e8   :  { %v9861_v17 = vpop.eup %9860 }
 0x5e9   :  { %9589 = vpush %v9861_v17 }
 0x61a   :  { %s9590_s15 = spop %9589 }
 0x61b   :  { %v1071_v39 = vstv %s9590_s15 }
 0x61c   :  { %v1072_v12 = vmul.f32 %v1071_v39, %v1066_v0 }
 0x61e   :  { %v1077_v25 = vadd.f32 %v10426_v11, %v1072_v12 }
 0x620   :  { %9197 = vmatmul.mubr.msk.f32.vlgmr.msra.gmra.mxu1 %vm373_vm1, %v1077_v25 }
 0x621   :  { %1181 = vmatpush1.msra.mxu1 %v1009_v27  ;;  %1216 = vmatprep.mubr.f32.mxu1 %v12873_v22 }
 0x622   :  { %1182 = vmatprep.subr.mxu1 %v1006_v40 }
 0x623   :  { %1183 = vmatpush1.msra.mxu1 %v1005_v56 }
 0x624   :  { %9198 = vmatmul.mubr.msk.f32.vlgmr.msra.gmra.mxu1 %vm373_vm1, %v1077_v25 }
 0x6e0   :  { %v1147_v43 = vpop.f32.mrf.mxu1 }
 0x6e1   :  { %v10432_v58 = vmax.f32 %v1147_v43, 0.0 }
 0x6e2   :  { %v1149_v60 = vpop.f32.mrf.mxu1 }
 0x6e3   :  { %v1244_v41 = vmul.f32 %v10432_v58, %v10432_v58  ;;  %v10436_v57 = vmax.f32 %v1149_v60, 0.0  ;;  %v1227_v3 = vsel %vm523_vm2, %v10432_v58, 0.0 }
 0x6e4   :  { %v1218_v63 = vpop.f32.mrf.mxu1 }
 0x6e5   :  { %v1228_v17 = vsel %vm523_vm2, %v10436_v57, 0.0  ;;  %v1245_v18 = vmul.f32 %v10436_v57, %v10436_v57  ;;  %v10444_v19 = vmax.f32 %v1218_v63, 0.0  ;;  %v1248_v39 = vsel %vm523_vm2, %v1244_v41, 0.0 }
 0x6e6   :  { %v1220_v20 = vpop.f32.mrf.mxu1  ;;  %v1229_v0 = vadd.f32 %v1228_v17, %v1227_v3 }
 0x6e7   :  { %v1246_v12 = vmul.f32 %v10444_v19, %v10444_v19  ;;  %v10449_v25 = vmax.f32 %v1220_v20, 0.0  ;;  %v1230_v27 = vsel %vm523_vm2, %v10444_v19, 0.0  ;;  %v1249_v40 = vsel %vm523_vm2, %v1245_v18, 0.0 }
 0x6e8   :  { %v1231_v56 = vadd.f32 %v1230_v27, %v1229_v0  ;;  %v1250_v43 = vadd.f32 %v1249_v40, %v1248_v39 }
 0x6e9   :  { %v1232_v60 = vsel %vm523_vm2, %v10449_v25, 0.0  ;;  %v1247_v63 = vmul.f32 %v10449_v25, %v10449_v25  ;;  %v1251_v41 = vsel %vm523_vm2, %v1246_v12, 0.0 }
 0x6ea   :  { %v1233_v3 = vadd.f32 %v1232_v60, %v1231_v56  ;;  %v1252_v17 = vadd.f32 %v1251_v41, %v1250_v43  ;;  %v1014_v60 = vld [vmem:[#allocation2 + $0xe1] ss:$8 sm:$0xf] }
 0x6eb   :  { %v1253_v20 = vsel %vm523_vm2, %v1247_v63, 0.0 }
 0x6ec   :  { %1234 = vadd.xlane.f32.xlu0 %v1233_v3  ;;  %v1254_v22 = vadd.f32 %v1253_v20, %v1252_v17  ;;  %v1021_v17 = vld [vmem:[#allocation2 + $0xe0] sm:$0xe0]  ;;  %v1022_v20 = vld [vmem:[#allocation2 + $0xe8] sm:$0xe0] }
 0x6ee   :  { %1255 = vadd.xlane.f32.xlu1 %v1254_v22 }
 0x775   :  { %v1235_v28 = vpop.xlane.xlu0 %1234 }
 0x776   :  { %v1236_v11 = vrot.slane %v1235_v28, 4 }
 0x777   :  { %v1256_v18 = vpop.xlane.xlu1 %1255 }
 0x778   :  { %v1237_v0 = vadd.f32 %v1236_v11, %v1235_v28  ;;  %v1257_v39 = vrot.slane %v1256_v18, 4  ;;  %v1012_v11 = vld [vmem:[#allocation2 + $0xe0] ss:$8 sm:$0xf] }
 0x77a   :  { %v1258_v27 = vadd.f32 %v1257_v39, %v1256_v18  ;;  %v1238_v40 = vrot.slane %v1237_v0, 2  ;;  %v1023_v18 = vld [vmem:[#allocation2 + $0xf0] sm:$0xe0]  ;;  %v10477_v39 = vrot.slane %v1014_v60, %v10177_v29 }
 0x77c   :  { %v1239_v21 = vadd.f32 %v1238_v40, %v1237_v0  ;;  %v1259_v45 = vrot.slane %v1258_v27, 2  ;;  %v1024_v0 = vld [vmem:[#allocation2 + $0xf8] sm:$0xe0]  ;;  %13100 = vst [vmem:[#allocation37_spill] sm:$0xff] %v10477_v39  ;;  %v10483_v40 = vrot.slane %v1014_v60, %v10225_v23 }
 0x77d   :  { %v10508_v46 = vrot.slane %v1024_v0, %v10231_v30 }
 0x77e   :  { %v1240_v2 = vrot.slane %v1239_v21, 1  ;;  %v1260_v1 = vadd.f32 %v1259_v45, %v1258_v27  ;;  %v10470_v45 = vrot.slane %v1012_v11, %v10228_v24  ;;  %v10480_v27 = vrot.slane %v1014_v60, %v10186_v34  ;;  %13102 = vst [vmem:[#allocation39_spill] sm:$0xff] %v10483_v40 }
 0x77f   :  { %13109 = vst [vmem:[#allocation46_spill] sm:$0xff] %v10508_v46 }
 0x780   :  { %v1241_v42 = vadd.f32 %v1240_v2, %v1239_v21  ;;  %v1261_v12 = vrot.slane %v1260_v1, 1  ;;  %v10461_v2 = vrot.slane %v1012_v11, %v10177_v29  ;;  %13099 = vst [vmem:[#allocation36_spill] sm:$0xff] %v10470_v45  ;;  %13101 = vst [vmem:[#allocation38_spill] sm:$0xff] %v10480_v27 }
 0x782   :  { %9591 = vpush %v1241_v42  ;;  %v1262_v56 = vadd.f32 %v1261_v12, %v1260_v1  ;;  %13096 = vst [vmem:[#allocation33_spill] sm:$0xff] %v10461_v2  ;;  %v10464_v42 = vrot.slane %v1012_v11, %v10186_v34  ;;  %v10467_v1 = vrot.slane %v1012_v11, %v10225_v23 }
 0x784   :  { %9593 = vpush %v1262_v56  ;;  %13097 = vst [vmem:[#allocation34_spill] sm:$0xff] %v10464_v42 }
 0x785   :  { %13098 = vst [vmem:[#allocation35_spill] sm:$0xff] %v10467_v1 }
 0x7b3   :  { %s9592_s16 = spop %9591 }
 0x7b4   :  { %s1243_s17 = smul.f32 0.0009765625, %s9592_s16 }
 0x7b5   :  { %s9594_s18 = spop %9593 }
 0x7b6   :  { %s1265_s19 = smul.f32 %s1243_s17, %s1243_s17  ;;  %v1267_v43 = vstv %s1243_s17 }
 0x7b7   :  { %s1264_s20 = smul.f32 0.0009765625, %s9594_s18  ;;  %v1268_v21 = vsub.f32 %v10432_v58, %v1267_v43  ;;  %v1269_v63 = vsub.f32 %v10436_v57, %v1267_v43  ;;  %v1270_v41 = vsub.f32 %v10444_v19, %v1267_v43  ;;  %v1271_v3 = vsub.f32 %v10449_v25, %v1267_v43 }
 0x7b8   :  { %v10486_v58 = vrot.slane %v1014_v60, %v10228_v24  ;;  %v10489_v57 = vrot.slane %v1021_v17, %v10231_v30  ;;  %v10492_v19 = vrot.slane %v1022_v20, %v10231_v30  ;;  %v10495_v25 = vrot.slane %v1023_v18, %v10231_v30 }
 0x7b9   :  { %s1266_s21 = ssub.f32 %s1264_s20, %s1265_s19  ;;  %v1293_v12 = vmul.f32 %v10461_v2, %v1268_v21  ;;  %v1294_v56 = vmul.f32 %v10464_v42, %v1269_v63  ;;  %v10502_v43 = vrot.slane %v1021_v17, %v10253_v49  ;;  %v10505_v60 = vrot.slane %v1022_v20, %v10253_v49  ;;  %v1016_v63 = vld [vmem:[#allocation2 + $0xe2] ss:$8 sm:$0xf] }
 0x7ba   :  { %13103 = vst [vmem:[#allocation40_spill] sm:$0xff] %v10486_v58  ;;  %13104 = vst [vmem:[#allocation41_spill] sm:$0xff] %v10489_v57 }
 0x7bb   :  { %s1297_s22 = sadd.f32 1e-08, %s1266_s21  ;;  %13105 = vst [vmem:[#allocation42_spill] sm:$0xff] %v10492_v19  ;;  %13106 = vst [vmem:[#allocation43_spill] sm:$0xff] %v10495_v25 }
 0x7bc   :  { %13107 = vst [vmem:[#allocation44_spill] sm:$0xff] %v10502_v43  ;;  %13108 = vst [vmem:[#allocation45_spill] sm:$0xff] %v10505_v60 }
 0x7bd   :  { %v1298_v22 = vstv %s1297_s22 }
 0x7be   :  { %9862 = vrsqrt.f32 %v1298_v22  ;;  %v1295_v22 = vmul.f32 %v10467_v1, %v1270_v41  ;;  %v10511_v41 = vrot.slane %v1023_v18, %v10253_v49  ;;  %v10520_v1 = vrot.slane %v1024_v0, %v10253_v49 }
 0x7c0   :  { %13110 = vst [vmem:[#allocation47_spill] sm:$0xff] %v10511_v41  ;;  %13113 = vst [vmem:[#allocation50_spill] sm:$0xff] %v10520_v1 }
 0x7cb   :  { %v9863_v28 = vpop.eup %9862 }
 0x7cc   :  { %9595 = vpush %v9863_v28  ;;  %v1296_v28 = vmul.f32 %v10470_v45, %v1271_v3  ;;  %v10514_v3 = vrot.slane %v1021_v17, %v10277_v55  ;;  %v10517_v45 = vrot.slane %v1022_v20, %v10277_v55  ;;  %v10530_v17 = vrot.slane %v1024_v0, %v10277_v55 }
 0x7cd   :  { %v10533_v20 = vrot.slane %v1016_v63, %v10177_v29 }
 0x7ce   :  { %13111 = vst [vmem:[#allocation48_spill] sm:$0xff] %v10514_v3  ;;  %13112 = vst [vmem:[#allocation49_spill] sm:$0xff] %v10517_v45 }
 0x7cf   :  { %13115 = vst [vmem:[#allocation52_spill] sm:$0xff] %v10530_v17  ;;  %13116 = vst [vmem:[#allocation53_spill] sm:$0xff] %v10533_v20 }
 0x7fd   :  { %s9596_s23 = spop %9595 }
 0x7fe   :  { %v1301_v11 = vstv %s9596_s23 }
 0x7ff   :  { %v1302_v4 = vmul.f32 %v1301_v11, %v1293_v12  ;;  %v1303_v31 = vmul.f32 %v1301_v11, %v1294_v56  ;;  %v1304_v21 = vmul.f32 %v1301_v11, %v1295_v22  ;;  %v1305_v2 = vmul.f32 %v1301_v11, %v1296_v28 }
 0x800   :  { %v10527_v28 = vrot.slane %v1023_v18, %v10277_v55  ;;  %v10536_v11 = vrot.slane %v1016_v63, %v10186_v34 }
 0x801   :  { %v1327_v42 = vadd.f32 %v10477_v39, %v1302_v4  ;;  %v1328_v12 = vadd.f32 %v10480_v27, %v1303_v31  ;;  %v1329_v56 = vadd.f32 %v10483_v40, %v1304_v21  ;;  %v1330_v22 = vadd.f32 %v10486_v58, %v1305_v2 }
 0x802   :  { %13114 = vst [vmem:[#allocation51_spill] sm:$0xff] %v10527_v28  ;;  %13117 = vst [vmem:[#allocation54_spill] sm:$0xff] %v10536_v11 }
 0x803   :  { %v1335_v26 = vrot.slane %v1327_v42, 7  ;;  %v1336_v4 = vrot.slane %v1328_v12, 7  ;;  %v1337_v39 = vrot.slane %v1329_v56, 7  ;;  %v1338_v31 = vrot.slane %v1330_v22, 7 }
 0x804   :  { %v1347_v27 = vrot.slane %v1327_v42, 1  ;;  %v1348_v21 = vrot.slane %v1328_v12, 1  ;;  %v1349_v40 = vrot.slane %v1329_v56, 1  ;;  %v1350_v2 = vrot.slane %v1330_v22, 1 }
 0x805   :  { %v1343_v18 = vsel %vm640_vm3, 0.0, %v1335_v26  ;;  %v1344_v58 = vsel %vm640_vm3, 0.0, %v1336_v4  ;;  %v1345_v0 = vsel %vm640_vm3, 0.0, %v1337_v39  ;;  %v1346_v10 = vsel %vm640_vm3, 0.0, %v1338_v31 }
 0x806   :  { %v1355_v9 = vsel %vm640_vm3, %v1347_v27, 0.0  ;;  %v1356_v16 = vsel %vm640_vm3, %v1348_v21, 0.0  ;;  %v1357_v15 = vsel %vm640_vm3, %v1349_v40, 0.0  ;;  %v1375_v14 = vmul.f32 %v10502_v43, %v1343_v18 }
 0x807   :  { %v1376_v13 = vmul.f32 %v10505_v60, %v1344_v58  ;;  %v1377_v7 = vmul.f32 %v10511_v41, %v1345_v0  ;;  %v1395_v26 = vmul.f32 %v10489_v57, %v1327_v42  ;;  %v1396_v4 = vmul.f32 %v10492_v19, %v1328_v12 }
 0x808   :  { %v1397_v39 = vmul.f32 %v10495_v25, %v1329_v56  ;;  %v1398_v31 = vmul.f32 %v10508_v46, %v1330_v22  ;;  %v1419_v27 = vmul.f32 %v10514_v3, %v1355_v9  ;;  %v1420_v21 = vmul.f32 %v10517_v45, %v1356_v16 }
 0x809   :  { %v1399_v6 = vadd.f32 %v1395_v26, %v1375_v14  ;;  %v1400_v40 = vadd.f32 %v1396_v4, %v1376_v13  ;;  %v1358_v18 = vsel %vm640_vm3, %v1350_v2, 0.0  ;;  %v1378_v58 = vmul.f32 %v10520_v1, %v1346_v10 }
 0x80a   :  { %v1401_v60 = vadd.f32 %v1397_v39, %v1377_v7  ;;  %v1421_v0 = vmul.f32 %v10527_v28, %v1357_v15  ;;  %v10558_v42 = vrot.slane %v1016_v63, %v10225_v23  ;;  %v10561_v12 = vrot.slane %v1016_v63, %v10228_v24 }
 0x80b   :  { %v1402_v56 = vadd.f32 %v1398_v31, %v1378_v58  ;;  %v1422_v9 = vmul.f32 %v10530_v17, %v1358_v18  ;;  %v1423_v22 = vadd.f32 %v1419_v27, %v1399_v6  ;;  %v1424_v16 = vadd.f32 %v1420_v21, %v1400_v40 }
 0x80c   :  { %13118 = vst [vmem:[#allocation55_spill] sm:$0xff] %v10558_v42  ;;  %13119 = vst [vmem:[#allocation56_spill] sm:$0xff] %v10561_v12  ;;  %v1425_v14 = vadd.f32 %v1421_v0, %v1401_v60 }
 0x80d   :  { %v1426_v13 = vadd.f32 %v1422_v9, %v1402_v56  ;;  %vm1427_vm8 = vcmp.gt.f32.partialorder %v1423_v22, 0.0  ;;  %vm1428_vm9 = vcmp.gt.f32.partialorder %v1424_v16, 0.0  ;;  %v1452_v10 = vmul.f32 %v10533_v20, %v1423_v22 }
 0x80e   :  { %vm1429_vm10 = vcmp.gt.f32.partialorder %v1425_v14, 0.0  ;;  %v1453_v7 = vmul.f32 %v10536_v11, %v1424_v16  ;;  %v1454_v15 = vmul.f32 %v10558_v42, %v1425_v14 }
 0x80f   :  { %vm1430_vm11 = vcmp.gt.f32.partialorder %v1426_v13, 0.0  ;;  %v1455_v63 = vmul.f32 %v10561_v12, %v1426_v13  ;;  %v10568_v2 = vsel %vm1427_vm8, %v1423_v22, %v1452_v10 }
 0x810   :  { %v10570_v26 = vsel %vm1428_vm9, %v1424_v16, %v1453_v7  ;;  %v10572_v6 = vsel %vm1429_vm10, %v1425_v14, %v1454_v15  ;;  %v1460_v60 = vsel %vm523_vm2, %v10568_v2, 0.0  ;;  %v1477_v4 = vmul.f32 %v10568_v2, %v10568_v2 }
 0x811   :  { %v10578_v39 = vsel %vm1430_vm11, %v1426_v13, %v1455_v63  ;;  %v1461_v31 = vsel %vm523_vm2, %v10570_v26, 0.0  ;;  %v1478_v27 = vmul.f32 %v10570_v26, %v10570_v26  ;;  %v1479_v40 = vmul.f32 %v10572_v6, %v10572_v6  ;;  %v84_v63 = vld [vmem:[%s12866_s0 + $0x38] sm:$0xff] }
 0x812   :  { %v1462_v21 = vadd.f32 %v1461_v31, %v1460_v60  ;;  %v1463_v18 = vsel %vm523_vm2, %v10572_v6, 0.0  ;;  %v1480_v58 = vmul.f32 %v10578_v39, %v10578_v39  ;;  %v1481_v0 = vsel %vm523_vm2, %v1477_v4, 0.0  ;;  %v85_v60 = vld [vmem:[%s12866_s0 + $0x40] sm:$0xff]  ;;  %v86_v4 = vld [vmem:[%s12866_s0 + $0x48] sm:$0x1] }
 0x813   :  { %v1482_v56 = vsel %vm523_vm2, %v1478_v27, 0.0  ;;  %v1465_v16 = vsel %vm523_vm2, %v10578_v39, 0.0  ;;  %v1484_v14 = vsel %vm523_vm2, %v1479_v40, 0.0  ;;  %v111_v31 = vrot.slane %v84_v63, 1  ;;  %v10608_v27 = vld [vmem:[%s12866_s0 + $0x30] sm:$0xff] }
 0x814   :  { %v1464_v9 = vadd.f32 %v1463_v18, %v1462_v21  ;;  %v1483_v22 = vadd.f32 %v1482_v56, %v1481_v0  ;;  %v1486_v7 = vsel %vm523_vm2, %v1480_v58, 0.0  ;;  %v113_v21 = vrot.slane %v85_v60, 1  ;;  %v10615_v0 = vld [vmem:[%s12866_s0 + $0x20] sm:$0xff]  ;;  %v10620_v56 = vld [vmem:[%s12866_s0 + $0x28] sm:$0xff] }
 0x815   :  { %v115_v40 = vrot.slane %v86_v4, 1  ;;  %v109_v58 = vrot.slane %v10608_v27, 1 }
 0x816   :  { %v1466_v13 = vadd.f32 %v1465_v16, %v1464_v9  ;;  %v1485_v10 = vadd.f32 %v1484_v14, %v1483_v22  ;;  %v114_v18 = vsel %vm97_vm12, %v111_v31, %v113_v21  ;;  %v105_v22 = vrot.slane %v10615_v0, 1 }
 0x817   :  { %v116_v9 = vsel %vm97_vm12, %v113_v21, %v115_v40  ;;  %v112_v16 = vsel %vm97_vm12, %v109_v58, %v111_v31  ;;  %v107_v14 = vrot.slane %v10620_v56, 1  ;;  %v10646_v21 = vld [vmem:[%s12866_s0] sm:$0xff]  ;;  %v10651_v40 = vld [vmem:[%s12866_s0 + $0x8] sm:$0xff] }
 0x818   :  { %1467 = vadd.xlane.f32.xlu0 %v1466_v13  ;;  %v1487_v15 = vadd.f32 %v1486_v7, %v1485_v10  ;;  %v10630_v13 = vld [vmem:[%s12866_s0 + $0x10] sm:$0xff]  ;;  %v10635_v10 = vld [vmem:[%s12866_s0 + $0x18] sm:$0xff] }
 0x819   :  { %v108_v7 = vsel %vm97_vm12, %v105_v22, %v107_v14  ;;  %v110_v4 = vsel %vm97_vm12, %v107_v14, %v109_v58  ;;  %v103_v31 = vrot.slane %v10635_v10, 1  ;;  %v98_v58 = vrot.slane %v10646_v21, 1 }
 0x81a   :  { %1488 = vadd.xlane.f32.xlu1 %v1487_v15  ;;  %v101_v15 = vrot.slane %v10630_v13, 1 }
 0x82b   :  { %131 = vrot.lane.b32.xlu1 %v114_v18, %s10106_s11  ;;  %v104_v18 = vsel %vm97_vm12, %v101_v15, %v103_v31 }
 0x82e   :  { %133 = vrot.lane.b32.xlu0 %v116_v9, %s10106_s11  ;;  %v106_v9 = vsel %vm97_vm12, %v103_v31, %v105_v22  ;;  %v1030_v22 = vld [vmem:[#allocation2 + $0x128] sm:$0xff] }
 0x82f   :  { %129 = vrot.lane.b32.xlu1 %v112_v16, %s10106_s11  ;;  %v99_v16 = vrot.slane %v10651_v40, 1  ;;  %1592 = vmatprep.subr.mxu1 %v1030_v22 }
 0x831   :  { %v100_v14 = vsel %vm97_vm12, %v98_v58, %v99_v16  ;;  %v102_v12 = vsel %vm97_vm12, %v99_v16, %v101_v15 }
 0x832   :  { %125 = vrot.lane.b32.xlu0 %v108_v7, %s10106_s11  ;;  %v38_v7 = vld [vmem:[%s12868_s2] sm:$0xff] }
 0x833   :  { %127 = vrot.lane.b32.xlu1 %v110_v4, %s10106_s11  ;;  %9393 = vmatprep.mubr.msk.f32.mxu0 %vm154_vm13, %v38_v7 }
 0x836   :  { %121 = vrot.lane.b32.xlu0 %v104_v18, %s10106_s11 }
 0x837   :  { %123 = vrot.lane.b32.xlu1 %v106_v9, %s10106_s11 }
 0x83a   :  { %117 = vrot.lane.b32.xlu0 %v100_v14, %s10106_s11 }
 0x83b   :  { %119 = vrot.lane.b32.xlu1 %v102_v12, %s10106_s11 }
 0x8a1   :  { %v1468_v4 = vpop.xlane.xlu0 %1467 }
 0x8a2   :  { %v1469_v31 = vrot.slane %v1468_v4, 4 }
 0x8a3   :  { %v1489_v18 = vpop.xlane.xlu1 %1488 }
 0x8a4   :  { %v1470_v58 = vadd.f32 %v1469_v31, %v1468_v4  ;;  %v1490_v9 = vrot.slane %v1489_v18, 4  ;;  %v1029_v4 = vld [vmem:[#allocation2 + $0x120] sm:$0xff] }
 0x8a5   :  { %v134_v15 = vpop.permute.xlu0 %133  ;;  %1593 = vmatpush1.xpose.msra.mxu1 %v1029_v4  ;;  %v1028_v4 = vld [vmem:[#allocation2 + $0x118] sm:$0xff] }
 0x8a6   :  { %v1491_v16 = vadd.f32 %v1490_v9, %v1489_v18  ;;  %v1471_v14 = vrot.slane %v1470_v58, 2  ;;  %v153_v12 = vsel %vm144_vm14, %v85_v60, %v134_v15  ;;  %v1025_v15 = vld [vmem:[#allocation2 + $0x100] sm:$0xff] }
 0x8a7   :  { %9375 = vmatprep.subr.msk.mxu0 %vm154_vm13, %v153_v12  ;;  %v132_v42 = vpop.permute.xlu1 %131 }
 0x8a8   :  { %v1472_v11 = vadd.f32 %v1471_v14, %v1470_v58  ;;  %v1492_v20 = vrot.slane %v1491_v16, 2  ;;  %9376 = vmatpush3.xpose.msk.msra.mxu0 %vm154_vm13, %v153_v12  ;;  %v152_v7 = vsel %vm144_vm14, %v84_v63, %v132_v42  ;;  %v1026_v58 = vld [vmem:[#allocation2 + $0x108] sm:$0xff] }
 0x8a9   :  { %9377 = vmatprep.subr.msk.mxu0 %vm154_vm13, %v152_v7  ;;  %1594 = vmatprep.subr.mxu1 %v1026_v58  ;;  %v126_v14 = vpop.permute.xlu0 %125 }
 0x8aa   :  { %v1473_v22 = vrot.slane %v1472_v11, 1  ;;  %v1493_v17 = vadd.f32 %v1492_v20, %v1491_v16  ;;  %1595 = vmatpush1.xpose.msra.mxu1 %v1025_v15 }
 0x8ab   :  { %v130_v31 = vpop.permute.xlu1 %129 }
 0x8ac   :  { %v1474_v18 = vadd.f32 %v1473_v22, %v1472_v11  ;;  %v1494_v9 = vrot.slane %v1493_v17, 1  ;;  %9378 = vmatpush3.xpose.msk.msra.mxu0 %vm154_vm13, %v152_v7  ;;  %v151_v60 = vsel %vm144_vm14, %v10608_v27, %v130_v31  ;;  %v149_v11 = vsel %vm144_vm14, %v10615_v0, %v126_v14  ;;  %v39_v22 = vld [vmem:[%s12868_s2 + $0x8] sm:$0xff]  ;;  %v1027_v31 = vld [vmem:[#allocation2 + $0x110] sm:$0xff] }
 0x8ad   :  { %9379 = vmatprep.subr.msk.mxu0 %vm154_vm13, %v151_v60  ;;  %v122_v16 = vpop.permute.xlu0 %121 }
 0x8ae   :  { %9597 = vpush %v1474_v18  ;;  %v1495_v42 = vadd.f32 %v1494_v9, %v1493_v17  ;;  %v1018_v9 = vld [vmem:[#allocation2 + $0xe3] ss:$8 sm:$0xf] }
 0x8af   :  { %v128_v63 = vpop.permute.xlu1 %127  ;;  %v10708_v58 = vrot.slane %v1018_v9, %v10177_v29  ;;  %v10711_v15 = vrot.slane %v1018_v9, %v10186_v34 }
 0x8b0   :  { %9599 = vpush %v1495_v42  ;;  %9380 = vmatpush3.xpose.msk.msra.mxu0 %vm154_vm13, %v151_v60  ;;  %v150_v20 = vsel %vm144_vm14, %v10620_v56, %v128_v63  ;;  %v147_v56 = vsel %vm144_vm14, %v10630_v13, %v122_v16  ;;  %v1032_v13 = vld [vmem:[#allocation2 + $0x138] sm:$0xff]  ;;  %v10714_v42 = vrot.slane %v1018_v9, %v10225_v23 }
 0x8b1   :  { %9381 = vmatprep.subr.msk.mxu0 %vm154_vm13, %v150_v20  ;;  %v118_v7 = vpop.permute.xlu0 %117  ;;  %13120 = vst [vmem:[#allocation57_spill] sm:$0xff] %v10708_v58  ;;  %13121 = vst [vmem:[#allocation58_spill] sm:$0xff] %v10711_v15  ;;  %v10717_v63 = vrot.slane %v1018_v9, %v10228_v24  ;;  %v13128_v9 = vmov 0.0  }
 0x8b2   :  { %13122 = vst [vmem:[#allocation59_spill] sm:$0xff] %v10714_v42 }
 0x8b3   :  { %v124_v27 = vpop.permute.xlu1 %123  ;;  %13123 = vst [vmem:[#allocation60_spill] sm:$0xff] %v10717_v63 }
 0x8b4   :  { %9382 = vmatpush3.xpose.msk.msra.mxu0 %vm154_vm13, %v150_v20  ;;  %v148_v17 = vsel %vm144_vm14, %v10635_v10, %v124_v27  ;;  %v145_v10 = vsel %vm144_vm14, %v10646_v21, %v118_v7 }
 0x8b5   :  { %9383 = vmatprep.subr.msk.mxu0 %vm154_vm13, %v149_v11 }
 0x8b7   :  { %v120_v12 = vpop.permute.xlu1 %119 }
 0x8b8   :  { %9384 = vmatpush3.xpose.msk.msra.mxu0 %vm154_vm13, %v149_v11  ;;  %v146_v0 = vsel %vm144_vm14, %v10651_v40, %v120_v12  ;;  %v1031_v40 = vld [vmem:[#allocation2 + $0x130] sm:$0xff] }
 0x8b9   :  { %9385 = vmatprep.subr.msk.mxu0 %vm154_vm13, %v148_v17 }
 0x8bc   :  { %9386 = vmatpush3.xpose.msk.msra.mxu0 %vm154_vm13, %v148_v17  ;;  %v1020_v17 = vld [vmem:[#allocation2 + $0xe4] ss:$8 sm:$0xf] }
 0x8bd   :  { %9387 = vmatprep.subr.msk.mxu0 %vm154_vm13, %v147_v56  ;;  %v10724_v16 = vrot.slane %v1020_v17, %v10177_v29  ;;  %v10730_v12 = vrot.slane %v1020_v17, %v10186_v34 }
 0x8bf   :  { %13124 = vst [vmem:[#allocation61_spill] sm:$0xff] %v10724_v16  ;;  %13126 = vst [vmem:[#allocation63_spill] sm:$0xff] %v10730_v12 }
 0x8c0   :  { %9388 = vmatpush3.xpose.msk.msra.mxu0 %vm154_vm13, %v147_v56  ;;  %v10727_v56 = vrot.slane %v1020_v17, %v10225_v23 }
 0x8c1   :  { %9389 = vmatprep.subr.msk.mxu0 %vm154_vm13, %v146_v0 }
 0x8c2   :  { %13125 = vst [vmem:[#allocation62_spill] sm:$0xff] %v10727_v56 }
 0x8c4   :  { %9390 = vmatpush3.xpose.msk.msra.mxu0 %vm154_vm13, %v146_v0  ;;  %v10733_v0 = vrot.slane %v1020_v17, %v10228_v24 }
 0x8c5   :  { %9391 = vmatprep.subr.msk.mxu0 %vm154_vm13, %v145_v10 }
 0x8c6   :  { %13127 = vst [vmem:[#allocation64_spill] sm:$0xff] %v10733_v0 }
 0x8c8   :  { %9392 = vmatpush3.xpose.msk.msra.mxu0 %vm154_vm13, %v145_v10 }
 0x8c9   :  { %1662 = vmatprep.subr.mxu0 %v1032_v13 }
 0x8cb   :  { %9394 = vmatmul.mubr.msk.f32.vlgmr.msra.gmra.mxu0 %vm154_vm13, %v39_v22 }
 0x8cc   :  { %1663 = vmatpush1.xpose.msra.mxu0 %v1031_v40 }
 0x8cd   :  { %1664 = vmatprep.subr.mxu0 %v1028_v4 }
 0x8d0   :  { %1665 = vmatpush1.xpose.msra.mxu0 %v1027_v31 }
 0x8df   :  { %s9598_s24 = spop %9597 }
 0x8e0   :  { %s1476_s25 = smul.f32 0.0009765625, %s9598_s24 }
 0x8e1   :  { %s9600_s26 = spop %9599 }
 0x8e2   :  { %s1498_s27 = smul.f32 %s1476_s25, %s1476_s25  ;;  %v1500_v60 = vstv %s1476_s25 }
 0x8e3   :  { %s1497_s28 = smul.f32 0.0009765625, %s9600_s26  ;;  %v1501_v14 = vsub.f32 %v10568_v2, %v1500_v60  ;;  %v1502_v20 = vsub.f32 %v10570_v26, %v1500_v60  ;;  %v1503_v11 = vsub.f32 %v10572_v6, %v1500_v60  ;;  %v1504_v27 = vsub.f32 %v10578_v39, %v1500_v60 }
 0x8e5   :  { %s1499_s29 = ssub.f32 %s1497_s28, %s1498_s27  ;;  %v1526_v2 = vmul.f32 %v10708_v58, %v1501_v14  ;;  %v1527_v26 = vmul.f32 %v10711_v15, %v1502_v20  ;;  %v1528_v6 = vmul.f32 %v10714_v42, %v1503_v11  ;;  %v1529_v39 = vmul.f32 %v10717_v63, %v1504_v27  ;;  %v1708_v42 = vld [vmem:[#allocation2 + $0x158] sm:$0xff] }
 0x8e7   :  { %s1530_s3 = sadd.f32 1e-08, %s1499_s29 }
 0x8e9   :  { %v1531_v21 = vstv %s1530_s3 }
 0x8ea   :  { %9864 = vrsqrt.f32 %v1531_v21 }
 0x8f7   :  { %v9865_v18 = vpop.eup %9864 }
 0x8f8   :  { %9601 = vpush %v9865_v18 }
 0x929   :  { %s9602_s30 = spop %9601 }
 0x92a   :  { %v1534_v7 = vstv %s9602_s30 }
 0x92b   :  { %v1535_v10 = vmul.f32 %v1534_v7, %v1526_v2  ;;  %v1536_v13 = vmul.f32 %v1534_v7, %v1527_v26  ;;  %v1537_v22 = vmul.f32 %v1534_v7, %v1528_v6  ;;  %v1538_v40 = vmul.f32 %v1534_v7, %v1529_v39 }
 0x92d   :  { %v1560_v4 = vadd.f32 %v10724_v16, %v1535_v10  ;;  %v1562_v31 = vadd.f32 %v10727_v56, %v1537_v22  ;;  %v1561_v21 = vadd.f32 %v10730_v12, %v1536_v13  ;;  %v1563_v18 = vadd.f32 %v10733_v0, %v1538_v40 }
 0x92f   :  { %1628 = vmatprep.mubr.f32.mxu1 %v1561_v21  ;;  %1698 = vmatprep.mubr.f32.mxu0 %v1563_v18 }
 0x930   :  { %1629 = vmatmul.mubr.f32.vlgmr.msra.gmra.mxu1 %v1560_v4  ;;  %1699 = vmatmul.mubr.f32.vlgmr.msra.gmra.mxu0 %v1562_v31 }
 0x931   :  { %1847 = vmatprep.mubr.f32.mxu1 %v13128_v9  ;;  %1918 = vmatprep.mubr.f32.mxu0 %v13128_v9 }
 0x98b   :  { %v9395_v60 = vpop.f32.mrf.mxu0 }
 0x98c   :  { %v10745_v14 = vmax.f32 %v9395_v60, 0.0 }
 0x98d   :  { %v254_v20 = vpop.f32.mrf.mxu0 }
 0x98e   :  { %v267_v11 = vsel %vm265_vm15, %v10745_v14, 0.0  ;;  %v277_v27 = vmul.f32 %v10745_v14, %v10745_v14  ;;  %v10751_v17 = vmax.f32 %v254_v20, 0.0 }
 0x990   :  { %v279_v2 = vsel %vm265_vm15, %v277_v27, 0.0  ;;  %v266_v26 = vsel %vm265_vm15, %v10751_v17, 0.0  ;;  %v276_v6 = vmul.f32 %v10751_v17, %v10751_v17 }
 0x991   :  { %v268_v39 = vadd.f32 %v267_v11, %v266_v26 }
 0x992   :  { %v278_v7 = vsel %vm265_vm15, %v276_v6, 0.0 }
 0x993   :  { %v269_v10 = vrot.slane %v268_v39, 4  ;;  %v280_v13 = vadd.f32 %v279_v2, %v278_v7 }
 0x995   :  { %v270_v22 = vadd.f32 %v269_v10, %v268_v39  ;;  %v281_v40 = vrot.slane %v280_v13, 4 }
 0x997   :  { %v271_v4 = vrot.slane %v270_v22, 2  ;;  %v282_v31 = vadd.f32 %v281_v40, %v280_v13 }
 0x999   :  { %v283_v21 = vrot.slane %v282_v31, 2  ;;  %v272_v18 = vadd.f32 %v271_v4, %v270_v22 }
 0x99b   :  { %v284_v60 = vadd.f32 %v283_v21, %v282_v31  ;;  %v273_v20 = vrot.slane %v272_v18, 1 }
 0x99d   :  { %v285_v27 = vrot.slane %v284_v60, 1  ;;  %v274_v0 = vadd.f32 %v273_v20, %v272_v18 }
 0x99f   :  { %v286_v12 = vadd.f32 %v285_v27, %v284_v60  ;;  %v10759_v56 = vmul.f32 0.0625, %v274_v0 }
 0x9a1   :  { %v287_v16 = vmul.f32 0.0625, %v286_v12  ;;  %v290_v11 = vmul.f32 %v10759_v56, %v10759_v56  ;;  %v288_v2 = vsub.f32 %v10751_v17, %v10759_v56 }
 0x9a3   :  { %v291_v26 = vsub.f32 %v287_v16, %v290_v11 }
 0x9a5   :  { %v292_v6 = vadd.f32 1e-05, %v291_v26 }
 0x9a7   :  { %9866 = vrsqrt.f32 %v292_v6 }
 0x9b4   :  { %v10765_v39 = vpop.eup %9866 }
 0x9b5   :  { %v10768_v7 = vmul.f32 %v10765_v39, %v288_v2 }
 0x9f0   :  { %v1630_v10 = vpop.f32.mrf.mxu1  ;;  %v1700_v13 = vpop.f32.mrf.mxu0 }
 0x9f1   :  { %v1631_v0 = vadd.f32 %v1630_v10, %v10413_v59 }
 0x9f2   :  { %v1632_v22 = vpop.f32.mrf.mxu1  ;;  %v1702_v12 = vpop.f32.mrf.mxu0 }
 0x9f3   :  { %v10771_v40 = vadd.f32 %v1700_v13, %v1631_v0  ;;  %v1710_v0 = vld [vmem:[#allocation2 + $0x168] sm:$0xff]  ;;  %v1712_v22 = vld [vmem:[#allocation2 + $0x178] sm:$0xff] }
 0x9f4   :  { %1811 = vmatprep.subr.mxu1 %v1710_v0  ;;  %1882 = vmatprep.subr.mxu0 %v1712_v22 }
 0x9f5   :  { %v1736_v16 = vmax.f32 %v10771_v40, 0.0 }
 0x9f7   :  { %v1737_v4 = vsel %vm329_vm0, %v1736_v16, 0.0  ;;  %v1748_v31 = vmul.f32 %v1736_v16, %v1736_v16 }
 0x9f8   :  { %1738 = vadd.xlane.f32.xlu1 %v1737_v4  ;;  %v1709_v4 = vld [vmem:[#allocation2 + $0x160] sm:$0xff] }
 0x9f9   :  { %v1749_v21 = vsel %vm329_vm0, %v1748_v31, 0.0  ;;  %v1711_v31 = vld [vmem:[#allocation2 + $0x170] sm:$0xff]  ;;  %1812 = vmatpush1.msra.mxu1 %v1709_v4 }
 0x9fa   :  { %1750 = vadd.xlane.f32.xlu0 %v1749_v21  ;;  %1883 = vmatpush1.msra.mxu0 %v1711_v31  ;;  %v1706_v21 = vld [vmem:[#allocation2 + $0x148] sm:$0xff] }
 0x9fb   :  { %1813 = vmatprep.subr.mxu1 %v1706_v21  ;;  %1884 = vmatprep.subr.mxu0 %v1708_v42  ;;  %v1735_v42 = vld [vmem:[%s12868_s2 + $0x44] sm:$0x3] }
 0xa81   :  { %v1739_v18 = vpop.xlane.xlu1 %1738 }
 0xa82   :  { %v1740_v60 = vrot.slane %v1739_v18, 4 }
 0xa83   :  { %v1751_v20 = vpop.xlane.xlu0 %1750 }
 0xa84   :  { %v1741_v27 = vadd.f32 %v1740_v60, %v1739_v18  ;;  %v1752_v11 = vrot.slane %v1751_v20, 4  ;;  %v1705_v18 = vld [vmem:[#allocation2 + $0x140] sm:$0xff] }
 0xa85   :  { %1814 = vmatpush1.msra.mxu1 %v1705_v18 }
 0xa86   :  { %v1753_v26 = vadd.f32 %v1752_v11, %v1751_v20  ;;  %v1742_v59 = vrot.slane %v1741_v27, 2  ;;  %v1707_v20 = vld [vmem:[#allocation2 + $0x150] sm:$0xff] }
 0xa87   :  { %1885 = vmatpush1.msra.mxu0 %v1707_v20 }
 0xa88   :  { %v1743_v6 = vadd.f32 %v1742_v59, %v1741_v27  ;;  %v1754_v2 = vrot.slane %v1753_v26, 2  ;;  %v10780_v59 = vrot.slane %v1735_v42, %v10177_v29 }
 0xa8a   :  { %v1744_v10 = vrot.slane %v1743_v6, 1  ;;  %v1755_v13 = vadd.f32 %v1754_v2, %v1753_v26  ;;  %13129 = vst [vmem:[#allocation65_spill] sm:$0xff] %v10780_v59  ;;  %v10784_v2 = vrot.slane %v1735_v42, %v10186_v34 }
 0xa8c   :  { %v1745_v12 = vadd.f32 %v1744_v10, %v1743_v6  ;;  %v1756_v63 = vrot.slane %v1755_v13, 1  ;;  %13130 = vst [vmem:[#allocation66_spill] sm:$0xff] %v10784_v2 }
 0xa8e   :  { %9603 = vpush %v1745_v12  ;;  %v1757_v60 = vadd.f32 %v1756_v63, %v1755_v13 }
 0xa90   :  { %9605 = vpush %v1757_v60 }
 0xabf   :  { %s9604_s7 = spop %9603 }
 0xac0   :  { %s1747_s8 = smul.f32 0.03125, %s9604_s7 }
 0xac1   :  { %s9606_s9 = spop %9605 }
 0xac2   :  { %s1760_s10 = smul.f32 %s1747_s8, %s1747_s8  ;;  %v1762_v26 = vstv %s1747_s8 }
 0xac3   :  { %s1759_s12 = smul.f32 0.03125, %s9606_s9  ;;  %v1763_v63 = vsub.f32 %v1736_v16, %v1762_v26 }
 0xac5   :  { %s1761_s13 = ssub.f32 %s1759_s12, %s1760_s10  ;;  %v1768_v6 = vmul.f32 %v10780_v59, %v1763_v63 }
 0xac7   :  { %s1769_s14 = sadd.f32 1e-08, %s1761_s13 }
 0xac9   :  { %v1770_v27 = vstv %s1769_s14 }
 0xaca   :  { %9868 = vrsqrt.f32 %v1770_v27 }
 0xad7   :  { %v9869_v11 = vpop.eup %9868 }
 0xad8   :  { %9607 = vpush %v9869_v11 }
 0xb09   :  { %s9608_s17 = spop %9607 }
 0xb0a   :  { %v1773_v10 = vstv %s9608_s17 }
 0xb0b   :  { %v1774_v13 = vmul.f32 %v1773_v10, %v1768_v6 }
 0xb0d   :  { %v1779_v0 = vadd.f32 %v10784_v2, %v1774_v13 }
 0xb0f   :  { %9199 = vmatmul.mubr.msk.f32.vlgmr.msra.gmra.mxu1 %vm373_vm1, %v1779_v0  ;;  %9200 = vmatmul.mubr.msk.f32.vlgmr.msra.gmra.mxu0 %vm373_vm1, %v1779_v0 }
 0xbcf   :  { %v1849_v22 = vpop.f32.mrf.mxu1  ;;  %v1920_v12 = vpop.f32.mrf.mxu0 }
 0xbd0   :  { %v10789_v16 = vmax.f32 %v1849_v22, 0.0  ;;  %v10791_v4 = vmax.f32 %v1920_v12, 0.0 }
 0xbd1   :  { %v1851_v31 = vpop.f32.mrf.mxu1  ;;  %v1922_v21 = vpop.f32.mrf.mxu0 }
 0xbd2   :  { %v1946_v18 = vmul.f32 %v10789_v16, %v10789_v16  ;;  %v10795_v60 = vmax.f32 %v1851_v31, 0.0  ;;  %v1929_v20 = vsel %vm523_vm2, %v10789_v16, 0.0  ;;  %v1948_v27 = vmul.f32 %v10791_v4, %v10791_v4 }
 0xbd3   :  { %v10805_v42 = vmax.f32 %v1922_v21, 0.0  ;;  %v1932_v6 = vsel %vm523_vm2, %v10791_v4, 0.0 }
 0xbd4   :  { %v1930_v11 = vsel %vm523_vm2, %v10795_v60, 0.0  ;;  %v1947_v26 = vmul.f32 %v10795_v60, %v10795_v60  ;;  %v1950_v10 = vsel %vm523_vm2, %v1946_v18, 0.0  ;;  %v1953_v2 = vsel %vm523_vm2, %v1948_v27, 0.0 }
 0xbd5   :  { %v1931_v63 = vadd.f32 %v1930_v11, %v1929_v20  ;;  %v1934_v12 = vsel %vm523_vm2, %v10805_v42, 0.0  ;;  %v1949_v31 = vmul.f32 %v10805_v42, %v10805_v42 }
 0xbd6   :  { %v1951_v13 = vsel %vm523_vm2, %v1947_v26, 0.0 }
 0xbd7   :  { %v1933_v0 = vadd.f32 %v1932_v6, %v1931_v63  ;;  %v1952_v22 = vadd.f32 %v1951_v13, %v1950_v10  ;;  %v1955_v20 = vsel %vm523_vm2, %v1949_v31, 0.0 }
 0xbd9   :  { %v1935_v21 = vadd.f32 %v1934_v12, %v1933_v0  ;;  %v1954_v59 = vadd.f32 %v1953_v2, %v1952_v22  ;;  %v1714_v0 = vld [vmem:[#allocation2 + $0x180] ss:$8 sm:$0xf]  ;;  %v1716_v12 = vld [vmem:[#allocation2 + $0x181] ss:$8 sm:$0xf] }
 0xbdb   :  { %1936 = vadd.xlane.f32.xlu0 %v1935_v21  ;;  %v1956_v11 = vadd.f32 %v1955_v20, %v1954_v59 }
 0xbdf   :  { %1957 = vadd.xlane.f32.xlu0 %v1956_v11  ;;  %v1723_v11 = vld [vmem:[#allocation2 + $0x180] sm:$0xe0] }
 0xc64   :  { %v1937_v18 = vpop.xlane.xlu0 %1936 }
 0xc65   :  { %v1938_v15 = vrot.slane %v1937_v18, 4 }
 0xc67   :  { %v1939_v26 = vadd.f32 %v1938_v15, %v1937_v18  ;;  %v1724_v18 = vld [vmem:[#allocation2 + $0x188] sm:$0xe0] }
 0xc68   :  { %v1958_v63 = vpop.xlane.xlu0 %1957 }
 0xc69   :  { %v1959_v6 = vrot.slane %v1958_v63, 4  ;;  %v1940_v10 = vrot.slane %v1939_v26, 2 }
 0xc6b   :  { %v1960_v13 = vadd.f32 %v1959_v6, %v1958_v63  ;;  %v1941_v58 = vadd.f32 %v1940_v10, %v1939_v26  ;;  %v1725_v26 = vld [vmem:[#allocation2 + $0x190] sm:$0xe0]  ;;  %v1726_v63 = vld [vmem:[#allocation2 + $0x198] sm:$0xe0]  ;;  %v10834_v6 = vrot.slane %v1716_v12, %v10177_v29  ;;  %v10837_v10 = vrot.slane %v1716_v12, %v10186_v34 }
 0xc6c   :  { %v10865_v25 = vrot.slane %v1726_v63, %v10231_v30 }
 0xc6d   :  { %v1942_v28 = vrot.slane %v1941_v58, 1  ;;  %v1961_v45 = vrot.slane %v1960_v13, 2  ;;  %13135 = vst [vmem:[#allocation71_spill] sm:$0xff] %v10834_v6  ;;  %13136 = vst [vmem:[#allocation72_spill] sm:$0xff] %v10837_v10 }
 0xc6e   :  { %13144 = vst [vmem:[#allocation80_spill] sm:$0xff] %v10865_v25 }
 0xc6f   :  { %v1943_v3 = vadd.f32 %v1942_v28, %v1941_v58  ;;  %v1962_v46 = vadd.f32 %v1961_v45, %v1960_v13  ;;  %v10818_v45 = vrot.slane %v1714_v0, %v10177_v29  ;;  %v10827_v28 = vrot.slane %v1714_v0, %v10228_v24 }
 0xc70   :  { %v10840_v13 = vrot.slane %v1716_v12, %v10225_v23 }
 0xc71   :  { %9609 = vpush %v1943_v3  ;;  %v1963_v27 = vrot.slane %v1962_v46, 1  ;;  %13131 = vst [vmem:[#allocation67_spill] sm:$0xff] %v10818_v45  ;;  %v10824_v3 = vrot.slane %v1714_v0, %v10225_v23 }
 0xc72   :  { %13134 = vst [vmem:[#allocation70_spill] sm:$0xff] %v10827_v28  ;;  %13137 = vst [vmem:[#allocation73_spill] sm:$0xff] %v10840_v13 }
 0xc73   :  { %v1964_v2 = vadd.f32 %v1963_v27, %v1962_v46  ;;  %v10821_v46 = vrot.slane %v1714_v0, %v10186_v34  ;;  %13133 = vst [vmem:[#allocation69_spill] sm:$0xff] %v10824_v3 }
 0xc75   :  { %9611 = vpush %v1964_v2  ;;  %13132 = vst [vmem:[#allocation68_spill] sm:$0xff] %v10821_v46 }
 0xca2   :  { %s9610_s18 = spop %9609 }
 0xca3   :  { %s1945_s19 = smul.f32 0.0009765625, %s9610_s18 }
 0xca5   :  { %s1967_s20 = smul.f32 %s1945_s19, %s1945_s19  ;;  %v1969_v22 = vstv %s1945_s19 }
 0xca6   :  { %s9612_s21 = spop %9611  ;;  %v1970_v58 = vsub.f32 %v10789_v16, %v1969_v22  ;;  %v1971_v31 = vsub.f32 %v10795_v60, %v1969_v22  ;;  %v1972_v21 = vsub.f32 %v10791_v4, %v1969_v22  ;;  %v1973_v20 = vsub.f32 %v10805_v42, %v1969_v22 }
 0xca7   :  { %s1966_s22 = smul.f32 0.0009765625, %s9612_s21  ;;  %v10843_v16 = vrot.slane %v1716_v12, %v10228_v24  ;;  %v10846_v4 = vrot.slane %v1723_v11, %v10231_v30  ;;  %v10849_v60 = vrot.slane %v1724_v18, %v10231_v30  ;;  %v10852_v42 = vrot.slane %v1725_v26, %v10231_v30 }
 0xca8   :  { %v1995_v27 = vmul.f32 %v10818_v45, %v1970_v58  ;;  %v1996_v2 = vmul.f32 %v10821_v46, %v1971_v31  ;;  %v10859_v22 = vrot.slane %v1723_v11, %v10253_v49  ;;  %v10862_v12 = vrot.slane %v1724_v18, %v10253_v49  ;;  %v1718_v31 = vld [vmem:[#allocation2 + $0x182] ss:$8 sm:$0xf] }
 0xca9   :  { %s1968_s23 = ssub.f32 %s1966_s22, %s1967_s20  ;;  %13138 = vst [vmem:[#allocation74_spill] sm:$0xff] %v10843_v16  ;;  %13139 = vst [vmem:[#allocation75_spill] sm:$0xff] %v10846_v4 }
 0xcaa   :  { %13140 = vst [vmem:[#allocation76_spill] sm:$0xff] %v10849_v60  ;;  %13141 = vst [vmem:[#allocation77_spill] sm:$0xff] %v10852_v42 }
 0xcab   :  { %s1999_s24 = sadd.f32 1e-08, %s1968_s23  ;;  %13142 = vst [vmem:[#allocation78_spill] sm:$0xff] %v10859_v22  ;;  %13143 = vst [vmem:[#allocation79_spill] sm:$0xff] %v10862_v12 }
 0xcad   :  { %v2000_v15 = vstv %s1999_s24 }
 0xcae   :  { %9870 = vrsqrt.f32 %v2000_v15  ;;  %v1997_v15 = vmul.f32 %v10824_v3, %v1972_v21  ;;  %v10868_v21 = vrot.slane %v1725_v26, %v10253_v49  ;;  %v10877_v3 = vrot.slane %v1726_v63, %v10253_v49 }
 0xcb0   :  { %13145 = vst [vmem:[#allocation81_spill] sm:$0xff] %v10868_v21  ;;  %13148 = vst [vmem:[#allocation84_spill] sm:$0xff] %v10877_v3 }
 0xcbb   :  { %v9871_v59 = vpop.eup %9870 }
 0xcbc   :  { %9613 = vpush %v9871_v59  ;;  %v1998_v59 = vmul.f32 %v10827_v28, %v1973_v20  ;;  %v10871_v20 = vrot.slane %v1723_v11, %v10277_v55  ;;  %v10874_v28 = vrot.slane %v1724_v18, %v10277_v55  ;;  %v10887_v11 = vrot.slane %v1726_v63, %v10277_v55 }
 0xcbd   :  { %v10890_v18 = vrot.slane %v1718_v31, %v10177_v29 }
 0xcbe   :  { %13146 = vst [vmem:[#allocation82_spill] sm:$0xff] %v10871_v20  ;;  %13147 = vst [vmem:[#allocation83_spill] sm:$0xff] %v10874_v28 }
 0xcbf   :  { %13150 = vst [vmem:[#allocation86_spill] sm:$0xff] %v10887_v11  ;;  %13151 = vst [vmem:[#allocation87_spill] sm:$0xff] %v10890_v18 }
 0xced   :  { %s9614_s25 = spop %9613 }
 0xcee   :  { %v2003_v0 = vstv %s9614_s25 }
 0xcef   :  { %v2004_v19 = vmul.f32 %v2003_v0, %v1995_v27  ;;  %v2005_v57 = vmul.f32 %v2003_v0, %v1996_v2  ;;  %v2006_v58 = vmul.f32 %v2003_v0, %v1997_v15  ;;  %v2007_v45 = vmul.f32 %v2003_v0, %v1998_v59 }
 0xcf0   :  { %v10884_v59 = vrot.slane %v1725_v26, %v10277_v55  ;;  %v10893_v0 = vrot.slane %v1718_v31, %v10186_v34 }
 0xcf1   :  { %v2029_v46 = vadd.f32 %v10834_v6, %v2004_v19  ;;  %v2030_v27 = vadd.f32 %v10837_v10, %v2005_v57  ;;  %v2031_v2 = vadd.f32 %v10840_v13, %v2006_v58  ;;  %v2032_v15 = vadd.f32 %v10843_v16, %v2007_v45 }
 0xcf2   :  { %13149 = vst [vmem:[#allocation85_spill] sm:$0xff] %v10884_v59  ;;  %13152 = vst [vmem:[#allocation88_spill] sm:$0xff] %v10893_v0 }
 0xcf3   :  { %v2037_v1 = vrot.slane %v2029_v46, 7  ;;  %v2038_v19 = vrot.slane %v2030_v27, 7  ;;  %v2039_v6 = vrot.slane %v2031_v2, 7  ;;  %v2040_v57 = vrot.slane %v2032_v15, 7 }
 0xcf4   :  { %v2049_v10 = vrot.slane %v2029_v46, 1  ;;  %v2050_v58 = vrot.slane %v2030_v27, 1  ;;  %v2051_v13 = vrot.slane %v2031_v2, 1  ;;  %v2052_v45 = vrot.slane %v2032_v15, 1 }
 0xcf5   :  { %v2045_v26 = vsel %vm640_vm3, 0.0, %v2037_v1  ;;  %v2046_v16 = vsel %vm640_vm3, 0.0, %v2038_v19  ;;  %v2047_v63 = vsel %vm640_vm3, 0.0, %v2039_v6  ;;  %v2048_v41 = vsel %vm640_vm3, 0.0, %v2040_v57 }
 0xcf6   :  { %v2057_v43 = vsel %vm640_vm3, %v2049_v10, 0.0  ;;  %v2058_v54 = vsel %vm640_vm3, %v2050_v58, 0.0  ;;  %v2059_v53 = vsel %vm640_vm3, %v2051_v13, 0.0  ;;  %v2077_v52 = vmul.f32 %v10859_v22, %v2045_v26 }
 0xcf7   :  { %v2078_v50 = vmul.f32 %v10862_v12, %v2046_v16  ;;  %v2079_v8 = vmul.f32 %v10868_v21, %v2047_v63  ;;  %v2097_v1 = vmul.f32 %v10846_v4, %v2029_v46  ;;  %v2098_v19 = vmul.f32 %v10849_v60, %v2030_v27 }
 0xcf8   :  { %v2099_v6 = vmul.f32 %v10852_v42, %v2031_v2  ;;  %v2100_v57 = vmul.f32 %v10865_v25, %v2032_v15  ;;  %v2121_v10 = vmul.f32 %v10871_v20, %v2057_v43  ;;  %v2122_v58 = vmul.f32 %v10874_v28, %v2058_v54 }
 0xcf9   :  { %v2101_v5 = vadd.f32 %v2097_v1, %v2077_v52  ;;  %v2102_v13 = vadd.f32 %v2098_v19, %v2078_v50  ;;  %v2060_v26 = vsel %vm640_vm3, %v2052_v45, 0.0  ;;  %v2080_v16 = vmul.f32 %v10877_v3, %v2048_v41 }
 0xcfa   :  { %v2103_v12 = vadd.f32 %v2099_v6, %v2079_v8  ;;  %v2123_v63 = vmul.f32 %v10884_v59, %v2059_v53  ;;  %v10915_v46 = vrot.slane %v1718_v31, %v10225_v23  ;;  %v10918_v27 = vrot.slane %v1718_v31, %v10228_v24 }
 0xcfb   :  { %v2104_v2 = vadd.f32 %v2100_v57, %v2080_v16  ;;  %v2124_v43 = vmul.f32 %v10887_v11, %v2060_v26  ;;  %v2125_v15 = vadd.f32 %v2121_v10, %v2101_v5  ;;  %v2126_v54 = vadd.f32 %v2122_v58, %v2102_v13 }
 0xcfc   :  { %13153 = vst [vmem:[#allocation89_spill] sm:$0xff] %v10915_v46  ;;  %13154 = vst [vmem:[#allocation90_spill] sm:$0xff] %v10918_v27  ;;  %v2127_v52 = vadd.f32 %v2123_v63, %v2103_v12 }
 0xcfd   :  { %v2128_v50 = vadd.f32 %v2124_v43, %v2104_v2  ;;  %vm2129_vm4 = vcmp.gt.f32.partialorder %v2125_v15, 0.0  ;;  %vm2130_vm5 = vcmp.gt.f32.partialorder %v2126_v54, 0.0  ;;  %v2154_v41 = vmul.f32 %v10890_v18, %v2125_v15 }
 0xcfe   :  { %vm2131_vm6 = vcmp.gt.f32.partialorder %v2127_v52, 0.0  ;;  %v2155_v53 = vmul.f32 %v10893_v0, %v2126_v54  ;;  %v2156_v8 = vmul.f32 %v10915_v46, %v2127_v52 }
 0xcff   :  { %vm2132_vm7 = vcmp.gt.f32.partialorder %v2128_v50, 0.0  ;;  %v2157_v31 = vmul.f32 %v10918_v27, %v2128_v50  ;;  %v10925_v45 = vsel %vm2129_vm4, %v2125_v15, %v2154_v41 }
 0xd00   :  { %v10927_v1 = vsel %vm2130_vm5, %v2126_v54, %v2155_v53  ;;  %v10929_v5 = vsel %vm2131_vm6, %v2127_v52, %v2156_v8  ;;  %v2162_v12 = vsel %vm523_vm2, %v10925_v45, 0.0  ;;  %v2179_v19 = vmul.f32 %v10925_v45, %v10925_v45 }
 0xd01   :  { %v10935_v6 = vsel %vm2132_vm7, %v2128_v50, %v2157_v31  ;;  %v2163_v57 = vsel %vm523_vm2, %v10927_v1, 0.0  ;;  %v2180_v10 = vmul.f32 %v10927_v1, %v10927_v1  ;;  %v2181_v13 = vmul.f32 %v10929_v5, %v10929_v5  ;;  %v1732_v31 = vld [vmem:[#allocation2 + $0x1c8] sm:$0xff] }
 0xd02   :  { %v2164_v58 = vadd.f32 %v2163_v57, %v2162_v12  ;;  %v2165_v26 = vsel %vm523_vm2, %v10929_v5, 0.0  ;;  %v2182_v16 = vmul.f32 %v10935_v6, %v10935_v6  ;;  %v2183_v63 = vsel %vm523_vm2, %v2179_v19, 0.0  ;;  %v1734_v12 = vld [vmem:[#allocation2 + $0x1d8] sm:$0xff]  ;;  %2294 = vmatprep.subr.mxu1 %v1732_v31 }
 0xd03   :  { %v2184_v2 = vsel %vm523_vm2, %v2180_v10, 0.0  ;;  %v2167_v54 = vsel %vm523_vm2, %v10935_v6, 0.0  ;;  %v2186_v52 = vsel %vm523_vm2, %v2181_v13, 0.0  ;;  %2364 = vmatprep.subr.mxu0 %v1734_v12  ;;  %v1729_v12 = vld [vmem:[#allocation2 + $0x1b0] sm:$0xff] }
 0xd04   :  { %v2166_v43 = vadd.f32 %v2165_v26, %v2164_v58  ;;  %v2185_v15 = vadd.f32 %v2184_v2, %v2183_v63  ;;  %v2188_v53 = vsel %vm523_vm2, %v2182_v16, 0.0  ;;  %v1733_v16 = vld [vmem:[#allocation2 + $0x1d0] sm:$0xff] }
 0xd05   :  { %2365 = vmatpush1.xpose.msra.mxu0 %v1733_v16  ;;  %v1722_v16 = vld [vmem:[#allocation2 + $0x184] ss:$8 sm:$0xf] }
 0xd06   :  { %v2168_v50 = vadd.f32 %v2167_v54, %v2166_v43  ;;  %v2187_v41 = vadd.f32 %v2186_v52, %v2185_v15  ;;  %v1731_v54 = vld [vmem:[#allocation2 + $0x1c0] sm:$0xff] }
 0xd07   :  { %2295 = vmatpush1.xpose.msra.mxu1 %v1731_v54 }
 0xd08   :  { %2169 = vadd.xlane.f32.xlu1 %v2168_v50  ;;  %v2189_v8 = vadd.f32 %v2188_v53, %v2187_v41  ;;  %v1728_v41 = vld [vmem:[#allocation2 + $0x1a8] sm:$0xff]  ;;  %v1730_v53 = vld [vmem:[#allocation2 + $0x1b8] sm:$0xff] }
 0xd09   :  { %2296 = vmatprep.subr.mxu1 %v1728_v41  ;;  %2366 = vmatprep.subr.mxu0 %v1730_v53  ;;  %v10976_v41 = vrot.slane %v1722_v16, %v10186_v34  ;;  %v10979_v53 = vrot.slane %v1722_v16, %v10228_v24 }
 0xd0a   :  { %2190 = vadd.xlane.f32.xlu0 %v2189_v8  ;;  %v1727_v8 = vld [vmem:[#allocation2 + $0x1a0] sm:$0xff]  ;;  %2367 = vmatpush1.xpose.msra.mxu0 %v1729_v12 }
 0xd0b   :  { %2297 = vmatpush1.xpose.msra.mxu1 %v1727_v8  ;;  %13161 = vst [vmem:[#allocation97_spill] sm:$0xff] %v10976_v41  ;;  %13162 = vst [vmem:[#allocation98_spill] sm:$0xff] %v10979_v53 }
 0xd91   :  { %v2170_v19 = vpop.xlane.xlu1 %2169 }
 0xd92   :  { %v2171_v57 = vrot.slane %v2170_v19, 4 }
 0xd93   :  { %v2191_v10 = vpop.xlane.xlu0 %2190 }
 0xd94   :  { %v2172_v58 = vadd.f32 %v2171_v57, %v2170_v19  ;;  %v2192_v26 = vrot.slane %v2191_v10, 4  ;;  %v1720_v57 = vld [vmem:[#allocation2 + $0x183] ss:$8 sm:$0xf] }
 0xd96   :  { %v2193_v63 = vadd.f32 %v2192_v26, %v2191_v10  ;;  %v2173_v2 = vrot.slane %v2172_v58, 2  ;;  %v10957_v26 = vrot.slane %v1720_v57, %v10186_v34 }
 0xd98   :  { %v2174_v27 = vadd.f32 %v2173_v2, %v2172_v58  ;;  %v2194_v13 = vrot.slane %v2193_v63, 2  ;;  %v10954_v58 = vrot.slane %v1720_v57, %v10177_v29  ;;  %13156 = vst [vmem:[#allocation92_spill] sm:$0xff] %v10957_v26  ;;  %v10963_v2 = vrot.slane %v1720_v57, %v10228_v24 }
 0xd9a   :  { %v2175_v43 = vrot.slane %v2174_v27, 1  ;;  %v2195_v15 = vadd.f32 %v2194_v13, %v2193_v63  ;;  %13155 = vst [vmem:[#allocation91_spill] sm:$0xff] %v10954_v58  ;;  %v10960_v63 = vrot.slane %v1720_v57, %v10225_v23  ;;  %13158 = vst [vmem:[#allocation94_spill] sm:$0xff] %v10963_v2 }
 0xd9c   :  { %v2176_v52 = vadd.f32 %v2175_v43, %v2174_v27  ;;  %v2196_v50 = vrot.slane %v2195_v15, 1  ;;  %13157 = vst [vmem:[#allocation93_spill] sm:$0xff] %v10960_v63 }
 0xd9e   :  { %9615 = vpush %v2176_v52  ;;  %v2197_v31 = vadd.f32 %v2196_v50, %v2195_v15  ;;  %v10970_v52 = vrot.slane %v1722_v16, %v10177_v29  ;;  %v10973_v50 = vrot.slane %v1722_v16, %v10225_v23 }
 0xda0   :  { %9617 = vpush %v2197_v31  ;;  %13159 = vst [vmem:[#allocation95_spill] sm:$0xff] %v10970_v52 }
 0xda1   :  { %13160 = vst [vmem:[#allocation96_spill] sm:$0xff] %v10973_v50 }
 0xdcf   :  { %s9616_s26 = spop %9615 }
 0xdd0   :  { %s2178_s27 = smul.f32 0.0009765625, %s9616_s26 }
 0xdd1   :  { %s9618_s28 = spop %9617 }
 0xdd2   :  { %s2200_s29 = smul.f32 %s2178_s27, %s2178_s27  ;;  %v2202_v10 = vstv %s2178_s27 }
 0xdd3   :  { %s2199_s3 = smul.f32 0.0009765625, %s9618_s28  ;;  %v2203_v13 = vsub.f32 %v10925_v45, %v2202_v10  ;;  %v2204_v43 = vsub.f32 %v10927_v1, %v2202_v10  ;;  %v2205_v15 = vsub.f32 %v10929_v5, %v2202_v10  ;;  %v2206_v54 = vsub.f32 %v10935_v6, %v2202_v10 }
 0xdd5   :  { %s2201_s30 = ssub.f32 %s2199_s3, %s2200_s29  ;;  %v2228_v45 = vmul.f32 %v10954_v58, %v2203_v13  ;;  %v2229_v1 = vmul.f32 %v10957_v26, %v2204_v43  ;;  %v2230_v5 = vmul.f32 %v10960_v63, %v2205_v15  ;;  %v2231_v6 = vmul.f32 %v10963_v2, %v2206_v54 }
 0xdd7   :  { %s2232_s7 = sadd.f32 1e-08, %s2201_s30 }
 0xdd9   :  { %v2233_v27 = vstv %s2232_s7 }
 0xdda   :  { %9872 = vrsqrt.f32 %v2233_v27 }
 0xde7   :  { %v9873_v19 = vpop.eup %9872 }
 0xde8   :  { %9619 = vpush %v9873_v19 }
 0xe19   :  { %s9620_s8 = spop %9619 }
 0xe1a   :  { %v2236_v8 = vstv %s9620_s8 }
 0xe1b   :  { %v2237_v31 = vmul.f32 %v2236_v8, %v2228_v45  ;;  %v2238_v12 = vmul.f32 %v2236_v8, %v2229_v1  ;;  %v2239_v27 = vmul.f32 %v2236_v8, %v2230_v5  ;;  %v2240_v19 = vmul.f32 %v2236_v8, %v2231_v6 }
 0xe1d   :  { %v2262_v57 = vadd.f32 %v10970_v52, %v2237_v31  ;;  %v2264_v10 = vadd.f32 %v10973_v50, %v2239_v27  ;;  %v2263_v16 = vadd.f32 %v10976_v41, %v2238_v12  ;;  %v2265_v13 = vadd.f32 %v10979_v53, %v2240_v19  ;;  %v2414_v53 = vld [vmem:[#allocation2 + $0x218] sm:$0xff] }
 0xe1e   :  { %2584 = vmatprep.subr.mxu0 %v2414_v53  ;;  %v2410_v52 = vld [vmem:[#allocation2 + $0x1f8] sm:$0xff] }
 0xe1f   :  { %2330 = vmatprep.mubr.f32.mxu1 %v2263_v16  ;;  %2400 = vmatprep.mubr.f32.mxu0 %v2265_v13 }
 0xe20   :  { %2331 = vmatmul.mubr.f32.vlgmr.msra.gmra.mxu1 %v2262_v57  ;;  %2401 = vmatmul.mubr.f32.vlgmr.msra.gmra.mxu0 %v2264_v10 }
 0xe21   :  { %2549 = vmatprep.mubr.f32.mxu1 %v13128_v9  ;;  %2620 = vmatprep.mubr.f32.mxu0 %v13128_v9 }
 0xee0   :  { %v2332_v43 = vpop.f32.mrf.mxu1  ;;  %v2402_v15 = vpop.f32.mrf.mxu0 }
 0xee1   :  { %v2333_v54 = vadd.f32 %v2332_v43, %v10771_v40 }
 0xee2   :  { %v2334_v45 = vpop.f32.mrf.mxu1  ;;  %v2404_v1 = vpop.f32.mrf.mxu0 }
 0xee3   :  { %v10992_v5 = vadd.f32 %v2402_v15, %v2333_v54  ;;  %v2412_v1 = vld [vmem:[#allocation2 + $0x208] sm:$0xff] }
 0xee4   :  { %2513 = vmatprep.subr.mxu1 %v2412_v1 }
 0xee5   :  { %v2438_v6 = vmax.f32 %v10992_v5, 0.0 }
 0xee7   :  { %v2439_v8 = vsel %vm329_vm0, %v2438_v6, 0.0  ;;  %v2450_v31 = vmul.f32 %v2438_v6, %v2438_v6 }
 0xee8   :  { %2440 = vadd.xlane.f32.xlu1 %v2439_v8  ;;  %v2411_v8 = vld [vmem:[#allocation2 + $0x200] sm:$0xff] }
 0xee9   :  { %v2451_v12 = vsel %vm329_vm0, %v2450_v31, 0.0  ;;  %v2413_v31 = vld [vmem:[#allocation2 + $0x210] sm:$0xff]  ;;  %2514 = vmatpush1.msra.mxu1 %v2411_v8 }
 0xeea   :  { %2452 = vadd.xlane.f32.xlu0 %v2451_v12  ;;  %2585 = vmatpush1.msra.mxu0 %v2413_v31  ;;  %v2408_v12 = vld [vmem:[#allocation2 + $0x1e8] sm:$0xff] }
 0xeeb   :  { %2515 = vmatprep.subr.mxu1 %v2408_v12  ;;  %2586 = vmatprep.subr.mxu0 %v2410_v52  ;;  %v2437_v52 = vld [vmem:[%s12868_s2 + $0x46] sm:$0x3] }
 0xf71   :  { %v2441_v27 = vpop.xlane.xlu1 %2440 }
 0xf72   :  { %v2442_v19 = vrot.slane %v2441_v27, 4 }
 0xf73   :  { %v2453_v57 = vpop.xlane.xlu0 %2452 }
 0xf74   :  { %v2443_v10 = vadd.f32 %v2442_v19, %v2441_v27  ;;  %v2454_v16 = vrot.slane %v2453_v57, 4  ;;  %v2407_v27 = vld [vmem:[#allocation2 + $0x1e0] sm:$0xff] }
 0xf75   :  { %2516 = vmatpush1.msra.mxu1 %v2407_v27 }
 0xf76   :  { %v2455_v13 = vadd.f32 %v2454_v16, %v2453_v57  ;;  %v2444_v40 = vrot.slane %v2443_v10, 2  ;;  %v2409_v57 = vld [vmem:[#allocation2 + $0x1f0] sm:$0xff] }
 0xf77   :  { %2587 = vmatpush1.msra.mxu0 %v2409_v57 }
 0xf78   :  { %v2445_v43 = vadd.f32 %v2444_v40, %v2443_v10  ;;  %v2456_v45 = vrot.slane %v2455_v13, 2  ;;  %v11005_v40 = vrot.slane %v2437_v52, %v10186_v34 }
 0xf7a   :  { %v2446_v15 = vrot.slane %v2445_v43, 1  ;;  %v2457_v54 = vadd.f32 %v2456_v45, %v2455_v13  ;;  %13164 = vst [vmem:[#allocation100_spill] sm:$0xff] %v11005_v40 }
 0xf7c   :  { %v2447_v41 = vadd.f32 %v2446_v15, %v2445_v43  ;;  %v2458_v50 = vrot.slane %v2457_v54, 1 }
 0xf7e   :  { %9621 = vpush %v2447_v41  ;;  %v2459_v19 = vadd.f32 %v2458_v50, %v2457_v54  ;;  %v11001_v41 = vrot.slane %v2437_v52, %v10177_v29 }
 0xf80   :  { %9623 = vpush %v2459_v19  ;;  %13163 = vst [vmem:[#allocation99_spill] sm:$0xff] %v11001_v41 }
 0xfaf   :  { %s9622_s9 = spop %9621 }
 0xfb0   :  { %s2449_s10 = smul.f32 0.03125, %s9622_s9 }
 0xfb1   :  { %s9624_s12 = spop %9623 }
 0xfb2   :  { %s2462_s13 = smul.f32 %s2449_s10, %s2449_s10  ;;  %v2464_v16 = vstv %s2449_s10 }
 0xfb3   :  { %s2461_s14 = smul.f32 0.03125, %s9624_s12  ;;  %v2465_v50 = vsub.f32 %v2438_v6, %v2464_v16 }
 0xfb5   :  { %s2463_s15 = ssub.f32 %s2461_s14, %s2462_s13  ;;  %v2470_v13 = vmul.f32 %v11001_v41, %v2465_v50 }
 0xfb7   :  { %s2471_s16 = sadd.f32 1e-08, %s2463_s15 }
 0xfb9   :  { %v2472_v53 = vstv %s2471_s16 }
 0xfba   :  { %9874 = vrsqrt.f32 %v2472_v53 }
 0xfc7   :  { %v9875_v10 = vpop.eup %9874 }
 0xfc8   :  { %9625 = vpush %v9875_v10 }
 0xff9   :  { %s9626_s19 = spop %9625 }
 0xffa   :  { %v2475_v43 = vstv %s9626_s19  ;;  %s10114_s19 = smov 1  }
 0xffb   :  { %v2476_v45 = vmul.f32 %v2475_v43, %v2470_v13 }
 0xffd   :  { %v2481_v15 = vadd.f32 %v11005_v40, %v2476_v45 }
 0xfff   :  { %9201 = vmatmul.mubr.msk.f32.vlgmr.msra.gmra.mxu1 %vm373_vm1, %v2481_v15  ;;  %9202 = vmatmul.mubr.msk.f32.vlgmr.msra.gmra.mxu0 %vm373_vm1, %v2481_v15 }
0x10bf   :  { %v2551_v54 = vpop.f32.mrf.mxu1  ;;  %v2622_v1 = vpop.f32.mrf.mxu0 }
0x10c0   :  { %v11010_v6 = vmax.f32 %v2551_v54, 0.0  ;;  %v11012_v8 = vmax.f32 %v2622_v1, 0.0 }
0x10c1   :  { %v2553_v31 = vpop.f32.mrf.mxu1  ;;  %v2624_v12 = vpop.f32.mrf.mxu0 }
0x10c2   :  { %v2648_v27 = vmul.f32 %v11010_v6, %v11010_v6  ;;  %v11016_v19 = vmax.f32 %v2553_v31, 0.0  ;;  %v11018_v57 = vmax.f32 %v2624_v12, 0.0  ;;  %v2631_v53 = vsel %vm523_vm2, %v11010_v6, 0.0 }
0x10c3   :  { %v2650_v10 = vmul.f32 %v11012_v8, %v11012_v8  ;;  %v2634_v13 = vsel %vm523_vm2, %v11012_v8, 0.0 }
0x10c4   :  { %v2632_v16 = vsel %vm523_vm2, %v11016_v19, 0.0  ;;  %v2649_v52 = vmul.f32 %v11016_v19, %v11016_v19  ;;  %v2651_v43 = vmul.f32 %v11018_v57, %v11018_v57  ;;  %v2652_v45 = vsel %vm523_vm2, %v2648_v27, 0.0 }
0x10c5   :  { %v2633_v50 = vadd.f32 %v2632_v16, %v2631_v53  ;;  %v2636_v31 = vsel %vm523_vm2, %v11018_v57, 0.0  ;;  %v2655_v12 = vsel %vm523_vm2, %v2650_v10, 0.0 }
0x10c6   :  { %v2653_v15 = vsel %vm523_vm2, %v2649_v52, 0.0  ;;  %v2657_v53 = vsel %vm523_vm2, %v2651_v43, 0.0 }
0x10c7   :  { %v2635_v54 = vadd.f32 %v2634_v13, %v2633_v50  ;;  %v2654_v1 = vadd.f32 %v2653_v15, %v2652_v45 }
0x10c9   :  { %v2637_v40 = vadd.f32 %v2636_v31, %v2635_v54  ;;  %v2656_v41 = vadd.f32 %v2655_v12, %v2654_v1 }
0x10cb   :  { %2638 = vadd.xlane.f32.xlu1 %v2637_v40  ;;  %v2658_v16 = vadd.f32 %v2657_v53, %v2656_v41  ;;  %v2418_v41 = vld [vmem:[#allocation2 + $0x221] ss:$8 sm:$0xf] }
0x10cd   :  { %2659 = vadd.xlane.f32.xlu0 %v2658_v16  ;;  %v2425_v16 = vld [vmem:[#allocation2 + $0x220] sm:$0xe0] }
0x1154   :  { %v2639_v2 = vpop.xlane.xlu1 %2638 }
0x1155   :  { %v2640_v63 = vrot.slane %v2639_v2, 4 }
0x1156   :  { %v2660_v26 = vpop.xlane.xlu0 %2659 }
0x1157   :  { %v2641_v27 = vadd.f32 %v2640_v63, %v2639_v2  ;;  %v2661_v58 = vrot.slane %v2660_v26, 4 }
0x1159   :  { %v2662_v52 = vadd.f32 %v2661_v58, %v2660_v26  ;;  %v2642_v50 = vrot.slane %v2641_v27, 2  ;;  %v2416_v26 = vld [vmem:[#allocation2 + $0x220] ss:$8 sm:$0xf] }
0x115a   :  { %v11039_v40 = vrot.slane %v2416_v26, %v10177_v29  ;;  %v11048_v43 = vrot.slane %v2416_v26, %v10228_v24 }
0x115b   :  { %v2643_v13 = vadd.f32 %v2642_v50, %v2641_v27  ;;  %v2663_v45 = vrot.slane %v2662_v52, 2  ;;  %v2426_v27 = vld [vmem:[#allocation2 + $0x228] sm:$0xe0]  ;;  %v2428_v50 = vld [vmem:[#allocation2 + $0x238] sm:$0xe0] }
0x115c   :  { %13165 = vst [vmem:[#allocation101_spill] sm:$0xff] %v11039_v40  ;;  %13168 = vst [vmem:[#allocation104_spill] sm:$0xff] %v11048_v43  ;;  %v11086_v18 = vrot.slane %v2428_v50, %v10231_v30 }
0x115d   :  { %v2644_v15 = vrot.slane %v2643_v13, 1  ;;  %v2664_v46 = vadd.f32 %v2663_v45, %v2662_v52  ;;  %v2427_v52 = vld [vmem:[#allocation2 + $0x230] sm:$0xe0]  ;;  %v11058_v45 = vrot.slane %v2418_v41, %v10186_v34 }
0x115e   :  { %13176 = vst [vmem:[#allocation112_spill] sm:$0xff] %v11086_v18 }
0x115f   :  { %v2645_v0 = vadd.f32 %v2644_v15, %v2643_v13  ;;  %v2665_v10 = vrot.slane %v2664_v46, 1  ;;  %v11055_v13 = vrot.slane %v2418_v41, %v10177_v29  ;;  %13170 = vst [vmem:[#allocation106_spill] sm:$0xff] %v11058_v45  ;;  %v11061_v15 = vrot.slane %v2418_v41, %v10225_v23 }
0x1161   :  { %9627 = vpush %v2645_v0  ;;  %v2666_v54 = vadd.f32 %v2665_v10, %v2664_v46  ;;  %v11042_v0 = vrot.slane %v2416_v26, %v10186_v34  ;;  %v11045_v46 = vrot.slane %v2416_v26, %v10225_v23  ;;  %13169 = vst [vmem:[#allocation105_spill] sm:$0xff] %v11055_v13 }
0x1162   :  { %13171 = vst [vmem:[#allocation107_spill] sm:$0xff] %v11061_v15 }
0x1163   :  { %9629 = vpush %v2666_v54  ;;  %13166 = vst [vmem:[#allocation102_spill] sm:$0xff] %v11042_v0 }
0x1164   :  { %13167 = vst [vmem:[#allocation103_spill] sm:$0xff] %v11045_v46 }
0x1192   :  { %s9628_s20 = spop %9627 }
0x1193   :  { %s2647_s21 = smul.f32 0.0009765625, %s9628_s20  ;;  %s10115_s20 = smov 127  }
0x1194   :  { %s9630_s22 = spop %9629 }
0x1195   :  { %s2669_s23 = smul.f32 %s2647_s21, %s2647_s21  ;;  %v2671_v2 = vstv %s2647_s21 }
0x1196   :  { %s2668_s24 = smul.f32 0.0009765625, %s9630_s22  ;;  %v2672_v1 = vsub.f32 %v11010_v6, %v2671_v2  ;;  %v2673_v31 = vsub.f32 %v11016_v19, %v2671_v2  ;;  %v2674_v12 = vsub.f32 %v11012_v8, %v2671_v2  ;;  %v2675_v53 = vsub.f32 %v11018_v57, %v2671_v2 }
0x1197   :  { %v11064_v6 = vrot.slane %v2418_v41, %v10228_v24  ;;  %v11067_v8 = vrot.slane %v2425_v16, %v10231_v30  ;;  %v11070_v19 = vrot.slane %v2426_v27, %v10231_v30  ;;  %v11073_v57 = vrot.slane %v2427_v52, %v10231_v30 }
0x1198   :  { %s2670_s25 = ssub.f32 %s2668_s24, %s2669_s23  ;;  %v2697_v10 = vmul.f32 %v11039_v40, %v2672_v1  ;;  %v2698_v54 = vmul.f32 %v11042_v0, %v2673_v31  ;;  %v11080_v2 = vrot.slane %v2425_v16, %v10253_v49  ;;  %v11083_v41 = vrot.slane %v2426_v27, %v10253_v49  ;;  %v2420_v31 = vld [vmem:[#allocation2 + $0x222] ss:$8 sm:$0xf] }
0x1199   :  { %13172 = vst [vmem:[#allocation108_spill] sm:$0xff] %v11064_v6  ;;  %13173 = vst [vmem:[#allocation109_spill] sm:$0xff] %v11070_v19 }
0x119a   :  { %s2701_s26 = sadd.f32 1e-08, %s2670_s25  ;;  %13174 = vst [vmem:[#allocation110_spill] sm:$0xff] %v11073_v57  ;;  %13175 = vst [vmem:[#allocation111_spill] sm:$0xff] %v11083_v41 }
0x119c   :  { %v2702_v63 = vstv %s2701_s26 }
0x119d   :  { %9876 = vrsqrt.f32 %v2702_v63  ;;  %v2699_v63 = vmul.f32 %v11045_v46, %v2674_v12  ;;  %v11089_v12 = vrot.slane %v2427_v52, %v10253_v49  ;;  %v11098_v46 = vrot.slane %v2428_v50, %v10253_v49 }
0x11aa   :  { %v9877_v58 = vpop.eup %9876 }
0x11ab   :  { %9631 = vpush %v9877_v58  ;;  %v2700_v58 = vmul.f32 %v11048_v43, %v2675_v53  ;;  %v11092_v53 = vrot.slane %v2425_v16, %v10277_v55  ;;  %v11095_v43 = vrot.slane %v2426_v27, %v10277_v55  ;;  %v11108_v16 = vrot.slane %v2428_v50, %v10277_v55 }
0x11ac   :  { %v11111_v27 = vrot.slane %v2420_v31, %v10177_v29 }
0x11ad   :  { %13177 = vst [vmem:[#allocation113_spill] sm:$0xff] %v11092_v53  ;;  %13178 = vst [vmem:[#allocation114_spill] sm:$0xff] %v11095_v43 }
0x11ae   :  { %13180 = vst [vmem:[#allocation116_spill] sm:$0xff] %v11108_v16  ;;  %13181 = vst [vmem:[#allocation117_spill] sm:$0xff] %v11111_v27 }
0x11dc   :  { %s9632_s27 = spop %9631 }
0x11dd   :  { %v2705_v26 = vstv %s9632_s27 }
0x11de   :  { %v2706_v11 = vmul.f32 %v2705_v26, %v2697_v10  ;;  %v2707_v59 = vmul.f32 %v2705_v26, %v2698_v54  ;;  %v2708_v1 = vmul.f32 %v2705_v26, %v2699_v63  ;;  %v2709_v40 = vmul.f32 %v2705_v26, %v2700_v58 }
0x11df   :  { %v11105_v58 = vrot.slane %v2427_v52, %v10277_v55  ;;  %v11114_v26 = vrot.slane %v2420_v31, %v10186_v34 }
0x11e0   :  { %v2731_v0 = vadd.f32 %v11055_v13, %v2706_v11  ;;  %v2732_v10 = vadd.f32 %v11058_v45, %v2707_v59  ;;  %v2733_v54 = vadd.f32 %v11061_v15, %v2708_v1  ;;  %v2734_v63 = vadd.f32 %v11064_v6, %v2709_v40 }
0x11e1   :  { %13179 = vst [vmem:[#allocation115_spill] sm:$0xff] %v11105_v58  ;;  %13182 = vst [vmem:[#allocation118_spill] sm:$0xff] %v11114_v26 }
0x11e2   :  { %v2739_v3 = vrot.slane %v2731_v0, 7  ;;  %v2740_v11 = vrot.slane %v2732_v10, 7  ;;  %v2741_v13 = vrot.slane %v2733_v54, 7  ;;  %v2742_v59 = vrot.slane %v2734_v63, 7 }
0x11e3   :  { %v2751_v45 = vrot.slane %v2731_v0, 1  ;;  %v2752_v1 = vrot.slane %v2732_v10, 1  ;;  %v2753_v15 = vrot.slane %v2733_v54, 1  ;;  %v2754_v40 = vrot.slane %v2734_v63, 1 }
0x11e4   :  { %v2747_v52 = vsel %vm640_vm3, 0.0, %v2739_v3  ;;  %v2748_v6 = vsel %vm640_vm3, 0.0, %v2740_v11  ;;  %v2749_v50 = vsel %vm640_vm3, 0.0, %v2741_v13  ;;  %v2750_v28 = vsel %vm640_vm3, 0.0, %v2742_v59 }
0x11e5   :  { %v2759_v20 = vsel %vm640_vm3, %v2751_v45, 0.0  ;;  %v2760_v25 = vsel %vm640_vm3, %v2752_v1, 0.0  ;;  %v2761_v42 = vsel %vm640_vm3, %v2753_v15, 0.0  ;;  %v2779_v60 = vmul.f32 %v11080_v2, %v2747_v52 }
0x11e6   :  { %v2780_v4 = vmul.f32 %v11083_v41, %v2748_v6  ;;  %v2781_v21 = vmul.f32 %v11089_v12, %v2749_v50  ;;  %v2799_v3 = vmul.f32 %v11067_v8, %v2731_v0  ;;  %v2800_v11 = vmul.f32 %v11070_v19, %v2732_v10 }
0x11e7   :  { %v2801_v13 = vmul.f32 %v11073_v57, %v2733_v54  ;;  %v2802_v59 = vmul.f32 %v11086_v18, %v2734_v63  ;;  %v2823_v45 = vmul.f32 %v11092_v53, %v2759_v20  ;;  %v2824_v1 = vmul.f32 %v11095_v43, %v2760_v25 }
0x11e8   :  { %v2803_v22 = vadd.f32 %v2799_v3, %v2779_v60  ;;  %v2804_v15 = vadd.f32 %v2800_v11, %v2780_v4  ;;  %v2762_v52 = vsel %vm640_vm3, %v2754_v40, 0.0  ;;  %v2782_v6 = vmul.f32 %v11098_v46, %v2750_v28 }
0x11e9   :  { %v2805_v41 = vadd.f32 %v2801_v13, %v2781_v21  ;;  %v2825_v50 = vmul.f32 %v11105_v58, %v2761_v42  ;;  %v11136_v0 = vrot.slane %v2420_v31, %v10225_v23  ;;  %v11139_v10 = vrot.slane %v2420_v31, %v10228_v24 }
0x11ea   :  { %v2806_v54 = vadd.f32 %v2802_v59, %v2782_v6  ;;  %v2826_v20 = vmul.f32 %v11108_v16, %v2762_v52  ;;  %v2827_v63 = vadd.f32 %v2823_v45, %v2803_v22  ;;  %v2828_v25 = vadd.f32 %v2824_v1, %v2804_v15 }
0x11eb   :  { %13183 = vst [vmem:[#allocation119_spill] sm:$0xff] %v11136_v0  ;;  %13184 = vst [vmem:[#allocation120_spill] sm:$0xff] %v11139_v10  ;;  %v2829_v60 = vadd.f32 %v2825_v50, %v2805_v41 }
0x11ec   :  { %v2830_v4 = vadd.f32 %v2826_v20, %v2806_v54  ;;  %vm2831_vm8 = vcmp.gt.f32.partialorder %v2827_v63, 0.0  ;;  %vm2832_vm9 = vcmp.gt.f32.partialorder %v2828_v25, 0.0  ;;  %v2856_v28 = vmul.f32 %v11111_v27, %v2827_v63 }
0x11ed   :  { %vm2833_vm10 = vcmp.gt.f32.partialorder %v2829_v60, 0.0  ;;  %v2857_v42 = vmul.f32 %v11114_v26, %v2828_v25  ;;  %v2858_v21 = vmul.f32 %v11136_v0, %v2829_v60 }
0x11ee   :  { %vm2834_vm11 = vcmp.gt.f32.partialorder %v2830_v4, 0.0  ;;  %v2859_v31 = vmul.f32 %v11139_v10, %v2830_v4  ;;  %v11146_v40 = vsel %vm2831_vm8, %v2827_v63, %v2856_v28 }
0x11ef   :  { %v11148_v3 = vsel %vm2832_vm9, %v2828_v25, %v2857_v42  ;;  %v11150_v22 = vsel %vm2833_vm10, %v2829_v60, %v2858_v21  ;;  %v2864_v41 = vsel %vm523_vm2, %v11146_v40, 0.0  ;;  %v2881_v11 = vmul.f32 %v11146_v40, %v11146_v40 }
0x11f0   :  { %v11156_v13 = vsel %vm2834_vm11, %v2830_v4, %v2859_v31  ;;  %v2865_v59 = vsel %vm523_vm2, %v11148_v3, 0.0  ;;  %v2882_v45 = vmul.f32 %v11148_v3, %v11148_v3  ;;  %v2883_v15 = vmul.f32 %v11150_v22, %v11150_v22  ;;  %v2434_v31 = vld [vmem:[#allocation2 + $0x268] sm:$0xff] }
0x11f1   :  { %v2866_v1 = vadd.f32 %v2865_v59, %v2864_v41  ;;  %v2867_v52 = vsel %vm523_vm2, %v11150_v22, 0.0  ;;  %v2884_v6 = vmul.f32 %v11156_v13, %v11156_v13  ;;  %v2885_v50 = vsel %vm523_vm2, %v2881_v11, 0.0  ;;  %v2436_v41 = vld [vmem:[#allocation2 + $0x278] sm:$0xff]  ;;  %2996 = vmatprep.subr.mxu1 %v2434_v31 }
0x11f2   :  { %v2886_v54 = vsel %vm523_vm2, %v2882_v45, 0.0  ;;  %v2869_v25 = vsel %vm523_vm2, %v11156_v13, 0.0  ;;  %v2888_v60 = vsel %vm523_vm2, %v2883_v15, 0.0  ;;  %3066 = vmatprep.subr.mxu0 %v2436_v41  ;;  %v2431_v41 = vld [vmem:[#allocation2 + $0x250] sm:$0xff]  ;;  %vm4190_vm10 = vcmask 7168  }
0x11f3   :  { %v2868_v20 = vadd.f32 %v2867_v52, %v2866_v1  ;;  %v2887_v63 = vadd.f32 %v2886_v54, %v2885_v50  ;;  %v2890_v42 = vsel %vm523_vm2, %v2884_v6, 0.0  ;;  %v2435_v6 = vld [vmem:[#allocation2 + $0x270] sm:$0xff]  ;;  %vm4221_vm11 = vcmask 580608  }
0x11f4   :  { %3067 = vmatpush1.xpose.msra.mxu0 %v2435_v6  ;;  %v2424_v6 = vld [vmem:[#allocation2 + $0x224] ss:$8 sm:$0xf] }
0x11f5   :  { %v2870_v4 = vadd.f32 %v2869_v25, %v2868_v20  ;;  %v2889_v28 = vadd.f32 %v2888_v60, %v2887_v63  ;;  %v2433_v25 = vld [vmem:[#allocation2 + $0x260] sm:$0xff] }
0x11f6   :  { %2997 = vmatpush1.xpose.msra.mxu1 %v2433_v25 }
0x11f7   :  { %2871 = vadd.xlane.f32.xlu1 %v2870_v4  ;;  %v2891_v21 = vadd.f32 %v2890_v42, %v2889_v28  ;;  %v2430_v28 = vld [vmem:[#allocation2 + $0x248] sm:$0xff]  ;;  %v2432_v42 = vld [vmem:[#allocation2 + $0x258] sm:$0xff] }
0x11f8   :  { %2998 = vmatprep.subr.mxu1 %v2430_v28  ;;  %3068 = vmatprep.subr.mxu0 %v2432_v42  ;;  %v11197_v28 = vrot.slane %v2424_v6, %v10186_v34  ;;  %v11200_v42 = vrot.slane %v2424_v6, %v10228_v24 }
0x11f9   :  { %2892 = vadd.xlane.f32.xlu0 %v2891_v21  ;;  %v2429_v21 = vld [vmem:[#allocation2 + $0x240] sm:$0xff]  ;;  %3069 = vmatpush1.xpose.msra.mxu0 %v2431_v41 }
0x11fa   :  { %2999 = vmatpush1.xpose.msra.mxu1 %v2429_v21  ;;  %13191 = vst [vmem:[#allocation127_spill] sm:$0xff] %v11197_v28  ;;  %13192 = vst [vmem:[#allocation128_spill] sm:$0xff] %v11200_v42 }
0x1280   :  { %v2872_v11 = vpop.xlane.xlu1 %2871 }
0x1281   :  { %v2873_v59 = vrot.slane %v2872_v11, 4 }
0x1282   :  { %v2893_v45 = vpop.xlane.xlu0 %2892 }
0x1283   :  { %v2874_v1 = vadd.f32 %v2873_v59, %v2872_v11  ;;  %v2894_v52 = vrot.slane %v2893_v45, 4  ;;  %v2422_v59 = vld [vmem:[#allocation2 + $0x223] ss:$8 sm:$0xf] }
0x1285   :  { %v2895_v50 = vadd.f32 %v2894_v52, %v2893_v45  ;;  %v2875_v54 = vrot.slane %v2874_v1, 2  ;;  %v11178_v52 = vrot.slane %v2422_v59, %v10186_v34 }
0x1287   :  { %v2876_v10 = vadd.f32 %v2875_v54, %v2874_v1  ;;  %v2896_v15 = vrot.slane %v2895_v50, 2  ;;  %v11175_v1 = vrot.slane %v2422_v59, %v10177_v29  ;;  %13186 = vst [vmem:[#allocation122_spill] sm:$0xff] %v11178_v52  ;;  %v11184_v54 = vrot.slane %v2422_v59, %v10228_v24 }
0x1289   :  { %v2877_v20 = vrot.slane %v2876_v10, 1  ;;  %v2897_v63 = vadd.f32 %v2896_v15, %v2895_v50  ;;  %13185 = vst [vmem:[#allocation121_spill] sm:$0xff] %v11175_v1  ;;  %v11181_v50 = vrot.slane %v2422_v59, %v10225_v23  ;;  %13188 = vst [vmem:[#allocation124_spill] sm:$0xff] %v11184_v54 }
0x128b   :  { %v2878_v60 = vadd.f32 %v2877_v20, %v2876_v10  ;;  %v2898_v4 = vrot.slane %v2897_v63, 1  ;;  %13187 = vst [vmem:[#allocation123_spill] sm:$0xff] %v11181_v50 }
0x128d   :  { %9633 = vpush %v2878_v60  ;;  %v2899_v31 = vadd.f32 %v2898_v4, %v2897_v63  ;;  %v11191_v60 = vrot.slane %v2424_v6, %v10177_v29  ;;  %v11194_v4 = vrot.slane %v2424_v6, %v10225_v23 }
0x128f   :  { %9635 = vpush %v2899_v31  ;;  %13189 = vst [vmem:[#allocation125_spill] sm:$0xff] %v11191_v60 }
0x1290   :  { %13190 = vst [vmem:[#allocation126_spill] sm:$0xff] %v11194_v4 }
0x12be   :  { %s9634_s28 = spop %9633 }
0x12bf   :  { %s2880_s29 = smul.f32 0.0009765625, %s9634_s28 }
0x12c0   :  { %s9636_s3 = spop %9635 }
0x12c1   :  { %s2902_s30 = smul.f32 %s2880_s29, %s2880_s29  ;;  %v2904_v45 = vstv %s2880_s29 }
0x12c2   :  { %s2901_s7 = smul.f32 0.0009765625, %s9636_s3  ;;  %v2905_v15 = vsub.f32 %v11146_v40, %v2904_v45  ;;  %v2906_v20 = vsub.f32 %v11148_v3, %v2904_v45  ;;  %v2907_v63 = vsub.f32 %v11150_v22, %v2904_v45  ;;  %v2908_v25 = vsub.f32 %v11156_v13, %v2904_v45 }
0x12c4   :  { %s2903_s8 = ssub.f32 %s2901_s7, %s2902_s30  ;;  %v2930_v40 = vmul.f32 %v11175_v1, %v2905_v15  ;;  %v2931_v3 = vmul.f32 %v11178_v52, %v2906_v20  ;;  %v2932_v22 = vmul.f32 %v11181_v50, %v2907_v63  ;;  %v2933_v13 = vmul.f32 %v11184_v54, %v2908_v25 }
0x12c6   :  { %s2934_s9 = sadd.f32 1e-08, %s2903_s8 }
0x12c8   :  { %v2935_v10 = vstv %s2934_s9 }
0x12c9   :  { %9878 = vrsqrt.f32 %v2935_v10 }
0x12d6   :  { %v9879_v11 = vpop.eup %9878 }
0x12d7   :  { %9637 = vpush %v9879_v11 }
0x1308   :  { %s9638_s10 = spop %9637 }
0x1309   :  { %v2938_v21 = vstv %s9638_s10 }
0x130a   :  { %v2939_v31 = vmul.f32 %v2938_v21, %v2930_v40  ;;  %v2940_v41 = vmul.f32 %v2938_v21, %v2931_v3  ;;  %v2941_v10 = vmul.f32 %v2938_v21, %v2932_v22  ;;  %v2942_v11 = vmul.f32 %v2938_v21, %v2933_v13 }
0x130c   :  { %v2964_v59 = vadd.f32 %v11191_v60, %v2939_v31  ;;  %v2966_v45 = vadd.f32 %v11194_v4, %v2941_v10  ;;  %v2965_v6 = vadd.f32 %v11197_v28, %v2940_v41  ;;  %v2967_v15 = vadd.f32 %v11200_v42, %v2942_v11  ;;  %v3114_v42 = vld [vmem:[#allocation2 + $0x2a8] sm:$0xff]  ;;  %v3115_v28 = vld [vmem:[#allocation2 + $0x2b0] sm:$0xff] }
0x130d   :  { %3215 = vmatprep.subr.mxu1 %v3114_v42 }
0x130e   :  { %3032 = vmatprep.mubr.f32.mxu1 %v2965_v6  ;;  %3102 = vmatprep.mubr.f32.mxu0 %v2967_v15 }
0x130f   :  { %3033 = vmatmul.mubr.f32.vlgmr.msra.gmra.mxu1 %v2964_v59  ;;  %3103 = vmatmul.mubr.f32.vlgmr.msra.gmra.mxu0 %v2966_v45 }
0x1310   :  { %3251 = vmatprep.mubr.f32.mxu1 %v13128_v9  ;;  %3322 = vmatprep.mubr.f32.mxu0 %v13128_v9 }
0x13cf   :  { %v3034_v20 = vpop.f32.mrf.mxu1  ;;  %v3104_v63 = vpop.f32.mrf.mxu0 }
0x13d0   :  { %v3035_v25 = vadd.f32 %v3034_v20, %v10992_v5 }
0x13d1   :  { %v3036_v40 = vpop.f32.mrf.mxu1  ;;  %v3106_v3 = vpop.f32.mrf.mxu0 }
0x13d2   :  { %v11213_v22 = vadd.f32 %v3104_v63, %v3035_v25  ;;  %v3116_v3 = vld [vmem:[#allocation2 + $0x2b8] sm:$0xff] }
0x13d3   :  { %3286 = vmatprep.subr.mxu0 %v3116_v3 }
0x13d4   :  { %v3140_v13 = vmax.f32 %v11213_v22, 0.0  ;;  %3287 = vmatpush1.msra.mxu0 %v3115_v28 }
0x13d6   :  { %v3141_v21 = vsel %vm329_vm0, %v3140_v13, 0.0  ;;  %v3152_v31 = vmul.f32 %v3140_v13, %v3140_v13 }
0x13d7   :  { %3142 = vadd.xlane.f32.xlu1 %v3141_v21 }
0x13d8   :  { %v3153_v41 = vsel %vm329_vm0, %v3152_v31, 0.0  ;;  %v3113_v31 = vld [vmem:[#allocation2 + $0x2a0] sm:$0xff] }
0x13d9   :  { %3154 = vadd.xlane.f32.xlu0 %v3153_v41  ;;  %v3112_v41 = vld [vmem:[#allocation2 + $0x298] sm:$0xff]  ;;  %3216 = vmatpush1.msra.mxu1 %v3113_v31  ;;  %v3137_v31 = vld [vmem:[#allocation2 + $0x310] sm:$0xff] }
0x13da   :  { %3288 = vmatprep.subr.mxu0 %v3112_v41  ;;  %v3134_v41 = vld [vmem:[#allocation2 + $0x2f8] sm:$0xff] }
0x1460   :  { %v3143_v10 = vpop.xlane.xlu1 %3142 }
0x1461   :  { %v3144_v11 = vrot.slane %v3143_v10, 4 }
0x1462   :  { %v3155_v59 = vpop.xlane.xlu0 %3154 }
0x1463   :  { %v3145_v45 = vadd.f32 %v3144_v11, %v3143_v10  ;;  %v3156_v6 = vrot.slane %v3155_v59, 4  ;;  %v3110_v10 = vld [vmem:[#allocation2 + $0x288] sm:$0xff]  ;;  %v3111_v11 = vld [vmem:[#allocation2 + $0x290] sm:$0xff] }
0x1464   :  { %3217 = vmatprep.subr.mxu1 %v3110_v10  ;;  %3289 = vmatpush1.msra.mxu0 %v3111_v11  ;;  %v3133_v10 = vld [vmem:[#allocation2 + $0x2f0] sm:$0xff] }
0x1465   :  { %v3157_v15 = vadd.f32 %v3156_v6, %v3155_v59  ;;  %v3146_v5 = vrot.slane %v3145_v45, 2  ;;  %v3109_v59 = vld [vmem:[#allocation2 + $0x280] sm:$0xff]  ;;  %v3138_v6 = vld [vmem:[#allocation2 + $0x318] sm:$0xff] }
0x1466   :  { %3218 = vmatpush1.msra.mxu1 %v3109_v59  ;;  %3768 = vmatprep.subr.mxu0 %v3138_v6 }
0x1467   :  { %v3147_v20 = vadd.f32 %v3146_v5, %v3145_v45  ;;  %v3158_v40 = vrot.slane %v3157_v15, 2 }
0x1469   :  { %v3148_v63 = vrot.slane %v3147_v20, 1  ;;  %v3159_v25 = vadd.f32 %v3158_v40, %v3157_v15 }
0x146b   :  { %v3149_v4 = vadd.f32 %v3148_v63, %v3147_v20  ;;  %v3160_v21 = vrot.slane %v3159_v25, 1 }
0x146d   :  { %9639 = vpush %v3149_v4  ;;  %v3161_v45 = vadd.f32 %v3160_v21, %v3159_v25  ;;  %v3139_v4 = vld [vmem:[%s12868_s2 + $0x48] sm:$0x3] }
0x146e   :  { %v11222_v20 = vrot.slane %v3139_v4, %v10177_v29  ;;  %v11226_v63 = vrot.slane %v3139_v4, %v10186_v34 }
0x146f   :  { %9641 = vpush %v3161_v45 }
0x1470   :  { %13193 = vst [vmem:[#allocation129_spill] sm:$0xff] %v11222_v20  ;;  %13194 = vst [vmem:[#allocation130_spill] sm:$0xff] %v11226_v63 }
0x149e   :  { %s9640_s12 = spop %9639 }
0x149f   :  { %s3151_s13 = smul.f32 0.03125, %s9640_s12 }
0x14a0   :  { %s9642_s14 = spop %9641 }
0x14a1   :  { %s3164_s15 = smul.f32 %s3151_s13, %s3151_s13  ;;  %v3166_v15 = vstv %s3151_s13 }
0x14a2   :  { %s3163_s16 = smul.f32 0.03125, %s9642_s14  ;;  %v3167_v5 = vsub.f32 %v3140_v13, %v3166_v15  ;;  %v289_v13 = vsub.f32 %v10745_v14, %v10759_v56 }
0x14a4   :  { %s3165_s17 = ssub.f32 %s3163_s16, %s3164_s15  ;;  %v3172_v40 = vmul.f32 %v11222_v20, %v3167_v5  ;;  %v11234_v11 = vmul.f32 %v10765_v39, %v289_v13 }
0x14a6   :  { %s3173_s18 = sadd.f32 1e-08, %s3165_s17 }
0x14a8   :  { %v3174_v28 = vstv %s3173_s18 }
0x14a9   :  { %9880 = vrsqrt.f32 %v3174_v28 }
0x14b6   :  { %v9881_v42 = vpop.eup %9880 }
0x14b7   :  { %9643 = vpush %v9881_v42 }
0x14e8   :  { %s9644_s21 = spop %9643 }
0x14e9   :  { %v3177_v25 = vstv %s9644_s21 }
0x14ea   :  { %v3178_v3 = vmul.f32 %v3177_v25, %v3172_v40 }
0x14ec   :  { %v3183_v21 = vadd.f32 %v11226_v63, %v3178_v3 }
0x14ee   :  { %9203 = vmatmul.mubr.msk.f32.vlgmr.msra.gmra.mxu1 %vm373_vm1, %v3183_v21  ;;  %9204 = vmatmul.mubr.msk.f32.vlgmr.msra.gmra.mxu0 %vm373_vm1, %v3183_v21 }
0x14ef   :  { %3769 = vmatpush1.xpose.msra.mxu0 %v3137_v31 }
0x14f0   :  { %3770 = vmatprep.subr.mxu0 %v3134_v41 }
0x14f3   :  { %3771 = vmatpush1.xpose.msra.mxu0 %v3133_v10 }
0x14f4   :  { %9401 = vmatprep.subr.mxu0 %v11234_v11 }
0x15ae   :  { %v3253_v59 = vpop.f32.mrf.mxu1  ;;  %v3324_v45 = vpop.f32.mrf.mxu0 }
0x15af   :  { %v11237_v6 = vmax.f32 %v3253_v59, 0.0  ;;  %v11239_v28 = vmax.f32 %v3324_v45, 0.0 }
0x15b0   :  { %v3255_v42 = vpop.f32.mrf.mxu1  ;;  %v3326_v15 = vpop.f32.mrf.mxu0 }
0x15b1   :  { %v3350_v56 = vmul.f32 %v11237_v6, %v11237_v6  ;;  %v11243_v4 = vmax.f32 %v3255_v42, 0.0  ;;  %v11245_v5 = vmax.f32 %v3326_v15, 0.0  ;;  %v3333_v39 = vsel %vm523_vm2, %v11237_v6, 0.0 }
0x15b2   :  { %v3352_v40 = vmul.f32 %v11239_v28, %v11239_v28  ;;  %v3336_v31 = vsel %vm523_vm2, %v11239_v28, 0.0 }
0x15b3   :  { %v3334_v25 = vsel %vm523_vm2, %v11243_v4, 0.0  ;;  %v3351_v3 = vmul.f32 %v11243_v4, %v11243_v4  ;;  %v3353_v41 = vmul.f32 %v11245_v5, %v11245_v5  ;;  %v3354_v13 = vsel %vm523_vm2, %v3350_v56, 0.0 }
0x15b4   :  { %v3335_v21 = vadd.f32 %v3334_v25, %v3333_v39  ;;  %v3338_v42 = vsel %vm523_vm2, %v11245_v5, 0.0  ;;  %v3357_v15 = vsel %vm523_vm2, %v3352_v40, 0.0 }
0x15b5   :  { %v3355_v10 = vsel %vm523_vm2, %v3351_v3, 0.0  ;;  %v3359_v39 = vsel %vm523_vm2, %v3353_v41, 0.0 }
0x15b6   :  { %v3337_v59 = vadd.f32 %v3336_v31, %v3335_v21  ;;  %v3356_v45 = vadd.f32 %v3355_v10, %v3354_v13 }
0x15b8   :  { %v3339_v63 = vadd.f32 %v3338_v42, %v3337_v59  ;;  %v3358_v20 = vadd.f32 %v3357_v15, %v3356_v45 }
0x15ba   :  { %3340 = vadd.xlane.f32.xlu1 %v3339_v63  ;;  %v3360_v25 = vadd.f32 %v3359_v39, %v3358_v20  ;;  %v3120_v20 = vld [vmem:[#allocation2 + $0x2c1] ss:$8 sm:$0xf] }
0x15bc   :  { %3361 = vadd.xlane.f32.xlu0 %v3360_v25  ;;  %v3127_v25 = vld [vmem:[#allocation2 + $0x2c0] sm:$0xe0] }
0x1643   :  { %v3341_v60 = vpop.xlane.xlu1 %3340 }
0x1644   :  { %v3342_v54 = vrot.slane %v3341_v60, 4 }
0x1645   :  { %v3362_v50 = vpop.xlane.xlu0 %3361 }
0x1646   :  { %v3343_v56 = vadd.f32 %v3342_v54, %v3341_v60  ;;  %v3363_v52 = vrot.slane %v3362_v50, 4 }
0x1648   :  { %v3364_v3 = vadd.f32 %v3363_v52, %v3362_v50  ;;  %v3344_v21 = vrot.slane %v3343_v56, 2  ;;  %v3118_v50 = vld [vmem:[#allocation2 + $0x2c0] ss:$8 sm:$0xf] }
0x1649   :  { %v11266_v63 = vrot.slane %v3118_v50, %v10177_v29  ;;  %v11275_v41 = vrot.slane %v3118_v50, %v10228_v24 }
0x164a   :  { %v3345_v31 = vadd.f32 %v3344_v21, %v3343_v56  ;;  %v3365_v13 = vrot.slane %v3364_v3, 2  ;;  %v3128_v56 = vld [vmem:[#allocation2 + $0x2c8] sm:$0xe0]  ;;  %v3130_v21 = vld [vmem:[#allocation2 + $0x2d8] sm:$0xe0] }
0x164b   :  { %13195 = vst [vmem:[#allocation131_spill] sm:$0xff] %v11266_v63  ;;  %13198 = vst [vmem:[#allocation134_spill] sm:$0xff] %v11275_v41  ;;  %v11313_v26 = vrot.slane %v3130_v21, %v10231_v30 }
0x164c   :  { %v3346_v10 = vrot.slane %v3345_v31, 1  ;;  %v3366_v1 = vadd.f32 %v3365_v13, %v3364_v3  ;;  %v3129_v3 = vld [vmem:[#allocation2 + $0x2d0] sm:$0xe0]  ;;  %v11285_v13 = vrot.slane %v3120_v20, %v10186_v34 }
0x164e   :  { %v3347_v0 = vadd.f32 %v3346_v10, %v3345_v31  ;;  %v3367_v40 = vrot.slane %v3366_v1, 1  ;;  %v11282_v31 = vrot.slane %v3120_v20, %v10177_v29  ;;  %13200 = vst [vmem:[#allocation136_spill] sm:$0xff] %v11285_v13  ;;  %v11288_v10 = vrot.slane %v3120_v20, %v10225_v23 }
0x1650   :  { %9645 = vpush %v3347_v0  ;;  %v3368_v59 = vadd.f32 %v3367_v40, %v3366_v1  ;;  %v11269_v0 = vrot.slane %v3118_v50, %v10186_v34  ;;  %v11272_v1 = vrot.slane %v3118_v50, %v10225_v23  ;;  %13199 = vst [vmem:[#allocation135_spill] sm:$0xff] %v11282_v31 }
0x1651   :  { %13201 = vst [vmem:[#allocation137_spill] sm:$0xff] %v11288_v10 }
0x1652   :  { %9647 = vpush %v3368_v59  ;;  %13196 = vst [vmem:[#allocation132_spill] sm:$0xff] %v11269_v0 }
0x1653   :  { %13197 = vst [vmem:[#allocation133_spill] sm:$0xff] %v11272_v1 }
0x1681   :  { %s9646_s22 = spop %9645 }
0x1682   :  { %s3349_s23 = smul.f32 0.0009765625, %s9646_s22 }
0x1683   :  { %s9648_s24 = spop %9647 }
0x1684   :  { %s3371_s25 = smul.f32 %s3349_s23, %s3349_s23  ;;  %v3373_v60 = vstv %s3349_s23 }
0x1685   :  { %s3370_s26 = smul.f32 0.0009765625, %s9648_s24  ;;  %v3374_v45 = vsub.f32 %v11237_v6, %v3373_v60  ;;  %v3375_v42 = vsub.f32 %v11243_v4, %v3373_v60  ;;  %v3376_v15 = vsub.f32 %v11239_v28, %v3373_v60  ;;  %v3377_v39 = vsub.f32 %v11245_v5, %v3373_v60 }
0x1686   :  { %v11291_v6 = vrot.slane %v3120_v20, %v10228_v24  ;;  %v11294_v28 = vrot.slane %v3127_v25, %v10231_v30  ;;  %v11297_v4 = vrot.slane %v3128_v56, %v10231_v30  ;;  %v11300_v5 = vrot.slane %v3129_v3, %v10231_v30 }
0x1687   :  { %s3372_s27 = ssub.f32 %s3370_s26, %s3371_s25  ;;  %v3399_v40 = vmul.f32 %v11266_v63, %v3374_v45  ;;  %v3400_v59 = vmul.f32 %v11269_v0, %v3375_v42  ;;  %v11307_v60 = vrot.slane %v3127_v25, %v10253_v49  ;;  %v11310_v20 = vrot.slane %v3128_v56, %v10253_v49  ;;  %v3122_v42 = vld [vmem:[#allocation2 + $0x2c2] ss:$8 sm:$0xf] }
0x1688   :  { %13202 = vst [vmem:[#allocation138_spill] sm:$0xff] %v11291_v6 }
0x1689   :  { %s3403_s28 = sadd.f32 1e-08, %s3372_s27  ;;  %13203 = vst [vmem:[#allocation139_spill] sm:$0xff] %v11310_v20 }
0x168b   :  { %v3404_v54 = vstv %s3403_s28 }
0x168c   :  { %9882 = vrsqrt.f32 %v3404_v54  ;;  %v3401_v54 = vmul.f32 %v11272_v1, %v3376_v15  ;;  %v11316_v15 = vrot.slane %v3129_v3, %v10253_v49  ;;  %v11325_v1 = vrot.slane %v3130_v21, %v10253_v49 }
0x168d   :  { %v11341_v49 = vrot.slane %v3122_v42, %v10186_v34 }
0x1699   :  { %v9883_v52 = vpop.eup %9882 }
0x169a   :  { %9649 = vpush %v9883_v52  ;;  %v3402_v52 = vmul.f32 %v11275_v41, %v3377_v39  ;;  %v11319_v39 = vrot.slane %v3127_v25, %v10277_v55  ;;  %v11322_v41 = vrot.slane %v3128_v56, %v10277_v55  ;;  %v11335_v25 = vrot.slane %v3130_v21, %v10277_v55 }
0x169b   :  { %v11338_v56 = vrot.slane %v3122_v42, %v10177_v29 }
0x16cb   :  { %s9650_s29 = spop %9649 }
0x16cc   :  { %v3407_v50 = vstv %s9650_s29 }
0x16cd   :  { %v3408_v27 = vmul.f32 %v3407_v50, %v3399_v40  ;;  %v3409_v16 = vmul.f32 %v3407_v50, %v3400_v59  ;;  %v3410_v45 = vmul.f32 %v3407_v50, %v3401_v54  ;;  %v3411_v63 = vmul.f32 %v3407_v50, %v3402_v52 }
0x16ce   :  { %v11332_v52 = vrot.slane %v3129_v3, %v10277_v55 }
0x16cf   :  { %v3433_v30 = vadd.f32 %v11282_v31, %v3408_v27  ;;  %v3434_v40 = vadd.f32 %v11285_v13, %v3409_v16  ;;  %v3435_v59 = vadd.f32 %v11288_v10, %v3410_v45  ;;  %v3436_v54 = vadd.f32 %v11291_v6, %v3411_v63 }
0x16d1   :  { %v3441_v50 = vrot.slane %v3433_v30, 7  ;;  %v3442_v27 = vrot.slane %v3434_v40, 7  ;;  %v3443_v31 = vrot.slane %v3435_v59, 7  ;;  %v3444_v16 = vrot.slane %v3436_v54, 7 }
0x16d2   :  { %v3453_v13 = vrot.slane %v3433_v30, 1  ;;  %v3454_v45 = vrot.slane %v3434_v40, 1  ;;  %v3455_v10 = vrot.slane %v3435_v59, 1  ;;  %v3456_v63 = vrot.slane %v3436_v54, 1 }
0x16d3   :  { %v3449_v3 = vsel %vm640_vm3, 0.0, %v3441_v50  ;;  %v3450_v6 = vsel %vm640_vm3, 0.0, %v3442_v27  ;;  %v3451_v55 = vsel %vm640_vm3, 0.0, %v3443_v31  ;;  %v3452_v21 = vsel %vm640_vm3, 0.0, %v3444_v16 }
0x16d4   :  { %v3461_v0 = vsel %vm640_vm3, %v3453_v13, 0.0  ;;  %v3462_v58 = vsel %vm640_vm3, %v3454_v45, 0.0  ;;  %v3463_v43 = vsel %vm640_vm3, %v3455_v10, 0.0  ;;  %v3481_v53 = vmul.f32 %v11307_v60, %v3449_v3 }
0x16d5   :  { %v3482_v18 = vmul.f32 %v11310_v20, %v3450_v6  ;;  %v3483_v57 = vmul.f32 %v11316_v15, %v3451_v55  ;;  %v3501_v50 = vmul.f32 %v11294_v28, %v3433_v30  ;;  %v3502_v27 = vmul.f32 %v11297_v4, %v3434_v40 }
0x16d6   :  { %v3503_v31 = vmul.f32 %v11300_v5, %v3435_v59  ;;  %v3504_v16 = vmul.f32 %v11313_v26, %v3436_v54  ;;  %v3525_v13 = vmul.f32 %v11319_v39, %v3461_v0  ;;  %v3526_v45 = vmul.f32 %v11322_v41, %v3462_v58 }
0x16d7   :  { %v3505_v19 = vadd.f32 %v3501_v50, %v3481_v53  ;;  %v3506_v10 = vadd.f32 %v3502_v27, %v3482_v18  ;;  %v3464_v3 = vsel %vm640_vm3, %v3456_v63, 0.0  ;;  %v3484_v6 = vmul.f32 %v11325_v1, %v3452_v21 }
0x16d8   :  { %v3507_v20 = vadd.f32 %v3503_v31, %v3483_v57  ;;  %v3527_v55 = vmul.f32 %v11332_v52, %v3463_v43  ;;  %v11363_v30 = vrot.slane %v3122_v42, %v10225_v23  ;;  %v11366_v40 = vrot.slane %v3122_v42, %v10228_v24 }
0x16d9   :  { %v3508_v59 = vadd.f32 %v3504_v16, %v3484_v6  ;;  %v3528_v0 = vmul.f32 %v11335_v25, %v3464_v3  ;;  %v3529_v54 = vadd.f32 %v3525_v13, %v3505_v19  ;;  %v3530_v58 = vadd.f32 %v3526_v45, %v3506_v10 }
0x16da   :  { %13204 = vst [vmem:[#allocation140_spill] sm:$0xff] %v11363_v30  ;;  %13205 = vst [vmem:[#allocation141_spill] sm:$0xff] %v11366_v40  ;;  %v3531_v53 = vadd.f32 %v3527_v55, %v3507_v20 }
0x16db   :  { %v3532_v18 = vadd.f32 %v3528_v0, %v3508_v59  ;;  %vm3533_vm4 = vcmp.gt.f32.partialorder %v3529_v54, 0.0  ;;  %vm3534_vm5 = vcmp.gt.f32.partialorder %v3530_v58, 0.0  ;;  %v3558_v63 = vmul.f32 %v11338_v56, %v3529_v54 }
0x16dc   :  { %vm3535_vm6 = vcmp.gt.f32.partialorder %v3531_v53, 0.0  ;;  %v3559_v43 = vmul.f32 %v11341_v49, %v3530_v58  ;;  %v3560_v57 = vmul.f32 %v11363_v30, %v3531_v53 }
0x16dd   :  { %vm3536_vm7 = vcmp.gt.f32.partialorder %v3532_v18, 0.0  ;;  %v3561_v42 = vmul.f32 %v11366_v40, %v3532_v18  ;;  %v11373_v21 = vsel %vm3533_vm4, %v3529_v54, %v3558_v63 }
0x16de   :  { %v11375_v50 = vsel %vm3534_vm5, %v3530_v58, %v3559_v43  ;;  %v11377_v19 = vsel %vm3535_vm6, %v3531_v53, %v3560_v57  ;;  %v3566_v20 = vsel %vm523_vm2, %v11373_v21, 0.0  ;;  %v3583_v27 = vmul.f32 %v11373_v21, %v11373_v21 }
0x16df   :  { %v11383_v31 = vsel %vm3536_vm7, %v3532_v18, %v3561_v42  ;;  %v3567_v16 = vsel %vm523_vm2, %v11375_v50, 0.0  ;;  %v3584_v13 = vmul.f32 %v11375_v50, %v11375_v50  ;;  %v3585_v10 = vmul.f32 %v11377_v19, %v11377_v19  ;;  %v3136_v42 = vld [vmem:[#allocation2 + $0x308] sm:$0xff] }
0x16e0   :  { %v3568_v45 = vadd.f32 %v3567_v16, %v3566_v20  ;;  %v3569_v3 = vsel %vm523_vm2, %v11377_v19, 0.0  ;;  %v3586_v6 = vmul.f32 %v11383_v31, %v11383_v31  ;;  %v3587_v55 = vsel %vm523_vm2, %v3583_v27, 0.0  ;;  %3698 = vmatprep.subr.mxu1 %v3136_v42 }
0x16e1   :  { %v3588_v59 = vsel %vm523_vm2, %v3584_v13, 0.0  ;;  %v3571_v58 = vsel %vm523_vm2, %v11383_v31, 0.0  ;;  %v3590_v53 = vsel %vm523_vm2, %v3585_v10, 0.0 }
0x16e2   :  { %v3570_v0 = vadd.f32 %v3569_v3, %v3568_v45  ;;  %v3589_v54 = vadd.f32 %v3588_v59, %v3587_v55  ;;  %v3592_v43 = vsel %vm523_vm2, %v3586_v6, 0.0 }
0x16e4   :  { %v3572_v18 = vadd.f32 %v3571_v58, %v3570_v0  ;;  %v3591_v63 = vadd.f32 %v3590_v53, %v3589_v54  ;;  %v3135_v0 = vld [vmem:[#allocation2 + $0x300] sm:$0xff]  ;;  %v3132_v58 = vld [vmem:[#allocation2 + $0x2e8] sm:$0xff] }
0x16e5   :  { %3699 = vmatpush1.xpose.msra.mxu1 %v3135_v0  ;;  %v3131_v53 = vld [vmem:[#allocation2 + $0x2e0] sm:$0xff] }
0x16e6   :  { %3573 = vadd.xlane.f32.xlu1 %v3572_v18  ;;  %v3593_v57 = vadd.f32 %v3592_v43, %v3591_v63  ;;  %3700 = vmatprep.subr.mxu1 %v3132_v58 }
0x16e8   :  { %3594 = vadd.xlane.f32.xlu0 %v3593_v57 }
0x16e9   :  { %3701 = vmatpush1.xpose.msra.mxu1 %v3131_v53 }
0x176f   :  { %v3574_v20 = vpop.xlane.xlu1 %3573 }
0x1770   :  { %v3575_v27 = vrot.slane %v3574_v20, 4 }
0x1771   :  { %v3595_v16 = vpop.xlane.xlu0 %3594 }
0x1772   :  { %v3576_v13 = vadd.f32 %v3575_v27, %v3574_v20  ;;  %v3596_v45 = vrot.slane %v3595_v16, 4 }
0x1774   :  { %v3597_v3 = vadd.f32 %v3596_v45, %v3595_v16  ;;  %v3577_v55 = vrot.slane %v3576_v13, 2 }
0x1776   :  { %v3578_v59 = vadd.f32 %v3577_v55, %v3576_v13  ;;  %v3598_v40 = vrot.slane %v3597_v3, 2  ;;  %v3126_v55 = vld [vmem:[#allocation2 + $0x2c4] ss:$8 sm:$0xf] }
0x1777   :  { %v11424_v0 = vrot.slane %v3126_v55, %v10186_v34 }
0x1778   :  { %v3579_v30 = vrot.slane %v3578_v59, 1  ;;  %v3599_v10 = vadd.f32 %v3598_v40, %v3597_v3 }
0x1779   :  { %13211 = vst [vmem:[#allocation147_spill] sm:$0xff] %v11424_v0 }
0x177a   :  { %v3580_v54 = vadd.f32 %v3579_v30, %v3578_v59  ;;  %v3600_v6 = vrot.slane %v3599_v10, 1  ;;  %v3124_v30 = vld [vmem:[#allocation2 + $0x2c3] ss:$8 sm:$0xf]  ;;  %v11418_v59 = vrot.slane %v3126_v55, %v10177_v29 }
0x177b   :  { %v11402_v57 = vrot.slane %v3124_v30, %v10177_v29  ;;  %v11405_v42 = vrot.slane %v3124_v30, %v10186_v34  ;;  %v11408_v20 = vrot.slane %v3124_v30, %v10225_v23  ;;  %v11411_v27 = vrot.slane %v3124_v30, %v10228_v24 }
0x177c   :  { %9651 = vpush %v3580_v54  ;;  %v3601_v18 = vadd.f32 %v3600_v6, %v3599_v10  ;;  %13209 = vst [vmem:[#allocation145_spill] sm:$0xff] %v11418_v59  ;;  %v11421_v10 = vrot.slane %v3126_v55, %v10225_v23  ;;  %v11427_v54 = vrot.slane %v3126_v55, %v10228_v24 }
0x177d   :  { %13206 = vst [vmem:[#allocation142_spill] sm:$0xff] %v11405_v42  ;;  %13207 = vst [vmem:[#allocation143_spill] sm:$0xff] %v11408_v20 }
0x177e   :  { %9653 = vpush %v3601_v18  ;;  %13208 = vst [vmem:[#allocation144_spill] sm:$0xff] %v11411_v27 }
0x177f   :  { %13210 = vst [vmem:[#allocation146_spill] sm:$0xff] %v11421_v10  ;;  %13212 = vst [vmem:[#allocation148_spill] sm:$0xff] %v11427_v54 }
0x17ad   :  { %s9652_s3 = spop %9651 }
0x17ae   :  { %s3582_s30 = smul.f32 0.0009765625, %s9652_s3 }
0x17af   :  { %s9654_s7 = spop %9653 }
0x17b0   :  { %s3604_s8 = smul.f32 %s3582_s30, %s3582_s30  ;;  %v3606_v43 = vstv %s3582_s30 }
0x17b1   :  { %s3603_s9 = smul.f32 0.0009765625, %s9654_s7  ;;  %v3607_v16 = vsub.f32 %v11373_v21, %v3606_v43  ;;  %v3608_v13 = vsub.f32 %v11375_v50, %v3606_v43  ;;  %v3609_v45 = vsub.f32 %v11377_v19, %v3606_v43  ;;  %v3610_v3 = vsub.f32 %v11383_v31, %v3606_v43  ;;  %v44_v43 = vld [vmem:[%s12868_s2 + $0x30] sm:$0xff] }
0x17b3   :  { %s3605_s10 = ssub.f32 %s3603_s9, %s3604_s8  ;;  %v3632_v21 = vmul.f32 %v11402_v57, %v3607_v16  ;;  %v3633_v50 = vmul.f32 %v11405_v42, %v3608_v13  ;;  %v3634_v19 = vmul.f32 %v11408_v20, %v3609_v45  ;;  %v3635_v31 = vmul.f32 %v11411_v27, %v3610_v3  ;;  %v40_v16 = vld [vmem:[%s12868_s2 + $0x10] sm:$0xff]  ;;  %v41_v13 = vld [vmem:[%s12868_s2 + $0x18] sm:$0xff]  ;;  %v42_v45 = vld [vmem:[%s12868_s2 + $0x20] sm:$0xff] }
0x17b4   :  { %v13014_v3 = vmov 1  }
0x17b5   :  { %s3636_s12 = sadd.f32 1e-08, %s3605_s10 }
0x17b7   :  { %v3637_v63 = vstv %s3636_s12 }
0x17b8   :  { %9884 = vrsqrt.f32 %v3637_v63 }
0x17c5   :  { %v9885_v40 = vpop.eup %9884 }
0x17c6   :  { %9655 = vpush %v9885_v40 }
0x17f7   :  { %s9656_s13 = spop %9655 }
0x17f8   :  { %v3640_v6 = vstv %s9656_s13 }
0x17f9   :  { %v3641_v58 = vmul.f32 %v3640_v6, %v3632_v21  ;;  %v3642_v53 = vmul.f32 %v3640_v6, %v3633_v50  ;;  %v3643_v23 = vmul.f32 %v3640_v6, %v3634_v19  ;;  %v3644_v18 = vmul.f32 %v3640_v6, %v3635_v31 }
0x17fb   :  { %v3666_v63 = vadd.f32 %v11418_v59, %v3641_v58  ;;  %v3668_v40 = vadd.f32 %v11421_v10, %v3643_v23  ;;  %v3667_v24 = vadd.f32 %v11424_v0, %v3642_v53  ;;  %v3669_v30 = vadd.f32 %v11427_v54, %v3644_v18  ;;  %v45_v58 = vld [vmem:[%s12868_s2 + $0x38] sm:$0xff]  ;;  %v11478_v18 = vld [vmem:[%s12868_s2 + $0x70] sm:$0xff] }
0x17fd   :  { %3734 = vmatprep.mubr.f32.mxu1 %v3667_v24  ;;  %3804 = vmatprep.mubr.f32.mxu0 %v3669_v30  ;;  %v49_v24 = vld [vmem:[%s12870_s4] sm:$0x3] }
0x17fe   :  { %3735 = vmatmul.mubr.f32.vlgmr.msra.gmra.mxu1 %v3666_v63  ;;  %3805 = vmatmul.mubr.f32.vlgmr.msra.gmra.mxu0 %v3668_v40  ;;  %v11485_v63 = vld [vmem:[%s12868_s2 + $0x78] sm:$0xff] }
0x17ff   :  { %9402 = vmatpush3.msra.mxu0 %v11234_v11  ;;  %9398 = vmatprep.mubr.msk.f32.mxu1 %vm373_vm1, %v44_v43  ;;  %v43_v11 = vld [vmem:[%s12868_s2 + $0x28] sm:$0xff]  ;;  %v11497_v43 = vrot.slane %v49_v24, %v10177_v29 }
0x1800   :  { %9403 = vmatprep.subr.mxu0 %v10768_v7  ;;  %9405 = vmatprep.mubr.msk.f32.mxu0 %vm373_vm1, %v40_v16 }
0x1801   :  { %9404 = vmatpush3.msra.mxu0 %v10768_v7  ;;  %v13009_v7 = vmov 0   ;;  %13215 = vst [vmem:[#allocation151_spill] sm:$0xff] %v11497_v43 }
0x1802   :  { %9820 = vset.pattern.permute.xlu1 %v13009_v7  ;;  %9406 = vmatmul.mubr.msk.f32.vlgmr.msra.gmra.mxu0 %vm373_vm1, %v41_v13  ;;  %v11500_v13 = vrot.slane %v49_v24, %v10186_v34 }
0x1803   :  { %3901 = vperm.xlu1 %9820, %v43_v11   ;;  %9821 = vset.pattern.permute.xlu0 %v13009_v7 }
0x1804   :  { %13216 = vst [vmem:[#allocation152_spill] sm:$0xff] %v11500_v13 }
0x1807   :  { %3896 = vperm.xlu1 %9820, %v42_v45  }
0x180b   :  { %9822 = vset.pattern.permute.xlu1 %v13014_v3 }
0x187e   :  { %v11489_v40 = vpop.permute.xlu1 %3901 }
0x187f   :  { %13213 = vst [vmem:[#allocation149_spill] sm:$0xff] %v11489_v40 }
0x1882   :  { %v11494_v30 = vpop.permute.xlu1 %3896 }
0x1883   :  { %13214 = vst [vmem:[#allocation150_spill] sm:$0xff] %v11494_v30 }
0x18be   :  { %v3736_v55 = vpop.f32.mrf.mxu1  ;;  %v3806_v21 = vpop.f32.mrf.mxu0 }
0x18bf   :  { %v3737_v50 = vadd.f32 %v3736_v55, %v11213_v22  ;;  %v4019_v22 = vld [vmem:[%s12868_s2 + $0x50] sm:$0xff] }
0x18c0   :  { %v3738_v19 = vpop.f32.mrf.mxu1  ;;  %v3808_v31 = vpop.f32.mrf.mxu0 }
0x18c1   :  { %v3807_v6 = vadd.f32 %v3806_v21, %v3737_v50 }
0x18c2   :  { %v9407_v16 = vpop.f32.mrf.mxu0 }
0x18c3   :  { %9396 = vmatprep.subr.msk.mxu1 %vm373_vm1, %v3807_v6  ;;  %v3982_v55 = vadd.f32 %v9407_v16, %v11489_v40  ;;  %v4020_v16 = vld [vmem:[%s12868_s2 + $0x58] sm:$0xff] }
0x18c4   :  { %9397 = vmatpush3.xpose.msk.msra.mxu1 %vm373_vm1, %v3807_v6 }
0x18c7   :  { %9399 = vmatmul.mubr.msk.f32.vlgmr.msra.gmra.mxu1 %vm373_vm1, %v45_v58  ;;  %v3976_v58 = vpop.f32.mrf.mxu0 }
0x18c8   :  { %9412 = vmatprep.mubr.msk.f32.mxu1 %vm373_vm1, %v4019_v22  ;;  %v3977_v34 = vadd.f32 %v3976_v58, %v11494_v30 }
0x1987   :  { %v9400_v53 = vpop.f32.mrf.mxu1 }
0x1988   :  { %4008 = vperm.xlu1 %9822, %v9400_v53   ;;  %3992 = vperm.xlu0 %9821, %v9400_v53  }
0x1989   :  { %v3885_v23 = vpop.f32.mrf.mxu1 }
0x198c   :  { %9823 = vset.pattern.permute.xlu1 %v13009_v7  ;;  %9827 = vset.pattern.permute.xlu0 %v13014_v3 }
0x198d   :  { %3987 = vperm.xlu1 %9823, %v3885_v23  }
0x1991   :  { %9824 = vset.pattern.permute.xlu1 %v13014_v3 }
0x1992   :  { %4004 = vperm.xlu1 %9824, %v3885_v23  }
0x1996   :  { %9825 = vset.pattern.permute.xlu1 %v13009_v7 }
0x1997   :  { %4110 = vperm.xlu1 %9825, %v11478_v18  }
0x199b   :  { %4115 = vperm.xlu1 %9825, %v11485_v63  }
0x199f   :  { %9826 = vset.pattern.permute.xlu1 %v13014_v3 }
0x1a03   :  { %v3993_v11 = vpop.permute.xlu0 %3992  ;;  %v4009_v45 = vpop.permute.xlu1 %4008 }
0x1a04   :  { %v4000_v21 = vmul.f32 %v11497_v43, %v3993_v11  ;;  %v4016_v19 = vmul.f32 %v11500_v13, %v4009_v45 }
0x1a06   :  { %v4002_v50 = vadd.f32 %v4000_v21, %v3982_v55 }
0x1a08   :  { %v11505_v31 = vadd.f32 %v4016_v19, %v4002_v50  ;;  %v3988_v6 = vpop.permute.xlu1 %3987 }
0x1a09   :  { %v3999_v29 = vmul.f32 %v11497_v43, %v3988_v6 }
0x1a0a   :  { %9408 = vmatprep.subr.mxu1 %v11505_v31 }
0x1a0b   :  { %9409 = vmatpush3.msra.mxu1 %v11505_v31  ;;  %v4001_v23 = vadd.f32 %v3999_v29, %v3977_v34 }
0x1a0d   :  { %v4005_v53 = vpop.permute.xlu1 %4004 }
0x1a0e   :  { %v4015_v22 = vmul.f32 %v11500_v13, %v4005_v53 }
0x1a10   :  { %v11512_v24 = vadd.f32 %v4015_v22, %v4001_v23 }
0x1a12   :  { %9410 = vmatprep.subr.mxu1 %v11512_v24  ;;  %v11520_v11 = vpop.permute.xlu1 %4110 }
0x1a13   :  { %9411 = vmatpush3.msra.mxu1 %v11512_v24  ;;  %13217 = vst [vmem:[#allocation153_spill] sm:$0xff] %v11520_v11 }
0x1a14   :  { %9413 = vmatmul.mubr.msk.f32.vlgmr.msra.gmra.mxu1 %vm373_vm1, %v4020_v16 }
0x1a16   :  { %v11522_v45 = vpop.permute.xlu1 %4115 }
0x1a17   :  { %13218 = vst [vmem:[#allocation154_spill] sm:$0xff] %v11522_v45 }
0x1ad4   :  { %v9414_v55 = vpop.f32.mrf.mxu1 }
0x1ad5   :  { %vm4107_vm8 = vcmp.gt.f32.partialorder %v9414_v55, 0.0  ;;  %v4119_v21 = vmul.f32 %v9414_v55, %v11522_v45 }
0x1ad6   :  { %v4097_v50 = vpop.f32.mrf.mxu1 }
0x1ad7   :  { %v11525_v19 = vsel %vm4107_vm8, %v9414_v55, %v4119_v21  ;;  %vm4106_vm9 = vcmp.gt.f32.partialorder %v4097_v50, 0.0  ;;  %v4118_v6 = vmul.f32 %v11520_v11, %v4097_v50  ;;  %v13013_v21 = vmov 2  }
0x1ad8   :  { %v4136_v58 = vmul.f32 %v11525_v19, %v11525_v19  ;;  %v4123_v53 = vsel %vm265_vm15, %v11525_v19, 0.0  ;;  %vm4562_vm8 = vcmask 15360  }
0x1ad9   :  { %v4120_v29 = vsel %vm4106_vm9, %v4097_v50, %v4118_v6  ;;  %v13011_v50 = vmov 6   ;;  %v13019_v6 = vmov 8   ;;  %vm4593_vm9 = vcmask 572416  }
0x1ada   :  { %v4122_v34 = vsel %vm265_vm15, %v4120_v29, 0.0  ;;  %v4135_v23 = vmul.f32 %v4120_v29, %v4120_v29  ;;  %v4138_v7 = vsel %vm265_vm15, %v4136_v58, 0.0 }
0x1adb   :  { %v4124_v22 = vadd.f32 %v4123_v53, %v4122_v34 }
0x1adc   :  { %v4137_v16 = vsel %vm265_vm15, %v4135_v23, 0.0 }
0x1add   :  { %4125 = vadd.xlane.f32.xlu1 %v4124_v22  ;;  %v4139_v55 = vadd.f32 %v4138_v7, %v4137_v16  ;;  %v13012_v7 = vmov 7  }
0x1adf   :  { %4140 = vadd.xlane.f32.xlu0 %v4139_v55 }
0x1aee   :  { %4156 = vperm.xlu1 %9826, %v11478_v18  }
0x1af2   :  { %9828 = vset.pattern.permute.xlu1 %v13013_v21 }
0x1af3   :  { %4173 = vperm.xlu1 %9828, %v11478_v18  }
0x1af5   :  { %4160 = vperm.xlu0 %9827, %v11485_v63  }
0x1af7   :  { %4177 = vperm.xlu1 %9828, %v11485_v63  }
0x1afb   :  { %9829 = vset.pattern.permute.xlu1 %v13011_v50 }
0x1afc   :  { %4194 = vperm.xlu1 %9829, %v11478_v18  }
0x1b00   :  { %4198 = vperm.xlu1 %9829, %v11485_v63  }
0x1b04   :  { %9830 = vset.pattern.permute.xlu1 %v13012_v7 }
0x1b05   :  { %4204 = vperm.xlu1 %9830, %v11478_v18  }
0x1b09   :  { %4208 = vperm.xlu1 %9830, %v11485_v63  }
0x1b0d   :  { %9831 = vset.pattern.permute.xlu1 %v13019_v6  ;;  %v13020_v6 = vmov 3  }
0x1b0e   :  { %4225 = vperm.xlu1 %9831, %v11478_v18   ;;  %9832 = vset.pattern.permute.xlu0 %v13020_v6 }
0x1b12   :  { %4229 = vperm.xlu1 %9831, %v11485_v63  }
0x1b16   :  { %9833 = vset.pattern.permute.xlu1 %v13020_v6 }
0x1b66   :  { %v4126_v58 = vpop.xlane.xlu1 %4125 }
0x1b67   :  { %v4127_v34 = vrot.slane %v4126_v58, 4 }
0x1b68   :  { %v4141_v53 = vpop.xlane.xlu0 %4140 }
0x1b69   :  { %v4128_v23 = vadd.f32 %v4127_v34, %v4126_v58  ;;  %v4142_v22 = vrot.slane %v4141_v53, 4 }
0x1b6b   :  { %v4143_v16 = vadd.f32 %v4142_v22, %v4141_v53  ;;  %v4129_v55 = vrot.slane %v4128_v23, 2 }
0x1b6d   :  { %v4130_v50 = vadd.f32 %v4129_v55, %v4128_v23  ;;  %v4144_v7 = vrot.slane %v4143_v16, 2 }
0x1b6f   :  { %v4131_v21 = vrot.slane %v4130_v50, 1  ;;  %v4145_v3 = vadd.f32 %v4144_v7, %v4143_v16 }
0x1b71   :  { %v4132_v11 = vadd.f32 %v4131_v21, %v4130_v50  ;;  %v4146_v45 = vrot.slane %v4145_v3, 1 }
0x1b73   :  { %9657 = vpush %v4132_v11  ;;  %v4147_v30 = vadd.f32 %v4146_v45, %v4145_v3  ;;  %v11551_v11 = vpop.permute.xlu1 %4156  ;;  %v11554_v45 = vpop.permute.xlu0 %4160 }
0x1b74   :  { %13219 = vst [vmem:[#allocation155_spill] sm:$0xff] %v11551_v11  ;;  %13220 = vst [vmem:[#allocation156_spill] sm:$0xff] %v11554_v45 }
0x1b75   :  { %9659 = vpush %v4147_v30 }
0x1b77   :  { %v11556_v50 = vpop.permute.xlu1 %4173 }
0x1b78   :  { %13221 = vst [vmem:[#allocation157_spill] sm:$0xff] %v11556_v50 }
0x1b7b   :  { %v11560_v55 = vpop.permute.xlu1 %4177 }
0x1b7c   :  { %13222 = vst [vmem:[#allocation158_spill] sm:$0xff] %v11560_v55 }
0x1ba4   :  { %s9658_s10 = spop %9657 }
0x1ba5   :  { %s4134_s12 = smul.f32 0.00086805556, %s9658_s10 }
0x1ba6   :  { %s9660_s13 = spop %9659 }
0x1ba7   :  { %s4150_s14 = smul.f32 %s4134_s12, %s4134_s12  ;;  %v4152_v21 = vstv %s4134_s12 }
0x1ba8   :  { %s4149_s15 = smul.f32 0.00086805556, %s9660_s13  ;;  %v4153_v3 = vsub.f32 %v4120_v29, %v4152_v21  ;;  %v4154_v30 = vsub.f32 %v11525_v19, %v4152_v21  ;;  %v13022_v19 = vmov 4  }
0x1baa   :  { %s4151_s16 = ssub.f32 %s4149_s15, %s4150_s14  ;;  %v4163_v34 = vmul.f32 %v11551_v11, %v4153_v3  ;;  %v4164_v53 = vmul.f32 %v11554_v45, %v4154_v30 }
0x1bac   :  { %s4165_s17 = sadd.f32 1e-08, %s4151_s16 }
0x1bae   :  { %v4166_v58 = vstv %s4165_s17 }
0x1baf   :  { %9886 = vrsqrt.f32 %v4166_v58 }
0x1bbc   :  { %v9887_v7 = vpop.eup %9886 }
0x1bbd   :  { %9661 = vpush %v9887_v7  ;;  %v11572_v7 = vpop.permute.xlu1 %4194 }
0x1bbe   :  { %13223 = vst [vmem:[#allocation159_spill] sm:$0xff] %v11572_v7 }
0x1bc1   :  { %v11574_v21 = vpop.permute.xlu1 %4198 }
0x1bc2   :  { %13224 = vst [vmem:[#allocation160_spill] sm:$0xff] %v11574_v21 }
0x1bc5   :  { %v11576_v3 = vpop.permute.xlu1 %4204 }
0x1bc6   :  { %13225 = vst [vmem:[#allocation161_spill] sm:$0xff] %v11576_v3 }
0x1bc9   :  { %v11578_v30 = vpop.permute.xlu1 %4208 }
0x1bca   :  { %13226 = vst [vmem:[#allocation162_spill] sm:$0xff] %v11578_v30 }
0x1bee   :  { %s9662_s18 = spop %9661 }
0x1bef   :  { %v4169_v23 = vstv %s9662_s18 }
0x1bf0   :  { %v4170_v22 = vmul.f32 %v4169_v23, %v4163_v34  ;;  %v4171_v16 = vmul.f32 %v4169_v23, %v4164_v53  ;;  %v11580_v34 = vpop.permute.xlu1 %4225 }
0x1bf1   :  { %13227 = vst [vmem:[#allocation163_spill] sm:$0xff] %v11580_v34 }
0x1bf2   :  { %v4180_v58 = vadd.f32 %v11556_v50, %v4170_v22  ;;  %v4181_v29 = vadd.f32 %v11560_v55, %v4171_v16 }
0x1bf4   :  { %4184 = vrot.lane.b32.xlu0 %v4180_v58, %s10114_s19  ;;  %4186 = vrot.lane.b32.xlu1 %v4181_v29, %s10114_s19  ;;  %v11582_v53 = vpop.permute.xlu1 %4229  ;;  %v4211_v43 = vmul.f32 %v11576_v3, %v4180_v58  ;;  %v4212_v40 = vmul.f32 %v11578_v30, %v4181_v29 }
0x1bf5   :  { %13228 = vst [vmem:[#allocation164_spill] sm:$0xff] %v11582_v53 }
0x1bf8   :  { %4215 = vrot.lane.b32.xlu0 %v4180_v58, %s10115_s20  ;;  %4217 = vrot.lane.b32.xlu1 %v4181_v29, %s10115_s20 }
0x1bfc   :  { %4239 = vperm.xlu0 %9832, %v11478_v18   ;;  %4243 = vperm.xlu1 %9833, %v11485_v63  }
0x1c00   :  { %9834 = vset.pattern.permute.xlu0 %v13022_v19  ;;  %9835 = vset.pattern.permute.xlu1 %v13022_v19 }
0x1c66   :  { %v4185_v23 = vpop.permute.xlu0 %4184  ;;  %v4187_v22 = vpop.permute.xlu1 %4186 }
0x1c67   :  { %v4191_v19 = vsel %vm4190_vm10, 0.0, %v4185_v23  ;;  %v4192_v55 = vsel %vm4190_vm10, 0.0, %v4187_v22 }
0x1c68   :  { %v4201_v11 = vmul.f32 %v11572_v7, %v4191_v19  ;;  %v4202_v13 = vmul.f32 %v11574_v21, %v4192_v55  ;;  %v13232_v19 = vmov 0  }
0x1c6a   :  { %v4216_v16 = vpop.permute.xlu0 %4215  ;;  %v4218_v6 = vpop.permute.xlu1 %4217  ;;  %v4213_v10 = vadd.f32 %v4211_v43, %v4201_v11  ;;  %v4214_v23 = vadd.f32 %v4212_v40, %v4202_v13  ;;  %v13038_v11 = vmov 5  }
0x1c6b   :  { %v4222_v50 = vsel %vm4221_vm11, %v4216_v16, 0.0  ;;  %v4223_v45 = vsel %vm4221_vm11, %v4218_v6, 0.0 }
0x1c6c   :  { %v4232_v54 = vmul.f32 %v11580_v34, %v4222_v50  ;;  %v4233_v0 = vmul.f32 %v11582_v53, %v4223_v45 }
0x1c6e   :  { %v4234_v59 = vadd.f32 %v4232_v54, %v4213_v10  ;;  %v4235_v22 = vadd.f32 %v4233_v0, %v4214_v23 }
0x1c70   :  { %vm4236_vm4 = vcmp.gt.f32.partialorder %v4234_v59, 0.0  ;;  %vm4237_vm5 = vcmp.gt.f32.partialorder %v4235_v22, 0.0 }
0x1c77   :  { %v11594_v27 = vpop.permute.xlu0 %4239  ;;  %v11596_v16 = vpop.permute.xlu1 %4243 }
0x1c78   :  { %13229 = vst [vmem:[#allocation165_spill] sm:$0xff] %v11594_v27  ;;  %13230 = vst [vmem:[#allocation166_spill] sm:$0xff] %v11596_v16  ;;  %v4246_v6 = vmul.f32 %v11594_v27, %v4234_v59  ;;  %v4247_v55 = vmul.f32 %v11596_v16, %v4235_v22 }
0x1c7a   :  { %v4248_v58 = vsel %vm4236_vm4, %v4234_v59, %v4246_v6  ;;  %v4249_v29 = vsel %vm4237_vm5, %v4235_v22, %v4247_v55  ;;  %v13231_v59 = vmov 1  }
0x1c7b   :  { %v4250_v50 = vsel %vm265_vm15, %v4248_v58, 0.0  ;;  %v4251_v45 = vsel %vm265_vm15, %v4249_v29, 0.0  ;;  %v4263_v43 = vmul.f32 %v4248_v58, %v4248_v58  ;;  %v4264_v40 = vmul.f32 %v4249_v29, %v4249_v29 }
0x1c7c   :  { %v4252_v10 = vadd.f32 %v4251_v45, %v4250_v50 }
0x1c7d   :  { %v4265_v0 = vsel %vm265_vm15, %v4263_v43, 0.0  ;;  %v4266_v54 = vsel %vm265_vm15, %v4264_v40, 0.0 }
0x1c7e   :  { %4253 = vadd.xlane.f32.xlu1 %v4252_v10  ;;  %v4267_v13 = vadd.f32 %v4266_v54, %v4265_v0 }
0x1c80   :  { %4268 = vadd.xlane.f32.xlu0 %v4267_v13 }
0x1c8f   :  { %4284 = vperm.xlu1 %9835, %v11478_v18  }
0x1c93   :  { %9836 = vset.pattern.permute.xlu1 %v13038_v11 }
0x1c94   :  { %4305 = vperm.xlu1 %9836, %v11485_v63  }
0x1c96   :  { %4288 = vperm.xlu0 %9834, %v11485_v63  }
0x1c98   :  { %4301 = vperm.xlu1 %9836, %v11478_v18   ;;  %v4021_v18 = vld [vmem:[%s12868_s2 + $0x60] sm:$0xff] }
0x1c99   :  { %9419 = vmatprep.mubr.msk.f32.mxu0 %vm373_vm1, %v4021_v18 }
0x1c9a   :  { %9839 = vset.pattern.permute.xlu0 %v13231_v59 }
0x1c9c   :  { %9837 = vset.pattern.permute.xlu1 %v13232_v19 }
0x1d07   :  { %v4254_v23 = vpop.xlane.xlu1 %4253 }
0x1d08   :  { %v4255_v22 = vrot.slane %v4254_v23, 4 }
0x1d09   :  { %v4269_v6 = vpop.xlane.xlu0 %4268 }
0x1d0a   :  { %v4256_v55 = vadd.f32 %v4255_v22, %v4254_v23  ;;  %v4270_v50 = vrot.slane %v4269_v6, 4 }
0x1d0c   :  { %v4271_v45 = vadd.f32 %v4270_v50, %v4269_v6  ;;  %v4257_v43 = vrot.slane %v4256_v55, 2 }
0x1d0e   :  { %v4258_v40 = vadd.f32 %v4257_v43, %v4256_v55  ;;  %v4272_v10 = vrot.slane %v4271_v45, 2 }
0x1d10   :  { %v4259_v0 = vrot.slane %v4258_v40, 1  ;;  %v4273_v54 = vadd.f32 %v4272_v10, %v4271_v45 }
0x1d11   :  { %v11617_v45 = vpop.permute.xlu0 %4288 }
0x1d12   :  { %v4260_v13 = vadd.f32 %v4259_v0, %v4258_v40  ;;  %v4274_v11 = vrot.slane %v4273_v54, 1  ;;  %13234 = vst [vmem:[#allocation168_spill] sm:$0xff] %v11617_v45 }
0x1d14   :  { %9663 = vpush %v4260_v13  ;;  %v4275_v63 = vadd.f32 %v4274_v11, %v4273_v54  ;;  %v11615_v11 = vpop.permute.xlu1 %4284 }
0x1d15   :  { %13233 = vst [vmem:[#allocation167_spill] sm:$0xff] %v11615_v11 }
0x1d16   :  { %9665 = vpush %v4275_v63 }
0x1d18   :  { %v11619_v43 = vpop.permute.xlu1 %4305 }
0x1d19   :  { %13235 = vst [vmem:[#allocation169_spill] sm:$0xff] %v11619_v43 }
0x1d1c   :  { %v11624_v18 = vpop.permute.xlu1 %4301 }
0x1d1d   :  { %13236 = vst [vmem:[#allocation170_spill] sm:$0xff] %v11624_v18 }
0x1d45   :  { %s9664_s23 = spop %9663 }
0x1d46   :  { %s4262_s24 = smul.f32 0.00086805556, %s9664_s23 }
0x1d47   :  { %s9666_s25 = spop %9665 }
0x1d48   :  { %s4278_s26 = smul.f32 %s4262_s24, %s4262_s24  ;;  %v4280_v6 = vstv %s4262_s24 }
0x1d49   :  { %s4277_s27 = smul.f32 0.00086805556, %s9666_s25  ;;  %v4281_v55 = vsub.f32 %v4248_v58, %v4280_v6  ;;  %v4282_v50 = vsub.f32 %v4249_v29, %v4280_v6  ;;  %v4022_v58 = vld [vmem:[%s12868_s2 + $0x68] sm:$0xff]  ;;  %v4391_v29 = vld [vmem:[%s12868_s2 + $0x80] sm:$0xff] }
0x1d4a   :  { %9426 = vmatprep.mubr.msk.f32.mxu1 %vm373_vm1, %v4391_v29  ;;  %v11644_v6 = vld [vmem:[%s12868_s2 + $0xa8] sm:$0xff] }
0x1d4b   :  { %s4279_s28 = ssub.f32 %s4277_s27, %s4278_s26  ;;  %v4291_v40 = vmul.f32 %v11615_v11, %v4281_v55  ;;  %v4292_v10 = vmul.f32 %v11617_v45, %v4282_v50  ;;  %s10118_s26 = smov 2  }
0x1d4c   :  { %s10119_s27 = smov 126  }
0x1d4d   :  { %s4293_s29 = sadd.f32 1e-08, %s4279_s28 }
0x1d4f   :  { %v4294_v23 = vstv %s4293_s29 }
0x1d50   :  { %9888 = vrsqrt.f32 %v4294_v23 }
0x1d5d   :  { %v9889_v22 = vpop.eup %9888 }
0x1d5e   :  { %9667 = vpush %v9889_v22  ;;  %v11638_v22 = vld [vmem:[%s12868_s2 + $0xa0] sm:$0xff] }
0x1d5f   :  { %4482 = vperm.xlu1 %9837, %v11638_v22  }
0x1d63   :  { %4487 = vperm.xlu1 %9837, %v11644_v6  }
0x1d67   :  { %9838 = vset.pattern.permute.xlu1 %v13231_v59 }
0x1d8f   :  { %s9668_s3 = spop %9667 }
0x1d90   :  { %v4297_v0 = vstv %s9668_s3 }
0x1d91   :  { %v4298_v54 = vmul.f32 %v4297_v0, %v4291_v40  ;;  %v4299_v13 = vmul.f32 %v4297_v0, %v4292_v10  ;;  %v4392_v0 = vld [vmem:[%s12868_s2 + $0x88] sm:$0xff] }
0x1d93   :  { %v4309_v63 = vadd.f32 %v11619_v43, %v4299_v13  ;;  %v4308_v23 = vadd.f32 %v11624_v18, %v4298_v54 }
0x1d95   :  { %9415 = vmatprep.subr.mxu0 %v4309_v63 }
0x1d96   :  { %9416 = vmatpush3.msra.mxu0 %v4309_v63 }
0x1d97   :  { %9417 = vmatprep.subr.mxu0 %v4308_v23 }
0x1d98   :  { %9418 = vmatpush3.msra.mxu0 %v4308_v23 }
0x1d99   :  { %9420 = vmatmul.mubr.msk.f32.vlgmr.msra.gmra.mxu0 %vm373_vm1, %v4022_v58 }
0x1e59   :  { %v9421_v55 = vpop.f32.mrf.mxu0 }
0x1e5a   :  { %v11649_v50 = vadd.f32 %v9421_v55, %v11505_v31  ;;  %v11662_v31 = vpop.permute.xlu1 %4482 }
0x1e5b   :  { %v4382_v40 = vpop.f32.mrf.mxu0  ;;  %13237 = vst [vmem:[#allocation171_spill] sm:$0xff] %v11662_v31 }
0x1e5c   :  { %v11652_v10 = vadd.f32 %v4382_v40, %v11512_v24  ;;  %9422 = vmatprep.subr.mxu1 %v11649_v50 }
0x1e5d   :  { %9423 = vmatpush3.msra.mxu1 %v11649_v50 }
0x1e5e   :  { %9424 = vmatprep.subr.mxu1 %v11652_v10  ;;  %v11664_v54 = vpop.permute.xlu1 %4487 }
0x1e5f   :  { %9425 = vmatpush3.msra.mxu1 %v11652_v10  ;;  %13238 = vst [vmem:[#allocation172_spill] sm:$0xff] %v11664_v54 }
0x1e60   :  { %9427 = vmatmul.mubr.msk.f32.vlgmr.msra.gmra.mxu1 %vm373_vm1, %v4392_v0 }
0x1f20   :  { %v9428_v24 = vpop.f32.mrf.mxu1 }
0x1f21   :  { %vm4479_vm6 = vcmp.gt.f32.partialorder %v9428_v24, 0.0  ;;  %v4491_v13 = vmul.f32 %v9428_v24, %v11664_v54 }
0x1f22   :  { %v4469_v63 = vpop.f32.mrf.mxu1 }
0x1f23   :  { %v4493_v23 = vsel %vm4479_vm6, %v9428_v24, %v4491_v13  ;;  %vm4478_vm7 = vcmp.gt.f32.partialorder %v4469_v63, 0.0  ;;  %v4490_v58 = vmul.f32 %v11662_v31, %v4469_v63  ;;  %v13239_v24 = vmov 2  }
0x1f24   :  { %v4508_v29 = vmul.f32 %v4493_v23, %v4493_v23  ;;  %v4495_v18 = vsel %vm265_vm15, %v4493_v23, 0.0  ;;  %v13240_v13 = vmov 3   ;;  %vm13066_vm6 = vmmov 0  }
0x1f25   :  { %v4492_v55 = vsel %vm4478_vm7, %v4469_v63, %v4490_v58 }
0x1f26   :  { %v4494_v40 = vsel %vm265_vm15, %v4492_v55, 0.0  ;;  %v4507_v0 = vmul.f32 %v4492_v55, %v4492_v55  ;;  %v4510_v11 = vsel %vm265_vm15, %v4508_v29, 0.0 }
0x1f27   :  { %v4496_v43 = vadd.f32 %v4495_v18, %v4494_v40  ;;  %v13241_v18 = vmov 6  }
0x1f28   :  { %v4509_v45 = vsel %vm265_vm15, %v4507_v0, 0.0 }
0x1f29   :  { %4497 = vadd.xlane.f32.xlu1 %v4496_v43  ;;  %v4511_v16 = vadd.f32 %v4510_v11, %v4509_v45  ;;  %v13242_v11 = vmov 7  }
0x1f2b   :  { %4512 = vadd.xlane.f32.xlu0 %v4511_v16  ;;  %v13243_v16 = vmov 8  }
0x1f3a   :  { %4528 = vperm.xlu1 %9838, %v11638_v22  }
0x1f3e   :  { %9840 = vset.pattern.permute.xlu1 %v13239_v24 }
0x1f3f   :  { %4545 = vperm.xlu1 %9840, %v11638_v22  }
0x1f41   :  { %4532 = vperm.xlu0 %9839, %v11644_v6  }
0x1f43   :  { %4549 = vperm.xlu1 %9840, %v11644_v6  }
0x1f45   :  { %9844 = vset.pattern.permute.xlu0 %v13240_v13 }
0x1f47   :  { %9841 = vset.pattern.permute.xlu1 %v13241_v18 }
0x1f48   :  { %4566 = vperm.xlu1 %9841, %v11638_v22  }
0x1f4c   :  { %4570 = vperm.xlu1 %9841, %v11644_v6  }
0x1f50   :  { %9842 = vset.pattern.permute.xlu1 %v13242_v11 }
0x1f51   :  { %4576 = vperm.xlu1 %9842, %v11638_v22  }
0x1f55   :  { %4580 = vperm.xlu1 %9842, %v11644_v6  }
0x1f59   :  { %9843 = vset.pattern.permute.xlu1 %v13243_v16 }
0x1f5a   :  { %4597 = vperm.xlu1 %9843, %v11638_v22  }
0x1f5e   :  { %4601 = vperm.xlu1 %9843, %v11644_v6  }
0x1f62   :  { %9845 = vset.pattern.permute.xlu1 %v13240_v13 }
0x1fb2   :  { %v4498_v45 = vpop.xlane.xlu1 %4497 }
0x1fb3   :  { %v4499_v43 = vrot.slane %v4498_v45, 4 }
0x1fb4   :  { %v4513_v63 = vpop.xlane.xlu0 %4512 }
0x1fb5   :  { %v4500_v58 = vadd.f32 %v4499_v43, %v4498_v45  ;;  %v4514_v29 = vrot.slane %v4513_v63, 4 }
0x1fb7   :  { %v4515_v40 = vadd.f32 %v4514_v29, %v4513_v63  ;;  %v4501_v0 = vrot.slane %v4500_v58, 2  ;;  %v11688_v63 = vpop.permute.xlu1 %4528 }
0x1fb8   :  { %13244 = vst [vmem:[#allocation173_spill] sm:$0xff] %v11688_v63 }
0x1fb9   :  { %v4502_v24 = vadd.f32 %v4501_v0, %v4500_v58  ;;  %v4516_v18 = vrot.slane %v4515_v40, 2 }
0x1fbb   :  { %v4503_v11 = vrot.slane %v4502_v24, 1  ;;  %v4517_v31 = vadd.f32 %v4516_v18, %v4515_v40 }
0x1fbc   :  { %v11690_v40 = vpop.permute.xlu0 %4532 }
0x1fbd   :  { %v4504_v54 = vadd.f32 %v4503_v11, %v4502_v24  ;;  %v4518_v53 = vrot.slane %v4517_v31, 1  ;;  %13245 = vst [vmem:[#allocation174_spill] sm:$0xff] %v11690_v40 }
0x1fbf   :  { %9669 = vpush %v4504_v54  ;;  %v4519_v16 = vadd.f32 %v4518_v53, %v4517_v31  ;;  %v11692_v53 = vpop.permute.xlu1 %4545 }
0x1fc0   :  { %13246 = vst [vmem:[#allocation175_spill] sm:$0xff] %v11692_v53 }
0x1fc1   :  { %9671 = vpush %v4519_v16 }
0x1fc3   :  { %v11696_v11 = vpop.permute.xlu1 %4549 }
0x1fc4   :  { %13247 = vst [vmem:[#allocation176_spill] sm:$0xff] %v11696_v11 }
0x1ff0   :  { %s9670_s16 = spop %9669 }
0x1ff1   :  { %s4506_s17 = smul.f32 0.00086805556, %s9670_s16 }
0x1ff2   :  { %s9672_s18 = spop %9671 }
0x1ff3   :  { %s4522_s21 = smul.f32 %s4506_s17, %s4506_s17  ;;  %v4524_v43 = vstv %s4506_s17 }
0x1ff4   :  { %s4521_s22 = smul.f32 0.00086805556, %s9672_s18  ;;  %v4525_v58 = vsub.f32 %v4492_v55, %v4524_v43  ;;  %v4526_v29 = vsub.f32 %v4493_v23, %v4524_v43  ;;  %v13248_v23 = vmov 4   ;;  %v11708_v55 = vpop.permute.xlu1 %4566 }
0x1ff6   :  { %s4523_s23 = ssub.f32 %s4521_s22, %s4522_s21  ;;  %v4535_v31 = vmul.f32 %v11688_v63, %v4525_v58  ;;  %v4536_v54 = vmul.f32 %v11690_v40, %v4526_v29 }
0x1ff8   :  { %s4537_s24 = sadd.f32 1e-08, %s4523_s23 }
0x1ffa   :  { %v4538_v13 = vstv %s4537_s24 }
0x1ffb   :  { %9890 = vrsqrt.f32 %v4538_v13 }
0x2008   :  { %v9891_v45 = vpop.eup %9890 }
0x2009   :  { %9673 = vpush %v9891_v45  ;;  %v11710_v45 = vpop.permute.xlu1 %4570 }
0x200d   :  { %v11712_v43 = vpop.permute.xlu1 %4576 }
0x2011   :  { %v11714_v58 = vpop.permute.xlu1 %4580 }
0x2015   :  { %v11716_v29 = vpop.permute.xlu1 %4597 }
0x203a   :  { %s9674_s25 = spop %9673 }
0x203b   :  { %v4541_v0 = vstv %s9674_s25 }
0x203c   :  { %v4542_v24 = vmul.f32 %v4541_v0, %v4535_v31  ;;  %v4543_v18 = vmul.f32 %v4541_v0, %v4536_v54  ;;  %v11718_v31 = vpop.permute.xlu1 %4601 }
0x203d   :  { %13249 = vst [vmem:[#allocation177_spill] sm:$0xff] %v11718_v31 }
0x203e   :  { %v4552_v16 = vadd.f32 %v11692_v53, %v4542_v24  ;;  %v4553_v13 = vadd.f32 %v11696_v11, %v4543_v18 }
0x2040   :  { %4556 = vrot.lane.b32.xlu0 %v4552_v16, %s10118_s26  ;;  %4558 = vrot.lane.b32.xlu1 %v4553_v13, %s10118_s26  ;;  %v4583_v30 = vmul.f32 %v11712_v43, %v4552_v16  ;;  %v4584_v34 = vmul.f32 %v11714_v58, %v4553_v13 }
0x2044   :  { %4587 = vrot.lane.b32.xlu0 %v4552_v16, %s10119_s27  ;;  %4589 = vrot.lane.b32.xlu1 %v4553_v13, %s10119_s27 }
0x2048   :  { %4611 = vperm.xlu0 %9844, %v11638_v22   ;;  %4615 = vperm.xlu1 %9845, %v11644_v6  }
0x204c   :  { %9846 = vset.pattern.permute.xlu0 %v13248_v23  ;;  %9847 = vset.pattern.permute.xlu1 %v13248_v23 }
0x20b2   :  { %v4557_v54 = vpop.permute.xlu0 %4556  ;;  %v4559_v0 = vpop.permute.xlu1 %4558 }
0x20b3   :  { %v4563_v23 = vsel %vm4562_vm8, 0.0, %v4557_v54  ;;  %v4564_v11 = vsel %vm4562_vm8, 0.0, %v4559_v0 }
0x20b4   :  { %v4573_v63 = vmul.f32 %v11708_v55, %v4563_v23  ;;  %v4574_v27 = vmul.f32 %v11710_v45, %v4564_v11 }
0x20b6   :  { %v4588_v24 = vpop.permute.xlu0 %4587  ;;  %v4590_v18 = vpop.permute.xlu1 %4589  ;;  %v4585_v7 = vadd.f32 %v4583_v30, %v4573_v63  ;;  %v4586_v54 = vadd.f32 %v4584_v34, %v4574_v27  ;;  %v13251_v63 = vmov 5  }
0x20b7   :  { %v4594_v53 = vsel %vm4593_vm9, %v4588_v24, 0.0  ;;  %v4595_v40 = vsel %vm4593_vm9, %v4590_v18, 0.0 }
0x20b8   :  { %v4604_v21 = vmul.f32 %v11716_v29, %v4594_v53  ;;  %v4605_v3 = vmul.f32 %v11718_v31, %v4595_v40 }
0x20ba   :  { %v4606_v20 = vadd.f32 %v4604_v21, %v4585_v7  ;;  %v4607_v0 = vadd.f32 %v4605_v3, %v4586_v54 }
0x20bc   :  { %vm4609_vm4 = vcmp.gt.f32.partialorder %v4607_v0, 0.0  ;;  %vm4608_vm5 = vcmp.gt.f32.partialorder %v4606_v20, 0.0 }
0x20c3   :  { %v11730_v42 = vpop.permute.xlu0 %4611  ;;  %v11732_v24 = vpop.permute.xlu1 %4615 }
0x20c4   :  { %13250 = vst [vmem:[#allocation178_spill] sm:$0xff] %v11732_v24  ;;  %v4618_v18 = vmul.f32 %v11730_v42, %v4606_v20  ;;  %v4619_v11 = vmul.f32 %v11732_v24, %v4607_v0 }
0x20c6   :  { %v4620_v16 = vsel %vm4608_vm5, %v4606_v20, %v4618_v18  ;;  %v4621_v13 = vsel %vm4609_vm4, %v4607_v0, %v4619_v11 }
0x20c7   :  { %v4622_v53 = vsel %vm265_vm15, %v4620_v16, 0.0  ;;  %v4623_v40 = vsel %vm265_vm15, %v4621_v13, 0.0  ;;  %v4635_v30 = vmul.f32 %v4620_v16, %v4620_v16  ;;  %v4636_v27 = vmul.f32 %v4621_v13, %v4621_v13 }
0x20c8   :  { %v4624_v7 = vadd.f32 %v4623_v40, %v4622_v53 }
0x20c9   :  { %v4637_v21 = vsel %vm265_vm15, %v4635_v30, 0.0  ;;  %v4638_v3 = vsel %vm265_vm15, %v4636_v27, 0.0 }
0x20ca   :  { %4625 = vadd.xlane.f32.xlu1 %v4624_v7  ;;  %v4639_v34 = vadd.f32 %v4638_v3, %v4637_v21 }
0x20cc   :  { %4640 = vadd.xlane.f32.xlu0 %v4639_v34 }
0x20db   :  { %4656 = vperm.xlu1 %9847, %v11638_v22  }
0x20df   :  { %9848 = vset.pattern.permute.xlu1 %v13251_v63 }
0x20e0   :  { %4677 = vperm.xlu1 %9848, %v11644_v6  }
0x20e2   :  { %4660 = vperm.xlu0 %9846, %v11644_v6  }
0x20e4   :  { %4673 = vperm.xlu1 %9848, %v11638_v22   ;;  %v4393_v22 = vld [vmem:[%s12868_s2 + $0x90] sm:$0xff] }
0x20e5   :  { %9433 = vmatprep.mubr.msk.f32.mxu0 %vm373_vm1, %v4393_v22  ;;  %v11775_v22 = vld [vmem:[%s12867_s1 + $0x2] sm:$0x3] }
0x20e6   :  { %9849 = vset.pattern.permute.xlu0 %v13232_v19 }
0x20e8   :  { %9850 = vset.pattern.permute.xlu1 %v13231_v59 }
0x2153   :  { %v4626_v20 = vpop.xlane.xlu1 %4625 }
0x2154   :  { %v4627_v23 = vrot.slane %v4626_v20, 4 }
0x2155   :  { %v4641_v54 = vpop.xlane.xlu0 %4640 }
0x2156   :  { %v4628_v0 = vadd.f32 %v4627_v23, %v4626_v20  ;;  %v4642_v18 = vrot.slane %v4641_v54, 4 }
0x2157   :  { %v11751_v23 = vpop.permute.xlu1 %4656 }
0x2158   :  { %v4643_v11 = vadd.f32 %v4642_v18, %v4641_v54  ;;  %v4629_v53 = vrot.slane %v4628_v0, 2  ;;  %13252 = vst [vmem:[#allocation179_spill] sm:$0xff] %v11751_v23 }
0x215a   :  { %v4644_v40 = vrot.slane %v4643_v11, 2  ;;  %v4630_v30 = vadd.f32 %v4629_v53, %v4628_v0 }
0x215c   :  { %v4631_v27 = vrot.slane %v4630_v30, 1  ;;  %v4645_v7 = vadd.f32 %v4644_v40, %v4643_v11  ;;  %v11755_v11 = vpop.permute.xlu1 %4677 }
0x215d   :  { %v11753_v18 = vpop.permute.xlu0 %4660  ;;  %13254 = vst [vmem:[#allocation181_spill] sm:$0xff] %v11755_v11 }
0x215e   :  { %v4632_v21 = vadd.f32 %v4631_v27, %v4630_v30  ;;  %v4646_v3 = vrot.slane %v4645_v7, 1  ;;  %13253 = vst [vmem:[#allocation180_spill] sm:$0xff] %v11753_v18 }
0x2160   :  { %9675 = vpush %v4632_v21  ;;  %v4647_v6 = vadd.f32 %v4646_v3, %v4645_v7  ;;  %v11760_v3 = vpop.permute.xlu1 %4673 }
0x2161   :  { %13255 = vst [vmem:[#allocation182_spill] sm:$0xff] %v11760_v3 }
0x2162   :  { %9677 = vpush %v4647_v6 }
0x2191   :  { %s9676_s3 = spop %9675 }
0x2192   :  { %s4634_s30 = smul.f32 0.00086805556, %s9676_s3 }
0x2193   :  { %s9678_s7 = spop %9677 }
0x2194   :  { %s4650_s8 = smul.f32 %s4634_s30, %s4634_s30  ;;  %v4652_v20 = vstv %s4634_s30 }
0x2195   :  { %s4649_s4 = smul.f32 0.00086805556, %s9678_s7  ;;  %v4653_v54 = vsub.f32 %v4620_v16, %v4652_v20  ;;  %v4654_v0 = vsub.f32 %v4621_v13, %v4652_v20  ;;  %v4394_v16 = vld [vmem:[%s12868_s2 + $0x98] sm:$0xff]  ;;  %v46_v13 = vld [vmem:[%s12868_s2 + $0xb0] sm:$0xff] }
0x2196   :  { %9440 = vmatprep.mubr.msk.f32.mxu1 %vm373_vm1, %v46_v13 }
0x2197   :  { %s4651_s9 = ssub.f32 %s4649_s4, %s4650_s8  ;;  %v4664_v53 = vmul.f32 %v11753_v18, %v4654_v0  ;;  %v4663_v40 = vmul.f32 %v11751_v23, %v4653_v54 }
0x2199   :  { %s4665_s10 = sadd.f32 1e-08, %s4651_s9 }
0x219b   :  { %v4666_v34 = vstv %s4665_s10 }
0x219c   :  { %9892 = vrsqrt.f32 %v4666_v34  ;;  %v11778_v34 = vmax.f32 %v11775_v22, 0.0 }
0x219e   :  { %v5422_v20 = vmul.f32 %v11778_v34, %v11778_v34 }
0x21a0   :  { %v5423_v54 = vsel %vm329_vm0, %v5422_v20, 0.0 }
0x21a1   :  { %5424 = vadd.xlane.f32.xlu0 %v5423_v54 }
0x21a9   :  { %v9893_v63 = vpop.eup %9892 }
0x21aa   :  { %9679 = vpush %v9893_v63  ;;  %v5411_v63 = vsel %vm329_vm0, %v11778_v34, 0.0 }
0x21ab   :  { %5412 = vadd.xlane.f32.xlu1 %v5411_v63 }
0x21db   :  { %s9680_s12 = spop %9679 }
0x21dc   :  { %v4669_v30 = vstv %s9680_s12 }
0x21dd   :  { %v4670_v27 = vmul.f32 %v4669_v30, %v4663_v40  ;;  %v4671_v7 = vmul.f32 %v4669_v30, %v4664_v53 }
0x21df   :  { %v4681_v21 = vadd.f32 %v11755_v11, %v4671_v7  ;;  %v4680_v6 = vadd.f32 %v11760_v3, %v4670_v27  ;;  %v47_v27 = vld [vmem:[%s12868_s2 + $0xb8] sm:$0xff] }
0x21e1   :  { %9429 = vmatprep.subr.mxu0 %v4681_v21 }
0x21e2   :  { %9430 = vmatpush3.msra.mxu0 %v4681_v21 }
0x21e3   :  { %9431 = vmatprep.subr.mxu0 %v4680_v6 }
0x21e4   :  { %9432 = vmatpush3.msra.mxu0 %v4680_v6 }
0x21e5   :  { %9434 = vmatmul.mubr.msk.f32.vlgmr.msra.gmra.mxu0 %vm373_vm1, %v4394_v16  ;;  %9443 = vmatprep.subr.mxu0 %v13128_v9 }
0x21e6   :  { %9447 = vmatprep.mubr.msk.f32.mxu0 %vm13066_vm6, %v13128_v9 }
0x222a   :  { %v5425_v21 = vpop.xlane.xlu0 %5424 }
0x222b   :  { %v5426_v16 = vrot.slane %v5425_v21, 4 }
0x222d   :  { %v5427_v13 = vadd.f32 %v5426_v16, %v5425_v21  ;;  %v69_v21 = vld [vmem:[%s12871_s5 + $0x98] sm:$0xff]  ;;  %v66_v16 = vld [vmem:[%s12871_s5 + $0x80] sm:$0xff] }
0x222f   :  { %v5428_v63 = vrot.slane %v5427_v13, 2 }
0x2234   :  { %v5413_v7 = vpop.xlane.xlu1 %5412 }
0x2235   :  { %v5414_v6 = vrot.slane %v5413_v7, 4 }
0x22a5   :  { %v9435_v0 = vpop.f32.mrf.mxu0 }
0x22a6   :  { %v4760_v53 = vadd.f32 %v9435_v0, %v11649_v50  ;;  %v5415_v50 = vadd.f32 %v5414_v6, %v5413_v7  ;;  %v5429_v0 = vadd.f32 %v5428_v63, %v5427_v13  ;;  %v72_v7 = vld [vmem:[%s12871_s5 + $0xb0] sm:$0xff]  ;;  %v63_v13 = vld [vmem:[%s12871_s5 + $0x68] sm:$0xff]  ;;  %v62_v63 = vld [vmem:[%s12871_s5 + $0x60] sm:$0xff] }
0x22a7   :  { %v4754_v40 = vpop.f32.mrf.mxu0  ;;  %v68_v6 = vld [vmem:[%s12871_s5 + $0x90] sm:$0xff] }
0x22a8   :  { %v4755_v30 = vadd.f32 %v4754_v40, %v11652_v10  ;;  %9436 = vmatprep.subr.mxu1 %v4760_v53  ;;  %v5416_v10 = vrot.slane %v5415_v50, 2  ;;  %v5430_v40 = vrot.slane %v5429_v0, 1 }
0x22a9   :  { %9437 = vmatpush3.msra.mxu1 %v4760_v53 }
0x22aa   :  { %9438 = vmatprep.subr.mxu1 %v4755_v30  ;;  %v5417_v20 = vadd.f32 %v5416_v10, %v5415_v50  ;;  %v5431_v3 = vadd.f32 %v5430_v40, %v5429_v0  ;;  %v65_v50 = vld [vmem:[%s12871_s5 + $0x78] sm:$0xff]  ;;  %v60_v10 = vld [vmem:[%s12871_s5 + $0x50] sm:$0xff] }
0x22ab   :  { %9439 = vmatpush3.msra.mxu1 %v4755_v30  ;;  %v75_v30 = vld [vmem:[%s12871_s5 + $0xc8] sm:$0xff]  ;;  %v56_v0 = vld [vmem:[%s12871_s5 + $0x30] sm:$0xff]  ;;  %v53_v40 = vld [vmem:[%s12871_s5 + $0x18] sm:$0xff] }
0x22ac   :  { %9441 = vmatmul.mubr.msk.f32.vlgmr.msra.gmra.mxu1 %vm373_vm1, %v47_v27  ;;  %v5418_v54 = vrot.slane %v5417_v20, 1  ;;  %v74_v27 = vld [vmem:[%s12871_s5 + $0xc0] sm:$0xff]  ;;  %4938 = vmatprep.subr.mxu1 %v75_v30  ;;  %v51_v30 = vld [vmem:[%s12871_s5 + $0x8] sm:$0xff] }
0x22ad   :  { %4988 = vmatprep.mubr.f32.mxu1 %v13128_v9  ;;  %4939 = vmatpush1.msra.mxu1 %v74_v27 }
0x22ae   :  { %v5419_v53 = vadd.f32 %v5418_v54, %v5417_v20  ;;  %4940 = vmatprep.subr.mxu1 %v72_v7  ;;  %v59_v20 = vld [vmem:[%s12871_s5 + $0x48] sm:$0xff]  ;;  %v57_v54 = vld [vmem:[%s12871_s5 + $0x38] sm:$0xff] }
0x22b0   :  { %9681 = vpush %v5419_v53  ;;  %v54_v53 = vld [vmem:[%s12871_s5 + $0x20] sm:$0xff] }
0x22b1   :  { %9683 = vpush %v5431_v3  ;;  %v71_v3 = vld [vmem:[%s12871_s5 + $0xa8] sm:$0xff] }
0x22b2   :  { %4941 = vmatpush1.msra.mxu1 %v71_v3 }
0x22b3   :  { %4942 = vmatprep.subr.mxu1 %v69_v21 }
0x22b4   :  { %4943 = vmatpush1.msra.mxu1 %v68_v6 }
0x22b5   :  { %4944 = vmatprep.subr.mxu1 %v66_v16 }
0x22b6   :  { %4945 = vmatpush1.msra.mxu1 %v65_v50 }
0x22b7   :  { %4946 = vmatprep.subr.mxu1 %v63_v13 }
0x22b8   :  { %4947 = vmatpush1.msra.mxu1 %v62_v63  ;;  %v48_v63 = vld [vmem:[%s12868_s2 + $0xc0] sm:$0xff] }
0x22b9   :  { %4948 = vmatprep.subr.mxu1 %v60_v10  ;;  %v76_v10 = vld [vmem:[%s12871_s5 + $0xd0] sm:$0xff] }
0x22ba   :  { %4949 = vmatpush1.msra.mxu1 %v59_v20  ;;  %v67_v20 = vld [vmem:[%s12871_s5 + $0x88] sm:$0xff] }
0x22bb   :  { %4950 = vmatprep.subr.mxu1 %v57_v54  ;;  %v64_v54 = vld [vmem:[%s12871_s5 + $0x70] sm:$0xff] }
0x22bc   :  { %4951 = vmatpush1.msra.mxu1 %v56_v0  ;;  %v61_v0 = vld [vmem:[%s12871_s5 + $0x58] sm:$0xff] }
0x22bd   :  { %4952 = vmatprep.subr.mxu1 %v54_v53  ;;  %v58_v53 = vld [vmem:[%s12871_s5 + $0x40] sm:$0xff] }
0x22be   :  { %4953 = vmatpush1.msra.mxu1 %v53_v40  ;;  %v55_v40 = vld [vmem:[%s12871_s5 + $0x28] sm:$0xff] }
0x22bf   :  { %4954 = vmatprep.subr.mxu1 %v51_v30  ;;  %v50_v30 = vld [vmem:[%s12871_s5] sm:$0xff] }
0x22c0   :  { %4955 = vmatpush1.msra.mxu1 %v50_v30  ;;  %v9945_v30 = vld [vmem:[#allocation2 + $0x68] sm:$0xff] }
0x22e1   :  { %s9682_s10 = spop %9681 }
0x22e2   :  { %s11845_s12 = smul.f32 0.03125, %s9682_s10  ;;  %s9684_s13 = spop %9683 }
0x22e3   :  { %s5433_s15 = smul.f32 0.03125, %s9684_s13 }
0x22e4   :  { %s5434_s14 = smul.f32 %s11845_s12, %s11845_s12 }
0x22e6   :  { %s5435_s16 = ssub.f32 %s5433_s15, %s5434_s14 }
0x22e8   :  { %s5439_s17 = sadd.f32 1e-08, %s5435_s16 }
0x22ea   :  { %v5440_v27 = vstv %s5439_s17 }
0x22eb   :  { %9894 = vrsqrt.f32 %v5440_v27  ;;  %v52_v27 = vld [vmem:[%s12871_s5 + $0x10] sm:$0xff] }
0x22f8   :  { %v9895_v7 = vpop.eup %9894 }
0x22f9   :  { %9685 = vpush %v9895_v7  ;;  %v9934_v7 = vld [vmem:[#allocation2 + $0x28] sm:$0xff] }
0x232a   :  { %s9686_s1 = spop %9685 }
0x236c   :  { %v9442_v3 = vpop.f32.mrf.mxu1 }
0x236d   :  { %v4845_v21 = vmax.f32 %v9442_v3, 0.0  ;;  %v5436_v3 = vstv %s11845_s12 }
0x236e   :  { %v4835_v6 = vpop.f32.mrf.mxu1 }
0x236f   :  { %v4847_v16 = vmul.f32 %v4845_v21, %v10745_v14  ;;  %v4844_v50 = vmax.f32 %v4835_v6, 0.0  ;;  %v73_v14 = vld [vmem:[%s12871_s5 + $0xb8] sm:$0xff]  ;;  %v5437_v21 = vsub.f32 %v11778_v34, %v5436_v3  ;;  %v9938_v34 = vld [vmem:[#allocation2] sm:$0xff] }
0x2371   :  { %v4846_v13 = vmul.f32 %v4844_v50, %v10751_v17  ;;  %9444 = vmatpush3.msra.mxu0 %v4847_v16  ;;  %v70_v17 = vld [vmem:[%s12871_s5 + $0xa0] sm:$0xff]  ;;  %v5438_v6 = vmul.f32 %v5437_v21, %v10183_v33  ;;  %v5443_v16 = vstv %s9686_s1 }
0x2372   :  { %9445 = vmatprep.subr.mxu0 %v13128_v9  ;;  %v9937_v33 = vld [vmem:[%s12868_s2] sm:$0xff] }
0x2373   :  { %9446 = vmatpush3.msra.mxu0 %v4846_v13  ;;  %v5444_v50 = vmul.f32 %v5443_v16, %v5438_v6 }
0x2374   :  { %9448 = vmatmul.mubr.msk.f32.vlgmr.msra.gmra.mxu0 %vm373_vm1, %v48_v63  ;;  %9450 = vmatprep.subr.mxu0 %v13128_v9 }
0x2375   :  { %9451 = vmatpush3.msra.mxu0 %v76_v10  ;;  %9468 = vmatprep.mubr.msk.f32.mxu0 %vm13066_vm6, %v13128_v9  ;;  %v9935_v10 = vld [vmem:[#allocation2 + $0x20] sm:$0xff] }
0x2376   :  { %9452 = vmatprep.subr.mxu0 %v13128_v9 }
0x2377   :  { %9453 = vmatpush3.msra.mxu0 %v73_v14  ;;  %v5445_v14 = vadd.f32 %v5444_v50, %v10190_v36  ;;  %v9942_v36 = vld [vmem:[#allocation2 + $0x10] sm:$0xff] }
0x2378   :  { %9454 = vmatprep.subr.mxu0 %v13128_v9 }
0x2379   :  { %9455 = vmatpush3.msra.mxu0 %v70_v17  ;;  %v9936_v17 = vld [vmem:[#allocation2 + $0x8] sm:$0xff] }
0x237a   :  { %9456 = vmatprep.subr.mxu0 %v13128_v9 }
0x237b   :  { %9457 = vmatpush3.msra.mxu0 %v67_v20  ;;  %v9939_v20 = vld [vmem:[#allocation2 + $0x38] sm:$0xff] }
0x237c   :  { %9458 = vmatprep.subr.mxu0 %v13128_v9 }
0x237d   :  { %9459 = vmatpush3.msra.mxu0 %v64_v54  ;;  %v9940_v54 = vld [vmem:[#allocation2 + $0x30] sm:$0xff] }
0x237e   :  { %9460 = vmatprep.subr.mxu0 %v13128_v9 }
0x237f   :  { %9461 = vmatpush3.msra.mxu0 %v61_v0  ;;  %v9941_v0 = vld [vmem:[#allocation2 + $0x18] sm:$0xff] }
0x2380   :  { %9462 = vmatprep.subr.mxu0 %v13128_v9 }
0x2381   :  { %9463 = vmatpush3.msra.mxu0 %v58_v53  ;;  %v9943_v53 = vld [vmem:[#allocation2 + $0x88] sm:$0xff] }
0x2382   :  { %9464 = vmatprep.subr.mxu0 %v13128_v9 }
0x2383   :  { %9465 = vmatpush3.msra.mxu0 %v55_v40  ;;  %v9944_v40 = vld [vmem:[#allocation2 + $0x80] sm:$0xff] }
0x2384   :  { %9466 = vmatprep.subr.mxu0 %v13128_v9 }
0x2385   :  { %9467 = vmatpush3.msra.mxu0 %v52_v27  ;;  %v9946_v27 = vld [vmem:[#allocation2 + $0x60] sm:$0xff] }
0x2386   :  { %5477 = vmatprep.subr.mxu0 %v9934_v7  ;;  %v9947_v7 = vld [vmem:[#allocation2 + $0x98] sm:$0xff] }
0x2434   :  { %v4917_v13 = vpop.f32.mrf.mxu0 }
0x2435   :  { %9221 = vmatmul.mubr.msk.f32.vlgmr.msra.gmra.mxu1 %vm265_vm15, %v4917_v13  ;;  %9469 = vmatmul.mubr.msk.f32.vlgmr.msra.gmra.mxu0 %vm265_vm15, %v4917_v13 }
0x2436   :  { %v9449_v63 = vpop.f32.mrf.mxu0  ;;  %5478 = vmatpush1.msra.mxu0 %v9935_v10  ;;  %5513 = vmatprep.mubr.f32.mxu0 %v13128_v9 }
0x2437   :  { %5479 = vmatprep.subr.mxu0 %v9936_v17  ;;  %9489 = vmatprep.mubr.msk.f32.mxu1 %vm154_vm13, %v9937_v33 }
0x2438   :  { %5480 = vmatpush1.msra.mxu0 %v9938_v34 }
0x2439   :  { %9245 = vmatmul.mubr.msk.f32.vlgmr.msra.gmra.mxu0 %vm373_vm1, %v5445_v14  ;;  %5548 = vmatprep.subr.mxu0 %v9939_v20 }
0x243a   :  { %5549 = vmatpush1.msra.mxu0 %v9940_v54  ;;  %5584 = vmatprep.mubr.f32.mxu0 %v13128_v9 }
0x243b   :  { %5550 = vmatprep.subr.mxu0 %v9941_v0 }
0x243c   :  { %5551 = vmatpush1.msra.mxu0 %v9942_v36 }
0x243d   :  { %9246 = vmatmul.mubr.msk.f32.vlgmr.msra.gmra.mxu0 %vm373_vm1, %v5445_v14  ;;  %5807 = vmatprep.subr.mxu0 %v9943_v53 }
0x243e   :  { %5808 = vmatpush1.xpose.msra.mxu0 %v9944_v40 }
0x243f   :  { %5809 = vmatprep.subr.mxu0 %v9945_v30 }
0x2442   :  { %5810 = vmatpush1.xpose.msra.mxu0 %v9946_v27 }
0x2443   :  { %5877 = vmatprep.subr.mxu0 %v9947_v7 }
0x24f5   :  { %v11911_v3 = vpop.f32.mrf.mxu0 }
0x24f6   :  { %13256 = vst [vmem:[#allocation183_spill] sm:$0xff] %v11911_v3 }
0x24f7   :  { %v9470_v21 = vpop.f32.mrf.mxu0 }
0x24f9   :  { %v5515_v6 = vpop.f32.mrf.mxu0 }
0x24fa   :  { %v5591_v16 = vmax.f32 %v5515_v6, 0.0 }
0x24fb   :  { %v5517_v50 = vpop.f32.mrf.mxu0 }
0x24fc   :  { %v5612_v13 = vmul.f32 %v5591_v16, %v5591_v16  ;;  %v5592_v63 = vmax.f32 %v5517_v50, 0.0  ;;  %v5595_v14 = vsel %vm523_vm2, %v5591_v16, 0.0 }
0x24fd   :  { %v5586_v10 = vpop.f32.mrf.mxu0 }
0x24fe   :  { %v5596_v17 = vsel %vm523_vm2, %v5592_v63, 0.0  ;;  %v5613_v33 = vmul.f32 %v5592_v63, %v5592_v63  ;;  %v5593_v34 = vmax.f32 %v5586_v10, 0.0  ;;  %v5616_v20 = vsel %vm523_vm2, %v5612_v13, 0.0 }
0x24ff   :  { %v5597_v54 = vadd.f32 %v5596_v17, %v5595_v14  ;;  %v5588_v0 = vpop.f32.mrf.mxu0 }
0x2500   :  { %v5617_v36 = vsel %vm523_vm2, %v5613_v33, 0.0  ;;  %v5598_v53 = vsel %vm523_vm2, %v5593_v34, 0.0  ;;  %v5614_v40 = vmul.f32 %v5593_v34, %v5593_v34  ;;  %v5594_v30 = vmax.f32 %v5588_v0, 0.0 }
0x2501   :  { %v5599_v27 = vadd.f32 %v5598_v53, %v5597_v54  ;;  %v5618_v7 = vadd.f32 %v5617_v36, %v5616_v20 }
0x2502   :  { %v5615_v21 = vmul.f32 %v5594_v30, %v5594_v30  ;;  %v5600_v6 = vsel %vm523_vm2, %v5594_v30, 0.0  ;;  %v5619_v50 = vsel %vm523_vm2, %v5614_v40, 0.0 }
0x2503   :  { %v5601_v11 = vadd.f32 %v5600_v6, %v5599_v27  ;;  %v5620_v18 = vadd.f32 %v5619_v50, %v5618_v7 }
0x2504   :  { %v5621_v10 = vsel %vm523_vm2, %v5615_v21, 0.0 }
0x2505   :  { %5602 = vadd.xlane.f32.xlu1 %v5601_v11  ;;  %v5622_v13 = vadd.f32 %v5621_v10, %v5620_v18 }
0x2509   :  { %5623 = vadd.xlane.f32.xlu1 %v5622_v13 }
0x258e   :  { %v5603_v14 = vpop.xlane.xlu1 %5602 }
0x258f   :  { %v5604_v17 = vrot.slane %v5603_v14, 4 }
0x2591   :  { %v5605_v33 = vadd.f32 %v5604_v17, %v5603_v14 }
0x2592   :  { %v5624_v23 = vpop.xlane.xlu1 %5623 }
0x2593   :  { %v5625_v3 = vrot.slane %v5624_v23, 4  ;;  %v5606_v0 = vrot.slane %v5605_v33, 2 }
0x2595   :  { %v5626_v54 = vadd.f32 %v5625_v3, %v5624_v23  ;;  %v5607_v20 = vadd.f32 %v5606_v0, %v5605_v33 }
0x2597   :  { %v5608_v36 = vrot.slane %v5607_v20, 1  ;;  %v5627_v53 = vrot.slane %v5626_v54, 2 }
0x2599   :  { %v5609_v24 = vadd.f32 %v5608_v36, %v5607_v20  ;;  %v5628_v31 = vadd.f32 %v5627_v53, %v5626_v54 }
0x259b   :  { %9687 = vpush %v5609_v24  ;;  %v5629_v40 = vrot.slane %v5628_v31, 1 }
0x259d   :  { %v5630_v27 = vadd.f32 %v5629_v40, %v5628_v31 }
0x259f   :  { %9689 = vpush %v5630_v27 }
0x25cc   :  { %s9688_s22 = spop %9687 }
0x25cd   :  { %s5611_s23 = smul.f32 0.0009765625, %s9688_s22 }
0x25cf   :  { %s5633_s24 = smul.f32 %s5611_s23, %s5611_s23  ;;  %v5635_v23 = vstv %s5611_s23 }
0x25d0   :  { %s9690_s25 = spop %9689  ;;  %v5636_v3 = vsub.f32 %v5591_v16, %v5635_v23  ;;  %v5637_v7 = vsub.f32 %v5592_v63, %v5635_v23  ;;  %v5638_v21 = vsub.f32 %v5593_v34, %v5635_v23  ;;  %v5639_v6 = vsub.f32 %v5594_v30, %v5635_v23 }
0x25d1   :  { %s5632_s28 = smul.f32 0.0009765625, %s9690_s25 }
0x25d2   :  { %v5640_v24 = vmul.f32 %v5636_v3, %v10234_v32  ;;  %v5641_v31 = vmul.f32 %v5637_v7, %v10237_v35  ;;  %v5642_v50 = vmul.f32 %v5638_v21, %v10240_v37  ;;  %v5643_v10 = vmul.f32 %v5639_v6, %v10243_v38  ;;  %v13257_v7 = vld [vmem:[#allocation13_spill] sm:$0xff]  ;;  %v13258_v6 = vld [vmem:[#allocation16_spill] sm:$0xff] }
0x25d3   :  { %s5634_s29 = ssub.f32 %s5632_s28, %s5633_s24 }
0x25d5   :  { %s5644_s3 = sadd.f32 1e-08, %s5634_s29 }
0x25d7   :  { %v5645_v18 = vstv %s5644_s3 }
0x25d8   :  { %9896 = vrsqrt.f32 %v5645_v18 }
0x25e5   :  { %v9897_v11 = vpop.eup %9896 }
0x25e6   :  { %9691 = vpush %v9897_v11 }
0x2617   :  { %s9692_s30 = spop %9691 }
0x2618   :  { %v5648_v13 = vstv %s9692_s30 }
0x2619   :  { %v5649_v14 = vmul.f32 %v5648_v13, %v5640_v24  ;;  %v5650_v17 = vmul.f32 %v5648_v13, %v5641_v31  ;;  %v5651_v33 = vmul.f32 %v5648_v13, %v5642_v50  ;;  %v5652_v0 = vmul.f32 %v5648_v13, %v5643_v10  ;;  %v13259_v31 = vld [vmem:[#allocation9_spill] sm:$0xff]  ;;  %v13260_v10 = vld [vmem:[#allocation10_spill] sm:$0xff] }
0x261b   :  { %v5653_v54 = vadd.f32 %v5649_v14, %v10250_v48  ;;  %v5654_v16 = vadd.f32 %v5650_v17, %v10256_v51  ;;  %v5655_v63 = vadd.f32 %v5651_v33, %v10259_v44  ;;  %v5656_v32 = vadd.f32 %v5652_v0, %v10262_v47  ;;  %v13261_v14 = vld [vmem:[#allocation11_spill] sm:$0xff]  ;;  %v13262_v33 = vld [vmem:[#allocation12_spill] sm:$0xff] }
0x261d   :  { %v5661_v34 = vrot.slane %v5653_v54, 7  ;;  %v5662_v35 = vrot.slane %v5654_v16, 7  ;;  %v5663_v30 = vrot.slane %v5655_v63, 7  ;;  %v5664_v37 = vrot.slane %v5656_v32, 7 }
0x261e   :  { %v5673_v20 = vrot.slane %v5653_v54, 1  ;;  %v5674_v38 = vrot.slane %v5654_v16, 1  ;;  %v5675_v36 = vrot.slane %v5655_v63, 1  ;;  %v5676_v53 = vrot.slane %v5656_v32, 1 }
0x261f   :  { %v5669_v40 = vsel %vm640_vm3, 0.0, %v5661_v34  ;;  %v5670_v27 = vsel %vm640_vm3, 0.0, %v5662_v35  ;;  %v5671_v48 = vsel %vm640_vm3, 0.0, %v5663_v30  ;;  %v5672_v51 = vsel %vm640_vm3, 0.0, %v5664_v37  ;;  %v13263_v34 = vld [vmem:[#allocation14_spill] sm:$0xff]  ;;  %v13264_v30 = vld [vmem:[#allocation15_spill] sm:$0xff] }
0x2620   :  { %v5681_v44 = vsel %vm640_vm3, %v5673_v20, 0.0  ;;  %v5682_v47 = vsel %vm640_vm3, %v5674_v38, 0.0  ;;  %v5683_v18 = vsel %vm640_vm3, %v5675_v36, 0.0  ;;  %v5684_v11 = vsel %vm640_vm3, %v5676_v53, 0.0  ;;  %v13265_v20 = vld [vmem:[#allocation17_spill] sm:$0xff]  ;;  %v13266_v38 = vld [vmem:[#allocation18_spill] sm:$0xff] }
0x2621   :  { %v5685_v23 = vmul.f32 %v5669_v40, %v10284_v61  ;;  %v5686_v3 = vmul.f32 %v5670_v27, %v10287_v62  ;;  %v5687_v21 = vmul.f32 %v5671_v48, %v13257_v7  ;;  %v5688_v24 = vmul.f32 %v5672_v51, %v13258_v6  ;;  %v13269_v7 = vld [vmem:[#allocation21_spill] sm:$0xff]  ;;  %v13270_v6 = vld [vmem:[#allocation22_spill] sm:$0xff] }
0x2622   :  { %v5689_v50 = vmul.f32 %v5653_v54, %v13259_v31  ;;  %v5690_v13 = vmul.f32 %v5654_v16, %v13260_v10  ;;  %v5691_v17 = vmul.f32 %v5655_v63, %v13261_v14  ;;  %v5692_v0 = vmul.f32 %v5656_v32, %v13262_v33  ;;  %v13267_v63 = vld [vmem:[#allocation19_spill] sm:$0xff] }
0x2623   :  { %v5697_v35 = vmul.f32 %v5681_v44, %v13263_v34  ;;  %v5698_v37 = vmul.f32 %v5682_v47, %v13264_v30  ;;  %v5699_v61 = vmul.f32 %v5683_v18, %v13265_v20  ;;  %v5700_v62 = vmul.f32 %v5684_v11, %v13266_v38  ;;  %v13268_v44 = vld [vmem:[#allocation20_spill] sm:$0xff] }
0x2624   :  { %v5693_v36 = vadd.f32 %v5689_v50, %v5685_v23  ;;  %v5694_v53 = vadd.f32 %v5690_v13, %v5686_v3  ;;  %v5695_v40 = vadd.f32 %v5691_v17, %v5687_v21  ;;  %v5696_v27 = vadd.f32 %v5692_v0, %v5688_v24 }
0x2626   :  { %v5701_v48 = vadd.f32 %v5697_v35, %v5693_v36  ;;  %v5702_v54 = vadd.f32 %v5698_v37, %v5694_v53  ;;  %v5703_v51 = vadd.f32 %v5699_v61, %v5695_v40  ;;  %v5704_v16 = vadd.f32 %v5700_v62, %v5696_v27 }
0x2628   :  { %vm5705_vm7 = vcmp.gt.f32.partialorder %v5701_v48, 0.0  ;;  %vm5706_vm4 = vcmp.gt.f32.partialorder %v5702_v54, 0.0  ;;  %vm5707_vm5 = vcmp.gt.f32.partialorder %v5703_v51, 0.0  ;;  %vm5708_vm6 = vcmp.gt.f32.partialorder %v5704_v16, 0.0 }
0x2629   :  { %v5709_v32 = vmul.f32 %v5701_v48, %v13267_v63  ;;  %v5710_v47 = vmul.f32 %v5702_v54, %v13268_v44  ;;  %v5711_v18 = vmul.f32 %v5703_v51, %v13269_v7  ;;  %v5712_v11 = vmul.f32 %v5704_v16, %v13270_v6 }
0x262b   :  { %v5713_v23 = vsel %vm5705_vm7, %v5701_v48, %v5709_v32  ;;  %v5714_v3 = vsel %vm5706_vm4, %v5702_v54, %v5710_v47  ;;  %v11953_v21 = vsel %vm5707_vm5, %v5703_v51, %v5711_v18  ;;  %v5716_v24 = vsel %vm5708_vm6, %v5704_v16, %v5712_v11 }
0x262c   :  { %v5717_v31 = vsel %vm523_vm2, %v5713_v23, 0.0  ;;  %v5718_v50 = vsel %vm523_vm2, %v5714_v3, 0.0  ;;  %v5734_v13 = vmul.f32 %v5713_v23, %v5713_v23  ;;  %v5735_v14 = vmul.f32 %v5714_v3, %v5714_v3 }
0x262d   :  { %v5719_v10 = vadd.f32 %v5718_v50, %v5717_v31  ;;  %v5736_v17 = vmul.f32 %v11953_v21, %v11953_v21  ;;  %v5720_v33 = vsel %vm523_vm2, %v11953_v21, 0.0  ;;  %v5737_v34 = vmul.f32 %v5716_v24, %v5716_v24 }
0x262e   :  { %v5738_v35 = vsel %vm523_vm2, %v5734_v13, 0.0  ;;  %v5739_v30 = vsel %vm523_vm2, %v5735_v14, 0.0  ;;  %v5722_v37 = vsel %vm523_vm2, %v5716_v24, 0.0 }
0x262f   :  { %v5721_v0 = vadd.f32 %v5720_v33, %v5719_v10  ;;  %v5740_v20 = vadd.f32 %v5739_v30, %v5738_v35  ;;  %v5741_v38 = vsel %vm523_vm2, %v5736_v17, 0.0  ;;  %v5743_v36 = vsel %vm523_vm2, %v5737_v34, 0.0  ;;  %v13271_v33 = vld [vmem:[#allocation23_spill] sm:$0xff]  ;;  %v13272_v34 = vld [vmem:[#allocation24_spill] sm:$0xff]  ;;  %v13273_v30 = vld [vmem:[#allocation25_spill] sm:$0xff] }
0x2631   :  { %v5723_v61 = vadd.f32 %v5722_v37, %v5721_v0  ;;  %v5742_v62 = vadd.f32 %v5741_v38, %v5740_v20 }
0x2633   :  { %5724 = vadd.xlane.f32.xlu1 %v5723_v61  ;;  %v5744_v53 = vadd.f32 %v5743_v36, %v5742_v62 }
0x2635   :  { %5745 = vadd.xlane.f32.xlu0 %v5744_v53  ;;  %v13274_v53 = vld [vmem:[#allocation26_spill] sm:$0xff] }
0x26bc   :  { %v5725_v40 = vpop.xlane.xlu1 %5724 }
0x26bd   :  { %v5726_v27 = vrot.slane %v5725_v40, 4 }
0x26be   :  { %v5746_v54 = vpop.xlane.xlu0 %5745 }
0x26bf   :  { %v5727_v48 = vadd.f32 %v5726_v27, %v5725_v40  ;;  %v5747_v51 = vrot.slane %v5746_v54, 4  ;;  %v13275_v27 = vld [vmem:[#allocation27_spill] sm:$0xff] }
0x26c1   :  { %v5728_v16 = vrot.slane %v5727_v48, 2  ;;  %v5748_v63 = vadd.f32 %v5747_v51, %v5746_v54  ;;  %v9948_v51 = vld [vmem:[#allocation2 + $0x90] sm:$0xff] }
0x26c3   :  { %v5729_v32 = vadd.f32 %v5728_v16, %v5727_v48  ;;  %v5749_v44 = vrot.slane %v5748_v63, 2 }
0x26c5   :  { %v5730_v47 = vrot.slane %v5729_v32, 1  ;;  %v5750_v7 = vadd.f32 %v5749_v44, %v5748_v63  ;;  %v9949_v63 = vld [vmem:[#allocation2 + $0x78] sm:$0xff] }
0x26c6   :  { %v13278_v44 = vld [vmem:[#allocation30_spill] sm:$0xff] }
0x26c7   :  { %v5731_v18 = vadd.f32 %v5730_v47, %v5729_v32  ;;  %v5751_v6 = vrot.slane %v5750_v7, 1  ;;  %v9950_v32 = vld [vmem:[#allocation2 + $0x70] sm:$0xff]  ;;  %v9951_v47 = vld [vmem:[#allocation2 + $0xc8] sm:$0xff] }
0x26c9   :  { %9693 = vpush %v5731_v18  ;;  %v5752_v11 = vadd.f32 %v5751_v6, %v5750_v7  ;;  %v9952_v7 = vld [vmem:[#allocation2 + $0xc0] sm:$0xff]  ;;  %v9953_v18 = vld [vmem:[#allocation2 + $0xa8] sm:$0xff] }
0x26ca   :  { %v9954_v6 = vld [vmem:[#allocation2 + $0xa0] sm:$0xff] }
0x26cb   :  { %9695 = vpush %v5752_v11  ;;  %v9955_v11 = vld [vmem:[#allocation2 + $0xd8] sm:$0xff] }
0x26fa   :  { %s9694_s7 = spop %9693 }
0x26fb   :  { %s5733_s8 = smul.f32 0.0009765625, %s9694_s7 }
0x26fc   :  { %s9696_s9 = spop %9695 }
0x26fd   :  { %s5755_s4 = smul.f32 %s5733_s8, %s5733_s8  ;;  %v5757_v10 = vstv %s5733_s8 }
0x26fe   :  { %s5754_s10 = smul.f32 0.0009765625, %s9696_s9  ;;  %v5758_v13 = vsub.f32 %v5713_v23, %v5757_v10  ;;  %v5759_v14 = vsub.f32 %v5714_v3, %v5757_v10  ;;  %v5761_v17 = vsub.f32 %v5716_v24, %v5757_v10  ;;  %v5760_v36 = vsub.f32 %v11953_v21, %v5757_v10  ;;  %v13276_v23 = vld [vmem:[#allocation28_spill] sm:$0xff]  ;;  %v13277_v24 = vld [vmem:[#allocation29_spill] sm:$0xff] }
0x2700   :  { %s5756_s13 = ssub.f32 %s5754_s10, %s5755_s4  ;;  %v5762_v0 = vmul.f32 %v5758_v13, %v13271_v33  ;;  %v5763_v35 = vmul.f32 %v5759_v14, %v13272_v34  ;;  %v5765_v37 = vmul.f32 %v5761_v17, %v13273_v30  ;;  %v5764_v54 = vmul.f32 %v5760_v36, %v13277_v24 }
0x2702   :  { %s5766_s14 = sadd.f32 1e-08, %s5756_s13 }
0x2704   :  { %v5767_v31 = vstv %s5766_s14 }
0x2705   :  { %9898 = vrsqrt.f32 %v5767_v31 }
0x2712   :  { %v9899_v50 = vpop.eup %9898 }
0x2713   :  { %9697 = vpush %v9899_v50 }
0x2744   :  { %s9698_s15 = spop %9697 }
0x2745   :  { %v5770_v20 = vstv %s9698_s15 }
0x2746   :  { %v5771_v61 = vmul.f32 %v5770_v20, %v5762_v0  ;;  %v5772_v38 = vmul.f32 %v5770_v20, %v5763_v35  ;;  %v5774_v62 = vmul.f32 %v5770_v20, %v5765_v37  ;;  %v5773_v16 = vmul.f32 %v5770_v20, %v5764_v54 }
0x2748   :  { %v5775_v40 = vadd.f32 %v5771_v61, %v13274_v53  ;;  %v5776_v48 = vadd.f32 %v5772_v38, %v13275_v27  ;;  %v5778_v3 = vadd.f32 %v5774_v62, %v13276_v23  ;;  %v5777_v21 = vadd.f32 %v5773_v16, %v13278_v44 }
0x274a   :  { %5843 = vmatprep.mubr.f32.mxu0 %v5776_v48 }
0x274b   :  { %5844 = vmatmul.mubr.f32.vlgmr.msra.gmra.mxu0 %v5775_v40 }
0x274c   :  { %5878 = vmatpush1.xpose.msra.mxu0 %v9948_v51  ;;  %5913 = vmatprep.mubr.f32.mxu0 %v5778_v3 }
0x274d   :  { %5879 = vmatprep.subr.mxu0 %v9949_v63  ;;  %v13279_v63 = vld [vmem:[#allocation31_spill] sm:$0xff] }
0x2750   :  { %5880 = vmatpush1.xpose.msra.mxu0 %v9950_v32 }
0x2751   :  { %5986 = vmatprep.subr.mxu0 %v9951_v47  ;;  %v13280_v47 = vld [vmem:[#allocation32_spill] sm:$0xff] }
0x2753   :  { %5914 = vmatmul.mubr.f32.vlgmr.msra.gmra.mxu0 %v5777_v21 }
0x2754   :  { %5987 = vmatpush1.msra.mxu0 %v9952_v7  ;;  %6022 = vmatprep.mubr.f32.mxu0 %v13128_v9 }
0x2755   :  { %5988 = vmatprep.subr.mxu0 %v9953_v18  ;;  %v9956_v18 = vld [vmem:[#allocation2 + $0xd0] sm:$0xff] }
0x2756   :  { %5989 = vmatpush1.msra.mxu0 %v9954_v6  ;;  %v9957_v6 = vld [vmem:[#allocation2 + $0xb8] sm:$0xff] }
0x2757   :  { %6057 = vmatprep.subr.mxu0 %v9955_v11  ;;  %v9958_v11 = vld [vmem:[#allocation2 + $0xb0] sm:$0xff] }
0x280b   :  { %v5845_v31 = vpop.f32.mrf.mxu0 }
0x280c   :  { %v5846_v10 = vadd.f32 %v11775_v22, %v5845_v31  ;;  %v9959_v31 = vld [vmem:[#allocation2 + $0x128] sm:$0xff] }
0x280d   :  { %v5847_v50 = vpop.f32.mrf.mxu0 }
0x280e   :  { %v9960_v50 = vld [vmem:[#allocation2 + $0x120] sm:$0xff] }
0x2813   :  { %v5915_v13 = vpop.f32.mrf.mxu0 }
0x2814   :  { %v11977_v14 = vadd.f32 %v5915_v13, %v5846_v10  ;;  %v9961_v10 = vld [vmem:[#allocation2 + $0x108] sm:$0xff]  ;;  %v9962_v13 = vld [vmem:[#allocation2 + $0x100] sm:$0xff] }
0x2815   :  { %v5917_v17 = vpop.f32.mrf.mxu0 }
0x2816   :  { %v5919_v33 = vmax.f32 %v11977_v14, 0.0  ;;  %v9963_v17 = vld [vmem:[#allocation2 + $0x168] sm:$0xff] }
0x2818   :  { %v5920_v0 = vsel %vm329_vm0, %v5919_v33, 0.0  ;;  %v5931_v34 = vmul.f32 %v5919_v33, %v5919_v33 }
0x2819   :  { %5921 = vadd.xlane.f32.xlu1 %v5920_v0 }
0x281a   :  { %v5932_v35 = vsel %vm329_vm0, %v5931_v34, 0.0 }
0x281b   :  { %5933 = vadd.xlane.f32.xlu0 %v5932_v35 }
0x28a2   :  { %v5922_v30 = vpop.xlane.xlu1 %5921 }
0x28a3   :  { %v5923_v37 = vrot.slane %v5922_v30, 4 }
0x28a4   :  { %v5934_v20 = vpop.xlane.xlu0 %5933 }
0x28a5   :  { %v5924_v61 = vadd.f32 %v5923_v37, %v5922_v30  ;;  %v5935_v38 = vrot.slane %v5934_v20, 4 }
0x28a7   :  { %v5936_v62 = vadd.f32 %v5935_v38, %v5934_v20  ;;  %v5925_v22 = vrot.slane %v5924_v61, 2 }
0x28a9   :  { %v5937_v36 = vrot.slane %v5936_v62, 2  ;;  %v5926_v53 = vadd.f32 %v5925_v22, %v5924_v61 }
0x28ab   :  { %v5927_v40 = vrot.slane %v5926_v53, 1  ;;  %v5938_v27 = vadd.f32 %v5937_v36, %v5936_v62 }
0x28ad   :  { %v5928_v48 = vadd.f32 %v5927_v40, %v5926_v53  ;;  %v5939_v23 = vrot.slane %v5938_v27, 1 }
0x28af   :  { %9699 = vpush %v5928_v48  ;;  %v5940_v3 = vadd.f32 %v5939_v23, %v5938_v27 }
0x28b1   :  { %9701 = vpush %v5940_v3 }
0x28e0   :  { %s9700_s16 = spop %9699 }
0x28e1   :  { %s5930_s17 = smul.f32 0.03125, %s9700_s16 }
0x28e2   :  { %s9702_s18 = spop %9701 }
0x28e3   :  { %s5943_s1 = smul.f32 %s5930_s17, %s5930_s17  ;;  %v5945_v51 = vstv %s5930_s17 }
0x28e4   :  { %s5942_s12 = smul.f32 0.03125, %s9702_s18  ;;  %v5946_v16 = vsub.f32 %v5919_v33, %v5945_v51 }
0x28e6   :  { %s5944_s21 = ssub.f32 %s5942_s12, %s5943_s1  ;;  %v5947_v32 = vmul.f32 %v5946_v16, %v13279_v63 }
0x28e8   :  { %s5948_s22 = sadd.f32 1e-08, %s5944_s21 }
0x28ea   :  { %v5949_v24 = vstv %s5948_s22 }
0x28eb   :  { %9900 = vrsqrt.f32 %v5949_v24 }
0x28f8   :  { %v9901_v54 = vpop.eup %9900 }
0x28f9   :  { %9703 = vpush %v9901_v54 }
0x292a   :  { %s9704_s23 = spop %9703 }
0x292b   :  { %v5952_v44 = vstv %s9704_s23 }
0x292c   :  { %v5953_v21 = vmul.f32 %v5952_v44, %v5947_v32 }
0x292e   :  { %v5954_v7 = vadd.f32 %v5953_v21, %v13280_v47 }
0x2930   :  { %9247 = vmatmul.mubr.msk.f32.vlgmr.msra.gmra.mxu0 %vm373_vm1, %v5954_v7 }
0x2931   :  { %6058 = vmatpush1.msra.mxu0 %v9956_v18  ;;  %6093 = vmatprep.mubr.f32.mxu0 %v13128_v9 }
0x2932   :  { %6059 = vmatprep.subr.mxu0 %v9957_v6 }
0x2933   :  { %6060 = vmatpush1.msra.mxu0 %v9958_v11 }
0x2934   :  { %9248 = vmatmul.mubr.msk.f32.vlgmr.msra.gmra.mxu0 %vm373_vm1, %v5954_v7  ;;  %6316 = vmatprep.subr.mxu0 %v9959_v31 }
0x2935   :  { %6317 = vmatpush1.xpose.msra.mxu0 %v9960_v50 }
0x2936   :  { %6318 = vmatprep.subr.mxu0 %v9961_v10 }
0x2939   :  { %6319 = vmatpush1.xpose.msra.mxu0 %v9962_v13 }
0x293a   :  { %6495 = vmatprep.subr.mxu0 %v9963_v17 }
0x29f0   :  { %v6024_v33 = vpop.f32.mrf.mxu0 }
0x29f1   :  { %v6100_v0 = vmax.f32 %v6024_v33, 0.0 }
0x29f2   :  { %v6026_v34 = vpop.f32.mrf.mxu0 }
0x29f3   :  { %v6121_v35 = vmul.f32 %v6100_v0, %v6100_v0  ;;  %v6101_v30 = vmax.f32 %v6026_v34, 0.0  ;;  %v6104_v20 = vsel %vm523_vm2, %v6100_v0, 0.0 }
0x29f4   :  { %v6095_v37 = vpop.f32.mrf.mxu0 }
0x29f5   :  { %v6105_v61 = vsel %vm523_vm2, %v6101_v30, 0.0  ;;  %v6122_v38 = vmul.f32 %v6101_v30, %v6101_v30  ;;  %v6102_v62 = vmax.f32 %v6095_v37, 0.0  ;;  %v6125_v53 = vsel %vm523_vm2, %v6121_v35, 0.0 }
0x29f6   :  { %v6106_v22 = vadd.f32 %v6105_v61, %v6104_v20  ;;  %v6097_v36 = vpop.f32.mrf.mxu0 }
0x29f7   :  { %v6107_v40 = vsel %vm523_vm2, %v6102_v62, 0.0  ;;  %v6123_v27 = vmul.f32 %v6102_v62, %v6102_v62  ;;  %v6103_v48 = vmax.f32 %v6097_v36, 0.0  ;;  %v6126_v23 = vsel %vm523_vm2, %v6122_v38, 0.0 }
0x29f8   :  { %v6108_v3 = vadd.f32 %v6107_v40, %v6106_v22  ;;  %v6127_v24 = vadd.f32 %v6126_v23, %v6125_v53 }
0x29f9   :  { %v6109_v54 = vsel %vm523_vm2, %v6103_v48, 0.0  ;;  %v6124_v51 = vmul.f32 %v6103_v48, %v6103_v48  ;;  %v6128_v16 = vsel %vm523_vm2, %v6123_v27, 0.0  ;;  %v13281_v27 = vld [vmem:[#allocation33_spill] sm:$0xff] }
0x29fa   :  { %v6110_v63 = vadd.f32 %v6109_v54, %v6108_v3  ;;  %v6129_v32 = vadd.f32 %v6128_v16, %v6127_v24  ;;  %v13282_v3 = vld [vmem:[#allocation34_spill] sm:$0xff]  ;;  %v13283_v54 = vld [vmem:[#allocation35_spill] sm:$0xff]  ;;  %v13284_v16 = vld [vmem:[#allocation36_spill] sm:$0xff] }
0x29fb   :  { %v6130_v44 = vsel %vm523_vm2, %v6124_v51, 0.0 }
0x29fc   :  { %6111 = vadd.xlane.f32.xlu1 %v6110_v63  ;;  %v6131_v21 = vadd.f32 %v6130_v44, %v6129_v32 }
0x29fe   :  { %6132 = vadd.xlane.f32.xlu0 %v6131_v21 }
0x2a85   :  { %v6112_v47 = vpop.xlane.xlu1 %6111 }
0x2a86   :  { %v6113_v7 = vrot.slane %v6112_v47, 4 }
0x2a87   :  { %v6133_v18 = vpop.xlane.xlu0 %6132 }
0x2a88   :  { %v6114_v6 = vadd.f32 %v6113_v7, %v6112_v47  ;;  %v6134_v11 = vrot.slane %v6133_v18, 4 }
0x2a8a   :  { %v6135_v31 = vadd.f32 %v6134_v11, %v6133_v18  ;;  %v6115_v50 = vrot.slane %v6114_v6, 2  ;;  %v13285_v18 = vld [vmem:[#allocation37_spill] sm:$0xff]  ;;  %v13288_v11 = vld [vmem:[#allocation40_spill] sm:$0xff] }
0x2a8c   :  { %v6136_v10 = vrot.slane %v6135_v31, 2  ;;  %v6116_v13 = vadd.f32 %v6115_v50, %v6114_v6 }
0x2a8e   :  { %v6117_v17 = vrot.slane %v6116_v13, 1  ;;  %v6137_v33 = vadd.f32 %v6136_v10, %v6135_v31 }
0x2a90   :  { %v6118_v34 = vadd.f32 %v6117_v17, %v6116_v13  ;;  %v6138_v35 = vrot.slane %v6137_v33, 1 }
0x2a92   :  { %9705 = vpush %v6118_v34  ;;  %v6139_v37 = vadd.f32 %v6138_v35, %v6137_v33 }
0x2a94   :  { %9707 = vpush %v6139_v37 }
0x2ac3   :  { %s9706_s24 = spop %9705 }
0x2ac4   :  { %s6120_s25 = smul.f32 0.0009765625, %s9706_s24 }
0x2ac5   :  { %s9708_s28 = spop %9707 }
0x2ac6   :  { %s6142_s29 = smul.f32 %s6120_s25, %s6120_s25  ;;  %v6144_v38 = vstv %s6120_s25 }
0x2ac7   :  { %s6141_s3 = smul.f32 0.0009765625, %s9708_s28  ;;  %v6145_v22 = vsub.f32 %v6100_v0, %v6144_v38  ;;  %v6146_v36 = vsub.f32 %v6101_v30, %v6144_v38  ;;  %v6147_v53 = vsub.f32 %v6102_v62, %v6144_v38  ;;  %v6148_v40 = vsub.f32 %v6103_v48, %v6144_v38  ;;  %v13286_v0 = vld [vmem:[#allocation38_spill] sm:$0xff]  ;;  %v13287_v62 = vld [vmem:[#allocation39_spill] sm:$0xff] }
0x2ac9   :  { %s6143_s30 = ssub.f32 %s6141_s3, %s6142_s29  ;;  %v6149_v23 = vmul.f32 %v6145_v22, %v13281_v27  ;;  %v6150_v24 = vmul.f32 %v6146_v36, %v13282_v3  ;;  %v6151_v51 = vmul.f32 %v6147_v53, %v13283_v54  ;;  %v6152_v63 = vmul.f32 %v6148_v40, %v13284_v16 }
0x2acb   :  { %s6153_s7 = sadd.f32 1e-08, %s6143_s30 }
0x2acd   :  { %v6154_v20 = vstv %s6153_s7 }
0x2ace   :  { %9902 = vrsqrt.f32 %v6154_v20 }
0x2adb   :  { %v9903_v61 = vpop.eup %9902 }
0x2adc   :  { %9709 = vpush %v9903_v61 }
0x2b0d   :  { %s9710_s8 = spop %9709 }
0x2b0e   :  { %v6157_v32 = vstv %s9710_s8 }
0x2b0f   :  { %v6158_v44 = vmul.f32 %v6157_v32, %v6149_v23  ;;  %v6159_v21 = vmul.f32 %v6157_v32, %v6150_v24  ;;  %v6160_v47 = vmul.f32 %v6157_v32, %v6151_v51  ;;  %v6161_v7 = vmul.f32 %v6157_v32, %v6152_v63  ;;  %v13289_v23 = vld [vmem:[#allocation44_spill] sm:$0xff]  ;;  %v13290_v24 = vld [vmem:[#allocation45_spill] sm:$0xff]  ;;  %v13291_v51 = vld [vmem:[#allocation47_spill] sm:$0xff] }
0x2b10   :  { %v13292_v63 = vld [vmem:[#allocation50_spill] sm:$0xff] }
0x2b11   :  { %v6162_v6 = vadd.f32 %v6158_v44, %v13285_v18  ;;  %v6163_v30 = vadd.f32 %v6159_v21, %v13286_v0  ;;  %v6164_v48 = vadd.f32 %v6160_v47, %v13287_v62  ;;  %v6165_v31 = vadd.f32 %v6161_v7, %v13288_v11  ;;  %v13293_v44 = vld [vmem:[#allocation41_spill] sm:$0xff]  ;;  %v13294_v47 = vld [vmem:[#allocation42_spill] sm:$0xff]  ;;  %v13295_v18 = vld [vmem:[#allocation43_spill] sm:$0xff] }
0x2b12   :  { %v13296_v62 = vld [vmem:[#allocation46_spill] sm:$0xff] }
0x2b13   :  { %v6170_v50 = vrot.slane %v6162_v6, 7  ;;  %v6171_v10 = vrot.slane %v6163_v30, 7  ;;  %v6172_v13 = vrot.slane %v6164_v48, 7  ;;  %v6173_v17 = vrot.slane %v6165_v31, 7 }
0x2b14   :  { %v6182_v33 = vrot.slane %v6162_v6, 1  ;;  %v6183_v34 = vrot.slane %v6163_v30, 1  ;;  %v6184_v35 = vrot.slane %v6164_v48, 1  ;;  %v6185_v37 = vrot.slane %v6165_v31, 1 }
0x2b15   :  { %v6178_v20 = vsel %vm640_vm3, 0.0, %v6170_v50  ;;  %v6179_v61 = vsel %vm640_vm3, 0.0, %v6171_v10  ;;  %v6180_v38 = vsel %vm640_vm3, 0.0, %v6172_v13  ;;  %v6181_v22 = vsel %vm640_vm3, 0.0, %v6173_v17  ;;  %v13297_v50 = vld [vmem:[#allocation48_spill] sm:$0xff]  ;;  %v13298_v13 = vld [vmem:[#allocation49_spill] sm:$0xff] }
0x2b16   :  { %v6190_v36 = vsel %vm640_vm3, %v6182_v33, 0.0  ;;  %v6191_v53 = vsel %vm640_vm3, %v6183_v34, 0.0  ;;  %v6192_v40 = vsel %vm640_vm3, %v6184_v35, 0.0  ;;  %v6193_v27 = vsel %vm640_vm3, %v6185_v37, 0.0  ;;  %v13299_v33 = vld [vmem:[#allocation51_spill] sm:$0xff]  ;;  %v13300_v35 = vld [vmem:[#allocation52_spill] sm:$0xff] }
0x2b17   :  { %v6194_v3 = vmul.f32 %v6178_v20, %v13289_v23  ;;  %v6195_v54 = vmul.f32 %v6179_v61, %v13290_v24  ;;  %v6196_v16 = vmul.f32 %v6180_v38, %v13291_v51  ;;  %v6197_v32 = vmul.f32 %v6181_v22, %v13292_v63  ;;  %v13303_v51 = vld [vmem:[#allocation55_spill] sm:$0xff]  ;;  %v13304_v63 = vld [vmem:[#allocation56_spill] sm:$0xff] }
0x2b18   :  { %v6198_v21 = vmul.f32 %v6162_v6, %v13293_v44  ;;  %v6199_v7 = vmul.f32 %v6163_v30, %v13294_v47  ;;  %v6200_v0 = vmul.f32 %v6164_v48, %v13295_v18  ;;  %v6201_v11 = vmul.f32 %v6165_v31, %v13296_v62  ;;  %v13301_v48 = vld [vmem:[#allocation53_spill] sm:$0xff] }
0x2b19   :  { %v6206_v10 = vmul.f32 %v6190_v36, %v13297_v50  ;;  %v6207_v17 = vmul.f32 %v6191_v53, %v13298_v13  ;;  %v6208_v34 = vmul.f32 %v6192_v40, %v13299_v33  ;;  %v6209_v37 = vmul.f32 %v6193_v27, %v13300_v35  ;;  %v13302_v36 = vld [vmem:[#allocation54_spill] sm:$0xff] }
0x2b1a   :  { %v6202_v20 = vadd.f32 %v6198_v21, %v6194_v3  ;;  %v6203_v61 = vadd.f32 %v6199_v7, %v6195_v54  ;;  %v6204_v38 = vadd.f32 %v6200_v0, %v6196_v16  ;;  %v6205_v22 = vadd.f32 %v6201_v11, %v6197_v32 }
0x2b1c   :  { %v6210_v23 = vadd.f32 %v6206_v10, %v6202_v20  ;;  %v6211_v6 = vadd.f32 %v6207_v17, %v6203_v61  ;;  %v6212_v24 = vadd.f32 %v6208_v34, %v6204_v38  ;;  %v6213_v30 = vadd.f32 %v6209_v37, %v6205_v22  ;;  %v9231_v38 = vld [vmem:[%s12866_s0 + $0x90] sm:$0xff]  ;;  %v9232_v22 = vld [vmem:[%s12866_s0 + $0x98] sm:$0x1] }
0x2b1e   :  { %vm6214_vm6 = vcmp.gt.f32.partialorder %v6210_v23, 0.0  ;;  %vm6215_vm7 = vcmp.gt.f32.partialorder %v6211_v6, 0.0  ;;  %vm6216_vm4 = vcmp.gt.f32.partialorder %v6212_v24, 0.0  ;;  %vm6217_vm5 = vcmp.gt.f32.partialorder %v6213_v30, 0.0 }
0x2b1f   :  { %v6218_v31 = vmul.f32 %v6210_v23, %v13301_v48  ;;  %v6219_v53 = vmul.f32 %v6211_v6, %v13302_v36  ;;  %v6220_v40 = vmul.f32 %v6212_v24, %v13303_v51  ;;  %v6221_v27 = vmul.f32 %v6213_v30, %v13304_v63  ;;  %v9228_v36 = vld [vmem:[%s12866_s0 + $0x78] sm:$0xff]  ;;  %v9227_v63 = vld [vmem:[%s12866_s0 + $0x70] sm:$0xff] }
0x2b21   :  { %v12027_v3 = vsel %vm6214_vm6, %v6210_v23, %v6218_v31  ;;  %v12029_v54 = vsel %vm6215_vm7, %v6211_v6, %v6219_v53  ;;  %v12031_v16 = vsel %vm6216_vm4, %v6212_v24, %v6220_v40  ;;  %v12033_v32 = vsel %vm6217_vm5, %v6213_v30, %v6221_v27  ;;  %v9229_v24 = vld [vmem:[%s12866_s0 + $0x80] sm:$0xff]  ;;  %v9230_v30 = vld [vmem:[%s12866_s0 + $0x88] sm:$0xff] }
0x2b22   :  { %v6226_v44 = vsel %vm523_vm2, %v12027_v3, 0.0  ;;  %v6227_v21 = vsel %vm523_vm2, %v12029_v54, 0.0  ;;  %v6243_v7 = vmul.f32 %v12027_v3, %v12027_v3  ;;  %v6244_v18 = vmul.f32 %v12029_v54, %v12029_v54  ;;  %v9226_v27 = vld [vmem:[%s12866_s0 + $0x68] sm:$0xff] }
0x2b23   :  { %v6228_v47 = vadd.f32 %v6227_v21, %v6226_v44  ;;  %v6245_v0 = vmul.f32 %v12031_v16, %v12031_v16  ;;  %v6229_v62 = vsel %vm523_vm2, %v12031_v16, 0.0  ;;  %v6246_v50 = vmul.f32 %v12033_v32, %v12033_v32 }
0x2b24   :  { %v6247_v10 = vsel %vm523_vm2, %v6243_v7, 0.0  ;;  %v6248_v13 = vsel %vm523_vm2, %v6244_v18, 0.0  ;;  %v6231_v17 = vsel %vm523_vm2, %v12033_v32, 0.0  ;;  %v5234_v23 = vrot.slane %v9231_v38, 1  ;;  %v9225_v18 = vld [vmem:[%s12866_s0 + $0x60] sm:$0xff] }
0x2b25   :  { %v6230_v11 = vadd.f32 %v6229_v62, %v6228_v47  ;;  %v6249_v33 = vadd.f32 %v6248_v13, %v6247_v10  ;;  %v6250_v35 = vsel %vm523_vm2, %v6245_v0, 0.0  ;;  %v6252_v20 = vsel %vm523_vm2, %v6246_v50, 0.0  ;;  %v9224_v0 = vld [vmem:[%s12866_s0 + $0x58] sm:$0xff]  ;;  %v9223_v13 = vld [vmem:[%s12866_s0 + $0x50] sm:$0xff] }
0x2b26   :  { %v5236_v6 = vrot.slane %v9232_v22, 1  ;;  %v5230_v31 = vrot.slane %v9229_v24, 1  ;;  %v5232_v53 = vrot.slane %v9230_v30, 1  ;;  %v5228_v40 = vrot.slane %v9228_v36, 1 }
0x2b27   :  { %v6232_v34 = vadd.f32 %v6231_v17, %v6230_v11  ;;  %v6251_v37 = vadd.f32 %v6250_v35, %v6249_v33  ;;  %v5226_v47 = vrot.slane %v9227_v63, 1  ;;  %v5224_v7 = vrot.slane %v9226_v27, 1 }
0x2b28   :  { %v5237_v48 = vsel %vm97_vm12, %v5234_v23, %v5236_v6  ;;  %v5233_v51 = vsel %vm97_vm12, %v5230_v31, %v5232_v53  ;;  %v5235_v44 = vsel %vm97_vm12, %v5232_v53, %v5234_v23  ;;  %v5231_v21 = vsel %vm97_vm12, %v5228_v40, %v5230_v31 }
0x2b29   :  { %6233 = vadd.xlane.f32.xlu1 %v6232_v34  ;;  %v6253_v61 = vadd.f32 %v6252_v20, %v6251_v37  ;;  %v5229_v62 = vsel %vm97_vm12, %v5226_v47, %v5228_v40  ;;  %v5227_v11 = vsel %vm97_vm12, %v5224_v7, %v5226_v47  ;;  %v5222_v50 = vrot.slane %v9225_v18, 1 }
0x2b2a   :  { %v5220_v10 = vrot.slane %v9224_v0, 1  ;;  %v5219_v34 = vrot.slane %v9223_v13, 1 }
0x2b2b   :  { %6254 = vadd.xlane.f32.xlu0 %v6253_v61  ;;  %v5225_v17 = vsel %vm97_vm12, %v5222_v50, %v5224_v7 }
0x2b2c   :  { %v5223_v33 = vsel %vm97_vm12, %v5220_v10, %v5222_v50  ;;  %v5221_v35 = vsel %vm97_vm12, %v5219_v34, %v5220_v10 }
0x2b3a   :  { %5254 = vrot.lane.b32.xlu1 %v5237_v48, %s10106_s11 }
0x2b3e   :  { %5250 = vrot.lane.b32.xlu1 %v5233_v51, %s10106_s11 }
0x2b41   :  { %5252 = vrot.lane.b32.xlu0 %v5235_v44, %s10106_s11 }
0x2b42   :  { %5248 = vrot.lane.b32.xlu1 %v5231_v21, %s10106_s11 }
0x2b45   :  { %5246 = vrot.lane.b32.xlu0 %v5229_v62, %s10106_s11 }
0x2b46   :  { %5244 = vrot.lane.b32.xlu1 %v5227_v11, %s10106_s11 }
0x2b49   :  { %5242 = vrot.lane.b32.xlu0 %v5225_v17, %s10106_s11 }
0x2b4a   :  { %5240 = vrot.lane.b32.xlu1 %v5223_v33, %s10106_s11 }
0x2b4d   :  { %5238 = vrot.lane.b32.xlu0 %v5221_v35, %s10106_s11 }
0x2bb2   :  { %v6234_v37 = vpop.xlane.xlu1 %6233 }
0x2bb3   :  { %v6235_v20 = vrot.slane %v6234_v37, 4 }
0x2bb4   :  { %v6255_v22 = vpop.xlane.xlu0 %6254 }
0x2bb5   :  { %v6236_v61 = vadd.f32 %v6235_v20, %v6234_v37  ;;  %v6256_v23 = vrot.slane %v6255_v22, 4 }
0x2bb6   :  { %v5255_v6 = vpop.permute.xlu1 %5254 }
0x2bb7   :  { %v6237_v48 = vrot.slane %v6236_v61, 2  ;;  %v5273_v31 = vsel %vm144_vm14, %v9231_v38, %v5255_v6  ;;  %v6257_v53 = vadd.f32 %v6256_v23, %v6255_v22  ;;  %v9965_v22 = vld [vmem:[%s12868_s2 + $0x8] sm:$0xff]  ;;  %v9967_v23 = vld [vmem:[#allocation2 + $0x118] sm:$0xff]  ;;  %v9968_v6 = vld [vmem:[#allocation2 + $0x110] sm:$0xff] }
0x2bb8   :  { %9471 = vmatprep.subr.msk.mxu1 %vm154_vm13, %v5273_v31  ;;  %v5253_v40 = vpop.permute.xlu0 %5252 }
0x2bb9   :  { %v6238_v51 = vadd.f32 %v6237_v48, %v6236_v61  ;;  %9472 = vmatpush3.xpose.msk.msra.mxu1 %vm154_vm13, %v5273_v31  ;;  %v6258_v44 = vrot.slane %v6257_v53, 2  ;;  %v5272_v21 = vsel %vm144_vm14, %v9230_v30, %v5253_v40 }
0x2bba   :  { %v5251_v47 = vpop.permute.xlu1 %5250  ;;  %9473 = vmatprep.subr.msk.mxu1 %vm154_vm13, %v5272_v21 }
0x2bbb   :  { %v6239_v7 = vrot.slane %v6238_v51, 1  ;;  %v5271_v62 = vsel %vm144_vm14, %v9229_v24, %v5251_v47  ;;  %v6259_v11 = vadd.f32 %v6258_v44, %v6257_v53  ;;  %v13305_v47 = vld [vmem:[#allocation57_spill] sm:$0xff] }
0x2bbc   :  { %v5247_v34 = vpop.permute.xlu0 %5246 }
0x2bbd   :  { %v6240_v50 = vadd.f32 %v6239_v7, %v6238_v51  ;;  %9474 = vmatpush3.xpose.msk.msra.mxu1 %vm154_vm13, %v5272_v21  ;;  %v6260_v38 = vrot.slane %v6259_v11, 1  ;;  %v5269_v24 = vsel %vm144_vm14, %v9227_v63, %v5247_v34 }
0x2bbe   :  { %9475 = vmatprep.subr.msk.mxu1 %vm154_vm13, %v5271_v62  ;;  %v5249_v10 = vpop.permute.xlu1 %5248 }
0x2bbf   :  { %9711 = vpush %v6240_v50  ;;  %v5270_v17 = vsel %vm144_vm14, %v9228_v36, %v5249_v10  ;;  %v6261_v33 = vadd.f32 %v6260_v38, %v6259_v11  ;;  %v13307_v50 = vld [vmem:[#allocation59_spill] sm:$0xff]  ;;  %v13308_v10 = vld [vmem:[#allocation60_spill] sm:$0xff] }
0x2bc0   :  { %v5243_v37 = vpop.permute.xlu0 %5242 }
0x2bc1   :  { %9476 = vmatpush3.xpose.msk.msra.mxu1 %vm154_vm13, %v5271_v62  ;;  %9713 = vpush %v6261_v33  ;;  %v5267_v36 = vsel %vm144_vm14, %v9225_v18, %v5243_v37  ;;  %v9964_v18 = vld [vmem:[#allocation2 + $0x138] sm:$0xff] }
0x2bc2   :  { %9477 = vmatprep.subr.msk.mxu1 %vm154_vm13, %v5270_v17  ;;  %v5245_v30 = vpop.permute.xlu1 %5244  ;;  %v13306_v62 = vld [vmem:[#allocation58_spill] sm:$0xff] }
0x2bc3   :  { %v5268_v35 = vsel %vm144_vm14, %v9226_v27, %v5245_v30  ;;  %v13310_v37 = vld [vmem:[#allocation62_spill] sm:$0xff] }
0x2bc4   :  { %v5239_v61 = vpop.permute.xlu0 %5238 }
0x2bc5   :  { %9478 = vmatpush3.xpose.msk.msra.mxu1 %vm154_vm13, %v5270_v17  ;;  %v5265_v27 = vsel %vm144_vm14, %v9223_v13, %v5239_v61  ;;  %v9969_v13 = vld [vmem:[#allocation2 + $0x178] sm:$0xff]  ;;  %v9970_v61 = vld [vmem:[#allocation2 + $0x160] sm:$0xff] }
0x2bc6   :  { %9479 = vmatprep.subr.msk.mxu1 %vm154_vm13, %v5269_v24  ;;  %v5241_v20 = vpop.permute.xlu1 %5240 }
0x2bc7   :  { %v5266_v63 = vsel %vm144_vm14, %v9224_v0, %v5241_v20  ;;  %v9966_v0 = vld [vmem:[#allocation2 + $0x130] sm:$0xff]  ;;  %v13312_v20 = vld [vmem:[#allocation64_spill] sm:$0xff] }
0x2bc9   :  { %9480 = vmatpush3.xpose.msk.msra.mxu1 %vm154_vm13, %v5269_v24 }
0x2bca   :  { %9481 = vmatprep.subr.msk.mxu1 %vm154_vm13, %v5268_v35 }
0x2bcd   :  { %9482 = vmatpush3.xpose.msk.msra.mxu1 %vm154_vm13, %v5268_v35  ;;  %v13309_v35 = vld [vmem:[#allocation61_spill] sm:$0xff] }
0x2bce   :  { %9483 = vmatprep.subr.msk.mxu1 %vm154_vm13, %v5267_v36 }
0x2bd1   :  { %9484 = vmatpush3.xpose.msk.msra.mxu1 %vm154_vm13, %v5267_v36  ;;  %v13311_v36 = vld [vmem:[#allocation63_spill] sm:$0xff] }
0x2bd2   :  { %9485 = vmatprep.subr.msk.mxu1 %vm154_vm13, %v5266_v63 }
0x2bd5   :  { %9486 = vmatpush3.xpose.msk.msra.mxu1 %vm154_vm13, %v5266_v63 }
0x2bd6   :  { %9487 = vmatprep.subr.msk.mxu1 %vm154_vm13, %v5265_v27 }
0x2bd9   :  { %9488 = vmatpush3.xpose.msk.msra.mxu1 %vm154_vm13, %v5265_v27  ;;  %v9971_v27 = vld [vmem:[#allocation2 + $0x170] sm:$0xff] }
0x2bda   :  { %6386 = vmatprep.subr.mxu1 %v9964_v18  ;;  %v9972_v18 = vld [vmem:[#allocation2 + $0x148] sm:$0xff] }
0x2bdc   :  { %9490 = vmatmul.mubr.msk.f32.vlgmr.msra.gmra.mxu1 %vm154_vm13, %v9965_v22  ;;  %v9973_v22 = vld [vmem:[#allocation2 + $0x158] sm:$0xff] }
0x2bdd   :  { %6387 = vmatpush1.xpose.msra.mxu1 %v9966_v0  ;;  %v9974_v0 = vld [vmem:[#allocation2 + $0x140] sm:$0xff] }
0x2bde   :  { %6388 = vmatprep.subr.mxu1 %v9967_v23  ;;  %v9975_v23 = vld [vmem:[#allocation2 + $0x150] sm:$0xff] }
0x2be1   :  { %6389 = vmatpush1.xpose.msra.mxu1 %v9968_v6  ;;  %v9976_v6 = vld [vmem:[#allocation2 + $0x1c8] sm:$0xff] }
0x2be2   :  { %6566 = vmatprep.subr.mxu1 %v9969_v13  ;;  %v9977_v13 = vld [vmem:[#allocation2 + $0x1d8] sm:$0xff] }
0x2bf0   :  { %s9712_s8 = spop %9711 }
0x2bf1   :  { %s6242_s4 = smul.f32 0.0009765625, %s9712_s8 }
0x2bf2   :  { %s9714_s10 = spop %9713 }
0x2bf3   :  { %s6264_s9 = smul.f32 %s6242_s4, %s6242_s4  ;;  %v6266_v53 = vstv %s6242_s4 }
0x2bf4   :  { %s6263_s13 = smul.f32 0.0009765625, %s9714_s10  ;;  %v6267_v51 = vsub.f32 %v12027_v3, %v6266_v53  ;;  %v6268_v40 = vsub.f32 %v12029_v54, %v6266_v53  ;;  %v6269_v44 = vsub.f32 %v12031_v16, %v6266_v53  ;;  %v6270_v21 = vsub.f32 %v12033_v32, %v6266_v53 }
0x2bf6   :  { %s6265_s14 = ssub.f32 %s6263_s13, %s6264_s9  ;;  %v6271_v7 = vmul.f32 %v6267_v51, %v13305_v47  ;;  %v6272_v11 = vmul.f32 %v6268_v40, %v13306_v62  ;;  %v6273_v38 = vmul.f32 %v6269_v44, %v13307_v50  ;;  %v6274_v17 = vmul.f32 %v6270_v21, %v13308_v10 }
0x2bf8   :  { %s6275_s15 = sadd.f32 1e-08, %s6265_s14 }
0x2bfa   :  { %v6276_v48 = vstv %s6275_s15 }
0x2bfb   :  { %9904 = vrsqrt.f32 %v6276_v48  ;;  %v12148_v48 = vpop.f32.mrf.mxu1 }
0x2bfc   :  { %13313 = vst [vmem:[#allocation13_spill] sm:$0xff] %v12148_v48 }
0x2c08   :  { %v9905_v31 = vpop.eup %9904 }
0x2c09   :  { %9715 = vpush %v9905_v31  ;;  %v12150_v31 = vpop.f32.mrf.mxu1 }
0x2c0a   :  { %13314 = vst [vmem:[#allocation16_spill] sm:$0xff] %v12150_v31  ;;  %v13334_v31 = vld [vmem:[#allocation83_spill] sm:$0xff] }
0x2c3a   :  { %s9716_s16 = spop %9715 }
0x2c3b   :  { %v6279_v33 = vstv %s9716_s16 }
0x2c3c   :  { %v6280_v34 = vmul.f32 %v6279_v33, %v6271_v7  ;;  %v6281_v24 = vmul.f32 %v6279_v33, %v6272_v11  ;;  %v6282_v30 = vmul.f32 %v6279_v33, %v6273_v38  ;;  %v6283_v3 = vmul.f32 %v6279_v33, %v6274_v17 }
0x2c3e   :  { %v6284_v54 = vadd.f32 %v6280_v34, %v13309_v35  ;;  %v6286_v16 = vadd.f32 %v6282_v30, %v13310_v37  ;;  %v6285_v32 = vadd.f32 %v6281_v24, %v13311_v36  ;;  %v6287_v63 = vadd.f32 %v6283_v3, %v13312_v20 }
0x2c40   :  { %6352 = vmatprep.mubr.f32.mxu0 %v6285_v32  ;;  %6422 = vmatprep.mubr.f32.mxu1 %v6287_v63 }
0x2c41   :  { %6353 = vmatmul.mubr.f32.vlgmr.msra.gmra.mxu0 %v6284_v54  ;;  %6423 = vmatmul.mubr.f32.vlgmr.msra.gmra.mxu1 %v6286_v16 }
0x2c42   :  { %6496 = vmatpush1.msra.mxu0 %v9970_v61  ;;  %6567 = vmatpush1.msra.mxu1 %v9971_v27 }
0x2c43   :  { %6497 = vmatprep.subr.mxu0 %v9972_v18  ;;  %6568 = vmatprep.subr.mxu1 %v9973_v22 }
0x2c44   :  { %6498 = vmatpush1.msra.mxu0 %v9974_v0  ;;  %6531 = vmatprep.mubr.f32.mxu0 %v13128_v9 }
0x2c45   :  { %6569 = vmatpush1.msra.mxu1 %v9975_v23  ;;  %6602 = vmatprep.mubr.f32.mxu1 %v13128_v9 }
0x2c46   :  { %6825 = vmatprep.subr.mxu0 %v9976_v6  ;;  %6895 = vmatprep.subr.mxu1 %v9977_v13 }
0x2c9c   :  { %v9491_v53 = vpop.f32.mrf.mxu1 }
0x2c9d   :  { %v12152_v51 = vmax.f32 %v9491_v53, 0.0 }
0x2c9e   :  { %v5367_v40 = vpop.f32.mrf.mxu1 }
0x2c9f   :  { %v5379_v44 = vsel %vm265_vm15, %v12152_v51, 0.0  ;;  %v5389_v21 = vmul.f32 %v12152_v51, %v12152_v51  ;;  %v12158_v47 = vmax.f32 %v5367_v40, 0.0 }
0x2ca1   :  { %13315 = vst [vmem:[#allocation9_spill] sm:$0xff] %v12158_v47  ;;  %v5391_v7 = vsel %vm265_vm15, %v5389_v21, 0.0  ;;  %v5378_v62 = vsel %vm265_vm15, %v12158_v47, 0.0  ;;  %v5388_v11 = vmul.f32 %v12158_v47, %v12158_v47 }
0x2ca2   :  { %v5380_v50 = vadd.f32 %v5379_v44, %v5378_v62 }
0x2ca3   :  { %v5390_v38 = vsel %vm265_vm15, %v5388_v11, 0.0 }
0x2ca4   :  { %v5381_v10 = vrot.slane %v5380_v50, 4  ;;  %v5392_v17 = vadd.f32 %v5391_v7, %v5390_v38 }
0x2ca6   :  { %v5382_v33 = vadd.f32 %v5381_v10, %v5380_v50  ;;  %v5393_v34 = vrot.slane %v5392_v17, 4 }
0x2ca8   :  { %v5383_v24 = vrot.slane %v5382_v33, 2  ;;  %v5394_v30 = vadd.f32 %v5393_v34, %v5392_v17 }
0x2caa   :  { %v5395_v3 = vrot.slane %v5394_v30, 2  ;;  %v5384_v35 = vadd.f32 %v5383_v24, %v5382_v33 }
0x2cac   :  { %v5396_v54 = vadd.f32 %v5395_v3, %v5394_v30  ;;  %v5385_v37 = vrot.slane %v5384_v35, 1 }
0x2cae   :  { %v5397_v16 = vrot.slane %v5396_v54, 1  ;;  %v5386_v36 = vadd.f32 %v5385_v37, %v5384_v35 }
0x2cb0   :  { %v5398_v32 = vadd.f32 %v5397_v16, %v5396_v54  ;;  %v12166_v20 = vmul.f32 0.0625, %v5386_v36 }
0x2cb2   :  { %v5399_v63 = vmul.f32 0.0625, %v5398_v32  ;;  %v5402_v61 = vmul.f32 %v12166_v20, %v12166_v20  ;;  %v5400_v22 = vsub.f32 %v12158_v47, %v12166_v20  ;;  %v13333_v47 = vld [vmem:[#allocation82_spill] sm:$0xff] }
0x2cb4   :  { %v5403_v27 = vsub.f32 %v5399_v63, %v5402_v61 }
0x2cb6   :  { %v5404_v18 = vadd.f32 1e-05, %v5403_v27 }
0x2cb8   :  { %9906 = vrsqrt.f32 %v5404_v18  ;;  %v13316_v18 = vld [vmem:[#allocation65_spill] sm:$0xff] }
0x2cc5   :  { %v12172_v0 = vpop.eup %9906 }
0x2cc6   :  { %v12175_v23 = vmul.f32 %v12172_v0, %v5400_v22 }
0x2d01   :  { %v6354_v6 = vpop.f32.mrf.mxu0  ;;  %v6424_v13 = vpop.f32.mrf.mxu1 }
0x2d02   :  { %v6355_v53 = vadd.f32 %v6354_v6, %v11977_v14 }
0x2d03   :  { %v6356_v40 = vpop.f32.mrf.mxu0  ;;  %v6426_v44 = vpop.f32.mrf.mxu1 }
0x2d04   :  { %v12178_v21 = vadd.f32 %v6424_v13, %v6355_v53  ;;  %v13317_v53 = vld [vmem:[#allocation66_spill] sm:$0xff]  ;;  %v9978_v44 = vld [vmem:[#allocation2 + $0x1c0] sm:$0xff] }
0x2d06   :  { %v6428_v7 = vmax.f32 %v12178_v21, 0.0 }
0x2d08   :  { %v6429_v62 = vsel %vm329_vm0, %v6428_v7, 0.0  ;;  %v6440_v11 = vmul.f32 %v6428_v7, %v6428_v7 }
0x2d09   :  { %6430 = vadd.xlane.f32.xlu1 %v6429_v62  ;;  %v9979_v62 = vld [vmem:[#allocation2 + $0x1d0] sm:$0xff] }
0x2d0a   :  { %v6441_v50 = vsel %vm329_vm0, %v6440_v11, 0.0  ;;  %v9980_v11 = vld [vmem:[#allocation2 + $0x1a8] sm:$0xff] }
0x2d0b   :  { %6442 = vadd.xlane.f32.xlu0 %v6441_v50  ;;  %v9981_v50 = vld [vmem:[#allocation2 + $0x1b8] sm:$0xff] }
0x2d92   :  { %v6431_v38 = vpop.xlane.xlu1 %6430 }
0x2d93   :  { %v6432_v10 = vrot.slane %v6431_v38, 4 }
0x2d94   :  { %v6443_v17 = vpop.xlane.xlu0 %6442 }
0x2d95   :  { %v6433_v33 = vadd.f32 %v6432_v10, %v6431_v38  ;;  %v6444_v34 = vrot.slane %v6443_v17, 4  ;;  %v9983_v38 = vld [vmem:[#allocation2 + $0x1b0] sm:$0xff]  ;;  %v9984_v10 = vld [vmem:[#allocation2 + $0x208] sm:$0xff] }
0x2d97   :  { %v6434_v24 = vrot.slane %v6433_v33, 2  ;;  %v6445_v14 = vadd.f32 %v6444_v34, %v6443_v17  ;;  %v9985_v17 = vld [vmem:[#allocation2 + $0x218] sm:$0xff] }
0x2d99   :  { %v6446_v30 = vrot.slane %v6445_v14, 2  ;;  %v6435_v3 = vadd.f32 %v6434_v24, %v6433_v33 }
0x2d9b   :  { %v6436_v35 = vrot.slane %v6435_v3, 1  ;;  %v6447_v54 = vadd.f32 %v6446_v30, %v6445_v14 }
0x2d9d   :  { %v6437_v37 = vadd.f32 %v6436_v35, %v6435_v3  ;;  %v6448_v16 = vrot.slane %v6447_v54, 1 }
0x2d9f   :  { %9717 = vpush %v6437_v37  ;;  %v6449_v36 = vadd.f32 %v6448_v16, %v6447_v54 }
0x2da1   :  { %9719 = vpush %v6449_v36 }
0x2dd0   :  { %s9718_s17 = spop %9717 }
0x2dd1   :  { %s6439_s18 = smul.f32 0.03125, %s9718_s17 }
0x2dd2   :  { %s9720_s1 = spop %9719 }
0x2dd3   :  { %s6452_s12 = smul.f32 %s6439_s18, %s6439_s18  ;;  %v6454_v61 = vstv %s6439_s18 }
0x2dd4   :  { %s6451_s21 = smul.f32 0.03125, %s9720_s1  ;;  %v6455_v27 = vsub.f32 %v6428_v7, %v6454_v61  ;;  %v9982_v7 = vld [vmem:[#allocation2 + $0x1a0] sm:$0xff] }
0x2dd6   :  { %s6453_s22 = ssub.f32 %s6451_s21, %s6452_s12  ;;  %v6456_v22 = vmul.f32 %v6455_v27, %v13316_v18 }
0x2dd8   :  { %s6457_s23 = sadd.f32 1e-08, %s6453_s22 }
0x2dda   :  { %v6458_v32 = vstv %s6457_s23 }
0x2ddb   :  { %9908 = vrsqrt.f32 %v6458_v32 }
0x2de8   :  { %v9909_v63 = vpop.eup %9908 }
0x2de9   :  { %9721 = vpush %v9909_v63 }
0x2e1a   :  { %s9722_s24 = spop %9721 }
0x2e1b   :  { %v6461_v6 = vstv %s9722_s24 }
0x2e1c   :  { %v6462_v13 = vmul.f32 %v6461_v6, %v6456_v22 }
0x2e1e   :  { %v6463_v40 = vadd.f32 %v6462_v13, %v13317_v53 }
0x2e20   :  { %9249 = vmatmul.mubr.msk.f32.vlgmr.msra.gmra.mxu0 %vm373_vm1, %v6463_v40  ;;  %9250 = vmatmul.mubr.msk.f32.vlgmr.msra.gmra.mxu1 %vm373_vm1, %v6463_v40 }
0x2e21   :  { %6826 = vmatpush1.xpose.msra.mxu0 %v9978_v44  ;;  %6896 = vmatpush1.xpose.msra.mxu1 %v9979_v62 }
0x2e22   :  { %6827 = vmatprep.subr.mxu0 %v9980_v11  ;;  %6897 = vmatprep.subr.mxu1 %v9981_v50 }
0x2e25   :  { %6828 = vmatpush1.xpose.msra.mxu0 %v9982_v7  ;;  %6898 = vmatpush1.xpose.msra.mxu1 %v9983_v38 }
0x2e26   :  { %7004 = vmatprep.subr.mxu0 %v9984_v10  ;;  %7075 = vmatprep.subr.mxu1 %v9985_v17 }
0x2ee0   :  { %v6533_v33 = vpop.f32.mrf.mxu0  ;;  %v6604_v34 = vpop.f32.mrf.mxu1 }
0x2ee1   :  { %v6609_v24 = vmax.f32 %v6533_v33, 0.0  ;;  %v6611_v14 = vmax.f32 %v6604_v34, 0.0 }
0x2ee2   :  { %v6535_v30 = vpop.f32.mrf.mxu0  ;;  %v6606_v3 = vpop.f32.mrf.mxu1 }
0x2ee3   :  { %v6630_v35 = vmul.f32 %v6609_v24, %v6609_v24  ;;  %v6610_v54 = vmax.f32 %v6535_v30, 0.0  ;;  %v6612_v37 = vmax.f32 %v6606_v3, 0.0  ;;  %v6613_v16 = vsel %vm523_vm2, %v6609_v24, 0.0 }
0x2ee4   :  { %v6632_v36 = vmul.f32 %v6611_v14, %v6611_v14  ;;  %v6616_v6 = vsel %vm523_vm2, %v6611_v14, 0.0 }
0x2ee5   :  { %v6614_v32 = vsel %vm523_vm2, %v6610_v54, 0.0  ;;  %v6631_v63 = vmul.f32 %v6610_v54, %v6610_v54  ;;  %v6634_v27 = vsel %vm523_vm2, %v6630_v35, 0.0  ;;  %v6633_v22 = vmul.f32 %v6612_v37, %v6612_v37 }
0x2ee6   :  { %v6615_v61 = vadd.f32 %v6614_v32, %v6613_v16  ;;  %v6618_v40 = vsel %vm523_vm2, %v6612_v37, 0.0  ;;  %v6637_v44 = vsel %vm523_vm2, %v6632_v36, 0.0 }
0x2ee7   :  { %v6635_v18 = vsel %vm523_vm2, %v6631_v63, 0.0  ;;  %v6639_v50 = vsel %vm523_vm2, %v6633_v22, 0.0 }
0x2ee8   :  { %v6617_v13 = vadd.f32 %v6616_v6, %v6615_v61  ;;  %v6636_v53 = vadd.f32 %v6635_v18, %v6634_v27 }
0x2eea   :  { %v6619_v62 = vadd.f32 %v6618_v40, %v6617_v13  ;;  %v6638_v11 = vadd.f32 %v6637_v44, %v6636_v53 }
0x2eec   :  { %6620 = vadd.xlane.f32.xlu0 %v6619_v62  ;;  %v6640_v7 = vadd.f32 %v6639_v50, %v6638_v11  ;;  %v13318_v62 = vld [vmem:[#allocation67_spill] sm:$0xff]  ;;  %v13319_v50 = vld [vmem:[#allocation68_spill] sm:$0xff] }
0x2eee   :  { %6641 = vadd.xlane.f32.xlu1 %v6640_v7 }
0x2f75   :  { %v6621_v38 = vpop.xlane.xlu0 %6620 }
0x2f76   :  { %v6622_v10 = vrot.slane %v6621_v38, 4 }
0x2f77   :  { %v6642_v17 = vpop.xlane.xlu1 %6641 }
0x2f78   :  { %v6623_v33 = vadd.f32 %v6622_v10, %v6621_v38  ;;  %v6643_v34 = vrot.slane %v6642_v17, 4  ;;  %v13320_v38 = vld [vmem:[#allocation69_spill] sm:$0xff] }
0x2f7a   :  { %v6624_v30 = vrot.slane %v6623_v33, 2  ;;  %v6644_v3 = vadd.f32 %v6643_v34, %v6642_v17  ;;  %v13321_v17 = vld [vmem:[#allocation70_spill] sm:$0xff] }
0x2f7c   :  { %v6645_v35 = vrot.slane %v6644_v3, 2  ;;  %v6625_v16 = vadd.f32 %v6624_v30, %v6623_v33 }
0x2f7e   :  { %v6626_v32 = vrot.slane %v6625_v16, 1  ;;  %v6646_v63 = vadd.f32 %v6645_v35, %v6644_v3 }
0x2f80   :  { %v6627_v61 = vadd.f32 %v6626_v32, %v6625_v16  ;;  %v6647_v36 = vrot.slane %v6646_v63, 1  ;;  %v13322_v32 = vld [vmem:[#allocation71_spill] sm:$0xff] }
0x2f82   :  { %9723 = vpush %v6627_v61  ;;  %v6648_v27 = vadd.f32 %v6647_v36, %v6646_v63  ;;  %v13325_v61 = vld [vmem:[#allocation74_spill] sm:$0xff] }
0x2f84   :  { %9725 = vpush %v6648_v27 }
0x2fb3   :  { %s9724_s25 = spop %9723 }
0x2fb4   :  { %s6629_s28 = smul.f32 0.0009765625, %s9724_s25 }
0x2fb5   :  { %s9726_s29 = spop %9725 }
0x2fb6   :  { %s6651_s3 = smul.f32 %s6629_s28, %s6629_s28  ;;  %v6653_v6 = vstv %s6629_s28 }
0x2fb7   :  { %s6650_s30 = smul.f32 0.0009765625, %s9726_s29  ;;  %v6654_v13 = vsub.f32 %v6609_v24, %v6653_v6  ;;  %v6655_v53 = vsub.f32 %v6610_v54, %v6653_v6  ;;  %v6656_v40 = vsub.f32 %v6611_v14, %v6653_v6  ;;  %v6657_v44 = vsub.f32 %v6612_v37, %v6653_v6  ;;  %v13323_v24 = vld [vmem:[#allocation72_spill] sm:$0xff]  ;;  %v13324_v14 = vld [vmem:[#allocation73_spill] sm:$0xff] }
0x2fb9   :  { %s6652_s0 = ssub.f32 %s6650_s30, %s6651_s3  ;;  %v6658_v11 = vmul.f32 %v6654_v13, %v13318_v62  ;;  %v6659_v7 = vmul.f32 %v6655_v53, %v13319_v50  ;;  %v6660_v10 = vmul.f32 %v6656_v40, %v13320_v38  ;;  %v6661_v33 = vmul.f32 %v6657_v44, %v13321_v17 }
0x2fbb   :  { %s6662_s7 = sadd.f32 1e-08, %s6652_s0 }
0x2fbd   :  { %v6663_v18 = vstv %s6662_s7 }
0x2fbe   :  { %9910 = vrsqrt.f32 %v6663_v18 }
0x2fcb   :  { %v9911_v22 = vpop.eup %9910 }
0x2fcc   :  { %9727 = vpush %v9911_v22 }
0x2ffd   :  { %s9728_s8 = spop %9727 }
0x2ffe   :  { %v6666_v34 = vstv %s9728_s8 }
0x2fff   :  { %v6667_v30 = vmul.f32 %v6666_v34, %v6658_v11  ;;  %v6668_v3 = vmul.f32 %v6666_v34, %v6659_v7  ;;  %v6669_v35 = vmul.f32 %v6666_v34, %v6660_v10  ;;  %v6670_v16 = vmul.f32 %v6666_v34, %v6661_v33  ;;  %v13326_v33 = vld [vmem:[#allocation78_spill] sm:$0xff] }
0x3001   :  { %v6671_v63 = vadd.f32 %v6667_v30, %v13322_v32  ;;  %v6672_v54 = vadd.f32 %v6668_v3, %v13323_v24  ;;  %v6673_v37 = vadd.f32 %v6669_v35, %v13324_v14  ;;  %v6674_v36 = vadd.f32 %v6670_v16, %v13325_v61  ;;  %v13327_v30 = vld [vmem:[#allocation79_spill] sm:$0xff]  ;;  %v13328_v35 = vld [vmem:[#allocation81_spill] sm:$0xff]  ;;  %v13330_v14 = vld [vmem:[#allocation76_spill] sm:$0xff] }
0x3002   :  { %v13329_v32 = vld [vmem:[#allocation75_spill] sm:$0xff] }
0x3003   :  { %v6679_v27 = vrot.slane %v6671_v63, 7  ;;  %v6680_v18 = vrot.slane %v6672_v54, 7  ;;  %v6681_v22 = vrot.slane %v6673_v37, 7  ;;  %v6682_v6 = vrot.slane %v6674_v36, 7 }
0x3004   :  { %v6691_v13 = vrot.slane %v6671_v63, 1  ;;  %v6692_v53 = vrot.slane %v6672_v54, 1  ;;  %v6693_v40 = vrot.slane %v6673_v37, 1  ;;  %v6694_v44 = vrot.slane %v6674_v36, 1 }
0x3005   :  { %v6687_v62 = vsel %vm640_vm3, 0.0, %v6679_v27  ;;  %v6688_v11 = vsel %vm640_vm3, 0.0, %v6680_v18  ;;  %v6689_v50 = vsel %vm640_vm3, 0.0, %v6681_v22  ;;  %v6690_v7 = vsel %vm640_vm3, 0.0, %v6682_v6  ;;  %v13331_v27 = vld [vmem:[#allocation77_spill] sm:$0xff]  ;;  %v13332_v22 = vld [vmem:[#allocation80_spill] sm:$0xff] }
0x3006   :  { %v6699_v38 = vsel %vm640_vm3, %v6691_v13, 0.0  ;;  %v6700_v10 = vsel %vm640_vm3, %v6692_v53, 0.0  ;;  %v6701_v17 = vsel %vm640_vm3, %v6693_v40, 0.0  ;;  %v6703_v34 = vmul.f32 %v6687_v62, %v13326_v33  ;;  %v13335_v33 = vld [vmem:[#allocation84_spill] sm:$0xff] }
0x3007   :  { %v6704_v3 = vmul.f32 %v6688_v11, %v13327_v30  ;;  %v6705_v16 = vmul.f32 %v6689_v50, %v13328_v35  ;;  %v6707_v24 = vmul.f32 %v6671_v63, %v13329_v32  ;;  %v6708_v61 = vmul.f32 %v6672_v54, %v13330_v14  ;;  %v13336_v50 = vld [vmem:[#allocation85_spill] sm:$0xff]  ;;  %v13337_v32 = vld [vmem:[#allocation86_spill] sm:$0xff] }
0x3008   :  { %v6709_v18 = vmul.f32 %v6673_v37, %v13331_v27  ;;  %v6710_v6 = vmul.f32 %v6674_v36, %v13332_v22  ;;  %v6715_v13 = vmul.f32 %v6699_v38, %v13333_v47  ;;  %v6716_v53 = vmul.f32 %v6700_v10, %v13334_v31  ;;  %v13338_v47 = vld [vmem:[#allocation87_spill] sm:$0xff]  ;;  %v13339_v38 = vld [vmem:[#allocation88_spill] sm:$0xff] }
0x3009   :  { %v6711_v48 = vadd.f32 %v6707_v24, %v6703_v34  ;;  %v6712_v40 = vadd.f32 %v6708_v61, %v6704_v3  ;;  %v6702_v62 = vsel %vm640_vm3, %v6694_v44, 0.0  ;;  %v6706_v11 = vmul.f32 %v6690_v7, %v13335_v33  ;;  %v13340_v44 = vld [vmem:[#allocation89_spill] sm:$0xff]  ;;  %v13341_v7 = vld [vmem:[#allocation90_spill] sm:$0xff] }
0x300a   :  { %v6713_v30 = vadd.f32 %v6709_v18, %v6705_v16  ;;  %v6717_v35 = vmul.f32 %v6701_v17, %v13336_v50  ;;  %v6718_v54 = vmul.f32 %v6702_v62, %v13337_v32 }
0x300b   :  { %v6714_v63 = vadd.f32 %v6710_v6, %v6706_v11  ;;  %v6719_v14 = vadd.f32 %v6715_v13, %v6711_v48  ;;  %v6720_v37 = vadd.f32 %v6716_v53, %v6712_v40 }
0x300c   :  { %v6721_v27 = vadd.f32 %v6717_v35, %v6713_v30 }
0x300d   :  { %v6722_v36 = vadd.f32 %v6718_v54, %v6714_v63  ;;  %vm6723_vm12 = vcmp.gt.f32.partialorder %v6719_v14, 0.0  ;;  %vm6724_vm13 = vcmp.gt.f32.partialorder %v6720_v37, 0.0  ;;  %v6727_v31 = vmul.f32 %v6719_v14, %v13338_v47 }
0x300e   :  { %vm6725_vm6 = vcmp.gt.f32.partialorder %v6721_v27, 0.0  ;;  %v6728_v10 = vmul.f32 %v6720_v37, %v13339_v38  ;;  %v6729_v34 = vmul.f32 %v6721_v27, %v13340_v44 }
0x300f   :  { %vm6726_vm7 = vcmp.gt.f32.partialorder %v6722_v36, 0.0  ;;  %v6730_v3 = vmul.f32 %v6722_v36, %v13341_v7  ;;  %v6731_v17 = vsel %vm6723_vm12, %v6719_v14, %v6727_v31 }
0x3010   :  { %v6732_v16 = vsel %vm6724_vm13, %v6720_v37, %v6728_v10  ;;  %v6733_v24 = vsel %vm6725_vm6, %v6721_v27, %v6729_v34  ;;  %v6735_v48 = vsel %vm523_vm2, %v6731_v17, 0.0  ;;  %v6752_v61 = vmul.f32 %v6731_v17, %v6731_v17 }
0x3011   :  { %v6734_v18 = vsel %vm6726_vm7, %v6722_v36, %v6730_v3  ;;  %v6736_v22 = vsel %vm523_vm2, %v6732_v16, 0.0  ;;  %v6753_v6 = vmul.f32 %v6732_v16, %v6732_v16  ;;  %v6754_v53 = vmul.f32 %v6733_v24, %v6733_v24 }
0x3012   :  { %v6737_v13 = vadd.f32 %v6736_v22, %v6735_v48  ;;  %v6738_v40 = vsel %vm523_vm2, %v6733_v24, 0.0  ;;  %v6755_v62 = vmul.f32 %v6734_v18, %v6734_v18  ;;  %v6756_v33 = vsel %vm523_vm2, %v6752_v61, 0.0 }
0x3013   :  { %v6757_v11 = vsel %vm523_vm2, %v6753_v6, 0.0  ;;  %v6740_v35 = vsel %vm523_vm2, %v6734_v18, 0.0  ;;  %v6759_v63 = vsel %vm523_vm2, %v6754_v53, 0.0 }
0x3014   :  { %v6739_v30 = vadd.f32 %v6738_v40, %v6737_v13  ;;  %v6758_v50 = vadd.f32 %v6757_v11, %v6756_v33  ;;  %v6761_v14 = vsel %vm523_vm2, %v6755_v62, 0.0 }
0x3016   :  { %v6741_v32 = vadd.f32 %v6740_v35, %v6739_v30  ;;  %v6760_v54 = vadd.f32 %v6759_v63, %v6758_v50  ;;  %v13342_v50 = vld [vmem:[#allocation91_spill] sm:$0xff]  ;;  %v13343_v63 = vld [vmem:[#allocation92_spill] sm:$0xff] }
0x3018   :  { %6742 = vadd.xlane.f32.xlu0 %v6741_v32  ;;  %v6762_v37 = vadd.f32 %v6761_v14, %v6760_v54  ;;  %v13344_v54 = vld [vmem:[#allocation93_spill] sm:$0xff] }
0x301a   :  { %6763 = vadd.xlane.f32.xlu1 %v6762_v37  ;;  %v13345_v37 = vld [vmem:[#allocation94_spill] sm:$0xff] }
0x30a1   :  { %v6743_v27 = vpop.xlane.xlu0 %6742 }
0x30a2   :  { %v6744_v36 = vrot.slane %v6743_v27, 4 }
0x30a3   :  { %v6764_v47 = vpop.xlane.xlu1 %6763 }
0x30a4   :  { %v6745_v31 = vadd.f32 %v6744_v36, %v6743_v27  ;;  %v6765_v38 = vrot.slane %v6764_v47, 4 }
0x30a6   :  { %v6746_v10 = vrot.slane %v6745_v31, 2  ;;  %v6766_v44 = vadd.f32 %v6765_v38, %v6764_v47 }
0x30a8   :  { %v6767_v34 = vrot.slane %v6766_v44, 2  ;;  %v6747_v7 = vadd.f32 %v6746_v10, %v6745_v31 }
0x30aa   :  { %v6748_v3 = vrot.slane %v6747_v7, 1  ;;  %v6768_v48 = vadd.f32 %v6767_v34, %v6766_v44  ;;  %v13346_v44 = vld [vmem:[#allocation95_spill] sm:$0xff] }
0x30ac   :  { %v6749_v61 = vadd.f32 %v6748_v3, %v6747_v7  ;;  %v6769_v22 = vrot.slane %v6768_v48, 1  ;;  %v13349_v7 = vld [vmem:[#allocation98_spill] sm:$0xff] }
0x30ae   :  { %9729 = vpush %v6749_v61  ;;  %v6770_v6 = vadd.f32 %v6769_v22, %v6768_v48  ;;  %v9986_v48 = vld [vmem:[#allocation2 + $0x200] sm:$0xff]  ;;  %v9987_v61 = vld [vmem:[#allocation2 + $0x210] sm:$0xff]  ;;  %v9988_v22 = vld [vmem:[#allocation2 + $0x1e8] sm:$0xff] }
0x30b0   :  { %9731 = vpush %v6770_v6  ;;  %v9989_v6 = vld [vmem:[#allocation2 + $0x1f8] sm:$0xff] }
0x30df   :  { %s9730_s4 = spop %9729 }
0x30e0   :  { %s6751_s9 = smul.f32 0.0009765625, %s9730_s4 }
0x30e1   :  { %s9732_s10 = spop %9731 }
0x30e2   :  { %s6773_s13 = smul.f32 %s6751_s9, %s6751_s9  ;;  %v6775_v40 = vstv %s6751_s9 }
0x30e3   :  { %s6772_s14 = smul.f32 0.0009765625, %s9732_s10  ;;  %v6776_v62 = vsub.f32 %v6731_v17, %v6775_v40  ;;  %v6777_v33 = vsub.f32 %v6732_v16, %v6775_v40  ;;  %v6778_v11 = vsub.f32 %v6733_v24, %v6775_v40  ;;  %v6779_v30 = vsub.f32 %v6734_v18, %v6775_v40  ;;  %v13347_v17 = vld [vmem:[#allocation96_spill] sm:$0xff]  ;;  %v13348_v24 = vld [vmem:[#allocation97_spill] sm:$0xff] }
0x30e4   :  { %v9992_v40 = vld [vmem:[#allocation2 + $0x268] sm:$0xff] }
0x30e5   :  { %s6774_s15 = ssub.f32 %s6772_s14, %s6773_s13  ;;  %v6780_v35 = vmul.f32 %v6776_v62, %v13342_v50  ;;  %v6781_v32 = vmul.f32 %v6777_v33, %v13343_v63  ;;  %v6782_v14 = vmul.f32 %v6778_v11, %v13344_v54  ;;  %v6783_v27 = vmul.f32 %v6779_v30, %v13345_v37  ;;  %v9993_v62 = vld [vmem:[#allocation2 + $0x278] sm:$0xff] }
0x30e7   :  { %s6784_s16 = sadd.f32 1e-08, %s6774_s15 }
0x30e9   :  { %v6785_v13 = vstv %s6784_s16 }
0x30ea   :  { %9912 = vrsqrt.f32 %v6785_v13  ;;  %v9990_v13 = vld [vmem:[#allocation2 + $0x1e0] sm:$0xff] }
0x30f7   :  { %v9913_v53 = vpop.eup %9912 }
0x30f8   :  { %9733 = vpush %v9913_v53  ;;  %v9991_v53 = vld [vmem:[#allocation2 + $0x1f0] sm:$0xff] }
0x3129   :  { %s9734_s17 = spop %9733 }
0x312a   :  { %v6788_v36 = vstv %s9734_s17 }
0x312b   :  { %v6789_v47 = vmul.f32 %v6788_v36, %v6780_v35  ;;  %v6790_v31 = vmul.f32 %v6788_v36, %v6781_v32  ;;  %v6791_v38 = vmul.f32 %v6788_v36, %v6782_v14  ;;  %v6792_v10 = vmul.f32 %v6788_v36, %v6783_v27 }
0x312d   :  { %v6793_v34 = vadd.f32 %v6789_v47, %v13346_v44  ;;  %v6795_v16 = vadd.f32 %v6791_v38, %v13347_v17  ;;  %v6794_v18 = vadd.f32 %v6790_v31, %v13348_v24  ;;  %v6796_v3 = vadd.f32 %v6792_v10, %v13349_v7 }
0x312f   :  { %6861 = vmatprep.mubr.f32.mxu0 %v6794_v18  ;;  %6931 = vmatprep.mubr.f32.mxu1 %v6796_v3 }
0x3130   :  { %6862 = vmatmul.mubr.f32.vlgmr.msra.gmra.mxu0 %v6793_v34  ;;  %6932 = vmatmul.mubr.f32.vlgmr.msra.gmra.mxu1 %v6795_v16 }
0x3131   :  { %7005 = vmatpush1.msra.mxu0 %v9986_v48  ;;  %7076 = vmatpush1.msra.mxu1 %v9987_v61 }
0x3132   :  { %7006 = vmatprep.subr.mxu0 %v9988_v22  ;;  %7077 = vmatprep.subr.mxu1 %v9989_v6  ;;  %v13350_v6 = vld [vmem:[#allocation99_spill] sm:$0xff] }
0x3133   :  { %7007 = vmatpush1.msra.mxu0 %v9990_v13  ;;  %7040 = vmatprep.mubr.f32.mxu0 %v13128_v9 }
0x3134   :  { %7078 = vmatpush1.msra.mxu1 %v9991_v53  ;;  %7111 = vmatprep.mubr.f32.mxu1 %v13128_v9 }
0x3135   :  { %7334 = vmatprep.subr.mxu0 %v9992_v40  ;;  %7404 = vmatprep.subr.mxu1 %v9993_v62  ;;  %v13351_v62 = vld [vmem:[#allocation100_spill] sm:$0xff] }
0x31f0   :  { %v6863_v33 = vpop.f32.mrf.mxu0  ;;  %v6933_v11 = vpop.f32.mrf.mxu1 }
0x31f1   :  { %v6864_v30 = vadd.f32 %v6863_v33, %v12178_v21 }
0x31f2   :  { %v6865_v50 = vpop.f32.mrf.mxu0  ;;  %v6935_v35 = vpop.f32.mrf.mxu1 }
0x31f3   :  { %v12246_v63 = vadd.f32 %v6933_v11, %v6864_v30  ;;  %v9994_v11 = vld [vmem:[#allocation2 + $0x260] sm:$0xff]  ;;  %v9995_v30 = vld [vmem:[#allocation2 + $0x270] sm:$0xff]  ;;  %v9996_v50 = vld [vmem:[#allocation2 + $0x248] sm:$0xff] }
0x31f4   :  { %v9997_v35 = vld [vmem:[#allocation2 + $0x258] sm:$0xff] }
0x31f5   :  { %v6937_v32 = vmax.f32 %v12246_v63, 0.0 }
0x31f7   :  { %v6938_v54 = vsel %vm329_vm0, %v6937_v32, 0.0  ;;  %v6949_v14 = vmul.f32 %v6937_v32, %v6937_v32 }
0x31f8   :  { %6939 = vadd.xlane.f32.xlu0 %v6938_v54  ;;  %v9999_v54 = vld [vmem:[#allocation2 + $0x250] sm:$0xff] }
0x31f9   :  { %v6950_v37 = vsel %vm329_vm0, %v6949_v14, 0.0  ;;  %v10000_v14 = vld [vmem:[#allocation2 + $0x2b8] sm:$0xff] }
0x31fa   :  { %6951 = vadd.xlane.f32.xlu1 %v6950_v37  ;;  %v10001_v37 = vld [vmem:[#allocation2 + $0x2a8] sm:$0xff] }
0x3281   :  { %v6940_v27 = vpop.xlane.xlu0 %6939 }
0x3282   :  { %v6941_v36 = vrot.slane %v6940_v27, 4 }
0x3283   :  { %v6952_v47 = vpop.xlane.xlu1 %6951 }
0x3284   :  { %v6942_v31 = vadd.f32 %v6941_v36, %v6940_v27  ;;  %v6953_v38 = vrot.slane %v6952_v47, 4 }
0x3286   :  { %v6943_v10 = vrot.slane %v6942_v31, 2  ;;  %v6954_v21 = vadd.f32 %v6953_v38, %v6952_v47 }
0x3288   :  { %v6955_v44 = vrot.slane %v6954_v21, 2  ;;  %v6944_v34 = vadd.f32 %v6943_v10, %v6942_v31 }
0x328a   :  { %v6945_v17 = vrot.slane %v6944_v34, 1  ;;  %v6956_v16 = vadd.f32 %v6955_v44, %v6954_v21 }
0x328c   :  { %v6946_v24 = vadd.f32 %v6945_v17, %v6944_v34  ;;  %v6957_v18 = vrot.slane %v6956_v16, 1 }
0x328e   :  { %9735 = vpush %v6946_v24  ;;  %v6958_v7 = vadd.f32 %v6957_v18, %v6956_v16 }
0x3290   :  { %9737 = vpush %v6958_v7 }
0x32bf   :  { %s9736_s18 = spop %9735 }
0x32c0   :  { %s6948_s1 = smul.f32 0.03125, %s9736_s18 }
0x32c1   :  { %s9738_s12 = spop %9737 }
0x32c2   :  { %s6961_s21 = smul.f32 %s6948_s1, %s6948_s1  ;;  %v6963_v61 = vstv %s6948_s1 }
0x32c3   :  { %s6960_s22 = smul.f32 0.03125, %s9738_s12  ;;  %v6964_v22 = vsub.f32 %v6937_v32, %v6963_v61  ;;  %v9998_v32 = vld [vmem:[#allocation2 + $0x240] sm:$0xff] }
0x32c5   :  { %s6962_s23 = ssub.f32 %s6960_s22, %s6961_s21  ;;  %v6965_v13 = vmul.f32 %v6964_v22, %v13350_v6 }
0x32c7   :  { %s6966_s24 = sadd.f32 1e-08, %s6962_s23 }
0x32c9   :  { %v6967_v3 = vstv %s6966_s24 }
0x32ca   :  { %9914 = vrsqrt.f32 %v6967_v3 }
0x32d7   :  { %v9915_v48 = vpop.eup %9914 }
0x32d8   :  { %9739 = vpush %v9915_v48 }
0x3309   :  { %s9740_s25 = spop %9739 }
0x330a   :  { %v6970_v53 = vstv %s9740_s25 }
0x330b   :  { %v6971_v40 = vmul.f32 %v6970_v53, %v6965_v13 }
0x330d   :  { %v6972_v33 = vadd.f32 %v6971_v40, %v13351_v62 }
0x330f   :  { %9251 = vmatmul.mubr.msk.f32.vlgmr.msra.gmra.mxu0 %vm373_vm1, %v6972_v33  ;;  %9252 = vmatmul.mubr.msk.f32.vlgmr.msra.gmra.mxu1 %vm373_vm1, %v6972_v33 }
0x3310   :  { %7335 = vmatpush1.xpose.msra.mxu0 %v9994_v11  ;;  %7405 = vmatpush1.xpose.msra.mxu1 %v9995_v30 }
0x3311   :  { %7336 = vmatprep.subr.mxu0 %v9996_v50  ;;  %7406 = vmatprep.subr.mxu1 %v9997_v35 }
0x3314   :  { %7337 = vmatpush1.xpose.msra.mxu0 %v9998_v32  ;;  %7407 = vmatpush1.xpose.msra.mxu1 %v9999_v54 }
0x3315   :  { %7584 = vmatprep.subr.mxu1 %v10000_v14  ;;  %7513 = vmatprep.subr.mxu0 %v10001_v37 }
0x33cf   :  { %v7042_v27 = vpop.f32.mrf.mxu0  ;;  %v7113_v36 = vpop.f32.mrf.mxu1 }
0x33d0   :  { %v7118_v47 = vmax.f32 %v7042_v27, 0.0  ;;  %v7120_v31 = vmax.f32 %v7113_v36, 0.0 }
0x33d1   :  { %v7044_v38 = vpop.f32.mrf.mxu0  ;;  %v7115_v10 = vpop.f32.mrf.mxu1 }
0x33d2   :  { %v7139_v21 = vmul.f32 %v7118_v47, %v7118_v47  ;;  %v7119_v44 = vmax.f32 %v7044_v38, 0.0  ;;  %v7121_v34 = vmax.f32 %v7115_v10, 0.0  ;;  %v7122_v17 = vsel %vm523_vm2, %v7118_v47, 0.0 }
0x33d3   :  { %v7141_v16 = vmul.f32 %v7120_v31, %v7120_v31  ;;  %v7125_v22 = vsel %vm523_vm2, %v7120_v31, 0.0 }
0x33d4   :  { %v7123_v24 = vsel %vm523_vm2, %v7119_v44, 0.0  ;;  %v7140_v18 = vmul.f32 %v7119_v44, %v7119_v44  ;;  %v7143_v3 = vsel %vm523_vm2, %v7139_v21, 0.0  ;;  %v7142_v61 = vmul.f32 %v7121_v34, %v7121_v34 }
0x33d5   :  { %v7124_v7 = vadd.f32 %v7123_v24, %v7122_v17  ;;  %v7127_v53 = vsel %vm523_vm2, %v7121_v34, 0.0  ;;  %v7146_v40 = vsel %vm523_vm2, %v7141_v16, 0.0 }
0x33d6   :  { %v7144_v48 = vsel %vm523_vm2, %v7140_v18, 0.0  ;;  %v7148_v11 = vsel %vm523_vm2, %v7142_v61, 0.0 }
0x33d7   :  { %v7126_v6 = vadd.f32 %v7125_v22, %v7124_v7  ;;  %v7145_v13 = vadd.f32 %v7144_v48, %v7143_v3 }
0x33d9   :  { %v7128_v62 = vadd.f32 %v7127_v53, %v7126_v6  ;;  %v7147_v33 = vadd.f32 %v7146_v40, %v7145_v13  ;;  %v13352_v13 = vld [vmem:[#allocation101_spill] sm:$0xff]  ;;  %v13353_v40 = vld [vmem:[#allocation102_spill] sm:$0xff] }
0x33db   :  { %7129 = vadd.xlane.f32.xlu0 %v7128_v62  ;;  %v7149_v30 = vadd.f32 %v7148_v11, %v7147_v33  ;;  %v13354_v33 = vld [vmem:[#allocation103_spill] sm:$0xff] }
0x33dd   :  { %7150 = vadd.xlane.f32.xlu1 %v7149_v30  ;;  %v13355_v30 = vld [vmem:[#allocation104_spill] sm:$0xff] }
0x3464   :  { %v7130_v50 = vpop.xlane.xlu0 %7129 }
0x3465   :  { %v7131_v35 = vrot.slane %v7130_v50, 4 }
0x3466   :  { %v7151_v32 = vpop.xlane.xlu1 %7150 }
0x3467   :  { %v7132_v54 = vadd.f32 %v7131_v35, %v7130_v50  ;;  %v7152_v14 = vrot.slane %v7151_v32, 4 }
0x3469   :  { %v7133_v37 = vrot.slane %v7132_v54, 2  ;;  %v7153_v27 = vadd.f32 %v7152_v14, %v7151_v32 }
0x346b   :  { %v7154_v36 = vrot.slane %v7153_v27, 2  ;;  %v7134_v38 = vadd.f32 %v7133_v37, %v7132_v54 }
0x346d   :  { %v7135_v10 = vrot.slane %v7134_v38, 1  ;;  %v7155_v21 = vadd.f32 %v7154_v36, %v7153_v27  ;;  %v13356_v27 = vld [vmem:[#allocation105_spill] sm:$0xff] }
0x346f   :  { %v7136_v17 = vadd.f32 %v7135_v10, %v7134_v38  ;;  %v7156_v16 = vrot.slane %v7155_v21, 1  ;;  %v13359_v38 = vld [vmem:[#allocation108_spill] sm:$0xff] }
0x3471   :  { %9741 = vpush %v7136_v17  ;;  %v7157_v24 = vadd.f32 %v7156_v16, %v7155_v21 }
0x3473   :  { %9743 = vpush %v7157_v24 }
0x34a2   :  { %s9742_s28 = spop %9741 }
0x34a3   :  { %s7138_s29 = smul.f32 0.0009765625, %s9742_s28 }
0x34a4   :  { %s9744_s3 = spop %9743 }
0x34a5   :  { %s7160_s30 = smul.f32 %s7138_s29, %s7138_s29  ;;  %v7162_v3 = vstv %s7138_s29 }
0x34a6   :  { %s7159_s0 = smul.f32 0.0009765625, %s9744_s3  ;;  %v7163_v48 = vsub.f32 %v7118_v47, %v7162_v3  ;;  %v7164_v61 = vsub.f32 %v7119_v44, %v7162_v3  ;;  %v7165_v22 = vsub.f32 %v7120_v31, %v7162_v3  ;;  %v7166_v6 = vsub.f32 %v7121_v34, %v7162_v3  ;;  %v13357_v47 = vld [vmem:[#allocation106_spill] sm:$0xff]  ;;  %v13358_v31 = vld [vmem:[#allocation107_spill] sm:$0xff] }
0x34a8   :  { %s7161_s7 = ssub.f32 %s7159_s0, %s7160_s30  ;;  %v7167_v53 = vmul.f32 %v7163_v48, %v13352_v13  ;;  %v7168_v62 = vmul.f32 %v7164_v61, %v13353_v40  ;;  %v7169_v11 = vmul.f32 %v7165_v22, %v13354_v33  ;;  %v7170_v50 = vmul.f32 %v7166_v6, %v13355_v30  ;;  %v13360_v30 = vld [vmem:[#allocation111_spill] sm:$0xff] }
0x34aa   :  { %s7171_s8 = sadd.f32 1e-08, %s7161_s7 }
0x34ac   :  { %v7172_v18 = vstv %s7171_s8 }
0x34ad   :  { %9916 = vrsqrt.f32 %v7172_v18 }
0x34ba   :  { %v9917_v7 = vpop.eup %9916 }
0x34bb   :  { %9745 = vpush %v9917_v7 }
0x34ec   :  { %s9746_s4 = spop %9745 }
0x34ed   :  { %v7175_v35 = vstv %s9746_s4 }
0x34ee   :  { %v7176_v32 = vmul.f32 %v7175_v35, %v7167_v53  ;;  %v7177_v54 = vmul.f32 %v7175_v35, %v7168_v62  ;;  %v7178_v14 = vmul.f32 %v7175_v35, %v7169_v11  ;;  %v7179_v37 = vmul.f32 %v7175_v35, %v7170_v50 }
0x34f0   :  { %v7180_v36 = vadd.f32 %v7176_v32, %v13356_v27  ;;  %v7181_v44 = vadd.f32 %v7177_v54, %v13357_v47  ;;  %v7182_v34 = vadd.f32 %v7178_v14, %v13358_v31  ;;  %v7183_v10 = vadd.f32 %v7179_v37, %v13359_v38  ;;  %v13361_v14 = vld [vmem:[#allocation109_spill] sm:$0xff]  ;;  %v13362_v27 = vld [vmem:[#allocation110_spill] sm:$0xff]  ;;  %v13363_v31 = vld [vmem:[#allocation112_spill] sm:$0xff] }
0x34f2   :  { %v7188_v21 = vrot.slane %v7180_v36, 7  ;;  %v7189_v17 = vrot.slane %v7181_v44, 7  ;;  %v7190_v16 = vrot.slane %v7182_v34, 7  ;;  %v7191_v24 = vrot.slane %v7183_v10, 7 }
0x34f3   :  { %v7200_v18 = vrot.slane %v7180_v36, 1  ;;  %v7201_v7 = vrot.slane %v7181_v44, 1  ;;  %v7202_v3 = vrot.slane %v7182_v34, 1  ;;  %v7203_v48 = vrot.slane %v7183_v10, 1 }
0x34f4   :  { %v7196_v61 = vsel %vm640_vm3, 0.0, %v7188_v21  ;;  %v7197_v22 = vsel %vm640_vm3, 0.0, %v7189_v17  ;;  %v7198_v6 = vsel %vm640_vm3, 0.0, %v7190_v16  ;;  %v7199_v13 = vsel %vm640_vm3, 0.0, %v7191_v24  ;;  %v13364_v21 = vld [vmem:[#allocation113_spill] sm:$0xff]  ;;  %v13365_v16 = vld [vmem:[#allocation114_spill] sm:$0xff] }
0x34f5   :  { %v7208_v53 = vsel %vm640_vm3, %v7200_v18, 0.0  ;;  %v7209_v40 = vsel %vm640_vm3, %v7201_v7, 0.0  ;;  %v7210_v62 = vsel %vm640_vm3, %v7202_v3, 0.0  ;;  %v7211_v33 = vsel %vm640_vm3, %v7203_v48, 0.0  ;;  %v13366_v18 = vld [vmem:[#allocation115_spill] sm:$0xff]  ;;  %v13367_v7 = vld [vmem:[#allocation116_spill] sm:$0xff] }
0x34f6   :  { %v7212_v11 = vmul.f32 %v7196_v61, %v11080_v2  ;;  %v7213_v50 = vmul.f32 %v7197_v22, %v13360_v30  ;;  %v7214_v35 = vmul.f32 %v7198_v6, %v11089_v12  ;;  %v7215_v32 = vmul.f32 %v7199_v13, %v11098_v46  ;;  %v13369_v6 = vld [vmem:[#allocation118_spill] sm:$0xff] }
0x34f7   :  { %v7216_v54 = vmul.f32 %v7180_v36, %v11067_v8  ;;  %v7217_v37 = vmul.f32 %v7181_v44, %v13361_v14  ;;  %v7218_v47 = vmul.f32 %v7182_v34, %v13362_v27  ;;  %v7219_v38 = vmul.f32 %v7183_v10, %v13363_v31  ;;  %v13368_v34 = vld [vmem:[#allocation117_spill] sm:$0xff] }
0x34f8   :  { %v7224_v17 = vmul.f32 %v7208_v53, %v13364_v21  ;;  %v7225_v24 = vmul.f32 %v7209_v40, %v13365_v16  ;;  %v7226_v2 = vmul.f32 %v7210_v62, %v13366_v18  ;;  %v7227_v3 = vmul.f32 %v7211_v33, %v13367_v7  ;;  %v13370_v53 = vld [vmem:[#allocation119_spill] sm:$0xff]  ;;  %v13371_v62 = vld [vmem:[#allocation120_spill] sm:$0xff] }
0x34f9   :  { %v7220_v48 = vadd.f32 %v7216_v54, %v7212_v11  ;;  %v7221_v12 = vadd.f32 %v7217_v37, %v7213_v50  ;;  %v7222_v61 = vadd.f32 %v7218_v47, %v7214_v35  ;;  %v7223_v46 = vadd.f32 %v7219_v38, %v7215_v32 }
0x34fb   :  { %v7228_v22 = vadd.f32 %v7224_v17, %v7220_v48  ;;  %v7229_v8 = vadd.f32 %v7225_v24, %v7221_v12  ;;  %v7230_v36 = vadd.f32 %v7226_v2, %v7222_v61  ;;  %v7231_v44 = vadd.f32 %v7227_v3, %v7223_v46 }
0x34fd   :  { %vm7232_vm4 = vcmp.gt.f32.partialorder %v7228_v22, 0.0  ;;  %vm7233_vm5 = vcmp.gt.f32.partialorder %v7229_v8, 0.0  ;;  %vm7234_vm12 = vcmp.gt.f32.partialorder %v7230_v36, 0.0  ;;  %vm7235_vm13 = vcmp.gt.f32.partialorder %v7231_v44, 0.0 }
0x34fe   :  { %v7236_v10 = vmul.f32 %v7228_v22, %v13368_v34  ;;  %v7237_v13 = vmul.f32 %v7229_v8, %v13369_v6  ;;  %v7238_v40 = vmul.f32 %v7230_v36, %v13370_v53  ;;  %v7239_v33 = vmul.f32 %v7231_v44, %v13371_v62 }
0x3500   :  { %v7240_v11 = vsel %vm7232_vm4, %v7228_v22, %v7236_v10  ;;  %v7241_v30 = vsel %vm7233_vm5, %v7229_v8, %v7237_v13  ;;  %v7242_v50 = vsel %vm7234_vm12, %v7230_v36, %v7238_v40  ;;  %v7243_v35 = vsel %vm7235_vm13, %v7231_v44, %v7239_v33 }
0x3501   :  { %v7244_v32 = vsel %vm523_vm2, %v7240_v11, 0.0  ;;  %v7245_v54 = vsel %vm523_vm2, %v7241_v30, 0.0  ;;  %v7261_v37 = vmul.f32 %v7240_v11, %v7240_v11  ;;  %v7262_v27 = vmul.f32 %v7241_v30, %v7241_v30 }
0x3502   :  { %v7246_v14 = vadd.f32 %v7245_v54, %v7244_v32  ;;  %v7263_v47 = vmul.f32 %v7242_v50, %v7242_v50  ;;  %v7247_v31 = vsel %vm523_vm2, %v7242_v50, 0.0  ;;  %v7264_v21 = vmul.f32 %v7243_v35, %v7243_v35 }
0x3503   :  { %v7265_v17 = vsel %vm523_vm2, %v7261_v37, 0.0  ;;  %v7266_v16 = vsel %vm523_vm2, %v7262_v27, 0.0  ;;  %v7249_v24 = vsel %vm523_vm2, %v7243_v35, 0.0 }
0x3504   :  { %v7248_v38 = vadd.f32 %v7247_v31, %v7246_v14  ;;  %v7267_v18 = vadd.f32 %v7266_v16, %v7265_v17  ;;  %v7268_v7 = vsel %vm523_vm2, %v7263_v47, 0.0  ;;  %v7270_v48 = vsel %vm523_vm2, %v7264_v21, 0.0  ;;  %v13373_v17 = vld [vmem:[#allocation122_spill] sm:$0xff] }
0x3506   :  { %v7250_v2 = vadd.f32 %v7249_v24, %v7248_v38  ;;  %v7269_v3 = vadd.f32 %v7268_v7, %v7267_v18  ;;  %v13372_v38 = vld [vmem:[#allocation121_spill] sm:$0xff]  ;;  %v13374_v24 = vld [vmem:[#allocation123_spill] sm:$0xff] }
0x3508   :  { %7251 = vadd.xlane.f32.xlu0 %v7250_v2  ;;  %v7271_v12 = vadd.f32 %v7270_v48, %v7269_v3  ;;  %v13375_v2 = vld [vmem:[#allocation124_spill] sm:$0xff] }
0x350a   :  { %7272 = vadd.xlane.f32.xlu1 %v7271_v12 }
0x3591   :  { %v7252_v61 = vpop.xlane.xlu0 %7251 }
0x3592   :  { %v7253_v46 = vrot.slane %v7252_v61, 4 }
0x3593   :  { %v7273_v8 = vpop.xlane.xlu1 %7272 }
0x3594   :  { %v7254_v22 = vadd.f32 %v7253_v46, %v7252_v61  ;;  %v7274_v36 = vrot.slane %v7273_v8, 4 }
0x3596   :  { %v7255_v44 = vrot.slane %v7254_v22, 2  ;;  %v7275_v34 = vadd.f32 %v7274_v36, %v7273_v8  ;;  %v13379_v36 = vld [vmem:[#allocation128_spill] sm:$0xff] }
0x3598   :  { %v7256_v10 = vadd.f32 %v7255_v44, %v7254_v22  ;;  %v7276_v6 = vrot.slane %v7275_v34, 2  ;;  %v13376_v22 = vld [vmem:[#allocation125_spill] sm:$0xff] }
0x359a   :  { %v7257_v13 = vrot.slane %v7256_v10, 1  ;;  %v7277_v53 = vadd.f32 %v7276_v6, %v7275_v34  ;;  %v10002_v34 = vld [vmem:[#allocation2 + $0x2b0] sm:$0xff]  ;;  %v10004_v6 = vld [vmem:[#allocation2 + $0x298] sm:$0xff] }
0x359c   :  { %v7258_v40 = vadd.f32 %v7257_v13, %v7256_v10  ;;  %v7278_v62 = vrot.slane %v7277_v53, 1  ;;  %v10003_v10 = vld [vmem:[#allocation2 + $0x2a0] sm:$0xff]  ;;  %v10005_v13 = vld [vmem:[#allocation2 + $0x288] sm:$0xff] }
0x359e   :  { %9747 = vpush %v7258_v40  ;;  %v7279_v33 = vadd.f32 %v7278_v62, %v7277_v53  ;;  %v10006_v53 = vld [vmem:[#allocation2 + $0x290] sm:$0xff]  ;;  %v10007_v40 = vld [vmem:[#allocation2 + $0x280] sm:$0xff]  ;;  %v10008_v62 = vld [vmem:[#allocation2 + $0x318] sm:$0xff] }
0x35a0   :  { %9749 = vpush %v7279_v33  ;;  %v10009_v33 = vld [vmem:[#allocation2 + $0x308] sm:$0xff] }
0x35cf   :  { %s9748_s9 = spop %9747 }
0x35d0   :  { %s7260_s10 = smul.f32 0.0009765625, %s9748_s9 }
0x35d1   :  { %s9750_s14 = spop %9749 }
0x35d2   :  { %s7282_s13 = smul.f32 %s7260_s10, %s7260_s10  ;;  %v7284_v14 = vstv %s7260_s10 }
0x35d3   :  { %s7281_s15 = smul.f32 0.0009765625, %s9750_s14  ;;  %v7285_v37 = vsub.f32 %v7240_v11, %v7284_v14  ;;  %v7286_v27 = vsub.f32 %v7241_v30, %v7284_v14  ;;  %v7287_v47 = vsub.f32 %v7242_v50, %v7284_v14  ;;  %v7288_v31 = vsub.f32 %v7243_v35, %v7284_v14  ;;  %v13377_v11 = vld [vmem:[#allocation126_spill] sm:$0xff]  ;;  %v13378_v50 = vld [vmem:[#allocation127_spill] sm:$0xff] }
0x35d5   :  { %s7283_s16 = ssub.f32 %s7281_s15, %s7282_s13  ;;  %v7289_v21 = vmul.f32 %v7285_v37, %v13372_v38  ;;  %v7290_v16 = vmul.f32 %v7286_v27, %v13373_v17  ;;  %v7291_v18 = vmul.f32 %v7287_v47, %v13374_v24  ;;  %v7292_v7 = vmul.f32 %v7288_v31, %v13375_v2 }
0x35d7   :  { %s7293_s17 = sadd.f32 1e-08, %s7283_s16 }
0x35d9   :  { %v7294_v32 = vstv %s7293_s17 }
0x35da   :  { %9918 = vrsqrt.f32 %v7294_v32 }
0x35e7   :  { %v9919_v54 = vpop.eup %9918 }
0x35e8   :  { %9751 = vpush %v9919_v54 }
0x3619   :  { %s9752_s18 = spop %9751 }
0x361a   :  { %v7297_v3 = vstv %s9752_s18 }
0x361b   :  { %v7298_v48 = vmul.f32 %v7297_v3, %v7289_v21  ;;  %v7299_v12 = vmul.f32 %v7297_v3, %v7290_v16  ;;  %v7300_v61 = vmul.f32 %v7297_v3, %v7291_v18  ;;  %v7301_v46 = vmul.f32 %v7297_v3, %v7292_v7 }
0x361d   :  { %v7302_v8 = vadd.f32 %v7298_v48, %v13376_v22  ;;  %v7304_v30 = vadd.f32 %v7300_v61, %v13377_v11  ;;  %v7303_v35 = vadd.f32 %v7299_v12, %v13378_v50  ;;  %v7305_v44 = vadd.f32 %v7301_v46, %v13379_v36 }
0x361f   :  { %7370 = vmatprep.mubr.f32.mxu0 %v7303_v35  ;;  %7440 = vmatprep.mubr.f32.mxu1 %v7305_v44  ;;  %v13380_v44 = vld [vmem:[#allocation129_spill] sm:$0xff] }
0x3620   :  { %7371 = vmatmul.mubr.f32.vlgmr.msra.gmra.mxu0 %v7302_v8  ;;  %7441 = vmatmul.mubr.f32.vlgmr.msra.gmra.mxu1 %v7304_v30 }
0x3621   :  { %7585 = vmatpush1.msra.mxu1 %v10002_v34  ;;  %7514 = vmatpush1.msra.mxu0 %v10003_v10 }
0x3622   :  { %7586 = vmatprep.subr.mxu1 %v10004_v6  ;;  %7515 = vmatprep.subr.mxu0 %v10005_v13  ;;  %v13381_v13 = vld [vmem:[#allocation130_spill] sm:$0xff] }
0x3623   :  { %7587 = vmatpush1.msra.mxu1 %v10006_v53  ;;  %7516 = vmatpush1.msra.mxu0 %v10007_v40  ;;  %v5401_v40 = vsub.f32 %v12152_v51, %v12166_v20 }
0x3624   :  { %7549 = vmatprep.mubr.f32.mxu0 %v13128_v9  ;;  %7620 = vmatprep.mubr.f32.mxu1 %v13128_v9 }
0x3625   :  { %7913 = vmatprep.subr.mxu1 %v10008_v62  ;;  %7843 = vmatprep.subr.mxu0 %v10009_v33  ;;  %v10010_v62 = vld [vmem:[#allocation2 + $0x310] sm:$0xff]  ;;  %v10011_v33 = vld [vmem:[#allocation2 + $0x300] sm:$0xff] }
0x36e0   :  { %v7372_v32 = vpop.f32.mrf.mxu0  ;;  %v7442_v54 = vpop.f32.mrf.mxu1 }
0x36e1   :  { %v7373_v14 = vadd.f32 %v7372_v32, %v12246_v63  ;;  %v10012_v32 = vld [vmem:[#allocation2 + $0x2f8] sm:$0xff] }
0x36e2   :  { %v7374_v37 = vpop.f32.mrf.mxu0  ;;  %v7444_v27 = vpop.f32.mrf.mxu1 }
0x36e3   :  { %v12314_v47 = vadd.f32 %v7442_v54, %v7373_v14  ;;  %v10013_v54 = vld [vmem:[#allocation2 + $0x2e8] sm:$0xff]  ;;  %v12326_v14 = vmul.f32 %v12172_v0, %v5401_v40  ;;  %v10014_v37 = vld [vmem:[#allocation2 + $0x2f0] sm:$0xff]  ;;  %v10015_v27 = vld [vmem:[#allocation2 + $0x2e0] sm:$0xff] }
0x36e5   :  { %v7446_v31 = vmax.f32 %v12314_v47, 0.0 }
0x36e7   :  { %v7447_v38 = vsel %vm329_vm0, %v7446_v31, 0.0  ;;  %v7458_v21 = vmul.f32 %v7446_v31, %v7446_v31 }
0x36e8   :  { %7448 = vadd.xlane.f32.xlu0 %v7447_v38 }
0x36e9   :  { %v7459_v17 = vsel %vm329_vm0, %v7458_v21, 0.0 }
0x36ea   :  { %7460 = vadd.xlane.f32.xlu1 %v7459_v17 }
0x3771   :  { %v7449_v16 = vpop.xlane.xlu0 %7448 }
0x3772   :  { %v7450_v24 = vrot.slane %v7449_v16, 4 }
0x3773   :  { %v7461_v18 = vpop.xlane.xlu1 %7460 }
0x3774   :  { %v7451_v2 = vadd.f32 %v7450_v24, %v7449_v16  ;;  %v7462_v7 = vrot.slane %v7461_v18, 4 }
0x3776   :  { %v7452_v3 = vrot.slane %v7451_v2, 2  ;;  %v7463_v63 = vadd.f32 %v7462_v7, %v7461_v18 }
0x3778   :  { %v7464_v48 = vrot.slane %v7463_v63, 2  ;;  %v7453_v12 = vadd.f32 %v7452_v3, %v7451_v2 }
0x377a   :  { %v7454_v61 = vrot.slane %v7453_v12, 1  ;;  %v7465_v46 = vadd.f32 %v7464_v48, %v7463_v63 }
0x377c   :  { %v7455_v22 = vadd.f32 %v7454_v61, %v7453_v12  ;;  %v7466_v8 = vrot.slane %v7465_v46, 1 }
0x377e   :  { %9753 = vpush %v7455_v22  ;;  %v7467_v11 = vadd.f32 %v7466_v8, %v7465_v46 }
0x3780   :  { %9755 = vpush %v7467_v11 }
0x37af   :  { %s9754_s1 = spop %9753 }
0x37b0   :  { %s7457_s12 = smul.f32 0.03125, %s9754_s1 }
0x37b1   :  { %s9756_s21 = spop %9755 }
0x37b2   :  { %s7470_s22 = smul.f32 %s7457_s12, %s7457_s12  ;;  %v7472_v35 = vstv %s7457_s12 }
0x37b3   :  { %s7469_s23 = smul.f32 0.03125, %s9756_s21  ;;  %v7473_v36 = vsub.f32 %v7446_v31, %v7472_v35 }
0x37b5   :  { %s7471_s24 = ssub.f32 %s7469_s23, %s7470_s22  ;;  %v7474_v34 = vmul.f32 %v7473_v36, %v13380_v44 }
0x37b7   :  { %s7475_s25 = sadd.f32 1e-08, %s7471_s24 }
0x37b9   :  { %v7476_v30 = vstv %s7475_s25 }
0x37ba   :  { %9920 = vrsqrt.f32 %v7476_v30 }
0x37c7   :  { %v9921_v50 = vpop.eup %9920 }
0x37c8   :  { %9757 = vpush %v9921_v50 }
0x37f9   :  { %s9758_s28 = spop %9757 }
0x37fa   :  { %v7479_v10 = vstv %s9758_s28 }
0x37fb   :  { %v7480_v6 = vmul.f32 %v7479_v10, %v7474_v34 }
0x37fd   :  { %v7481_v53 = vadd.f32 %v7480_v6, %v13381_v13 }
0x37ff   :  { %9253 = vmatmul.mubr.msk.f32.vlgmr.msra.gmra.mxu0 %vm373_vm1, %v7481_v53  ;;  %9254 = vmatmul.mubr.msk.f32.vlgmr.msra.gmra.mxu1 %vm373_vm1, %v7481_v53 }
0x3800   :  { %7914 = vmatpush1.xpose.msra.mxu1 %v10010_v62  ;;  %7844 = vmatpush1.xpose.msra.mxu0 %v10011_v33 }
0x3801   :  { %7915 = vmatprep.subr.mxu1 %v10012_v32  ;;  %7845 = vmatprep.subr.mxu0 %v10013_v54 }
0x3804   :  { %7916 = vmatpush1.xpose.msra.mxu1 %v10014_v37  ;;  %7846 = vmatpush1.xpose.msra.mxu0 %v10015_v27 }
0x3805   :  { %9497 = vmatprep.subr.mxu1 %v12326_v14 }
0x38bf   :  { %v7551_v31 = vpop.f32.mrf.mxu0  ;;  %v7622_v38 = vpop.f32.mrf.mxu1 }
0x38c0   :  { %v7627_v20 = vmax.f32 %v7551_v31, 0.0  ;;  %v7629_v21 = vmax.f32 %v7622_v38, 0.0 }
0x38c1   :  { %v7553_v17 = vpop.f32.mrf.mxu0  ;;  %v7624_v16 = vpop.f32.mrf.mxu1 }
0x38c2   :  { %v7648_v24 = vmul.f32 %v7627_v20, %v7627_v20  ;;  %v7628_v18 = vmax.f32 %v7553_v17, 0.0  ;;  %v7630_v2 = vmax.f32 %v7624_v16, 0.0  ;;  %v7631_v7 = vsel %vm523_vm2, %v7627_v20, 0.0 }
0x38c3   :  { %v7650_v3 = vmul.f32 %v7629_v21, %v7629_v21  ;;  %v7634_v61 = vsel %vm523_vm2, %v7629_v21, 0.0 }
0x38c4   :  { %v7632_v0 = vsel %vm523_vm2, %v7628_v18, 0.0  ;;  %v7649_v63 = vmul.f32 %v7628_v18, %v7628_v18  ;;  %v7652_v12 = vsel %vm523_vm2, %v7648_v24, 0.0  ;;  %v7651_v22 = vmul.f32 %v7630_v2, %v7630_v2 }
0x38c5   :  { %v7633_v48 = vadd.f32 %v7632_v0, %v7631_v7  ;;  %v7636_v30 = vsel %vm523_vm2, %v7630_v2, 0.0  ;;  %v7655_v50 = vsel %vm523_vm2, %v7650_v3, 0.0 }
0x38c6   :  { %v7653_v46 = vsel %vm523_vm2, %v7649_v63, 0.0  ;;  %v7657_v44 = vsel %vm523_vm2, %v7651_v22, 0.0 }
0x38c7   :  { %v7635_v8 = vadd.f32 %v7634_v61, %v7633_v48  ;;  %v7654_v11 = vadd.f32 %v7653_v46, %v7652_v12  ;;  %v13382_v12 = vld [vmem:[#allocation131_spill] sm:$0xff]  ;;  %v13383_v46 = vld [vmem:[#allocation132_spill] sm:$0xff] }
0x38c9   :  { %v7637_v35 = vadd.f32 %v7636_v30, %v7635_v8  ;;  %v7656_v36 = vadd.f32 %v7655_v50, %v7654_v11  ;;  %v13384_v8 = vld [vmem:[#allocation133_spill] sm:$0xff]  ;;  %v13385_v30 = vld [vmem:[#allocation134_spill] sm:$0xff] }
0x38cb   :  { %7638 = vadd.xlane.f32.xlu0 %v7637_v35  ;;  %v7658_v34 = vadd.f32 %v7657_v44, %v7656_v36 }
0x38cd   :  { %7659 = vadd.xlane.f32.xlu1 %v7658_v34 }
0x3954   :  { %v7639_v10 = vpop.xlane.xlu0 %7638 }
0x3955   :  { %v7640_v6 = vrot.slane %v7639_v10, 4 }
0x3956   :  { %v7660_v13 = vpop.xlane.xlu1 %7659 }
0x3957   :  { %v7641_v53 = vadd.f32 %v7640_v6, %v7639_v10  ;;  %v7661_v40 = vrot.slane %v7660_v13, 4  ;;  %v13386_v6 = vld [vmem:[#allocation135_spill] sm:$0xff] }
0x3959   :  { %v7642_v62 = vrot.slane %v7641_v53, 2  ;;  %v7662_v33 = vadd.f32 %v7661_v40, %v7660_v13 }
0x395b   :  { %v7663_v32 = vrot.slane %v7662_v33, 2  ;;  %v7643_v54 = vadd.f32 %v7642_v62, %v7641_v53  ;;  %v13389_v53 = vld [vmem:[#allocation138_spill] sm:$0xff] }
0x395d   :  { %v7644_v37 = vrot.slane %v7643_v54, 1  ;;  %v7664_v27 = vadd.f32 %v7663_v32, %v7662_v33 }
0x395f   :  { %v7645_v31 = vadd.f32 %v7644_v37, %v7643_v54  ;;  %v7665_v38 = vrot.slane %v7664_v27, 1 }
0x3961   :  { %9759 = vpush %v7645_v31  ;;  %v7666_v17 = vadd.f32 %v7665_v38, %v7664_v27 }
0x3963   :  { %9761 = vpush %v7666_v17 }
0x3992   :  { %s9760_s29 = spop %9759 }
0x3993   :  { %s7647_s3 = smul.f32 0.0009765625, %s9760_s29 }
0x3994   :  { %s9762_s30 = spop %9761 }
0x3995   :  { %s7669_s0 = smul.f32 %s7647_s3, %s7647_s3  ;;  %v7671_v7 = vstv %s7647_s3 }
0x3996   :  { %s7668_s7 = smul.f32 0.0009765625, %s9762_s30  ;;  %v7672_v3 = vsub.f32 %v7627_v20, %v7671_v7  ;;  %v7673_v0 = vsub.f32 %v7628_v18, %v7671_v7  ;;  %v7674_v63 = vsub.f32 %v7629_v21, %v7671_v7  ;;  %v7675_v48 = vsub.f32 %v7630_v2, %v7671_v7  ;;  %v13387_v20 = vld [vmem:[#allocation136_spill] sm:$0xff]  ;;  %v13388_v21 = vld [vmem:[#allocation137_spill] sm:$0xff] }
0x3998   :  { %s7670_s8 = ssub.f32 %s7668_s7, %s7669_s0  ;;  %v7676_v61 = vmul.f32 %v7672_v3, %v13382_v12  ;;  %v7677_v22 = vmul.f32 %v7673_v0, %v13383_v46  ;;  %v7678_v11 = vmul.f32 %v7674_v63, %v13384_v8  ;;  %v7679_v50 = vmul.f32 %v7675_v48, %v13385_v30 }
0x399a   :  { %s7680_s4 = sadd.f32 1e-08, %s7670_s8 }
0x399c   :  { %v7681_v16 = vstv %s7680_s4 }
0x399d   :  { %9922 = vrsqrt.f32 %v7681_v16 }
0x39aa   :  { %v9923_v24 = vpop.eup %9922 }
0x39ab   :  { %9763 = vpush %v9923_v24 }
0x39dc   :  { %s9764_s9 = spop %9763 }
0x39dd   :  { %v7684_v35 = vstv %s9764_s9 }
0x39de   :  { %v7685_v36 = vmul.f32 %v7684_v35, %v7676_v61  ;;  %v7686_v44 = vmul.f32 %v7684_v35, %v7677_v22  ;;  %v7687_v34 = vmul.f32 %v7684_v35, %v7678_v11  ;;  %v7688_v10 = vmul.f32 %v7684_v35, %v7679_v50  ;;  %v13390_v61 = vld [vmem:[#allocation139_spill] sm:$0xff] }
0x39e0   :  { %v7689_v13 = vadd.f32 %v7685_v36, %v13386_v6  ;;  %v7690_v18 = vadd.f32 %v7686_v44, %v13387_v20  ;;  %v7691_v2 = vadd.f32 %v7687_v34, %v13388_v21  ;;  %v7692_v40 = vadd.f32 %v7688_v10, %v13389_v53 }
0x39e2   :  { %v7697_v62 = vrot.slane %v7689_v13, 7  ;;  %v7698_v33 = vrot.slane %v7690_v18, 7  ;;  %v7699_v32 = vrot.slane %v7691_v2, 7  ;;  %v7700_v54 = vrot.slane %v7692_v40, 7 }
0x39e3   :  { %v7709_v37 = vrot.slane %v7689_v13, 1  ;;  %v7710_v27 = vrot.slane %v7690_v18, 1  ;;  %v7711_v31 = vrot.slane %v7691_v2, 1  ;;  %v7712_v38 = vrot.slane %v7692_v40, 1 }
0x39e4   :  { %v7705_v17 = vsel %vm640_vm3, 0.0, %v7697_v62  ;;  %v7706_v16 = vsel %vm640_vm3, 0.0, %v7698_v33  ;;  %v7707_v24 = vsel %vm640_vm3, 0.0, %v7699_v32  ;;  %v7708_v7 = vsel %vm640_vm3, 0.0, %v7700_v54 }
0x39e5   :  { %v7717_v3 = vsel %vm640_vm3, %v7709_v37, 0.0  ;;  %v7718_v0 = vsel %vm640_vm3, %v7710_v27, 0.0  ;;  %v7719_v63 = vsel %vm640_vm3, %v7711_v31, 0.0  ;;  %v7720_v48 = vsel %vm640_vm3, %v7712_v38, 0.0 }
0x39e6   :  { %v7721_v12 = vmul.f32 %v7705_v17, %v11307_v60  ;;  %v7722_v46 = vmul.f32 %v7706_v16, %v13390_v61  ;;  %v7723_v22 = vmul.f32 %v7707_v24, %v11316_v15  ;;  %v7724_v8 = vmul.f32 %v7708_v7, %v11325_v1 }
0x39e7   :  { %v7725_v11 = vmul.f32 %v7689_v13, %v11294_v28  ;;  %v7726_v30 = vmul.f32 %v7690_v18, %v11297_v4  ;;  %v7727_v50 = vmul.f32 %v7691_v2, %v11300_v5  ;;  %v7728_v35 = vmul.f32 %v7692_v40, %v11313_v26  ;;  %v13391_v5 = vld [vmem:[#allocation140_spill] sm:$0xff] }
0x39e8   :  { %v7733_v36 = vmul.f32 %v7717_v3, %v11319_v39  ;;  %v7734_v44 = vmul.f32 %v7718_v0, %v11322_v41  ;;  %v7735_v60 = vmul.f32 %v7719_v63, %v11332_v52  ;;  %v7736_v34 = vmul.f32 %v7720_v48, %v11335_v25  ;;  %v13392_v52 = vld [vmem:[#allocation141_spill] sm:$0xff] }
0x39e9   :  { %v7729_v10 = vadd.f32 %v7725_v11, %v7721_v12  ;;  %v7730_v15 = vadd.f32 %v7726_v30, %v7722_v46  ;;  %v7731_v6 = vadd.f32 %v7727_v50, %v7723_v22  ;;  %v7732_v1 = vadd.f32 %v7728_v35, %v7724_v8 }
0x39eb   :  { %v7737_v20 = vadd.f32 %v7733_v36, %v7729_v10  ;;  %v7738_v28 = vadd.f32 %v7734_v44, %v7730_v15  ;;  %v7739_v13 = vadd.f32 %v7735_v60, %v7731_v6  ;;  %v7740_v4 = vadd.f32 %v7736_v34, %v7732_v1 }
0x39ed   :  { %vm7741_vm0 = vcmp.gt.f32.partialorder %v7737_v20, 0.0  ;;  %vm7742_vm6 = vcmp.gt.f32.partialorder %v7738_v28, 0.0  ;;  %vm7743_vm7 = vcmp.gt.f32.partialorder %v7739_v13, 0.0  ;;  %vm7744_vm4 = vcmp.gt.f32.partialorder %v7740_v4, 0.0 }
0x39ee   :  { %v7745_v26 = vmul.f32 %v7737_v20, %v11338_v56  ;;  %v7746_v41 = vmul.f32 %v7738_v28, %v11341_v49  ;;  %v7747_v39 = vmul.f32 %v7739_v13, %v13391_v5  ;;  %v7748_v25 = vmul.f32 %v7740_v4, %v13392_v52  ;;  %v13394_v5 = vld [vmem:[#allocation143_spill] sm:$0xff]  ;;  %v13395_v52 = vld [vmem:[#allocation144_spill] sm:$0xff] }
0x39f0   :  { %v7749_v18 = vsel %vm7741_vm0, %v7737_v20, %v7745_v26  ;;  %v7750_v21 = vsel %vm7742_vm6, %v7738_v28, %v7746_v41  ;;  %v7751_v2 = vsel %vm7743_vm7, %v7739_v13, %v7747_v39  ;;  %v7752_v53 = vsel %vm7744_vm4, %v7740_v4, %v7748_v25  ;;  %v13393_v26 = vld [vmem:[#allocation142_spill] sm:$0xff] }
0x39f1   :  { %v7753_v40 = vsel %vm523_vm2, %v7749_v18, 0.0  ;;  %v7754_v62 = vsel %vm523_vm2, %v7750_v21, 0.0  ;;  %v7770_v32 = vmul.f32 %v7749_v18, %v7749_v18  ;;  %v7771_v54 = vmul.f32 %v7750_v21, %v7750_v21 }
0x39f2   :  { %v7755_v33 = vadd.f32 %v7754_v62, %v7753_v40  ;;  %v7772_v37 = vmul.f32 %v7751_v2, %v7751_v2  ;;  %v7756_v56 = vsel %vm523_vm2, %v7751_v2, 0.0  ;;  %v7773_v49 = vmul.f32 %v7752_v53, %v7752_v53 }
0x39f3   :  { %v7774_v31 = vsel %vm523_vm2, %v7770_v32, 0.0  ;;  %v7775_v38 = vsel %vm523_vm2, %v7771_v54, 0.0  ;;  %v7758_v17 = vsel %vm523_vm2, %v7752_v53, 0.0 }
0x39f4   :  { %v7757_v27 = vadd.f32 %v7756_v56, %v7755_v33  ;;  %v7776_v16 = vadd.f32 %v7775_v38, %v7774_v31  ;;  %v7777_v7 = vsel %vm523_vm2, %v7772_v37, 0.0  ;;  %v7779_v0 = vsel %vm523_vm2, %v7773_v49, 0.0  ;;  %v13396_v37 = vld [vmem:[#allocation145_spill] sm:$0xff]  ;;  %v10019_v38 = vld [vmem:[%s12868_s2 + $0x60] sm:$0xff] }
0x39f5   :  { %v10016_v49 = vld [vmem:[%s12868_s2 + $0x10] sm:$0xff] }
0x39f6   :  { %v7759_v24 = vadd.f32 %v7758_v17, %v7757_v27  ;;  %v7778_v3 = vadd.f32 %v7777_v7, %v7776_v16  ;;  %v13399_v27 = vld [vmem:[#allocation148_spill] sm:$0xff]  ;;  %v10017_v31 = vld [vmem:[%s12868_s2 + $0x30] sm:$0xff] }
0x39f8   :  { %7760 = vadd.xlane.f32.xlu0 %v7759_v24  ;;  %v7780_v63 = vadd.f32 %v7779_v0, %v7778_v3 }
0x39fa   :  { %7781 = vadd.xlane.f32.xlu1 %v7780_v63  ;;  %v10021_v63 = vld [vmem:[%s12868_s2 + $0x50] sm:$0xff] }
0x3a81   :  { %v7761_v48 = vpop.xlane.xlu0 %7760 }
0x3a82   :  { %v7762_v12 = vrot.slane %v7761_v48, 4 }
0x3a83   :  { %v7782_v46 = vpop.xlane.xlu1 %7781 }
0x3a84   :  { %v7763_v61 = vadd.f32 %v7762_v12, %v7761_v48  ;;  %v7783_v22 = vrot.slane %v7782_v46, 4 }
0x3a86   :  { %v7764_v8 = vrot.slane %v7763_v61, 2  ;;  %v7784_v11 = vadd.f32 %v7783_v22, %v7782_v46  ;;  %v13400_v22 = vld [vmem:[#allocation149_spill] sm:$0xff] }
0x3a88   :  { %v7765_v30 = vadd.f32 %v7764_v8, %v7763_v61  ;;  %v7785_v50 = vrot.slane %v7784_v11, 2 }
0x3a8a   :  { %v7766_v35 = vrot.slane %v7765_v30, 1  ;;  %v7786_v36 = vadd.f32 %v7785_v50, %v7784_v11  ;;  %v13401_v11 = vld [vmem:[#allocation151_spill] sm:$0xff]  ;;  %v13402_v50 = vld [vmem:[#allocation152_spill] sm:$0xff] }
0x3a8c   :  { %v7767_v44 = vadd.f32 %v7766_v35, %v7765_v30  ;;  %v7787_v60 = vrot.slane %v7786_v36, 1 }
0x3a8e   :  { %9765 = vpush %v7767_v44  ;;  %v7788_v34 = vadd.f32 %v7787_v60, %v7786_v36 }
0x3a90   :  { %9767 = vpush %v7788_v34 }
0x3abf   :  { %s9766_s10 = spop %9765 }
0x3ac0   :  { %s7769_s13 = smul.f32 0.0009765625, %s9766_s10 }
0x3ac1   :  { %s9768_s15 = spop %9767 }
0x3ac2   :  { %s7791_s14 = smul.f32 %s7769_s13, %s7769_s13  ;;  %v7793_v6 = vstv %s7769_s13 }
0x3ac3   :  { %s7790_s16 = smul.f32 0.0009765625, %s9768_s15  ;;  %v7794_v1 = vsub.f32 %v7749_v18, %v7793_v6  ;;  %v7795_v20 = vsub.f32 %v7750_v21, %v7793_v6  ;;  %v7796_v28 = vsub.f32 %v7751_v2, %v7793_v6  ;;  %v7797_v13 = vsub.f32 %v7752_v53, %v7793_v6  ;;  %v13397_v18 = vld [vmem:[#allocation146_spill] sm:$0xff]  ;;  %v13398_v2 = vld [vmem:[#allocation147_spill] sm:$0xff] }
0x3ac5   :  { %s7792_s17 = ssub.f32 %s7790_s16, %s7791_s14  ;;  %v7798_v4 = vmul.f32 %v7794_v1, %v11402_v57  ;;  %v7799_v41 = vmul.f32 %v7795_v20, %v13393_v26  ;;  %v7800_v39 = vmul.f32 %v7796_v28, %v13394_v5  ;;  %v7801_v25 = vmul.f32 %v7797_v13, %v13395_v52  ;;  %v10022_v28 = vld [vmem:[%s12868_s2 + $0x58] sm:$0xff]  ;;  %v10023_v13 = vld [vmem:[%s12868_s2 + $0x80] sm:$0xff]  ;;  %v13405_v52 = vld [vmem:[#allocation153_spill] sm:$0xff] }
0x3ac6   :  { %v13404_v26 = vld [vmem:[#allocation154_spill] sm:$0xff] }
0x3ac7   :  { %s7802_s18 = sadd.f32 1e-08, %s7792_s17 }
0x3ac9   :  { %v7803_v10 = vstv %s7802_s18 }
0x3aca   :  { %9924 = vrsqrt.f32 %v7803_v10 }
0x3ad7   :  { %v9925_v15 = vpop.eup %9924 }
0x3ad8   :  { %9769 = vpush %v9925_v15 }
0x3b09   :  { %s9770_s1 = spop %9769 }
0x3b0a   :  { %v7806_v40 = vstv %s9770_s1 }
0x3b0b   :  { %v7807_v62 = vmul.f32 %v7806_v40, %v7798_v4  ;;  %v7808_v33 = vmul.f32 %v7806_v40, %v7799_v41  ;;  %v7809_v32 = vmul.f32 %v7806_v40, %v7800_v39  ;;  %v7810_v54 = vmul.f32 %v7806_v40, %v7801_v25 }
0x3b0d   :  { %v7811_v56 = vadd.f32 %v7807_v62, %v13396_v37  ;;  %v7813_v21 = vadd.f32 %v7809_v32, %v13397_v18  ;;  %v7812_v53 = vadd.f32 %v7808_v33, %v13398_v2  ;;  %v7814_v57 = vadd.f32 %v7810_v54, %v13399_v27 }
0x3b0f   :  { %7879 = vmatprep.mubr.f32.mxu0 %v7812_v53  ;;  %7949 = vmatprep.mubr.f32.mxu1 %v7814_v57 }
0x3b10   :  { %7880 = vmatmul.mubr.f32.vlgmr.msra.gmra.mxu0 %v7811_v56  ;;  %7950 = vmatmul.mubr.f32.vlgmr.msra.gmra.mxu1 %v7813_v21 }
0x3b11   :  { %9498 = vmatpush3.msra.mxu1 %v12326_v14  ;;  %9501 = vmatprep.mubr.msk.f32.mxu1 %vm373_vm1, %v10016_v49  ;;  %v10018_v14 = vld [vmem:[%s12868_s2 + $0x18] sm:$0xff] }
0x3b12   :  { %9499 = vmatprep.subr.mxu1 %v12175_v23  ;;  %9494 = vmatprep.mubr.msk.f32.mxu0 %vm373_vm1, %v10017_v31 }
0x3b13   :  { %9500 = vmatpush3.msra.mxu1 %v12175_v23  ;;  %v10020_v23 = vld [vmem:[%s12868_s2 + $0x38] sm:$0xff] }
0x3b14   :  { %9502 = vmatmul.mubr.msk.f32.vlgmr.msra.gmra.mxu1 %vm373_vm1, %v10018_v14 }
0x3b15   :  { %9515 = vmatprep.mubr.msk.f32.mxu1 %vm373_vm1, %v10019_v38 }
0x3bd0   :  { %v7881_v17 = vpop.f32.mrf.mxu0  ;;  %v7951_v16 = vpop.f32.mrf.mxu1 }
0x3bd1   :  { %v7882_v24 = vadd.f32 %v7881_v17, %v12314_v47 }
0x3bd2   :  { %v7883_v7 = vpop.f32.mrf.mxu0  ;;  %v7953_v3 = vpop.f32.mrf.mxu1 }
0x3bd3   :  { %v7952_v0 = vadd.f32 %v7951_v16, %v7882_v24 }
0x3bd4   :  { %v9503_v12 = vpop.f32.mrf.mxu1 }
0x3bd5   :  { %9492 = vmatprep.subr.msk.mxu0 %vm373_vm1, %v7952_v0  ;;  %v8105_v8 = vadd.f32 %v9503_v12, %v13400_v22  ;;  %v13407_v22 = vld [vmem:[#allocation156_spill] sm:$0xff] }
0x3bd6   :  { %9493 = vmatpush3.xpose.msk.msra.mxu0 %vm373_vm1, %v7952_v0 }
0x3bd9   :  { %9495 = vmatmul.mubr.msk.f32.vlgmr.msra.gmra.mxu0 %vm373_vm1, %v10020_v23 }
0x3bda   :  { %9508 = vmatprep.mubr.msk.f32.mxu0 %vm373_vm1, %v10021_v63 }
0x3c99   :  { %v9496_v47 = vpop.f32.mrf.mxu0 }
0x3c9a   :  { %8127 = vperm.xlu1 %9850, %v9496_v47   ;;  %8115 = vperm.xlu0 %9849, %v9496_v47  }
0x3c9b   :  { %v8024_v48 = vpop.f32.mrf.mxu0 }
0x3c9e   :  { %9851 = vset.pattern.permute.xlu1 %v13232_v19  ;;  %9853 = vset.pattern.permute.xlu0 %v13231_v59  ;;  %v8099_v19 = vpop.f32.mrf.mxu1 }
0x3c9f   :  { %8110 = vperm.xlu1 %9851, %v8024_v48  }
0x3ca3   :  { %9852 = vset.pattern.permute.xlu1 %v13231_v59  ;;  %v13403_v59 = vld [vmem:[#allocation150_spill] sm:$0xff] }
0x3ca4   :  { %8123 = vperm.xlu1 %9852, %v8024_v48   ;;  %v8100_v10 = vadd.f32 %v8099_v19, %v13403_v59 }
0x3d15   :  { %v8128_v61 = vpop.permute.xlu1 %8127  ;;  %v8116_v46 = vpop.permute.xlu0 %8115 }
0x3d16   :  { %v8119_v30 = vmul.f32 %v8116_v46, %v13401_v11  ;;  %v8131_v35 = vmul.f32 %v8128_v61, %v13402_v50  ;;  %v13406_v61 = vld [vmem:[#allocation155_spill] sm:$0xff] }
0x3d18   :  { %v8121_v36 = vadd.f32 %v8119_v30, %v8105_v8 }
0x3d1a   :  { %v8111_v44 = vpop.permute.xlu1 %8110  ;;  %v12421_v60 = vadd.f32 %v8131_v35, %v8121_v36  ;;  %v13408_v35 = vld [vmem:[#allocation157_spill] sm:$0xff] }
0x3d1b   :  { %v8118_v34 = vmul.f32 %v8111_v44, %v13401_v11  ;;  %v13409_v44 = vld [vmem:[#allocation158_spill] sm:$0xff] }
0x3d1c   :  { %9504 = vmatprep.subr.mxu0 %v12421_v60 }
0x3d1d   :  { %9505 = vmatpush3.msra.mxu0 %v12421_v60  ;;  %v8120_v6 = vadd.f32 %v8118_v34, %v8100_v10 }
0x3d1f   :  { %v8124_v15 = vpop.permute.xlu1 %8123 }
0x3d20   :  { %v8130_v1 = vmul.f32 %v8124_v15, %v13402_v50  ;;  %v13410_v15 = vld [vmem:[#allocation159_spill] sm:$0xff] }
0x3d22   :  { %v12428_v20 = vadd.f32 %v8130_v1, %v8120_v6 }
0x3d24   :  { %9506 = vmatprep.subr.mxu0 %v12428_v20 }
0x3d25   :  { %9507 = vmatpush3.msra.mxu0 %v12428_v20 }
0x3d26   :  { %9509 = vmatmul.mubr.msk.f32.vlgmr.msra.gmra.mxu0 %vm373_vm1, %v10022_v28  ;;  %v13411_v28 = vld [vmem:[#allocation161_spill] sm:$0xff] }
0x3d27   :  { %9522 = vmatprep.mubr.msk.f32.mxu0 %vm373_vm1, %v10023_v13 }
0x3de6   :  { %v9510_v4 = vpop.f32.mrf.mxu0 }
0x3de7   :  { %vm8210_vm5 = vcmp.gt.f32.partialorder %v9510_v4, 0.0  ;;  %v8212_v41 = vmul.f32 %v9510_v4, %v13404_v26 }
0x3de8   :  { %v8200_v5 = vpop.f32.mrf.mxu0 }
0x3de9   :  { %v8214_v39 = vsel %vm8210_vm5, %v9510_v4, %v8212_v41  ;;  %vm8209_vm12 = vcmp.gt.f32.partialorder %v8200_v5, 0.0  ;;  %v8211_v25 = vmul.f32 %v8200_v5, %v13405_v52  ;;  %v13412_v41 = vld [vmem:[#allocation160_spill] sm:$0xff]  ;;  %v13413_v52 = vld [vmem:[#allocation163_spill] sm:$0xff]  ;;  %vm13437_vm5 = vmmov 0  }
0x3dea   :  { %v8229_v40 = vmul.f32 %v8214_v39, %v8214_v39  ;;  %v8216_v54 = vsel %vm265_vm15, %v8214_v39, 0.0 }
0x3deb   :  { %v8213_v62 = vsel %vm8209_vm12, %v8200_v5, %v8211_v25  ;;  %vm5188_vm12 = vcmask 56320  }
0x3dec   :  { %v8228_v33 = vmul.f32 %v8213_v62, %v8213_v62  ;;  %v8215_v32 = vsel %vm265_vm15, %v8213_v62, 0.0  ;;  %v8231_v18 = vsel %vm265_vm15, %v8229_v40, 0.0  ;;  %v13414_v40 = vld [vmem:[#allocation162_spill] sm:$0xff] }
0x3ded   :  { %v8217_v37 = vadd.f32 %v8216_v54, %v8215_v32 }
0x3dee   :  { %v8230_v56 = vsel %vm265_vm15, %v8228_v33, 0.0 }
0x3def   :  { %8218 = vadd.xlane.f32.xlu1 %v8217_v37  ;;  %v8232_v21 = vadd.f32 %v8231_v18, %v8230_v56  ;;  %v13415_v56 = vld [vmem:[#allocation165_spill] sm:$0xff] }
0x3df1   :  { %8233 = vadd.xlane.f32.xlu0 %v8232_v21  ;;  %v13416_v21 = vld [vmem:[#allocation164_spill] sm:$0xff] }
0x3e78   :  { %v8219_v2 = vpop.xlane.xlu1 %8218 }
0x3e79   :  { %v8220_v53 = vrot.slane %v8219_v2, 4 }
0x3e7a   :  { %v8234_v27 = vpop.xlane.xlu0 %8233 }
0x3e7b   :  { %v8221_v57 = vadd.f32 %v8220_v53, %v8219_v2  ;;  %v8235_v49 = vrot.slane %v8234_v27, 4 }
0x3e7d   :  { %v8222_v31 = vrot.slane %v8221_v57, 2  ;;  %v8236_v14 = vadd.f32 %v8235_v49, %v8234_v27 }
0x3e7f   :  { %v8237_v38 = vrot.slane %v8236_v14, 2  ;;  %v8223_v17 = vadd.f32 %v8222_v31, %v8221_v57  ;;  %v13417_v57 = vld [vmem:[#allocation166_spill] sm:$0xff] }
0x3e81   :  { %v8224_v16 = vrot.slane %v8223_v17, 1  ;;  %v8238_v24 = vadd.f32 %v8237_v38, %v8236_v14 }
0x3e83   :  { %v8225_v7 = vadd.f32 %v8224_v16, %v8223_v17  ;;  %v8239_v3 = vrot.slane %v8238_v24, 1 }
0x3e85   :  { %9771 = vpush %v8225_v7  ;;  %v8240_v0 = vadd.f32 %v8239_v3, %v8238_v24 }
0x3e87   :  { %9773 = vpush %v8240_v0 }
0x3eb6   :  { %s9772_s13 = spop %9771 }
0x3eb7   :  { %s8227_s14 = smul.f32 0.00086805556, %s9772_s13 }
0x3eb8   :  { %s9774_s15 = spop %9773 }
0x3eb9   :  { %s8243_s16 = smul.f32 %s8227_s14, %s8227_s14  ;;  %v8245_v47 = vstv %s8227_s14 }
0x3eba   :  { %s8242_s17 = smul.f32 0.00086805556, %s9774_s15  ;;  %v8246_v48 = vsub.f32 %v8213_v62, %v8245_v47  ;;  %v8247_v12 = vsub.f32 %v8214_v39, %v8245_v47 }
0x3ebc   :  { %s8244_s18 = ssub.f32 %s8242_s17, %s8243_s16  ;;  %v8248_v46 = vmul.f32 %v8246_v48, %v13406_v61  ;;  %v8249_v8 = vmul.f32 %v8247_v12, %v13407_v22 }
0x3ebe   :  { %s8250_s1 = sadd.f32 1e-08, %s8244_s18 }
0x3ec0   :  { %v8251_v23 = vstv %s8250_s1 }
0x3ec1   :  { %9926 = vrsqrt.f32 %v8251_v23 }
0x3ece   :  { %v9927_v63 = vpop.eup %9926 }
0x3ecf   :  { %9775 = vpush %v9927_v63 }
0x3f00   :  { %s9776_s12 = spop %9775 }
0x3f01   :  { %v8254_v11 = vstv %s9776_s12 }
0x3f02   :  { %v8255_v30 = vmul.f32 %v8254_v11, %v8248_v46  ;;  %v8256_v50 = vmul.f32 %v8254_v11, %v8249_v8 }
0x3f04   :  { %v8257_v36 = vadd.f32 %v8255_v30, %v13408_v35  ;;  %v8258_v19 = vadd.f32 %v8256_v50, %v13409_v44 }
0x3f06   :  { %8263 = vrot.lane.b32.xlu0 %v8258_v19, %s10114_s19  ;;  %8261 = vrot.lane.b32.xlu1 %v8257_v36, %s10114_s19  ;;  %v8271_v13 = vmul.f32 %v8257_v36, %v13411_v28  ;;  %v8272_v62 = vmul.f32 %v8258_v19, %v13414_v40  ;;  %v10025_v40 = vld [vmem:[%s12868_s2 + $0x90] sm:$0xff] }
0x3f0a   :  { %8275 = vrot.lane.b32.xlu1 %v8257_v36, %s10115_s20 }
0x3f0e   :  { %8277 = vrot.lane.b32.xlu1 %v8258_v19, %s10115_s20 }
0x3f78   :  { %v8264_v34 = vpop.permute.xlu0 %8263  ;;  %v8262_v59 = vpop.permute.xlu1 %8261 }
0x3f79   :  { %v8267_v10 = vsel %vm4190_vm10, 0.0, %v8262_v59  ;;  %v8268_v1 = vsel %vm4190_vm10, 0.0, %v8264_v34 }
0x3f7a   :  { %v8269_v6 = vmul.f32 %v8267_v10, %v13410_v15  ;;  %v8270_v5 = vmul.f32 %v8268_v1, %v13412_v41  ;;  %v13418_v15 = vld [vmem:[#allocation167_spill] sm:$0xff]  ;;  %v13419_v1 = vld [vmem:[#allocation168_spill] sm:$0xff]  ;;  %v13420_v41 = vld [vmem:[#allocation169_spill] sm:$0xff] }
0x3f7c   :  { %v8276_v4 = vpop.permute.xlu1 %8275  ;;  %v8273_v39 = vadd.f32 %v8271_v13, %v8269_v6  ;;  %v8274_v37 = vadd.f32 %v8272_v62, %v8270_v5 }
0x3f7d   :  { %v8281_v26 = vsel %vm4221_vm11, %v8276_v4, 0.0 }
0x3f7e   :  { %v8283_v25 = vmul.f32 %v8281_v26, %v13413_v52 }
0x3f80   :  { %v8285_v33 = vadd.f32 %v8283_v25, %v8273_v39  ;;  %v8278_v32 = vpop.permute.xlu1 %8277  ;;  %v13421_v39 = vld [vmem:[#allocation170_spill] sm:$0xff]  ;;  %v10024_v25 = vld [vmem:[%s12868_s2 + $0x68] sm:$0xff] }
0x3f81   :  { %v8282_v54 = vsel %vm4221_vm11, %v8278_v32, 0.0 }
0x3f82   :  { %vm8287_vm13 = vcmp.gt.f32.partialorder %v8285_v33, 0.0  ;;  %v8289_v18 = vmul.f32 %v8285_v33, %v13415_v56  ;;  %v8284_v2 = vmul.f32 %v8282_v54, %v13416_v21  ;;  %v13422_v56 = vld [vmem:[#allocation172_spill] sm:$0xff] }
0x3f84   :  { %v8286_v53 = vadd.f32 %v8284_v2, %v8274_v37  ;;  %v8291_v27 = vsel %vm8287_vm13, %v8285_v33, %v8289_v18  ;;  %v10026_v37 = vld [vmem:[%s12868_s2 + $0x88] sm:$0xff] }
0x3f85   :  { %v8306_v31 = vmul.f32 %v8291_v27, %v8291_v27  ;;  %v8293_v38 = vsel %vm265_vm15, %v8291_v27, 0.0 }
0x3f86   :  { %vm8288_vm0 = vcmp.gt.f32.partialorder %v8286_v53, 0.0  ;;  %v8290_v49 = vmul.f32 %v8286_v53, %v13417_v57 }
0x3f87   :  { %v8308_v7 = vsel %vm265_vm15, %v8306_v31, 0.0 }
0x3f88   :  { %v8292_v14 = vsel %vm8288_vm0, %v8286_v53, %v8290_v49  ;;  %v13423_v53 = vld [vmem:[#allocation171_spill] sm:$0xff] }
0x3f89   :  { %v8294_v17 = vsel %vm265_vm15, %v8292_v14, 0.0  ;;  %v8307_v16 = vmul.f32 %v8292_v14, %v8292_v14 }
0x3f8a   :  { %v8295_v24 = vadd.f32 %v8294_v17, %v8293_v38 }
0x3f8b   :  { %v8309_v3 = vsel %vm265_vm15, %v8307_v16, 0.0 }
0x3f8c   :  { %8296 = vadd.xlane.f32.xlu1 %v8295_v24  ;;  %v8310_v0 = vadd.f32 %v8309_v3, %v8308_v7 }
0x3f8e   :  { %8311 = vadd.xlane.f32.xlu0 %v8310_v0 }
0x4015   :  { %v8297_v23 = vpop.xlane.xlu1 %8296 }
0x4016   :  { %v8298_v63 = vrot.slane %v8297_v23, 4 }
0x4017   :  { %v8312_v47 = vpop.xlane.xlu0 %8311 }
0x4018   :  { %v8299_v48 = vadd.f32 %v8298_v63, %v8297_v23  ;;  %v8313_v12 = vrot.slane %v8312_v47, 4 }
0x401a   :  { %v8300_v61 = vrot.slane %v8299_v48, 2  ;;  %v8314_v46 = vadd.f32 %v8313_v12, %v8312_v47 }
0x401c   :  { %v8315_v22 = vrot.slane %v8314_v46, 2  ;;  %v8301_v8 = vadd.f32 %v8300_v61, %v8299_v48 }
0x401e   :  { %v8302_v11 = vrot.slane %v8301_v8, 1  ;;  %v8316_v30 = vadd.f32 %v8315_v22, %v8314_v46 }
0x4020   :  { %v8303_v50 = vadd.f32 %v8302_v11, %v8301_v8  ;;  %v8317_v35 = vrot.slane %v8316_v30, 1 }
0x4022   :  { %9777 = vpush %v8303_v50  ;;  %v8318_v36 = vadd.f32 %v8317_v35, %v8316_v30 }
0x4024   :  { %9779 = vpush %v8318_v36 }
0x4053   :  { %s9778_s20 = spop %9777 }
0x4054   :  { %s8305_s21 = smul.f32 0.00086805556, %s9778_s20  ;;  %s10122_s20 = smov 5  }
0x4055   :  { %s9780_s22 = spop %9779 }
0x4056   :  { %s8321_s23 = smul.f32 %s8305_s21, %s8305_s21  ;;  %v8323_v34 = vstv %s8305_s21  ;;  %s10123_s21 = smov 6  }
0x4057   :  { %s8320_s24 = smul.f32 0.00086805556, %s9780_s22  ;;  %v8324_v59 = vsub.f32 %v8291_v27, %v8323_v34  ;;  %v8325_v10 = vsub.f32 %v8292_v14, %v8323_v34  ;;  %s10124_s22 = smov 7  }
0x4059   :  { %s8322_s25 = ssub.f32 %s8320_s24, %s8321_s23  ;;  %v8326_v6 = vmul.f32 %v8324_v59, %v13418_v15  ;;  %v8327_v28 = vmul.f32 %v8325_v10, %v13419_v1  ;;  %v13424_v59 = vld [vmem:[#allocation173_spill] sm:$0xff]  ;;  %v13425_v15 = vld [vmem:[#allocation174_spill] sm:$0xff] }
0x405b   :  { %s8328_s28 = sadd.f32 1e-08, %s8322_s25 }
0x405d   :  { %v8329_v44 = vstv %s8328_s28 }
0x405e   :  { %9928 = vrsqrt.f32 %v8329_v44 }
0x406b   :  { %v9929_v19 = vpop.eup %9928 }
0x406c   :  { %9781 = vpush %v9929_v19 }
0x409d   :  { %s9782_s29 = spop %9781 }
0x409e   :  { %v8332_v13 = vstv %s9782_s29 }
0x409f   :  { %v8333_v4 = vmul.f32 %v8332_v13, %v8326_v6  ;;  %v8334_v26 = vmul.f32 %v8332_v13, %v8327_v28 }
0x40a1   :  { %v8336_v5 = vadd.f32 %v8334_v26, %v13420_v41  ;;  %v8335_v52 = vadd.f32 %v8333_v4, %v13421_v39  ;;  %v13426_v4 = vld [vmem:[#allocation175_spill] sm:$0xff]  ;;  %v13427_v41 = vld [vmem:[#allocation176_spill] sm:$0xff] }
0x40a3   :  { %9511 = vmatprep.subr.mxu1 %v8336_v5 }
0x40a4   :  { %9512 = vmatpush3.msra.mxu1 %v8336_v5 }
0x40a5   :  { %9513 = vmatprep.subr.mxu1 %v8335_v52 }
0x40a6   :  { %9514 = vmatpush3.msra.mxu1 %v8335_v52 }
0x40a7   :  { %9516 = vmatmul.mubr.msk.f32.vlgmr.msra.gmra.mxu1 %vm373_vm1, %v10024_v25 }
0x40a8   :  { %9529 = vmatprep.mubr.msk.f32.mxu1 %vm373_vm1, %v10025_v40 }
0x4167   :  { %v9517_v62 = vpop.f32.mrf.mxu1 }
0x4168   :  { %v12483_v33 = vadd.f32 %v9517_v62, %v12421_v60  ;;  %v10027_v60 = vld [vmem:[%s12868_s2 + $0xb0] sm:$0xff] }
0x4169   :  { %v8403_v32 = vpop.f32.mrf.mxu1 }
0x416a   :  { %v12486_v54 = vadd.f32 %v8403_v32, %v12428_v20  ;;  %9518 = vmatprep.subr.mxu0 %v12483_v33 }
0x416b   :  { %9519 = vmatpush3.msra.mxu0 %v12483_v33 }
0x416c   :  { %9520 = vmatprep.subr.mxu0 %v12486_v54 }
0x416d   :  { %9521 = vmatpush3.msra.mxu0 %v12486_v54 }
0x416e   :  { %9523 = vmatmul.mubr.msk.f32.vlgmr.msra.gmra.mxu0 %vm373_vm1, %v10026_v37 }
0x416f   :  { %9536 = vmatprep.mubr.msk.f32.mxu0 %vm373_vm1, %v10027_v60 }
0x422e   :  { %v9524_v20 = vpop.f32.mrf.mxu0 }
0x422f   :  { %vm8488_vm11 = vcmp.gt.f32.partialorder %v9524_v20, 0.0  ;;  %v8490_v18 = vmul.f32 %v9524_v20, %v13422_v56 }
0x4230   :  { %v8478_v21 = vpop.f32.mrf.mxu0 }
0x4231   :  { %v8492_v2 = vsel %vm8488_vm11, %v9524_v20, %v8490_v18  ;;  %vm8487_vm6 = vcmp.gt.f32.partialorder %v8478_v21, 0.0  ;;  %v8489_v27 = vmul.f32 %v8478_v21, %v13423_v53 }
0x4232   :  { %v8507_v57 = vmul.f32 %v8492_v2, %v8492_v2  ;;  %v8494_v38 = vsel %vm265_vm15, %v8492_v2, 0.0 }
0x4233   :  { %v8491_v49 = vsel %vm8487_vm6, %v8478_v21, %v8489_v27 }
0x4234   :  { %v8506_v31 = vmul.f32 %v8491_v49, %v8491_v49  ;;  %v8493_v14 = vsel %vm265_vm15, %v8491_v49, 0.0  ;;  %v8509_v24 = vsel %vm265_vm15, %v8507_v57, 0.0 }
0x4235   :  { %v8495_v17 = vadd.f32 %v8494_v38, %v8493_v14 }
0x4236   :  { %v8508_v16 = vsel %vm265_vm15, %v8506_v31, 0.0 }
0x4237   :  { %8496 = vadd.xlane.f32.xlu1 %v8495_v17  ;;  %v8510_v7 = vadd.f32 %v8509_v24, %v8508_v16 }
0x4239   :  { %8511 = vadd.xlane.f32.xlu0 %v8510_v7 }
0x42c0   :  { %v8497_v3 = vpop.xlane.xlu1 %8496 }
0x42c1   :  { %v8498_v0 = vrot.slane %v8497_v3, 4 }
0x42c2   :  { %v8512_v23 = vpop.xlane.xlu0 %8511 }
0x42c3   :  { %v8499_v63 = vadd.f32 %v8498_v0, %v8497_v3  ;;  %v8513_v47 = vrot.slane %v8512_v23, 4 }
0x42c5   :  { %v8500_v48 = vrot.slane %v8499_v63, 2  ;;  %v8514_v12 = vadd.f32 %v8513_v47, %v8512_v23  ;;  %v13430_v23 = vld [vmem:[#allocation13_spill] sm:$0xff] }
0x42c6   :  { %v5086_v47 = vrot.slane %v13430_v23, 2 }
0x42c7   :  { %v8515_v61 = vrot.slane %v8514_v12, 2  ;;  %v8501_v46 = vadd.f32 %v8500_v48, %v8499_v63  ;;  %v5068_v63 = vrot.slane %v13430_v23, 1  ;;  %v13431_v48 = vld [vmem:[#allocation16_spill] sm:$0xff] }
0x42c9   :  { %v8502_v22 = vrot.slane %v8501_v46, 1  ;;  %v8516_v8 = vadd.f32 %v8515_v61, %v8514_v12  ;;  %v5069_v12 = vrot.slane %v13431_v48, 1  ;;  %v5104_v61 = vrot.slane %v13430_v23, 3 }
0x42cb   :  { %v8503_v11 = vadd.f32 %v8502_v22, %v8501_v46  ;;  %v8517_v30 = vrot.slane %v8516_v8, 1  ;;  %v13432_v46 = vld [vmem:[#allocation183_spill] sm:$0xff] }
0x42cc   :  { %v5070_v22 = vrot.slane %v13432_v46, 1 }
0x42cd   :  { %9783 = vpush %v8503_v11  ;;  %v8518_v50 = vadd.f32 %v8517_v30, %v8516_v8  ;;  %v5123_v8 = vrot.slane %v13430_v23, 4  ;;  %v5087_v11 = vrot.slane %v13431_v48, 2  ;;  %v5141_v30 = vrot.slane %v13430_v23, 5 }
0x42cf   :  { %9785 = vpush %v8518_v50  ;;  %v5088_v50 = vrot.slane %v13432_v46, 2 }
0x42fe   :  { %s9784_s13 = spop %9783 }
0x42ff   :  { %s8505_s14 = smul.f32 0.00086805556, %s9784_s13 }
0x4300   :  { %s9786_s15 = spop %9785 }
0x4301   :  { %s8521_s16 = smul.f32 %s8505_s14, %s8505_s14  ;;  %v8523_v44 = vstv %s8505_s14 }
0x4302   :  { %s8520_s17 = smul.f32 0.00086805556, %s9786_s15  ;;  %v8524_v19 = vsub.f32 %v8491_v49, %v8523_v44  ;;  %v8525_v34 = vsub.f32 %v8492_v2, %v8523_v44  ;;  %v13428_v49 = vld [vmem:[#allocation177_spill] sm:$0xff]  ;;  %v5179_v44 = vrot.slane %v13430_v23, 7 }
0x4304   :  { %s8522_s18 = ssub.f32 %s8520_s17, %s8521_s16  ;;  %v8526_v10 = vmul.f32 %v8524_v19, %v13424_v59  ;;  %v8527_v6 = vmul.f32 %v8525_v34, %v13425_v15  ;;  %v5106_v19 = vrot.slane %v13432_v46, 3  ;;  %v5124_v34 = vrot.slane %v13431_v48, 4 }
0x4305   :  { %v5125_v59 = vrot.slane %v13432_v46, 4  ;;  %v5143_v15 = vrot.slane %v13432_v46, 5 }
0x4306   :  { %s8528_s1 = sadd.f32 1e-08, %s8522_s18 }
0x4308   :  { %v8529_v35 = vstv %s8528_s1 }
0x4309   :  { %9930 = vrsqrt.f32 %v8529_v35  ;;  %v5160_v35 = vrot.slane %v13430_v23, 6 }
0x4316   :  { %v9931_v36 = vpop.eup %9930 }
0x4317   :  { %9787 = vpush %v9931_v36  ;;  %v5105_v36 = vrot.slane %v13431_v48, 3 }
0x4348   :  { %s9788_s12 = spop %9787 }
0x4349   :  { %v8532_v1 = vstv %s9788_s12 }
0x434a   :  { %v8533_v28 = vmul.f32 %v8532_v1, %v8526_v10  ;;  %v8534_v13 = vmul.f32 %v8532_v1, %v8527_v6  ;;  %v5142_v10 = vrot.slane %v13431_v48, 5  ;;  %v5161_v6 = vrot.slane %v13431_v48, 6 }
0x434b   :  { %v5162_v1 = vrot.slane %v13432_v46, 6 }
0x434c   :  { %v8535_v26 = vadd.f32 %v8533_v28, %v13426_v4  ;;  %v8536_v5 = vadd.f32 %v8534_v13, %v13427_v41  ;;  %v5180_v28 = vrot.slane %v13431_v48, 7 }
0x434e   :  { %8541 = vrot.lane.b32.xlu0 %v8536_v5, %s10118_s26  ;;  %8539 = vrot.lane.b32.xlu1 %v8535_v26, %s10118_s26  ;;  %v8549_v32 = vmul.f32 %v8535_v26, %v11712_v43  ;;  %v8550_v21 = vmul.f32 %v8536_v5, %v11714_v58 }
0x4352   :  { %8553 = vrot.lane.b32.xlu1 %v8535_v26, %s10119_s27 }
0x4356   :  { %8555 = vrot.lane.b32.xlu1 %v8536_v5, %s10119_s27  ;;  %s10121_s27 = smov 3  }
0x43c0   :  { %v8542_v39 = vpop.permute.xlu0 %8541  ;;  %v8540_v52 = vpop.permute.xlu1 %8539 }
0x43c1   :  { %v8545_v25 = vsel %vm4562_vm8, 0.0, %v8540_v52  ;;  %v8546_v62 = vsel %vm4562_vm8, 0.0, %v8542_v39 }
0x43c2   :  { %v8547_v40 = vmul.f32 %v8545_v25, %v11708_v55  ;;  %v8548_v20 = vmul.f32 %v8546_v62, %v11710_v45  ;;  %v13429_v45 = vld [vmem:[#allocation178_spill] sm:$0xff] }
0x43c4   :  { %v8554_v37 = vpop.permute.xlu1 %8553  ;;  %v8551_v56 = vadd.f32 %v8549_v32, %v8547_v40  ;;  %v8552_v57 = vadd.f32 %v8550_v21, %v8548_v20 }
0x43c5   :  { %v8559_v60 = vsel %vm4593_vm9, %v8554_v37, 0.0 }
0x43c6   :  { %v8561_v18 = vmul.f32 %v8559_v60, %v11716_v29 }
0x43c8   :  { %v8563_v2 = vadd.f32 %v8561_v18, %v8551_v56  ;;  %v8556_v53 = vpop.permute.xlu1 %8555 }
0x43c9   :  { %v8560_v27 = vsel %vm4593_vm9, %v8556_v53, 0.0  ;;  %vm5113_vm9 = vcmask 23552  }
0x43ca   :  { %vm8565_vm7 = vcmp.gt.f32.partialorder %v8563_v2, 0.0  ;;  %v8567_v55 = vmul.f32 %v8563_v2, %v11730_v42  ;;  %v8562_v43 = vmul.f32 %v8560_v27, %v13428_v49 }
0x43cc   :  { %v8564_v31 = vadd.f32 %v8562_v43, %v8552_v57  ;;  %v12525_v14 = vsel %vm8565_vm7, %v8563_v2, %v8567_v55 }
0x43cd   :  { %v8584_v29 = vmul.f32 %v12525_v14, %v12525_v14  ;;  %v8571_v17 = vsel %vm265_vm15, %v12525_v14, 0.0 }
0x43ce   :  { %vm8566_vm4 = vcmp.gt.f32.partialorder %v8564_v31, 0.0  ;;  %v8568_v38 = vmul.f32 %v8564_v31, %v13429_v45 }
0x43cf   :  { %v8586_v7 = vsel %vm265_vm15, %v8584_v29, 0.0 }
0x43d0   :  { %v12530_v58 = vsel %vm8566_vm4, %v8564_v31, %v8568_v38 }
0x43d1   :  { %v8572_v16 = vsel %vm265_vm15, %v12530_v58, 0.0  ;;  %v8585_v42 = vmul.f32 %v12530_v58, %v12530_v58 }
0x43d2   :  { %v8573_v24 = vadd.f32 %v8572_v16, %v8571_v17 }
0x43d3   :  { %v8587_v3 = vsel %vm265_vm15, %v8585_v42, 0.0 }
0x43d4   :  { %8574 = vadd.xlane.f32.xlu1 %v8573_v24  ;;  %v8588_v0 = vadd.f32 %v8587_v3, %v8586_v7 }
0x43d6   :  { %8589 = vadd.xlane.f32.xlu0 %v8588_v0 }
0x43e5   :  { %5071 = vrot.lane.b32.xlu1 %v5068_v63, %s10114_s19 }
0x43e9   :  { %5089 = vrot.lane.b32.xlu1 %v5086_v47, %s10118_s26 }
0x43ec   :  { %5073 = vrot.lane.b32.xlu0 %v5069_v12, %s10114_s19 }
0x43ed   :  { %5107 = vrot.lane.b32.xlu1 %v5104_v61, %s10121_s27  ;;  %v13433_v61 = vld [vmem:[#allocation179_spill] sm:$0xff] }
0x43f0   :  { %5075 = vrot.lane.b32.xlu0 %v5070_v22, %s10114_s19 }
0x43f1   :  { %5126 = vrot.lane.b32.xlu1 %v5123_v8, %s10106_s11  ;;  %v13434_v8 = vld [vmem:[#allocation180_spill] sm:$0xff] }
0x43f4   :  { %5091 = vrot.lane.b32.xlu0 %v5087_v11, %s10118_s26 }
0x43f5   :  { %5144 = vrot.lane.b32.xlu1 %v5141_v30, %s10122_s20 }
0x43f8   :  { %5093 = vrot.lane.b32.xlu0 %v5088_v50, %s10118_s26 }
0x43f9   :  { %5163 = vrot.lane.b32.xlu1 %v5160_v35, %s10123_s21 }
0x43fc   :  { %5109 = vrot.lane.b32.xlu0 %v5105_v36, %s10121_s27  ;;  %v13435_v36 = vld [vmem:[#allocation181_spill] sm:$0xff] }
0x43fd   :  { %5182 = vrot.lane.b32.xlu1 %v5179_v44, %s10124_s22 }
0x4400   :  { %5111 = vrot.lane.b32.xlu0 %v5106_v19, %s10121_s27  ;;  %v13436_v19 = vld [vmem:[#allocation182_spill] sm:$0xff] }
0x4404   :  { %5128 = vrot.lane.b32.xlu0 %v5124_v34, %s10106_s11 }
0x4408   :  { %5130 = vrot.lane.b32.xlu0 %v5125_v59, %s10106_s11 }
0x440c   :  { %5146 = vrot.lane.b32.xlu0 %v5142_v10, %s10122_s20 }
0x4410   :  { %5148 = vrot.lane.b32.xlu0 %v5143_v15, %s10122_s20 }
0x4414   :  { %5165 = vrot.lane.b32.xlu0 %v5161_v6, %s10123_s21  ;;  %v10029_v6 = vld [vmem:[%s12868_s2 + $0xb8] sm:$0xff] }
0x4418   :  { %5167 = vrot.lane.b32.xlu0 %v5162_v1, %s10123_s21  ;;  %v10030_v1 = vld [vmem:[%s12871_s5 + $0xc8] sm:$0xff] }
0x441c   :  { %5184 = vrot.lane.b32.xlu0 %v5180_v28, %s10124_s22  ;;  %v10033_v28 = vld [vmem:[%s12871_s5 + $0xa8] sm:$0xff] }
0x445d   :  { %v8575_v13 = vpop.xlane.xlu1 %8574 }
0x445e   :  { %v8576_v4 = vrot.slane %v8575_v13, 4 }
0x445f   :  { %v8590_v26 = vpop.xlane.xlu0 %8589 }
0x4460   :  { %v8577_v41 = vadd.f32 %v8576_v4, %v8575_v13  ;;  %v8591_v5 = vrot.slane %v8590_v26, 4  ;;  %v10034_v13 = vld [vmem:[%s12871_s5 + $0x98] sm:$0xff]  ;;  %v10035_v4 = vld [vmem:[%s12871_s5 + $0x90] sm:$0xff] }
0x4461   :  { %v5072_v39 = vpop.permute.xlu1 %5071 }
0x4462   :  { %v8578_v52 = vrot.slane %v8577_v41, 2  ;;  %v8592_v25 = vadd.f32 %v8591_v5, %v8590_v26  ;;  %v5082_v40 = vsel %vm4190_vm10, 0.0, %v5072_v39  ;;  %v10036_v26 = vld [vmem:[%s12871_s5 + $0x80] sm:$0xff]  ;;  %v10038_v5 = vld [vmem:[%s12871_s5 + $0x68] sm:$0xff] }
0x4463   :  { %v5074_v62 = vpop.permute.xlu0 %5073  ;;  %v5083_v20 = vadd.f32 %v5082_v40, %v13430_v23  ;;  %v10042_v40 = vld [vmem:[%s12871_s5 + $0x38] sm:$0xff] }
0x4464   :  { %v8593_v32 = vrot.slane %v8592_v25, 2  ;;  %v5077_v37 = vsel %vm4190_vm10, %v5072_v39, %v5074_v62  ;;  %v8579_v60 = vadd.f32 %v8578_v52, %v8577_v41  ;;  %v10037_v41 = vld [vmem:[%s12871_s5 + $0x78] sm:$0xff]  ;;  %v10039_v39 = vld [vmem:[%s12871_s5 + $0x60] sm:$0xff]  ;;  %v10040_v52 = vld [vmem:[%s12871_s5 + $0x50] sm:$0xff] }
0x4465   :  { %v5090_v56 = vpop.permute.xlu1 %5089  ;;  %v5084_v38 = vadd.f32 %v5077_v37, %v13431_v48  ;;  %v10045_v37 = vld [vmem:[%s12871_s5 + $0x18] sm:$0xff] }
0x4466   :  { %v5100_v18 = vsel %vm4562_vm8, 0.0, %v5090_v56  ;;  %v8580_v21 = vrot.slane %v8579_v60, 1  ;;  %v8594_v2 = vadd.f32 %v8593_v32, %v8592_v25  ;;  %v10041_v25 = vld [vmem:[%s12871_s5 + $0x48] sm:$0xff]  ;;  %v10044_v32 = vld [vmem:[%s12871_s5 + $0x20] sm:$0xff] }
0x4467   :  { %v5101_v53 = vadd.f32 %v5100_v18, %v5083_v20  ;;  %v5076_v27 = vpop.permute.xlu0 %5075  ;;  %v10047_v20 = vld [vmem:[%s12871_s5] sm:$0xff] }
0x4468   :  { %v12585_v57 = vsel %vm4190_vm10, %v5074_v62, %v5076_v27  ;;  %v8581_v55 = vadd.f32 %v8580_v21, %v8579_v60  ;;  %v8595_v49 = vrot.slane %v8594_v2, 1  ;;  %v10043_v62 = vld [vmem:[%s12871_s5 + $0x30] sm:$0xff]  ;;  %v10046_v60 = vld [vmem:[%s12871_s5 + $0x8] sm:$0xff] }
0x4469   :  { %v5108_v43 = vpop.permute.xlu1 %5107  ;;  %v13438_v27 = vld [vmem:[#allocation9_spill] sm:$0xff] }
0x446a   :  { %v5119_v31 = vsel %vm5113_vm9, 0.0, %v5108_v43  ;;  %9789 = vpush %v8581_v55  ;;  %v8596_v45 = vadd.f32 %v8595_v49, %v8594_v2  ;;  %v10048_v49 = vld [vmem:[%s12868_s2 + $0xc0] sm:$0xff] }
0x446b   :  { %v12589_v29 = vadd.f32 %v5119_v31, %v5101_v53  ;;  %v12591_v17 = vpop.permute.xlu0 %5091  ;;  %v10051_v31 = vld [vmem:[%s12871_s5 + $0xa0] sm:$0xff] }
0x446c   :  { %v5095_v16 = vsel %vm4562_vm8, %v5090_v56, %v12591_v17  ;;  %9791 = vpush %v8596_v45  ;;  %v10052_v45 = vld [vmem:[%s12871_s5 + $0x88] sm:$0xff] }
0x446d   :  { %v5102_v42 = vadd.f32 %v5095_v16, %v5084_v38  ;;  %v10053_v38 = vld [vmem:[%s12871_s5 + $0x70] sm:$0xff]  ;;  %v10054_v16 = vld [vmem:[%s12871_s5 + $0x58] sm:$0xff] }
0x446f   :  { %v12595_v24 = vpop.permute.xlu0 %5093 }
0x4473   :  { %v12597_v7 = vpop.permute.xlu0 %5109 }
0x4474   :  { %v5114_v3 = vsel %vm5113_vm9, %v5108_v43, %v12597_v7  ;;  %v10049_v43 = vld [vmem:[%s12871_s5 + $0xd0] sm:$0xff] }
0x4475   :  { %v12601_v0 = vadd.f32 %v5114_v3, %v5102_v42  ;;  %v10055_v42 = vld [vmem:[%s12871_s5 + $0x40] sm:$0xff]  ;;  %v10056_v3 = vld [vmem:[%s12871_s5 + $0x28] sm:$0xff] }
0x449b   :  { %s9790_s23 = spop %9789 }
0x449c   :  { %s8583_s24 = smul.f32 0.00086805556, %s9790_s23 }
0x449d   :  { %s9792_s25 = spop %9791 }
0x449e   :  { %s8599_s28 = smul.f32 %s8583_s24, %s8583_s24  ;;  %v8601_v47 = vstv %s8583_s24 }
0x449f   :  { %s8598_s29 = smul.f32 0.00086805556, %s9792_s25  ;;  %v8602_v48 = vsub.f32 %v12525_v14, %v8601_v47  ;;  %v8603_v12 = vsub.f32 %v12530_v58, %v8601_v47  ;;  %v10028_v14 = vld [vmem:[%s12868_s2 + $0x98] sm:$0xff] }
0x44a1   :  { %s8600_s3 = ssub.f32 %s8598_s29, %s8599_s28  ;;  %v8604_v22 = vmul.f32 %v8602_v48, %v13433_v61  ;;  %v8605_v11 = vmul.f32 %v8603_v12, %v13434_v8 }
0x44a3   :  { %s8606_s30 = sadd.f32 1e-08, %s8600_s3 }
0x44a5   :  { %v8607_v23 = vstv %s8606_s30 }
0x44a6   :  { %9932 = vrsqrt.f32 %v8607_v23  ;;  %v10057_v23 = vld [vmem:[%s12871_s5 + $0x10] sm:$0xff] }
0x44b3   :  { %v9933_v63 = vpop.eup %9932 }
0x44b4   :  { %9793 = vpush %v9933_v63 }
0x44e5   :  { %s9794_s0 = spop %9793 }
0x44e6   :  { %v8610_v30 = vstv %s9794_s0 }
0x44e7   :  { %v8611_v50 = vmul.f32 %v8610_v30, %v8604_v22  ;;  %v8612_v35 = vmul.f32 %v8610_v30, %v8605_v11 }
0x44e9   :  { %v8614_v44 = vadd.f32 %v8612_v35, %v13435_v36  ;;  %v8613_v34 = vadd.f32 %v8611_v50, %v13436_v19 }
0x44eb   :  { %9525 = vmatprep.subr.mxu1 %v8614_v44 }
0x44ec   :  { %9526 = vmatpush3.msra.mxu1 %v8614_v44 }
0x44ed   :  { %9527 = vmatprep.subr.mxu1 %v8613_v34 }
0x44ee   :  { %9528 = vmatpush3.msra.mxu1 %v8613_v34 }
0x44ef   :  { %9530 = vmatmul.mubr.msk.f32.vlgmr.msra.gmra.mxu1 %vm373_vm1, %v10028_v14  ;;  %9539 = vmatprep.subr.mxu1 %v13128_v9 }
0x44f0   :  { %9543 = vmatprep.mubr.msk.f32.mxu1 %vm13437_vm5, %v13128_v9 }
0x45af   :  { %v9531_v58 = vpop.f32.mrf.mxu1 }
0x45b0   :  { %v8687_v59 = vadd.f32 %v9531_v58, %v12483_v33  ;;  %v10031_v33 = vld [vmem:[%s12871_s5 + $0xc0] sm:$0xff] }
0x45b1   :  { %v8681_v10 = vpop.f32.mrf.mxu1 }
0x45b2   :  { %v8682_v15 = vadd.f32 %v8681_v10, %v12486_v54  ;;  %9532 = vmatprep.subr.mxu0 %v8687_v59  ;;  %v10032_v54 = vld [vmem:[%s12871_s5 + $0xb0] sm:$0xff] }
0x45b3   :  { %9533 = vmatpush3.msra.mxu0 %v8687_v59 }
0x45b4   :  { %9534 = vmatprep.subr.mxu0 %v8682_v15 }
0x45b5   :  { %9535 = vmatpush3.msra.mxu0 %v8682_v15  ;;  %v5181_v15 = vrot.slane %v13432_v46, 7 }
0x45b6   :  { %9537 = vmatmul.mubr.msk.f32.vlgmr.msra.gmra.mxu0 %vm373_vm1, %v10029_v6  ;;  %8856 = vmatprep.subr.mxu0 %v10030_v1 }
0x45b7   :  { %8857 = vmatpush1.msra.mxu0 %v10031_v33  ;;  %8906 = vmatprep.mubr.f32.mxu0 %v13128_v9 }
0x45b8   :  { %8858 = vmatprep.subr.mxu0 %v10032_v54 }
0x45b9   :  { %8859 = vmatpush1.msra.mxu0 %v10033_v28 }
0x45ba   :  { %8860 = vmatprep.subr.mxu0 %v10034_v13 }
0x45bb   :  { %8861 = vmatpush1.msra.mxu0 %v10035_v4 }
0x45bc   :  { %8862 = vmatprep.subr.mxu0 %v10036_v26  ;;  %v5112_v26 = vpop.permute.xlu0 %5111 }
0x45bd   :  { %8863 = vmatpush1.msra.mxu0 %v10037_v41 }
0x45be   :  { %8864 = vmatprep.subr.mxu0 %v10038_v5 }
0x45bf   :  { %8865 = vmatpush1.msra.mxu0 %v10039_v39 }
0x45c0   :  { %8866 = vmatprep.subr.mxu0 %v10040_v52  ;;  %v12774_v41 = vpop.permute.xlu0 %5128  ;;  %v5127_v52 = vpop.permute.xlu1 %5126 }
0x45c1   :  { %8867 = vmatpush1.msra.mxu0 %v10041_v25 }
0x45c2   :  { %8868 = vmatprep.subr.mxu0 %v10042_v40 }
0x45c3   :  { %8869 = vmatpush1.msra.mxu0 %v10043_v62 }
0x45c4   :  { %8870 = vmatprep.subr.mxu0 %v10044_v32  ;;  %v12776_v5 = vpop.permute.xlu0 %5130  ;;  %v5145_v40 = vpop.permute.xlu1 %5144 }
0x45c5   :  { %8871 = vmatpush1.msra.mxu0 %v10045_v37 }
0x45c6   :  { %8872 = vmatprep.subr.mxu0 %v10046_v60 }
0x45c7   :  { %8873 = vmatpush1.msra.mxu0 %v10047_v20 }
0x45c8   :  { %v12778_v39 = vpop.permute.xlu0 %5146  ;;  %v12784_v32 = vpop.permute.xlu1 %5163 }
0x45cc   :  { %v12780_v25 = vpop.permute.xlu0 %5148  ;;  %v12788_v60 = vpop.permute.xlu1 %5182 }
0x45d0   :  { %v12782_v62 = vpop.permute.xlu0 %5165 }
0x45d4   :  { %v12786_v37 = vpop.permute.xlu0 %5167 }
0x45d8   :  { %v12790_v20 = vpop.permute.xlu0 %5184 }
0x4676   :  { %v9538_v56 = vpop.f32.mrf.mxu0 }
0x4677   :  { %v8766_v18 = vmax.f32 %v9538_v56, 0.0 }
0x4678   :  { %v8756_v21 = vpop.f32.mrf.mxu0 }
0x4679   :  { %v8768_v2 = vmul.f32 %v8766_v18, %v12152_v51  ;;  %v8765_v53 = vmax.f32 %v8756_v21, 0.0  ;;  %v10050_v51 = vld [vmem:[%s12871_s5 + $0xb8] sm:$0xff]  ;;  %s10126_s5 = smov [#allocation5]  }
0x467b   :  { %v8767_v55 = vmul.f32 %v8765_v53, %v13438_v27  ;;  %9540 = vmatpush3.msra.mxu1 %v8768_v2 }
0x467c   :  { %9541 = vmatprep.subr.mxu1 %v13128_v9 }
0x467d   :  { %9542 = vmatpush3.msra.mxu1 %v8767_v55 }
0x467e   :  { %9544 = vmatmul.mubr.msk.f32.vlgmr.msra.gmra.mxu1 %vm373_vm1, %v10048_v49  ;;  %9546 = vmatprep.subr.mxu1 %v13128_v9  ;;  %vm5150_vm1 = vcmask 39936  }
0x467f   :  { %9547 = vmatpush3.msra.mxu1 %v10049_v43  ;;  %9564 = vmatprep.mubr.msk.f32.mxu1 %vm13437_vm5, %v13128_v9 }
0x4680   :  { %9548 = vmatprep.subr.mxu1 %v13128_v9 }
0x4681   :  { %9549 = vmatpush3.msra.mxu1 %v10050_v51 }
0x4682   :  { %9550 = vmatprep.subr.mxu1 %v13128_v9 }
0x4683   :  { %9551 = vmatpush3.msra.mxu1 %v10051_v31 }
0x4684   :  { %9552 = vmatprep.subr.mxu1 %v13128_v9 }
0x4685   :  { %9553 = vmatpush3.msra.mxu1 %v10052_v45 }
0x4686   :  { %9554 = vmatprep.subr.mxu1 %v13128_v9 }
0x4687   :  { %9555 = vmatpush3.msra.mxu1 %v10053_v38 }
0x4688   :  { %9556 = vmatprep.subr.mxu1 %v13128_v9 }
0x4689   :  { %9557 = vmatpush3.msra.mxu1 %v10054_v16 }
0x468a   :  { %9558 = vmatprep.subr.mxu1 %v13128_v9 }
0x468b   :  { %9559 = vmatpush3.msra.mxu1 %v10055_v42 }
0x468c   :  { %9560 = vmatprep.subr.mxu1 %v13128_v9 }
0x468d   :  { %9561 = vmatpush3.msra.mxu1 %v10056_v3  ;;  %v5137_v3 = vsel %vm144_vm14, 0.0, %v5127_v52 }
0x468e   :  { %9562 = vmatprep.subr.mxu1 %v13128_v9 }
0x468f   :  { %9563 = vmatpush3.msra.mxu1 %v10057_v23 }
0x473e   :  { %v8835_v63 = vpop.f32.mrf.mxu1 }
0x473f   :  { %9271 = vmatmul.mubr.msk.f32.vlgmr.msra.gmra.mxu0 %vm265_vm15, %v8835_v63  ;;  %9565 = vmatmul.mubr.msk.f32.vlgmr.msra.gmra.mxu1 %vm265_vm15, %v8835_v63  ;;  %vm5169_vm15 = vcmask 48128  }
0x4740   :  { %v9545_v47 = vpop.f32.mrf.mxu1 }
0x47ff   :  { %v12724_v48 = vpop.f32.mrf.mxu0  ;;  %v12726_v12 = vpop.f32.mrf.mxu1 }
0x4800   :  { %v8986_v61 = vrot.slane %v12724_v48, 1  ;;  %v8988_v22 = vrot.slane %v12726_v12, 1  ;;  %v9004_v8 = vrot.slane %v12724_v48, 2  ;;  %v9006_v11 = vrot.slane %v12726_v12, 2 }
0x4801   :  { %v9566_v9 = vpop.f32.mrf.mxu1  ;;  %v9022_v30 = vrot.slane %v12724_v48, 3  ;;  %v9024_v50 = vrot.slane %v12726_v12, 3  ;;  %v9040_v35 = vrot.slane %v12724_v48, 4  ;;  %v9042_v36 = vrot.slane %v12726_v12, 4  ;;  %v12750_v58 = vpop.f32.mrf.mxu0 }
0x4802   :  { %8989 = vrot.lane.b32.xlu0 %v8986_v61, %s10114_s19  ;;  %8993 = vrot.lane.b32.xlu1 %v8988_v22, %s10114_s19  ;;  %v9058_v44 = vrot.slane %v12724_v48, 5  ;;  %v9060_v19 = vrot.slane %v12726_v12, 5  ;;  %v9076_v34 = vrot.slane %v12724_v48, 6  ;;  %v9078_v14 = vrot.slane %v12726_v12, 6 }
0x4803   :  { %v9094_v59 = vrot.slane %v12724_v48, 7  ;;  %v8987_v10 = vrot.slane %v12750_v58, 1  ;;  %v9005_v6 = vrot.slane %v12750_v58, 2  ;;  %v9023_v1 = vrot.slane %v12750_v58, 3 }
0x4804   :  { %v9041_v33 = vrot.slane %v12750_v58, 4  ;;  %v9059_v54 = vrot.slane %v12750_v58, 5  ;;  %v9077_v28 = vrot.slane %v12750_v58, 6  ;;  %v9095_v13 = vrot.slane %v12750_v58, 7 }
0x4805   :  { %v9096_v4 = vrot.slane %v12726_v12, 7  ;;  %v5156_v61 = vsel %vm5150_vm1, 0.0, %v5145_v40 }
0x4806   :  { %9007 = vrot.lane.b32.xlu0 %v9004_v8, %s10118_s26  ;;  %9011 = vrot.lane.b32.xlu1 %v9006_v11, %s10118_s26  ;;  %v5138_v8 = vadd.f32 %v5137_v3, %v12589_v29  ;;  %v5096_v11 = vsel %vm4562_vm8, %v12591_v17, %v12595_v24  ;;  %v5115_v29 = vsel %vm5113_vm9, %v12597_v7, %v5112_v26 }
0x480a   :  { %9025 = vrot.lane.b32.xlu0 %v9022_v30, %s10121_s27  ;;  %9029 = vrot.lane.b32.xlu1 %v9024_v50, %s10121_s27 }
0x480e   :  { %9043 = vrot.lane.b32.xlu0 %v9040_v35, %s10106_s11  ;;  %9047 = vrot.lane.b32.xlu1 %v9042_v36, %s10106_s11  ;;  %v5085_v35 = vadd.f32 %v12585_v57, %v13432_v46 }
0x4810   :  { %v5103_v17 = vadd.f32 %v5096_v11, %v5085_v35 }
0x4812   :  { %9061 = vrot.lane.b32.xlu0 %v9058_v44, %s10122_s20  ;;  %9065 = vrot.lane.b32.xlu1 %v9060_v19, %s10122_s20  ;;  %v5157_v19 = vadd.f32 %v5156_v61, %v5138_v8  ;;  %v10125_v61 = vmov 1983009808   ;;  %v5189_v8 = vsel %vm5188_vm12, %v12788_v60, %v12790_v20 }
0x4816   :  { %9079 = vrot.lane.b32.xlu0 %v9076_v34, %s10123_s21  ;;  %9083 = vrot.lane.b32.xlu1 %v9078_v14, %s10123_s21 }
0x481a   :  { %9097 = vrot.lane.b32.xlu0 %v9094_v59, %s10124_s22  ;;  %8991 = vrot.lane.b32.xlu1 %v8987_v10, %s10114_s19 }
0x481e   :  { %5186 = vrot.lane.b32.xlu0 %v5181_v15, %s10124_s22  ;;  %9009 = vrot.lane.b32.xlu1 %v9005_v6, %s10118_s26 }
0x4822   :  { %9027 = vrot.lane.b32.xlu1 %v9023_v1, %s10121_s27 }
0x4826   :  { %9045 = vrot.lane.b32.xlu1 %v9041_v33, %s10106_s11  ;;  %v5122_v33 = vadd.f32 %v5115_v29, %v5103_v17  ;;  %s9155_s11 = sshll.u32 %s10126_s5, 4  ;;  %s9156_s11 = int_to_ptr.vmem [resolvable:$true] %s9155_s11 }
0x4827   :  { %s10078_s19 = scalar_lea.vmem %s9156_s11, 96  ;;  %p10083_p6 = scmp.lt.s32.totalorder %s9156_s11, %s9156_s11 }
0x4828   :  { %p10079_p5 = scmp.ne.s32.totalorder %s9156_s11, %s10078_s19  ;;  %p10084_p7 = scmp.lt.s32.totalorder %s10078_s19, %s10078_s19 }
0x482a   :  { %9063 = vrot.lane.b32.xlu1 %v9059_v54, %s10122_s20  ;;  %p10085_p8 = por %p10084_p7, %p10083_p6 }
0x482c   :  { %p10086_p9 = pnand %p10085_p8, %p10079_p5 }
0x482e   :  { %9081 = vrot.lane.b32.xlu1 %v9077_v28, %s10123_s21  ;;  %v5132_v28 = vsel %vm144_vm14, %v5127_v52, %v12774_v41 }
0x4832   :  { %9099 = vrot.lane.b32.xlu1 %v9095_v13, %s10124_s22 }
0x4836   :  { %9101 = vrot.lane.b32.xlu1 %v9096_v4, %s10124_s22 }
0x4874   :  { %v8994_v56 = vpop.permute.xlu1 %8993  ;;  %v8990_v18 = vpop.permute.xlu0 %8989 }
0x4875   :  { %v9000_v16 = vsel %vm4190_vm10, 0.0, %v8990_v18 }
0x4876   :  { %v9001_v63 = vadd.f32 %v9000_v16, %v12724_v48  ;;  %v5175_v48 = vsel %vm5169_vm15, 0.0, %v12784_v32  ;;  %v5139_v16 = vadd.f32 %v5132_v28, %v12601_v0 }
0x4877   :  { %v5176_v57 = vadd.f32 %v5175_v48, %v5157_v19 }
0x4878   :  { %v9012_v21 = vpop.permute.xlu1 %9011  ;;  %v9008_v53 = vpop.permute.xlu0 %9007 }
0x4879   :  { %v9018_v23 = vsel %vm4562_vm8, 0.0, %v9008_v53 }
0x487a   :  { %v9019_v30 = vadd.f32 %v9018_v23, %v9001_v63  ;;  %v5194_v23 = vsel %vm5188_vm12, 0.0, %v12788_v60 }
0x487c   :  { %v9030_v2 = vpop.permute.xlu1 %9029  ;;  %v9026_v55 = vpop.permute.xlu0 %9025 }
0x487d   :  { %v9036_v22 = vsel %vm5113_vm9, 0.0, %v9026_v55 }
0x487e   :  { %v9037_v34 = vadd.f32 %v9036_v22, %v9019_v30  ;;  %v5171_v30 = vsel %vm5169_vm15, %v12782_v62, %v12786_v37 }
0x4880   :  { %v9048_v27 = vpop.permute.xlu1 %9047  ;;  %v9044_v51 = vpop.permute.xlu0 %9043 }
0x4881   :  { %v9054_v36 = vsel %vm144_vm14, 0.0, %v9044_v51 }
0x4882   :  { %v9055_v10 = vadd.f32 %v9054_v36, %v9037_v34 }
0x4884   :  { %v12792_v49 = vpop.permute.xlu1 %9065  ;;  %v9062_v45 = vpop.permute.xlu0 %9061 }
0x4885   :  { %v9072_v24 = vsel %vm5150_vm1, 0.0, %v9062_v45 }
0x4886   :  { %v9073_v13 = vadd.f32 %v9072_v24, %v9055_v10 }
0x4888   :  { %v12794_v43 = vpop.permute.xlu1 %9083  ;;  %v9080_v47 = vpop.permute.xlu0 %9079 }
0x4889   :  { %v9090_v54 = vsel %vm5169_vm15, 0.0, %v9080_v47 }
0x488c   :  { %v8992_v31 = vpop.permute.xlu1 %8991  ;;  %v9098_v15 = vpop.permute.xlu0 %9097 }
0x488d   :  { %v8995_v9 = vsel %vm4190_vm10, %v8990_v18, %v8992_v31  ;;  %v8996_v59 = vsel %vm4190_vm10, %v8992_v31, %v8994_v56  ;;  %v5151_v56 = vsel %vm5150_vm1, %v5145_v40, %v12778_v39  ;;  %v9108_v18 = vsel %vm5188_vm12, 0.0, %v9098_v15 }
0x488e   :  { %v9002_v14 = vadd.f32 %v8995_v9, %v12750_v58  ;;  %v9003_v4 = vadd.f32 %v8996_v59, %v12726_v12  ;;  %v9091_v31 = vadd.f32 %v9090_v54, %v9073_v13  ;;  %v5133_v12 = vsel %vm144_vm14, %v12774_v41, %v12776_v5 }
0x488f   :  { %v5158_v63 = vadd.f32 %v5151_v56, %v5139_v16  ;;  %v9129_v41 = vunpack.c.l.s4 %v10125_v61  ;;  %v5140_v5 = vadd.f32 %v5133_v12, %v5122_v33 }
0x4890   :  { %v9010_v38 = vpop.permute.xlu1 %9009  ;;  %v5187_v35 = vpop.permute.xlu0 %5186 }
0x4891   :  { %v9013_v44 = vsel %vm4562_vm8, %v9008_v53, %v9010_v38  ;;  %v9014_v7 = vsel %vm4562_vm8, %v9010_v38, %v9012_v21  ;;  %v9130_v36 = vunpack.c.0.s8 %v9129_v41  ;;  %vm9146_vm8 = vcmask 291844  }
0x4892   :  { %v9020_v6 = vadd.f32 %v9013_v44, %v9002_v14  ;;  %v9021_v21 = vadd.f32 %v9014_v7, %v9003_v4  ;;  %v5195_v44 = vadd.f32 %v5194_v23, %v5176_v57 }
0x4894   :  { %v9028_v42 = vpop.permute.xlu1 %9027 }
0x4895   :  { %v9031_v46 = vsel %vm5113_vm9, %v9026_v55, %v9028_v42  ;;  %v9032_v53 = vsel %vm5113_vm9, %v9028_v42, %v9030_v2  ;;  %v5170_v2 = vsel %vm5169_vm15, %v12784_v32, %v12782_v62  ;;  %v9109_v42 = vadd.f32 %v9108_v18, %v9091_v31 }
0x4896   :  { %v9038_v26 = vadd.f32 %v9031_v46, %v9020_v6  ;;  %v5177_v9 = vadd.f32 %v5170_v2, %v5158_v63  ;;  %v13439_v46 = vld [vmem:[#allocation8_spill] sm:$0xff] }
0x4897   :  { %v9133_v10 = vsub.s32 %v9130_v36, %v13439_v46 }
0x4898   :  { %v9046_v50 = vpop.permute.xlu1 %9045  ;;  %v5196_v19 = vadd.f32 %v5189_v8, %v5177_v9 }
0x4899   :  { %v9049_v58 = vsel %vm144_vm14, %v9044_v51, %v9046_v50  ;;  %v9050_v52 = vsel %vm144_vm14, %v9046_v50, %v9048_v27  ;;  %v5152_v27 = vsel %vm5150_vm1, %v12778_v39, %v12780_v25  ;;  %v9115_v50 = vrot.slane %v9109_v42, 7 }
0x489a   :  { %v9056_v38 = vadd.f32 %v9049_v58, %v9038_v26  ;;  %v5159_v48 = vadd.f32 %v5152_v27, %v5140_v5  ;;  %vm9144_vm14 = vcmask 1043458  }
0x489b   :  { %v9121_v24 = vsel %vm640_vm3, %v5195_v44, %v9115_v50  ;;  %vm9145_vm10 = vmor %vm9144_vm14, %vm523_vm2 }
0x489c   :  { %v9064_v1 = vpop.permute.xlu1 %9063  ;;  %v5178_v14 = vadd.f32 %v5171_v30, %v5159_v48  ;;  %vm9147_vm13 = vmor %vm9146_vm8, %vm9145_vm10 }
0x489d   :  { %v9067_v55 = vsel %vm5150_vm1, %v9062_v45, %v9064_v1  ;;  %v9039_v45 = vadd.f32 %v9032_v53, %v9021_v21  ;;  %v9068_v0 = vsel %vm5150_vm1, %v9064_v1, %v12792_v49 }
0x489e   :  { %v9074_v3 = vadd.f32 %v9067_v55, %v9056_v38 }
0x48a0   :  { %v9082_v51 = vpop.permute.xlu1 %9081 }
0x48a1   :  { %v9085_v40 = vsel %vm5169_vm15, %v9080_v47, %v9082_v51  ;;  %v9057_v47 = vadd.f32 %v9050_v52, %v9039_v45  ;;  %v9086_v11 = vsel %vm5169_vm15, %v9082_v51, %v12794_v43  ;;  %v5190_v43 = vsel %vm5188_vm12, %v12790_v20, %v5187_v35 }
0x48a2   :  { %v9092_v22 = vadd.f32 %v9085_v40, %v9074_v3  ;;  %v5197_v57 = vadd.f32 %v5190_v43, %v5178_v14 }
0x48a3   :  { %v9075_v39 = vadd.f32 %v9068_v0, %v9057_v47 }
0x48a4   :  { %v9100_v32 = vpop.permute.xlu1 %9099 }
0x48a5   :  { %v9103_v49 = vsel %vm5188_vm12, %v9098_v15, %v9100_v32  ;;  %v9093_v29 = vadd.f32 %v9086_v11, %v9075_v39 }
0x48a6   :  { %v9110_v25 = vadd.f32 %v9103_v49, %v9092_v22 }
0x48a8   :  { %v9116_v34 = vrot.slane %v9110_v25, 7  ;;  %v9102_v60 = vpop.permute.xlu1 %9101 }
0x48a9   :  { %v9104_v17 = vsel %vm5188_vm12, %v9100_v32, %v9102_v60 }
0x48aa   :  { %v9122_v62 = vsel %vm640_vm3, %v5196_v19, %v9116_v34  ;;  %v9111_v37 = vadd.f32 %v9104_v17, %v9093_v29 }
0x48ab   :  { %v9127_v59 = vcombine.low %v9121_v24, %v9122_v62 }
0x48ac   :  { %v9117_v15 = vrot.slane %v9111_v37, 7 }
0x48ad   :  { %v9134_v20 = vrot.slane %v9127_v59, %v9133_v10 }
0x48ae   :  { %v9123_v6 = vsel %vm640_vm3, %v5197_v57, %v9117_v15 }
0x48af   :  { %v9141_v1 = vrot.slane %v9123_v6, %v9133_v10 }
0x48b1   :  { %v9142_v33 = vcombine.low %v9134_v20, %v9141_v1 }
0x48b3   :  { %9148 = vst.msk [vmem:[#allocation5] sm:$0x3f] %vm9147_vm13, %v9142_v33 }
0x48b4   :  { %10089 = shalt.err (!%p10086_p9)
}
0x48b5   :  { %9158 = dma.vmem_to_hbm [thread:$0]  %s9156_s11, 96, %s12872_s6, [#allocation4]  }
0x48b6   :  { %10100 = dma.done.wait [#allocation4], 96  }
0x48b7   :  { %10101 = vsyncadd [#allocation4], 4294967200 }
0x48b8   :  { %9162 = vsyncpa [#allocation3], 1 }
0x48b9   :  { %9163 = vsyncpa [#allocation4], 1 }

</bundles_post_ra>
